<compile_context>
chip_gen: v7x
topology: tpu7x:2x2x1
jax: 0.10.0
libtpu: 0.0.40
codegen_flags: <defaults>
</compile_context>

<pallas_src>
import math
import numpy as np
import jax
import jax.numpy as jnp
from jax.experimental import pallas as pl
from jax.experimental.pallas import tpu as pltpu

NEG_SLOPE = 0.01  # nn.LeakyReLU default
N_GRID = 45
N_POINTS = N_GRID * N_GRID  # 2025


def _leaky(v):
    return jnp.maximum(v, NEG_SLOPE * v)


def folding_dec_kernel(gpts_ref, biascode_ref, w1p_ref, wstack_ref, bstack_ref,
                       w4b_ref, b4b_ref, out_ref):
    """One (batch, point-tile) step of the fused double-fold MLP.

    gpts_ref     : (tile_n, 2)   grid points
    biascode_ref : (1, 2, H)     row 0: x@W1a_code + b1a ; row 1: x@W1b_code + b4a@W1b_pt + b1b
    w1p_ref      : (2, H)        fold1 layer-1 point-feature weights
    wstack_ref   : (5, H, H)     [W2a, W3a, W4a@W1b_pt, W2b, W3b]
    bstack_ref   : (4, H)        [b2a, b3a, b2b, b3b]
    w4b_ref      : (H, 3), b4b_ref: (1, 3)
    out_ref      : (1, tile_n, 3)
    """
    g = gpts_ref[...]                                   # (tile_n, 2)
    bc = biascode_ref[0]                                # (2, H)  per-batch biases
    bs = bstack_ref[...]                                # (4, H)

    # fold1 layers 1-3
    h = _leaky(jnp.dot(g, w1p_ref[...], preferred_element_type=jnp.float32)
               + bc[0:1, :])
    h = _leaky(jnp.dot(h, wstack_ref[0], preferred_element_type=jnp.float32)
               + bs[0:1, :])
    h = _leaky(jnp.dot(h, wstack_ref[1], preferred_element_type=jnp.float32)
               + bs[1:2, :])
    # fold1.conv4 fused with fold2.conv1 (no activation in between):
    #   h @ (W4a @ W1b_pt) + [x @ W1b_code + b4a @ W1b_pt + b1b]
    h = _leaky(jnp.dot(h, wstack_ref[2], preferred_element_type=jnp.float32)
               + bc[1:2, :])
    # fold2 layers 2-3
    h = _leaky(jnp.dot(h, wstack_ref[3], preferred_element_type=jnp.float32)
               + bs[2:3, :])
    h = _leaky(jnp.dot(h, wstack_ref[4], preferred_element_type=jnp.float32)
               + bs[3:4, :])
    # fold2.conv4
    out = jnp.dot(h, w4b_ref[...], preferred_element_type=jnp.float32) + b4b_ref[...]
    out_ref[...] = out[None].astype(out_ref.dtype)


def make_grid_points():
    # Matches GridSamplingLayer with meshgrid=[[-1,1,45],[-1,1,45]] (np default 'xy')
    lin = np.linspace(-1.0, 1.0, N_GRID)
    r0, r1 = np.meshgrid(lin, lin)
    g = np.stack([r0.reshape(-1), r1.reshape(-1)], axis=-1).astype(np.float32)
    return g  # (2025, 2)


def init_params(key, F, H):
    def conv_init(k, fan_in, fan_out):
        k1, k2 = jax.random.split(k)
        bound = 1.0 / math.sqrt(fan_in)
        w = jax.random.uniform(k1, (fan_in, fan_out), jnp.float32, -bound, bound)
        b = jax.random.uniform(k2, (1, fan_out), jnp.float32, -bound, bound)
        return w, b

    keys = jax.random.split(key, 8)
    w1a, b1a = conv_init(keys[0], F + 2, H)
    w2a, b2a = conv_init(keys[1], H, H)
    w3a, b3a = conv_init(keys[2], H, H)
    w4a, b4a = conv_init(keys[3], H, 3)
    w1b, b1b = conv_init(keys[4], F + 3, H)
    w2b, b2b = conv_init(keys[5], H, H)
    w3b, b3b = conv_init(keys[6], H, H)
    w4b, b4b = conv_init(keys[7], H, 3)
    return dict(
        fold1=(w1a, b1a, w2a, b2a, w3a, b3a, w4a, b4a),
        fold2=(w1b, b1b, w2b, b2b, w3b, b3b, w4b, b4b),
    )


def folding_net_dec(x, params, *, tile_n=1024):
    B, F = x.shape
    w1a, b1a, w2a, b2a, w3a, b3a, w4a, b4a = params["fold1"]
    w1b, b1b, w2b, b2b, w3b, b3b, w4b, b4b = params["fold2"]
    H = w2a.shape[0]

    n_pad = pl.cdiv(N_POINTS, tile_n) * tile_n          # 2025 -> 2048
    n_tiles = n_pad // tile_n

    gpts = make_grid_points()
    gpts = np.pad(gpts, ((0, n_pad - N_POINTS), (0, 0)))
    gpts = jnp.asarray(gpts)                            # (n_pad, 2)

    # Split layer-1 weights into [codeword part | point part].
    w1a_c, w1a_p = w1a[:F], w1a[F:]                     # (F, H), (2, H)
    w1b_c, w1b_p = w1b[:F], w1b[F:]                     # (F, H), (3, H)

    # Rank-1 codeword contribution folded into per-batch layer-1 biases.
    bias1a = x @ w1a_c + b1a                            # (B, H)
    bias1b = x @ w1b_c + b4a @ w1b_p + b1b              # (B, H)
    bias_code = jnp.stack([bias1a, bias1b], axis=1)     # (B, 2, H)

    # Fuse fold1.conv4 into fold2.conv1 (no activation between them).
    w_fused = w4a @ w1b_p                               # (H, H)

    # Pack weight operands: 5x(H,H) and 4x(1,H).
    wstack = jnp.stack([w2a, w3a, w_fused, w2b, w3b], axis=0)   # (5, H, H)
    bstack = jnp.concatenate([b2a, b3a, b2b, b3b], axis=0)      # (4, H)

    def full(shape):
        return pl.BlockSpec(shape, lambda b, n: (0,) * len(shape))

    in_specs = [
        pl.BlockSpec((tile_n, 2), lambda b, n: (n, 0)),     # grid points
        pl.BlockSpec((1, 2, H), lambda b, n: (b, 0, 0)),    # per-batch fused biases
        full((2, H)),                                       # fold1 layer-1 point weights
        full((5, H, H)),                                    # stacked HxH weights
        full((4, H)),                                       # stacked hidden biases
        full((H, 3)),                                       # fold2 layer-4 weight
        full((1, 3)),                                       # fold2 layer-4 bias
    ]
    out_spec = pl.BlockSpec((1, tile_n, 3), lambda b, n: (b, n, 0))

    out = pl.pallas_call(
        folding_dec_kernel,
        out_shape=jax.ShapeDtypeStruct((B, n_pad, 3), jnp.float32),
        grid=(B, n_tiles),
        in_specs=in_specs,
        out_specs=out_spec,
        compiler_params=pltpu.CompilerParams(
            dimension_semantics=("parallel", "parallel")),
    )(gpts, bias_code, w1a_p, wstack, bstack, w4b, b4b)

    return out[:, :N_POINTS, :]                          # (B, 2025, 3)


def reference(x, params):
    """Pure-JAX reference matching the PyTorch forward (channels-last)."""
    B, F = x.shape
    gpts = jnp.asarray(make_grid_points())
    c = jnp.broadcast_to(x[:, None, :], (B, N_POINTS, F))
    g = jnp.broadcast_to(gpts[None], (B, N_POINTS, 2))

    def fold(inp, w1, b1, w2, b2, w3, b3, w4, b4):
        h = _leaky(inp @ w1 + b1)
        h = _leaky(h @ w2 + b2)
        h = _leaky(h @ w3 + b3)
        return h @ w4 + b4

    p1 = fold(jnp.concatenate([c, g], axis=-1), *params["fold1"])
    p2 = fold(jnp.concatenate([c, p1], axis=-1), *params["fold2"])
    return p2


if __name__ == "__main__":
    B, F, H = 2, 8, 64   # small shapes: batch=2, input_features=8, hidden=64
    key = jax.random.PRNGKey(0)
    k_param, k_x = jax.random.split(key)
    params = init_params(k_param, F, H)
    x = jax.random.normal(k_x, (B, F), jnp.float32)

    out = folding_net_dec(x, params)
    out = jax.block_until_ready(out)

    ref = jax.block_until_ready(reference(x, params))
    assert out.shape == (B, N_POINTS, 3), out.shape
    np.testing.assert_allclose(np.asarray(out), np.asarray(ref), rtol=1e-4, atol=1e-4)
    print("KERNEL_OK")
</pallas_src>

<mosaic_0001>
module attributes {stable_mosaic.version = 11 : i64} {
  func.func @folding_dec_kernel(%arg0: i32, %arg1: i32, %arg2: memref<1024x2xf32, #tpu.memory_space<vmem>>, %arg3: memref<1x2x64xf32, #tpu.memory_space<vmem>>, %arg4: memref<2x64xf32, #tpu.memory_space<vmem>>, %arg5: memref<5x64x64xf32, #tpu.memory_space<vmem>>, %arg6: memref<4x64xf32, #tpu.memory_space<vmem>>, %arg7: memref<64x3xf32, #tpu.memory_space<vmem>>, %arg8: memref<1x3xf32, #tpu.memory_space<vmem>>, %arg9: memref<1x1024x3xf32, #tpu.memory_space<vmem>>) attributes {dimension_semantics = [#tpu.dimension_semantics<parallel>, #tpu.dimension_semantics<parallel>], iteration_bounds = array<i64: 2, 2>, scalar_prefetch = 0 : i64, scratch_operands = 0 : i64, tpu.core_type = #tpu.core_type<tc>, window_params = [{transform_indices = @transform_0, window_bounds = array<i64: 1024, 2>}, {transform_indices = @transform_1, window_bounds = array<i64: 1, 2, 64>}, {pipeline_mode = #tpu.pipeline_mode<synchronous>, transform_indices = @transform_2, window_bounds = array<i64: 2, 64>}, {pipeline_mode = #tpu.pipeline_mode<synchronous>, transform_indices = @transform_3, window_bounds = array<i64: 5, 64, 64>}, {pipeline_mode = #tpu.pipeline_mode<synchronous>, transform_indices = @transform_4, window_bounds = array<i64: 4, 64>}, {pipeline_mode = #tpu.pipeline_mode<synchronous>, transform_indices = @transform_5, window_bounds = array<i64: 64, 3>}, {pipeline_mode = #tpu.pipeline_mode<synchronous>, transform_indices = @transform_6, window_bounds = array<i64: 1, 3>}, {transform_indices = @transform_7, window_bounds = array<i64: 1, 1024, 3>}]} {
    %c0 = arith.constant 0 : index
    %c0_0 = arith.constant 0 : index
    %0 = vector.load %arg2[%c0, %c0_0] : memref<1024x2xf32, #tpu.memory_space<vmem>>, vector<1024x2xf32>
    %c0_1 = arith.constant 0 : index
    %c0_2 = arith.constant 0 : index
    %c0_3 = arith.constant 0 : index
    %1 = vector.load %arg3[%c0_1, %c0_2, %c0_3] : memref<1x2x64xf32, #tpu.memory_space<vmem>>, vector<1x2x64xf32>
    %2 = vector.shape_cast %1 : vector<1x2x64xf32> to vector<2x64xf32>
    %c0_4 = arith.constant 0 : index
    %c0_5 = arith.constant 0 : index
    %3 = vector.load %arg6[%c0_4, %c0_5] : memref<4x64xf32, #tpu.memory_space<vmem>>, vector<4x64xf32>
    %c0_6 = arith.constant 0 : index
    %c0_7 = arith.constant 0 : index
    %4 = vector.load %arg4[%c0_6, %c0_7] : memref<2x64xf32, #tpu.memory_space<vmem>>, vector<2x64xf32>
    %cst = arith.constant dense<0.000000e+00> : vector<1024x64xf32>
    %5 = tpu.matmul %0, %4, %cst {dimension_numbers = #tpu.dot_dimension_numbers<[1], [0], [0], [1], [0, 0, 1, 1], [], []>} : vector<1024x2xf32>, vector<2x64xf32>, vector<1024x64xf32> -> vector<1024x64xf32>
    %6 = vector.extract_strided_slice %2 {offsets = [0, 0], sizes = [1, 64], strides = [1, 1]} : vector<2x64xf32> to vector<1x64xf32>
    %7 = vector.broadcast %6 : vector<1x64xf32> to vector<1024x64xf32>
    %8 = arith.addf %5, %7 : vector<1024x64xf32>
    %cst_8 = arith.constant 0.00999999977 : f32
    %9 = vector.broadcast %cst_8 : f32 to vector<1024x64xf32>
    %10 = arith.mulf %9, %8 : vector<1024x64xf32>
    %11 = arith.maximumf %8, %10 : vector<1024x64xf32>
    %c0_9 = arith.constant 0 : index
    %c0_10 = arith.constant 0 : index
    %c0_11 = arith.constant 0 : index
    %12 = vector.load %arg5[%c0_9, %c0_10, %c0_11] : memref<5x64x64xf32, #tpu.memory_space<vmem>>, vector<1x64x64xf32>
    %13 = vector.shape_cast %12 : vector<1x64x64xf32> to vector<64x64xf32>
    %cst_12 = arith.constant dense<0.000000e+00> : vector<1024x64xf32>
    %14 = tpu.matmul %11, %13, %cst_12 {dimension_numbers = #tpu.dot_dimension_numbers<[1], [0], [0], [1], [0, 0, 1, 1], [], []>} : vector<1024x64xf32>, vector<64x64xf32>, vector<1024x64xf32> -> vector<1024x64xf32>
    %15 = vector.extract_strided_slice %3 {offsets = [0, 0], sizes = [1, 64], strides = [1, 1]} : vector<4x64xf32> to vector<1x64xf32>
    %16 = vector.broadcast %15 : vector<1x64xf32> to vector<1024x64xf32>
    %17 = arith.addf %14, %16 : vector<1024x64xf32>
    %cst_13 = arith.constant 0.00999999977 : f32
    %18 = vector.broadcast %cst_13 : f32 to vector<1024x64xf32>
    %19 = arith.mulf %18, %17 : vector<1024x64xf32>
    %20 = arith.maximumf %17, %19 : vector<1024x64xf32>
    %c1 = arith.constant 1 : index
    %c0_14 = arith.constant 0 : index
    %c0_15 = arith.constant 0 : index
    %21 = vector.load %arg5[%c1, %c0_14, %c0_15] : memref<5x64x64xf32, #tpu.memory_space<vmem>>, vector<1x64x64xf32>
    %22 = vector.shape_cast %21 : vector<1x64x64xf32> to vector<64x64xf32>
    %cst_16 = arith.constant dense<0.000000e+00> : vector<1024x64xf32>
    %23 = tpu.matmul %20, %22, %cst_16 {dimension_numbers = #tpu.dot_dimension_numbers<[1], [0], [0], [1], [0, 0, 1, 1], [], []>} : vector<1024x64xf32>, vector<64x64xf32>, vector<1024x64xf32> -> vector<1024x64xf32>
    %24 = vector.extract_strided_slice %3 {offsets = [1, 0], sizes = [1, 64], strides = [1, 1]} : vector<4x64xf32> to vector<1x64xf32>
    %25 = vector.broadcast %24 : vector<1x64xf32> to vector<1024x64xf32>
    %26 = arith.addf %23, %25 : vector<1024x64xf32>
    %cst_17 = arith.constant 0.00999999977 : f32
    %27 = vector.broadcast %cst_17 : f32 to vector<1024x64xf32>
    %28 = arith.mulf %27, %26 : vector<1024x64xf32>
    %29 = arith.maximumf %26, %28 : vector<1024x64xf32>
    %c2 = arith.constant 2 : index
    %c0_18 = arith.constant 0 : index
    %c0_19 = arith.constant 0 : index
    %30 = vector.load %arg5[%c2, %c0_18, %c0_19] : memref<5x64x64xf32, #tpu.memory_space<vmem>>, vector<1x64x64xf32>
    %31 = vector.shape_cast %30 : vector<1x64x64xf32> to vector<64x64xf32>
    %cst_20 = arith.constant dense<0.000000e+00> : vector<1024x64xf32>
    %32 = tpu.matmul %29, %31, %cst_20 {dimension_numbers = #tpu.dot_dimension_numbers<[1], [0], [0], [1], [0, 0, 1, 1], [], []>} : vector<1024x64xf32>, vector<64x64xf32>, vector<1024x64xf32> -> vector<1024x64xf32>
    %33 = vector.extract_strided_slice %2 {offsets = [1, 0], sizes = [1, 64], strides = [1, 1]} : vector<2x64xf32> to vector<1x64xf32>
    %34 = vector.broadcast %33 : vector<1x64xf32> to vector<1024x64xf32>
    %35 = arith.addf %32, %34 : vector<1024x64xf32>
    %cst_21 = arith.constant 0.00999999977 : f32
    %36 = vector.broadcast %cst_21 : f32 to vector<1024x64xf32>
    %37 = arith.mulf %36, %35 : vector<1024x64xf32>
    %38 = arith.maximumf %35, %37 : vector<1024x64xf32>
    %c3 = arith.constant 3 : index
    %c0_22 = arith.constant 0 : index
    %c0_23 = arith.constant 0 : index
    %39 = vector.load %arg5[%c3, %c0_22, %c0_23] : memref<5x64x64xf32, #tpu.memory_space<vmem>>, vector<1x64x64xf32>
    %40 = vector.shape_cast %39 : vector<1x64x64xf32> to vector<64x64xf32>
    %cst_24 = arith.constant dense<0.000000e+00> : vector<1024x64xf32>
    %41 = tpu.matmul %38, %40, %cst_24 {dimension_numbers = #tpu.dot_dimension_numbers<[1], [0], [0], [1], [0, 0, 1, 1], [], []>} : vector<1024x64xf32>, vector<64x64xf32>, vector<1024x64xf32> -> vector<1024x64xf32>
    %42 = vector.extract_strided_slice %3 {offsets = [2, 0], sizes = [1, 64], strides = [1, 1]} : vector<4x64xf32> to vector<1x64xf32>
    %43 = vector.broadcast %42 : vector<1x64xf32> to vector<1024x64xf32>
    %44 = arith.addf %41, %43 : vector<1024x64xf32>
    %cst_25 = arith.constant 0.00999999977 : f32
    %45 = vector.broadcast %cst_25 : f32 to vector<1024x64xf32>
    %46 = arith.mulf %45, %44 : vector<1024x64xf32>
    %47 = arith.maximumf %44, %46 : vector<1024x64xf32>
    %c4 = arith.constant 4 : index
    %c0_26 = arith.constant 0 : index
    %c0_27 = arith.constant 0 : index
    %48 = vector.load %arg5[%c4, %c0_26, %c0_27] : memref<5x64x64xf32, #tpu.memory_space<vmem>>, vector<1x64x64xf32>
    %49 = vector.shape_cast %48 : vector<1x64x64xf32> to vector<64x64xf32>
    %cst_28 = arith.constant dense<0.000000e+00> : vector<1024x64xf32>
    %50 = tpu.matmul %47, %49, %cst_28 {dimension_numbers = #tpu.dot_dimension_numbers<[1], [0], [0], [1], [0, 0, 1, 1], [], []>} : vector<1024x64xf32>, vector<64x64xf32>, vector<1024x64xf32> -> vector<1024x64xf32>
    %51 = vector.extract_strided_slice %3 {offsets = [3, 0], sizes = [1, 64], strides = [1, 1]} : vector<4x64xf32> to vector<1x64xf32>
    %52 = vector.broadcast %51 : vector<1x64xf32> to vector<1024x64xf32>
    %53 = arith.addf %50, %52 : vector<1024x64xf32>
    %cst_29 = arith.constant 0.00999999977 : f32
    %54 = vector.broadcast %cst_29 : f32 to vector<1024x64xf32>
    %55 = arith.mulf %54, %53 : vector<1024x64xf32>
    %56 = arith.maximumf %53, %55 : vector<1024x64xf32>
    %c0_30 = arith.constant 0 : index
    %c0_31 = arith.constant 0 : index
    %57 = vector.load %arg7[%c0_30, %c0_31] : memref<64x3xf32, #tpu.memory_space<vmem>>, vector<64x3xf32>
    %cst_32 = arith.constant dense<0.000000e+00> : vector<1024x3xf32>
    %58 = tpu.matmul %56, %57, %cst_32 {dimension_numbers = #tpu.dot_dimension_numbers<[1], [0], [0], [1], [0, 0, 1, 1], [], []>} : vector<1024x64xf32>, vector<64x3xf32>, vector<1024x3xf32> -> vector<1024x3xf32>
    %c0_33 = arith.constant 0 : index
    %c0_34 = arith.constant 0 : index
    %59 = vector.load %arg8[%c0_33, %c0_34] : memref<1x3xf32, #tpu.memory_space<vmem>>, vector<1x3xf32>
    %60 = vector.broadcast %59 : vector<1x3xf32> to vector<1024x3xf32>
    %61 = arith.addf %58, %60 : vector<1024x3xf32>
    %62 = vector.shape_cast %61 : vector<1024x3xf32> to vector<1x1024x3xf32>
    %c0_35 = arith.constant 0 : index
    %c0_36 = arith.constant 0 : index
    %c0_37 = arith.constant 0 : index
    %63 = vector.load %arg9[%c0_35, %c0_36, %c0_37] : memref<1x1024x3xf32, #tpu.memory_space<vmem>>, vector<1x1024x3xf32>
    tpu.vector_store %arg9[%c0_35, %c0_36, %c0_37], %62 {strides = array<i32>} : memref<1x1024x3xf32, #tpu.memory_space<vmem>>, vector<1x1024x3xf32>,
    return
  }
  func.func @transform_0(%arg0: i32, %arg1: i32) -> (i32, i32) {
    %c0_i32 = arith.constant 0 : i32
    %c0_i32_0 = arith.constant 0 : i32
    return %arg1, %c0_i32 : i32, i32
  }
  func.func @transform_1(%arg0: i32, %arg1: i32) -> (i32, i32, i32) {
    %c0_i32 = arith.constant 0 : i32
    %c0_i32_0 = arith.constant 0 : i32
    %c0_i32_1 = arith.constant 0 : i32
    return %arg0, %c0_i32, %c0_i32_0 : i32, i32, i32
  }
  func.func @transform_2(%arg0: i32, %arg1: i32) -> (i32, i32) {
    %c0_i32 = arith.constant 0 : i32
    %c0_i32_0 = arith.constant 0 : i32
    %c0_i32_1 = arith.constant 0 : i32
    return %c0_i32, %c0_i32_0 : i32, i32
  }
  func.func @transform_3(%arg0: i32, %arg1: i32) -> (i32, i32, i32) {
    %c0_i32 = arith.constant 0 : i32
    %c0_i32_0 = arith.constant 0 : i32
    %c0_i32_1 = arith.constant 0 : i32
    %c0_i32_2 = arith.constant 0 : i32
    return %c0_i32, %c0_i32_0, %c0_i32_1 : i32, i32, i32
  }
  func.func @transform_4(%arg0: i32, %arg1: i32) -> (i32, i32) {
    %c0_i32 = arith.constant 0 : i32
    %c0_i32_0 = arith.constant 0 : i32
    %c0_i32_1 = arith.constant 0 : i32
    return %c0_i32, %c0_i32_0 : i32, i32
  }
  func.func @transform_5(%arg0: i32, %arg1: i32) -> (i32, i32) {
    %c0_i32 = arith.constant 0 : i32
    %c0_i32_0 = arith.constant 0 : i32
    %c0_i32_1 = arith.constant 0 : i32
    return %c0_i32, %c0_i32_0 : i32, i32
  }
  func.func @transform_6(%arg0: i32, %arg1: i32) -> (i32, i32) {
    %c0_i32 = arith.constant 0 : i32
    %c0_i32_0 = arith.constant 0 : i32
    %c0_i32_1 = arith.constant 0 : i32
    return %c0_i32, %c0_i32_0 : i32, i32
  }
  func.func @transform_7(%arg0: i32, %arg1: i32) -> (i32, i32, i32) {
    %c0_i32 = arith.constant 0 : i32
    %c0_i32_0 = arith.constant 0 : i32
    return %arg0, %arg1, %c0_i32 : i32, i32, i32
  }
}

</mosaic_0001>

<bundles_post_ra>
// kernel: tpu_custom_call.1
= control target key start
LH: loop header
LB: loop body
LE: loop exit
PB: predicated region body
PF: predicated region fallthrough
CT: control target
= control target key end

     0   :  { %s16540_s0 = inlined_call_operand.vmem [shape: f32[2048,2], index: 0, kind: input, shape index: {}]   ;;  %s16541_s1 = inlined_call_operand.hbm [shape: f32[2,2,64], index: 1, kind: input, shape index: {}]   ;;  %s16542_s2 = inlined_call_operand.hbm [shape: f32[2,64], index: 2, kind: input, shape index: {}]   ;;  %s16543_s3 = inlined_call_operand.hbm [shape: f32[5,64,64], index: 3, kind: input, shape index: {}]   ;;  %s16544_s4 = inlined_call_operand.hbm [shape: f32[4,64], index: 4, kind: input, shape index: {}]   ;;  %s16545_s5 = inlined_call_operand.vmem [shape: f32[64,3], index: 5, kind: input, shape index: {}]   ;;  %s16546_s6 = inlined_call_operand.hbm [shape: f32[1,3], index: 6, kind: input, shape index: {}]   ;;  %s16547_s7 = inlined_call_operand.vmem [shape: f32[2,2048,3], index: 7, kind: output, shape index: {}]  }
   0x1   :  { %16554 = sst [smem:[#allocation25_spill]] %s16542_s2 }
   0x2   :  { %16555 = sst [smem:[#allocation26_spill]] %s16544_s4 }
   0x3   :  { %16556 = sst [smem:[#allocation27_spill]] %s16547_s7 }
   0x4   :  { %12 = vsyncpa [#allocation3], 0 }
   0x5   :  { %14 = vsyncpa [#allocation3 + $0x1], 0 }
   0x6   :  { %15 = vsyncpa [#allocation5], 0 }
   0x7   :  { %16 = vsyncpa [#allocation8], 0  ;;  %s13835_s24 = smov 0   ;;  %s13837_s25 = smov 0  }
   0x8   :  { %s13839_s26 = smov 0   ;;  %s13841_s27 = smov 0  }
   0x9   :  { %s13843_s28 = smov 0   ;;  %s13845_s29 = smov 0  }
   0xa   :  { %s13847_s30 = smov 0   ;;  %s13849_s8 = smov 0  }
   0xb LB: > { %s10046_s9 = sadd.s32 4294967295, %s13786_s8   ;;  %p10048_p0 = scmp.ge.s32.totalorder %s13786_s8, 1  ;;  %s13786_s8 = sphi %s13849_s8, %s22_s8   ;;  %s13782_s30 = sphi %s13847_s30, %s16601_s30   ;;  %s13778_s29 = sphi %s13845_s29, %s16600_s29   ;;  %s13774_s28 = sphi %s13843_s28, %s16599_s28   ;;  %s13770_s27 = sphi %s13841_s27, %s16598_s27   ;;  %s13766_s26 = sphi %s13839_s26, %s16597_s26   ;;  %s13762_s25 = sphi %s13837_s25, %s16596_s25   ;;  %s13758_s24 = sphi %s13835_s24, %s16595_s24  }
   0xc   : > { %p13877_p1 = scmp.eq.s32.totalorder %s10046_s9, 0  ;;  %p224_p2 = scmp.lt.s32.totalorder %s13786_s8, 5 }
   0xd   : > { %s13788_s12 = smov [#allocation4]   ;;  %s13789_s14 = smov [#allocation7]  }
   0xe   : > { %s16557_s10 = scalar_select %p13877_p1, 1, 0 }
   0xf   : > { %p13882_p3 = pnand %p10048_p0, %p224_p2  ;;  %s237_s13 = sshll.u32 %s13788_s12, 4  ;;  %s238_s13 = int_to_ptr.vmem [resolvable:$true] %s237_s13 }
  0x10   : > { %s261_s15 = sshll.u32 %s13789_s14, 4  ;;  %s13790_s17 = smov [#allocation6]   ;;  %s13894_s15 = int_to_ptr.vmem [resolvable:$true] %s261_s15 }
  0x11   : > { %s16558_s11 = scalar_select %p13882_p3, 1, 0 }
  0x12   : > { %p13470_p4 = pneg %p13882_p3  ;;  %s247_s18 = sshll.u32 %s13790_s17, 4  ;;  %s13896_s18 = int_to_ptr.vmem [resolvable:$true] %s247_s18 }
  0x13   : > { %s16560_s2 = sld [smem:[#allocation25_spill]] }
  0x14   : > { %p13890_p5 = pnand %p13470_p4, %p13877_p1 }
  0x16   : > { %p13906_p7 = pneg %p13890_p5 }
  0x19   : > { %s13570_s21 = scalar_lea.hbm %s16560_s2, 32 }
  0x1a   : > { %p13571_p6 = scmp.ne.s32.totalorder %s16560_s2, %s13570_s21  ;;  %p13577_p10 = scmp.lt.u32.totalorder %s13570_s21, %s16560_s2 }
  0x1c   : > { %p13573_p8 = pnand %p13906_p7, %p13571_p6 }
  0x1e   : > { %p13574_p9 = pneg %p13573_p8 }
  0x20   : > { %p13579_p11 = pnand %p13577_p10, %p13574_p9 }
  0x22   : > { %13582 = shalt.err (!%p13579_p11)
}
  0x23   : > { %s13583_s17 = scalar_lea.vmem %s238_s13, 32  ;;  %p13591_p2 = scmp.lt.s32.totalorder %s238_s13, %s238_s13 }
  0x24   : > { %p13584_p12 = scmp.ne.s32.totalorder %s238_s13, %s13583_s17  ;;  %p13592_p4 = scmp.lt.s32.totalorder %s13583_s17, %s13583_s17 }
  0x26   : > { %p13586_p13 = pnand %p13584_p12, %p13906_p7  ;;  %p13593_p3 = por %p13592_p4, %p13591_p2 }
  0x28   : > { %p13587_p0 = pneg %p13586_p13 }
  0x2a   : > { %p13594_p1 = pnand %p13593_p3, %p13587_p0 }
  0x2c   : > { %13597 = shalt.err (!%p13594_p1)
}
  0x2d   : > { %13473 = dma.hbm_to_vmem [thread:$0]  (!%p13890_p5), %s16560_s2, 32, %s238_s13, [#allocation5]  }
  0x2e   : > { %s16562_s4 = sld [smem:[#allocation26_spill]] }
  0x34   : > { %s13598_s23 = scalar_lea.hbm %s16562_s4, 64 }
  0x35   : > { %p13599_p6 = scmp.ne.s32.totalorder %s16562_s4, %s13598_s23  ;;  %p13605_p1 = scmp.lt.u32.totalorder %s13598_s23, %s16562_s4 }
  0x37   : > { %p13601_p8 = pnand %p13599_p6, %p13906_p7 }
  0x39   : > { %p13602_p9 = pneg %p13601_p8 }
  0x3b   : > { %p13607_p3 = pnand %p13605_p1, %p13602_p9 }
  0x3d   : > { %13610 = shalt.err (!%p13607_p3)
}
  0x3e   : > { %s13611_s13 = scalar_lea.vmem %s13894_s15, 64  ;;  %p13619_p13 = scmp.lt.s32.totalorder %s13894_s15, %s13894_s15 }
  0x3f   : > { %p13612_p10 = scmp.ne.s32.totalorder %s13894_s15, %s13611_s13  ;;  %p13620_p0 = scmp.lt.s32.totalorder %s13611_s13, %s13611_s13 }
  0x41   : > { %p13614_p11 = pnand %p13612_p10, %p13906_p7  ;;  %p13621_p2 = por %p13620_p0, %p13619_p13 }
  0x43   : > { %p13615_p12 = pneg %p13614_p11 }
  0x45   : > { %p13622_p4 = pnand %p13621_p2, %p13615_p12 }
  0x47   : > { %13625 = shalt.err (!%p13622_p4)
}
  0x48   : > { %13479 = dma.hbm_to_vmem [thread:$0]  (!%p13890_p5), %s16562_s4, 64, %s13894_s15, [#allocation8]  }
  0x49   : > { %s13626_s22 = scalar_lea.hbm %s16543_s3, 5120 }
  0x4a   : > { %p13627_p6 = scmp.ne.s32.totalorder %s16543_s3, %s13626_s22  ;;  %p13633_p1 = scmp.lt.u32.totalorder %s13626_s22, %s16543_s3 }
  0x4c   : > { %p13629_p8 = pnand %p13627_p6, %p13906_p7 }
  0x4e   : > { %p13630_p9 = pneg %p13629_p8 }
  0x50   : > { %p13635_p3 = pnand %p13633_p1, %p13630_p9 }
  0x52   : > { %13638 = shalt.err (!%p13635_p3)
}
  0x53   : > { %s13639_s15 = scalar_lea.vmem %s13896_s18, 5120  ;;  %p13647_p13 = scmp.lt.s32.totalorder %s13896_s18, %s13896_s18 }
  0x54   : > { %p13640_p10 = scmp.ne.s32.totalorder %s13896_s18, %s13639_s15  ;;  %p13648_p0 = scmp.lt.s32.totalorder %s13639_s15, %s13639_s15 }
  0x56   : > { %p13642_p11 = pnand %p13640_p10, %p13906_p7  ;;  %p13649_p2 = por %p13648_p0, %p13647_p13 }
  0x58   : > { %p13643_p12 = pneg %p13642_p11 }
  0x5a   : > { %p13650_p4 = pnand %p13649_p2, %p13643_p12 }
  0x5c   : > { %13653 = shalt.err (!%p13650_p4)
}
  0x5d   : > { %s13791_s13 = smov 128   ;;  %s13792_s7 = smov 8  }
  0x5e   : > { %13476 = dma.hbm_to_vmem [thread:$0]  (!%p13890_p5), %s16543_s3, 5120, %s13896_s18, [#allocation5], %s13791_s13, %s13791_s13, %s13792_s7  }
  0x5f   : > { %s13793_s21 = smov [#allocation9]   ;;  %s13654_s14 = scalar_lea.hbm %s16546_s6, 16 }
  0x60   : > { %s275_s22 = sshll.u32 %s13793_s21, 4  ;;  %p13655_p6 = scmp.ne.s32.totalorder %s16546_s6, %s13654_s14  ;;  %s276_s22 = int_to_ptr.vmem [resolvable:$true] %s275_s22 }
  0x61   : > { %p13661_p1 = scmp.lt.u32.totalorder %s13654_s14, %s16546_s6 }
  0x62   : > { %p13657_p8 = pnand %p13655_p6, %p13906_p7 }
  0x64   : > { %p13658_p9 = pneg %p13657_p8 }
  0x66   : > { %p13663_p3 = pnand %p13661_p1, %p13658_p9 }
  0x68   : > { %13666 = shalt.err (!%p13663_p3)
}
  0x69   : > { %s13667_s18 = scalar_lea.vmem %s276_s22, 16  ;;  %s13674_s13 = scalar_lea.vmem %s276_s22, 32 }
  0x6a   : > { %p13668_p10 = scmp.ne.s32.totalorder %s276_s22, %s13667_s18  ;;  %p13675_p13 = scmp.lt.s32.totalorder %s276_s22, %s276_s22 }
  0x6b   : > { %p13676_p0 = scmp.lt.s32.totalorder %s13674_s13, %s13667_s18 }
  0x6c   : > { %p13670_p11 = pnand %p13668_p10, %p13906_p7 }
  0x6d   : > { %p13677_p2 = por %p13676_p0, %p13675_p13 }
  0x6e   : > { %p13671_p12 = pneg %p13670_p11 }
  0x70   : > { %p13678_p4 = pnand %p13677_p2, %p13671_p12 }
  0x72   : > { %13681 = shalt.err (!%p13678_p4)
}
  0x73   : > { %13482 = dma.hbm_to_vmem [thread:$0]  (!%p13890_p5), %s16546_s6, 16, %s276_s22, [#allocation8]  }
  0x74   : > { %s31_s2 = sadd.s32 1, %s13778_s29  ;;  %s34_s4 = sadd.s32 1, %s13782_s30 }
  0x75   : > { %p32_p7 = scmp.ge.s32.totalorder %s31_s2, 2  ;;  %s67_s16 = sadd.s32 1, %s13766_s26 }
  0x76   : > { %p74_p6 = scmp.ne.s32.totalorder %s13766_s26, %s13762_s25  ;;  %p75_p8 = scmp.eq.s32.totalorder %s13786_s8, 0 }
  0x77   : > { %s16603_s2 = smov (%p32_p7, %s31_s2), 0  ;;  %s16605_s4 = smov (!%p32_p7, %s34_s4), %s13782_s30 }
  0x78   : > { %p13995_p9 = por %p75_p8, %p74_p6  ;;  %p80_p1 = scmp.ne.s32.totalorder %s13762_s25, %s13758_s24 }
  0x79   : > { %p36_p5 = scmp.ge.s32.totalorder %s16605_s4, 2  ;;  %p13491_p3 = scmp.lt.s32.totalorder %s13786_s8, 4 }
  0x7a   : > { %p16564_p10 = scmp.ne.s32.totalorder %s16557_s10, 0  ;;  %s295_s21 = sand.u32 1, %s13766_s26  }
  0x7b   : > { %s16607_s4 = smov (%p36_p5, %s16605_s4), 0  ;;  %s10054_s22 = sshll.u32 %s295_s21, 1 }
  0x7c   : > { %p14004_p11 = por %p16564_p10, %p80_p1  ;;  %s64_s23 = ssub.s32 %s13782_s30, %s16607_s4 }
  0x7d   : > { %p65_p12 = scmp.eq.s32.totalorder %s64_s23, 0  ;;  %s10055_s12 = sshll.u32 %s13782_s30, 5 }
  0x7e   : > { %s14017_s15 = scalar_lea.hbm %s16541_s1, %s10055_s12  ;;  %s299_s24 = scalar_lea.vmem [#allocation2], %s10054_s22 }
  0x7f   : > { %s306_s18 = sshll.u32 %s299_s24, 4  ;;  %p14028_p13 = pnand %p13491_p3, %p13995_p9  ;;  %s14022_s18 = int_to_ptr.vmem [resolvable:$true] %s306_s18 }
  0x80   : > { %s14020_s13 = scalar_select %p65_p12, %s13766_s26, %s67_s16  }
  0x81   : > { %s296_s19 = scalar_lea.sflag [#allocation3], %s295_s21  ;;  %s13682_s23 = scalar_lea.hbm %s14017_s15, 32 }
  0x82   : > { %p13683_p0 = scmp.ne.s32.totalorder %s14017_s15, %s13682_s23  ;;  %p13684_p2 = pneg %p14028_p13 }
  0x83   : > { %s13687_s9 = scalar_lea.hbm %s16541_s1, 64  ;;  %p13688_p6 = scmp.lt.u32.totalorder %s14017_s15, %s16541_s1 }
  0x84   : > { %p13685_p4 = pnand %p13684_p2, %p13683_p0  ;;  %p13689_p8 = scmp.lt.u32.totalorder %s13687_s9, %s13682_s23 }
  0x85   : > { %p13691_p1 = scmp.lt.u32.totalorder %s13682_s23, %s14017_s15 }
  0x86   : > { %p13686_p7 = pneg %p13685_p4  ;;  %p13690_p9 = por %p13689_p8, %p13688_p6 }
  0x88   : > { %p13692_p5 = por %p13691_p1, %p13690_p9 }
  0x8a   : > { %p13693_p3 = pnand %p13692_p5, %p13686_p7 }
  0x8c   : > { %13696 = shalt.err (!%p13693_p3)
}
  0x8d   : > { %s13697_s21 = scalar_lea.vmem %s14022_s18, 32  ;;  %s13794_s17 = smov [#allocation2]  }
  0x8e   : > { %p13698_p10 = scmp.ne.s32.totalorder %s14022_s18, %s13697_s21  ;;  %s13702_s24 = sshll.u32 %s13794_s17, 4  ;;  %s13703_s24 = int_to_ptr.vmem [resolvable:$false] %s13702_s24 }
  0x8f   : > { %s13704_s16 = scalar_lea.vmem %s13703_s24, 64  ;;  %p13705_p4 = scmp.lt.s32.totalorder %s14022_s18, %s13703_s24 }
  0x90   : > { %p13700_p12 = pnand %p13698_p10, %p13684_p2  ;;  %p13706_p6 = scmp.lt.s32.totalorder %s13704_s16, %s13697_s21 }
  0x92   : > { %p13701_p0 = pneg %p13700_p12  ;;  %p13707_p8 = por %p13706_p6, %p13705_p4 }
  0x94   : > { %p13708_p9 = pnand %p13707_p8, %p13701_p0 }
  0x96   : > { %13711 = shalt.err (!%p13708_p9)
}
  0x97   : > { %13486 = dma.hbm_to_vmem [thread:$0]  (!%p14028_p13), %s14017_s15, 32, %s14022_s18, %s296_s19  }
  0x98   : > { %p16567_p7 = scmp.ne.s32.totalorder %s16558_s11, 0 }
  0x9a   : > { %315 = sbr.rel (%p16567_p7) target bundleno = 1966 (0x7ae), region = 48 }
  0xa1   : > { %s317_s23 = sand.u32 1, %s13762_s25  }
  0xa2   : > { %s14060_s22 = sshll.u32 %s317_s23, 1  ;;  %s318_s9 = scalar_lea.sflag [#allocation3], %s317_s23 }
  0xa3   : > { %s321_s12 = scalar_lea.vmem [#allocation2], %s14060_s22 }
  0xa4   : > { %13745 = dma.done.wait (%p14004_p11), %s318_s9, 32  }
  0xa5   : > { %13747 = vsyncadd (%p14004_p11), %s318_s9, 4294967264  ;;  %p16568_p2 = scmp.ne.s32.totalorder %s16557_s10, 0 }
  0xa7   : > { %13749 = dma.done.wait (%p16568_p2), [#allocation5], 5152  }
  0xa8   : > { %13751 = vsyncadd (%p16568_p2), [#allocation5], 4294962144 }
  0xa9   : > { %13753 = dma.done.wait (%p16568_p2), [#allocation8], 80  }
  0xaa   : > { %13755 = vsyncadd (%p16568_p2), [#allocation8], 4294967216  ;;  %s10062_s11 = sshll.u32 %s13770_s27, 7  ;;  %vm913_vm0 = vcmask 1041408   ;;  %vm528_vm1 = vcmask 15360   ;;  %v1878_v13 = vld [vmem:[#allocation6] sm:$0xff] }
  0xab   : > { %p378_p13 = scmp.lt.s32.totalorder %s10062_s11, 255  ;;  %v523_v0 = vld [vmem:[#allocation4] sm:$0x3]  ;;  %v1879_v15 = vld [vmem:[#allocation6 + $0x8] sm:$0xff]  ;;  %v1880_v29 = vld [vmem:[#allocation6 + $0x10] sm:$0xff]  ;;  %vm1890_vm2 = vcmask 523264  }
  0xac   : > { %11912 = vmatprep.subr.msk.mxu0 %vm913_vm0, %v523_v0  ;;  %13450 = vmatprep.subr.msk.mxu1 %vm913_vm0, %v523_v0  ;;  %v13354_v17 = vpack.c.bf16 %v1879_v15, %v1878_v13  ;;  %v1881_v30 = vld [vmem:[#allocation6 + $0x18] sm:$0xff]  ;;  %v1882_v37 = vld [vmem:[#allocation6 + $0x20] sm:$0xff]  ;;  %v1883_v38 = vld [vmem:[#allocation6 + $0x28] sm:$0xff]  ;;  %p384_p11 = scmp.lt.s32.totalorder %s13774_s28, 1  ;;  %s16594_s14 = sld [smem:[#allocation27_spill]]  ;;  %vm9772_vm3 = vcmask 23552  }
  0xad   : > { %s16609_s11 = smov (!%p378_p13, %s10062_s11), 255  ;;  %11913 = vmatpush3.msk.msra.mxu0 %vm913_vm0, %v523_v0  ;;  %13451 = vmatpush3.msk.msra.mxu1 %vm913_vm0, %v523_v0  ;;  %v13358_v32 = vpack.c.bf16 %v1881_v30, %v1880_v29  ;;  %v13362_v40 = vpack.c.bf16 %v1883_v38, %v1882_v37  ;;  %v1884_v47 = vld [vmem:[#allocation6 + $0x30] sm:$0xff]  ;;  %v1885_v48 = vld [vmem:[#allocation6 + $0x38] sm:$0xff] }
  0xae   : > { %s10063_s20 = sshll.u32 %s16609_s11, 3  ;;  %13355 = vmatprep.subr.bf16.mxu1 %v13354_v17  ;;  %v13366_v50 = vpack.c.bf16 %v1885_v48, %v1884_v47  ;;  %s16611_s28 = smov (!%p384_p11, %s13774_s28), 1 }
  0xaf   : > { %s14082_s7 = scalar_lea.vmem %s16540_s0, %s10063_s20  ;;  %s10065_s27 = sshll.u32 %s16611_s28, 8 }
  0xb0   : > { %v393_v1 = vld [vmem:[%s14082_s7] sm:$0xff]  ;;  %v394_v2 = vld [vmem:[%s14082_s7 + $0x8] sm:$0xff]  ;;  %v395_v3 = vld [vmem:[%s14082_s7 + $0x10] sm:$0xff]  ;;  %s389_s10 = sadd.s32 %s10065_s27, %s16609_s11 }
  0xb1   : > { %11914 = vmatprep.mubr.msk.f32.mxu0 %vm528_vm1, %v393_v1  ;;  %v396_v4 = vld [vmem:[%s14082_s7 + $0x18] sm:$0xff]  ;;  %v397_v5 = vld [vmem:[%s14082_s7 + $0x20] sm:$0xff]  ;;  %v398_v6 = vld [vmem:[%s14082_s7 + $0x28] sm:$0xff]  ;;  %s10066_s28 = sshll.u32 %s389_s10, 3 }
  0xb2   : > { %11915 = vmatmul.mubr.msk.f32.vlgmr.msra.gmra.mrb[0].mxu0 %vm528_vm1, %v394_v2  ;;  %v399_v7 = vld [vmem:[%s14082_s7 + $0x30] sm:$0xff]  ;;  %v400_v8 = vld [vmem:[%s14082_s7 + $0x38] sm:$0xff]  ;;  %v401_v9 = vld [vmem:[%s14082_s7 + $0x40] sm:$0xff]  ;;  %s16091_s21 = scalar_lea.vmem %s16594_s14, %s10066_s28 }
  0xb3   : > { %11917 = vmatprep.mubr.msk.f32.mxu0 %vm528_vm1, %v395_v3  ;;  %v457_v10 = vld [vmem:[%s14082_s7 + $0x200] sm:$0xff]  ;;  %v402_v11 = vld [vmem:[%s14082_s7 + $0x48] sm:$0xff]  ;;  %v403_v14 = vld [vmem:[%s14082_s7 + $0x50] sm:$0xff] }
  0xb4   : > { %12010 = vmatprep.mubr.msk.f32.mxu1 %vm528_vm1, %v457_v10  ;;  %v458_v12 = vld [vmem:[%s14082_s7 + $0x208] sm:$0xff]  ;;  %v459_v16 = vld [vmem:[%s14082_s7 + $0x210] sm:$0xff]  ;;  %v460_v18 = vld [vmem:[%s14082_s7 + $0x218] sm:$0xff] }
  0xb5   : > { %12011 = vmatmul.mubr.msk.f32.vlgmr.msra.gmra.mrb[0].mxu1 %vm528_vm1, %v458_v12  ;;  %v404_v19 = vld [vmem:[%s14082_s7 + $0x58] sm:$0xff]  ;;  %v461_v20 = vld [vmem:[%s14082_s7 + $0x220] sm:$0xff]  ;;  %v462_v22 = vld [vmem:[%s14082_s7 + $0x228] sm:$0xff] }
  0xb6   : > { %11918 = vmatmul.mubr.msk.f32.gmra.mrb[2].mxu0 %vm528_vm1, %v396_v4  ;;  %12013 = vmatprep.mubr.msk.f32.mxu1 %vm528_vm1, %v459_v16  ;;  %v405_v21 = vld [vmem:[%s14082_s7 + $0x60] sm:$0xff]  ;;  %v406_v23 = vld [vmem:[%s14082_s7 + $0x68] sm:$0xff]  ;;  %v463_v24 = vld [vmem:[%s14082_s7 + $0x230] sm:$0xff] }
  0xb7   : > { %11920 = vmatprep.mubr.msk.f32.mxu0 %vm528_vm1, %v397_v5  ;;  %13357 = vmatpush3.bf16.msra.mxu1 %v13354_v17  ;;  %v407_v25 = vld [vmem:[%s14082_s7 + $0x70] sm:$0xff]  ;;  %v408_v26 = vld [vmem:[%s14082_s7 + $0x78] sm:$0xff]  ;;  %v465_v28 = vld [vmem:[%s14082_s7 + $0x240] sm:$0xff] }
  0xb8   : > { %v464_v27 = vld [vmem:[%s14082_s7 + $0x238] sm:$0xff]  ;;  %v409_v31 = vld [vmem:[%s14082_s7 + $0x80] sm:$0xff]  ;;  %v466_v33 = vld [vmem:[%s14082_s7 + $0x248] sm:$0xff]  ;;  %13359 = vmatprep.subr.bf16.mxu1 %v13358_v32 }
  0xb9   : > { %12014 = vmatmul.mubr.msk.f32.gmra.mrb[2].mxu1 %vm528_vm1, %v460_v18  ;;  %v410_v34 = vld [vmem:[%s14082_s7 + $0x88] sm:$0xff]  ;;  %v467_v35 = vld [vmem:[%s14082_s7 + $0x250] sm:$0xff]  ;;  %v468_v39 = vld [vmem:[%s14082_s7 + $0x258] sm:$0xff] }
  0xba   : > { %11921 = vmatmul.mubr.msk.f32.gmra.mrb[4].mxu0 %vm528_vm1, %v398_v6  ;;  %12016 = vmatprep.mubr.msk.f32.mxu1 %vm528_vm1, %v461_v20  ;;  %v411_v36 = vld [vmem:[%s14082_s7 + $0x90] sm:$0xff]  ;;  %v412_v41 = vld [vmem:[%s14082_s7 + $0x98] sm:$0xff]  ;;  %v469_v42 = vld [vmem:[%s14082_s7 + $0x260] sm:$0xff] }
  0xbb   : > { %11923 = vmatprep.mubr.msk.f32.mxu0 %vm528_vm1, %v399_v7  ;;  %13361 = vmatpush3.bf16.msra.mxu1 %v13358_v32  ;;  %v413_v43 = vld [vmem:[%s14082_s7 + $0xa0] sm:$0xff]  ;;  %v414_v44 = vld [vmem:[%s14082_s7 + $0xa8] sm:$0xff]  ;;  %v471_v46 = vld [vmem:[%s14082_s7 + $0x270] sm:$0xff] }
  0xbc   : > { %13363 = vmatprep.subr.bf16.mxu1 %v13362_v40  ;;  %v470_v45 = vld [vmem:[%s14082_s7 + $0x268] sm:$0xff]  ;;  %v415_v49 = vld [vmem:[%s14082_s7 + $0xb0] sm:$0xff]  ;;  %v472_v51 = vld [vmem:[%s14082_s7 + $0x278] sm:$0xff] }
  0xbd   : > { %12017 = vmatmul.mubr.msk.f32.gmra.mrb[4].mxu1 %vm528_vm1, %v462_v22  ;;  %v416_v52 = vld [vmem:[%s14082_s7 + $0xb8] sm:$0xff]  ;;  %v473_v53 = vld [vmem:[%s14082_s7 + $0x280] sm:$0xff]  ;;  %v474_v55 = vld [vmem:[%s14082_s7 + $0x288] sm:$0xff] }
  0xbe   : > { %11924 = vmatmul.mubr.msk.f32.gmra.mrb[6].mxu0 %vm528_vm1, %v400_v8  ;;  %12019 = vmatprep.mubr.msk.f32.mxu1 %vm528_vm1, %v463_v24  ;;  %v417_v54 = vld [vmem:[%s14082_s7 + $0xc0] sm:$0xff]  ;;  %v418_v56 = vld [vmem:[%s14082_s7 + $0xc8] sm:$0xff]  ;;  %v475_v57 = vld [vmem:[%s14082_s7 + $0x290] sm:$0xff] }
  0xbf   : > { %11926 = vmatprep.mubr.msk.f32.mxu0 %vm528_vm1, %v401_v9  ;;  %13365 = vmatpush3.bf16.msra.mxu1 %v13362_v40  ;;  %v419_v58 = vld [vmem:[%s14082_s7 + $0xd0] sm:$0xff]  ;;  %v476_v59 = vld [vmem:[%s14082_s7 + $0x298] sm:$0xff]  ;;  %v477_v61 = vld [vmem:[%s14082_s7 + $0x2a0] sm:$0xff] }
  0xc0   : > { %13367 = vmatprep.subr.bf16.mxu1 %v13366_v50  ;;  %v420_v60 = vld [vmem:[%s14082_s7 + $0xd8] sm:$0xff]  ;;  %v421_v62 = vld [vmem:[%s14082_s7 + $0xe0] sm:$0xff]  ;;  %v478_v63 = vld [vmem:[%s14082_s7 + $0x2a8] sm:$0xff] }
  0xc1   : > { %12020 = vmatmul.mubr.msk.f32.gmra.mrb[6].mxu1 %vm528_vm1, %v464_v27  ;;  %v422_v0 = vld [vmem:[%s14082_s7 + $0xe8] sm:$0xff]  ;;  %v479_v1 = vld [vmem:[%s14082_s7 + $0x2b0] sm:$0xff]  ;;  %v480_v3 = vld [vmem:[%s14082_s7 + $0x2b8] sm:$0xff] }
  0xc2   : > { %11927 = vmatmul.mubr.msk.f32.gmra.mrb[8].mxu0 %vm528_vm1, %v402_v11  ;;  %12022 = vmatprep.mubr.msk.f32.mxu1 %vm528_vm1, %v465_v28  ;;  %v423_v2 = vld [vmem:[%s14082_s7 + $0xf0] sm:$0xff]  ;;  %v424_v4 = vld [vmem:[%s14082_s7 + $0xf8] sm:$0xff]  ;;  %v481_v5 = vld [vmem:[%s14082_s7 + $0x2c0] sm:$0xff] }
  0xc3   : > { %11929 = vmatprep.mubr.msk.f32.mxu0 %vm528_vm1, %v403_v14  ;;  %13369 = vmatpush3.bf16.msra.mxu1 %v13366_v50  ;;  %v425_v6 = vld [vmem:[%s14082_s7 + $0x100] sm:$0xff]  ;;  %v482_v7 = vld [vmem:[%s14082_s7 + $0x2c8] sm:$0xff]  ;;  %v483_v9 = vld [vmem:[%s14082_s7 + $0x2d0] sm:$0xff] }
  0xc4   : > { %v426_v8 = vld [vmem:[%s14082_s7 + $0x108] sm:$0xff]  ;;  %v427_v10 = vld [vmem:[%s14082_s7 + $0x110] sm:$0xff]  ;;  %v484_v11 = vld [vmem:[%s14082_s7 + $0x2d8] sm:$0xff] }
  0xc5   : > { %12023 = vmatmul.mubr.msk.f32.gmra.mrb[8].mxu1 %vm528_vm1, %v466_v33  ;;  %v428_v12 = vld [vmem:[%s14082_s7 + $0x118] sm:$0xff]  ;;  %v485_v13 = vld [vmem:[%s14082_s7 + $0x2e0] sm:$0xff]  ;;  %v486_v15 = vld [vmem:[%s14082_s7 + $0x2e8] sm:$0xff] }
  0xc6   : > { %11930 = vmatmul.mubr.msk.f32.gmra.mrb[10].mxu0 %vm528_vm1, %v404_v19  ;;  %12025 = vmatprep.mubr.msk.f32.mxu1 %vm528_vm1, %v467_v35  ;;  %v429_v14 = vld [vmem:[%s14082_s7 + $0x120] sm:$0xff]  ;;  %v430_v16 = vld [vmem:[%s14082_s7 + $0x128] sm:$0xff]  ;;  %v487_v17 = vld [vmem:[%s14082_s7 + $0x2f0] sm:$0xff] }
  0xc7   : > { %11932 = vmatprep.mubr.msk.f32.mxu0 %vm528_vm1, %v405_v21  ;;  %v431_v18 = vld [vmem:[%s14082_s7 + $0x130] sm:$0xff]  ;;  %v488_v19 = vld [vmem:[%s14082_s7 + $0x2f8] sm:$0xff]  ;;  %v489_v21 = vld [vmem:[%s14082_s7 + $0x300] sm:$0xff] }
  0xc8   : > { %v432_v20 = vld [vmem:[%s14082_s7 + $0x138] sm:$0xff]  ;;  %v433_v22 = vld [vmem:[%s14082_s7 + $0x140] sm:$0xff]  ;;  %v434_v24 = vld [vmem:[%s14082_s7 + $0x148] sm:$0xff] }
  0xc9   : > { %12026 = vmatmul.mubr.msk.f32.gmra.mrb[10].mxu1 %vm528_vm1, %v468_v39  ;;  %v492_v27 = vld [vmem:[%s14082_s7 + $0x318] sm:$0xff]  ;;  %v493_v29 = vld [vmem:[%s14082_s7 + $0x320] sm:$0xff]  ;;  %v438_v32 = vld [vmem:[%s14082_s7 + $0x168] sm:$0xff] }
  0xca   : > { %11933 = vmatmul.mubr.msk.f32.gmra.mrb[12].mxu0 %vm528_vm1, %v406_v23  ;;  %12028 = vmatprep.mubr.msk.f32.mxu1 %vm528_vm1, %v469_v42  ;;  %v490_v23 = vld [vmem:[%s14082_s7 + $0x308] sm:$0xff]  ;;  %v436_v28 = vld [vmem:[%s14082_s7 + $0x158] sm:$0xff]  ;;  %v437_v30 = vld [vmem:[%s14082_s7 + $0x160] sm:$0xff] }
  0xcb   : > { %11935 = vmatprep.mubr.msk.f32.mxu0 %vm528_vm1, %v407_v25  ;;  %v491_v25 = vld [vmem:[%s14082_s7 + $0x310] sm:$0xff]  ;;  %v496_v35 = vld [vmem:[%s14082_s7 + $0x338] sm:$0xff]  ;;  %v497_v37 = vld [vmem:[%s14082_s7 + $0x340] sm:$0xff] }
  0xcc   : > { %v495_v33 = vld [vmem:[%s14082_s7 + $0x330] sm:$0xff]  ;;  %v441_v38 = vld [vmem:[%s14082_s7 + $0x180] sm:$0xff]  ;;  %v498_v39 = vld [vmem:[%s14082_s7 + $0x348] sm:$0xff] }
  0xcd   : > { %12029 = vmatmul.mubr.msk.f32.gmra.mrb[12].mxu1 %vm528_vm1, %v470_v45  ;;  %v442_v40 = vld [vmem:[%s14082_s7 + $0x188] sm:$0xff]  ;;  %v443_v42 = vld [vmem:[%s14082_s7 + $0x190] sm:$0xff]  ;;  %v501_v45 = vld [vmem:[%s14082_s7 + $0x360] sm:$0xff] }
  0xce   : > { %11936 = vmatmul.mubr.msk.f32.gmra.mrb[14].mxu0 %vm528_vm1, %v408_v26  ;;  %12031 = vmatprep.mubr.msk.f32.mxu1 %vm528_vm1, %v471_v46  ;;  %v435_v26 = vld [vmem:[%s14082_s7 + $0x150] sm:$0xff]  ;;  %v445_v46 = vld [vmem:[%s14082_s7 + $0x1a0] sm:$0xff]  ;;  %v502_v47 = vld [vmem:[%s14082_s7 + $0x368] sm:$0xff] }
  0xcf   : > { %11938 = vmatprep.mubr.msk.f32.mxu0 %vm528_vm1, %v409_v31  ;;  %v494_v31 = vld [vmem:[%s14082_s7 + $0x328] sm:$0xff]  ;;  %v447_v50 = vld [vmem:[%s14082_s7 + $0x1b0] sm:$0xff] }
  0xd0   : > { %v446_v48 = vld [vmem:[%s14082_s7 + $0x1a8] sm:$0xff] }
  0xd1   : > { %12032 = vmatmul.mubr.msk.f32.gmra.mrb[14].mxu1 %vm528_vm1, %v472_v51  ;;  %v504_v51 = vld [vmem:[%s14082_s7 + $0x378] sm:$0xff] }
  0xd2   : > { %11939 = vmatmul.mubr.msk.f32.gmra.mrb[16].mxu0 %vm528_vm1, %v410_v34  ;;  %12034 = vmatprep.mubr.msk.f32.mxu1 %vm528_vm1, %v473_v53  ;;  %v439_v34 = vld [vmem:[%s14082_s7 + $0x170] sm:$0xff]  ;;  %v505_v53 = vld [vmem:[%s14082_s7 + $0x380] sm:$0xff] }
  0xd3   : > { %11941 = vmatprep.mubr.msk.f32.mxu0 %vm528_vm1, %v411_v36  ;;  %v440_v36 = vld [vmem:[%s14082_s7 + $0x178] sm:$0xff] }
  0xd5   : > { %12035 = vmatmul.mubr.msk.f32.gmra.mrb[16].mxu1 %vm528_vm1, %v474_v55  ;;  %v506_v55 = vld [vmem:[%s14082_s7 + $0x388] sm:$0xff] }
  0xd6   : > { %11942 = vmatmul.mubr.msk.f32.gmra.mrb[18].mxu0 %vm528_vm1, %v412_v41  ;;  %12037 = vmatprep.mubr.msk.f32.mxu1 %vm528_vm1, %v475_v57  ;;  %v499_v41 = vld [vmem:[%s14082_s7 + $0x350] sm:$0xff] }
  0xd7   : > { %11944 = vmatprep.mubr.msk.f32.mxu0 %vm528_vm1, %v413_v43  ;;  %v500_v43 = vld [vmem:[%s14082_s7 + $0x358] sm:$0xff]  ;;  %v507_v57 = vld [vmem:[%s14082_s7 + $0x390] sm:$0xff] }
  0xd9   : > { %12038 = vmatmul.mubr.msk.f32.gmra.mrb[18].mxu1 %vm528_vm1, %v476_v59  ;;  %v508_v59 = vld [vmem:[%s14082_s7 + $0x398] sm:$0xff] }
  0xda   : > { %11945 = vmatmul.mubr.msk.f32.gmra.mrb[20].mxu0 %vm528_vm1, %v414_v44  ;;  %12040 = vmatprep.mubr.msk.f32.mxu1 %vm528_vm1, %v477_v61  ;;  %v444_v44 = vld [vmem:[%s14082_s7 + $0x198] sm:$0xff]  ;;  %v509_v61 = vld [vmem:[%s14082_s7 + $0x3a0] sm:$0xff] }
  0xdb   : > { %11947 = vmatprep.mubr.msk.f32.mxu0 %vm528_vm1, %v415_v49  ;;  %v503_v49 = vld [vmem:[%s14082_s7 + $0x370] sm:$0xff] }
  0xdd   : > { %12041 = vmatmul.mubr.msk.f32.gmra.mrb[20].mxu1 %vm528_vm1, %v478_v63  ;;  %v510_v63 = vld [vmem:[%s14082_s7 + $0x3a8] sm:$0xff] }
  0xde   : > { %11948 = vmatmul.mubr.msk.f32.gmra.mrb[22].mxu0 %vm528_vm1, %v416_v52  ;;  %12043 = vmatprep.mubr.msk.f32.mxu1 %vm528_vm1, %v479_v1  ;;  %v448_v52 = vld [vmem:[%s14082_s7 + $0x1b8] sm:$0xff]  ;;  %v511_v1 = vld [vmem:[%s14082_s7 + $0x3b0] sm:$0xff] }
  0xdf   : > { %11950 = vmatprep.mubr.msk.f32.mxu0 %vm528_vm1, %v417_v54  ;;  %v449_v54 = vld [vmem:[%s14082_s7 + $0x1c0] sm:$0xff] }
  0xe1   : > { %12044 = vmatmul.mubr.msk.f32.gmra.mrb[22].mxu1 %vm528_vm1, %v480_v3  ;;  %v512_v3 = vld [vmem:[%s14082_s7 + $0x3b8] sm:$0xff] }
  0xe2   : > { %11951 = vmatmul.mubr.msk.f32.gmra.mrb[24].mxu0 %vm528_vm1, %v418_v56  ;;  %12046 = vmatprep.mubr.msk.f32.mxu1 %vm528_vm1, %v481_v5  ;;  %v450_v56 = vld [vmem:[%s14082_s7 + $0x1c8] sm:$0xff]  ;;  %v513_v5 = vld [vmem:[%s14082_s7 + $0x3c0] sm:$0xff] }
  0xe3   : > { %11953 = vmatprep.mubr.msk.f32.mxu0 %vm528_vm1, %v419_v58  ;;  %v451_v58 = vld [vmem:[%s14082_s7 + $0x1d0] sm:$0xff] }
  0xe5   : > { %12047 = vmatmul.mubr.msk.f32.gmra.mrb[24].mxu1 %vm528_vm1, %v482_v7  ;;  %v515_v7 = vld [vmem:[%s14082_s7 + $0x3d0] sm:$0xff] }
  0xe6   : > { %11954 = vmatmul.mubr.msk.f32.gmra.mrb[26].mxu0 %vm528_vm1, %v420_v60  ;;  %12049 = vmatprep.mubr.msk.f32.mxu1 %vm528_vm1, %v483_v9  ;;  %v452_v60 = vld [vmem:[%s14082_s7 + $0x1d8] sm:$0xff]  ;;  %v517_v9 = vld [vmem:[%s14082_s7 + $0x3e0] sm:$0xff] }
  0xe7   : > { %11956 = vmatprep.mubr.msk.f32.mxu0 %vm528_vm1, %v421_v62  ;;  %v453_v62 = vld [vmem:[%s14082_s7 + $0x1e0] sm:$0xff] }
  0xe9   : > { %12050 = vmatmul.mubr.msk.f32.gmra.mrb[26].mxu1 %vm528_vm1, %v484_v11  ;;  %v519_v11 = vld [vmem:[%s14082_s7 + $0x3f0] sm:$0xff] }
  0xea   : > { %11957 = vmatmul.mubr.msk.f32.gmra.mrb[28].mxu0 %vm528_vm1, %v422_v0  ;;  %12052 = vmatprep.mubr.msk.f32.mxu1 %vm528_vm1, %v485_v13  ;;  %v454_v0 = vld [vmem:[%s14082_s7 + $0x1e8] sm:$0xff] }
  0xeb   : > { %11959 = vmatprep.mubr.msk.f32.mxu0 %vm528_vm1, %v423_v2  ;;  %v455_v2 = vld [vmem:[%s14082_s7 + $0x1f0] sm:$0xff]  ;;  %v3237_v13 = vld [vmem:[#allocation6 + $0x40] sm:$0xff] }
  0xed   : > { %12053 = vmatmul.mubr.msk.f32.gmra.mrb[28].mxu1 %vm528_vm1, %v486_v15 }
  0xee   : > { %11960 = vmatmul.mubr.msk.f32.gmra.mrb[30].mxu0 %vm528_vm1, %v424_v4  ;;  %12055 = vmatprep.mubr.msk.f32.mxu1 %vm528_vm1, %v487_v17  ;;  %v456_v4 = vld [vmem:[%s14082_s7 + $0x1f8] sm:$0xff] }
  0xef   : > { %11962 = vmatprep.mubr.msk.f32.mxu0 %vm528_vm1, %v425_v6  ;;  %v514_v6 = vld [vmem:[%s14082_s7 + $0x3c8] sm:$0xff] }
  0xf1   : > { %12056 = vmatmul.mubr.msk.f32.gmra.mrb[30].mxu1 %vm528_vm1, %v488_v19  ;;  %v521_v19 = vld [vmem:[%s321_s12] sm:$0x3] }
  0xf2   : > { %11963 = vmatmul.mubr.msk.f32.gmra.mrb[32].mxu0 %vm528_vm1, %v426_v8  ;;  %12058 = vmatprep.mubr.msk.f32.mxu1 %vm528_vm1, %v489_v21  ;;  %v516_v8 = vld [vmem:[%s14082_s7 + $0x3d8] sm:$0xff] }
  0xf3   : > { %11965 = vmatprep.mubr.msk.f32.mxu0 %vm528_vm1, %v427_v10  ;;  %v518_v10 = vld [vmem:[%s14082_s7 + $0x3e8] sm:$0xff] }
  0xf5   : > { %12059 = vmatmul.mubr.msk.f32.gmra.mrb[32].mxu1 %vm528_vm1, %v490_v23 }
  0xf6   : > { %11966 = vmatmul.mubr.msk.f32.gmra.mrb[34].mxu0 %vm528_vm1, %v428_v12  ;;  %12061 = vmatprep.mubr.msk.f32.mxu1 %vm528_vm1, %v491_v25  ;;  %v520_v12 = vld [vmem:[%s14082_s7 + $0x3f8] sm:$0xff] }
  0xf7   : > { %11968 = vmatprep.mubr.msk.f32.mxu0 %vm528_vm1, %v429_v14  ;;  %v3238_v14 = vld [vmem:[#allocation6 + $0x48] sm:$0xff] }
  0xf8   : > { %v13370_v15 = vpack.c.bf16 %v3238_v14, %v3237_v13 }
  0xf9   : > { %12062 = vmatmul.mubr.msk.f32.gmra.mrb[34].mxu1 %vm528_vm1, %v492_v27 }
  0xfa   : > { %11969 = vmatmul.mubr.msk.f32.gmra.mrb[36].mxu0 %vm528_vm1, %v430_v16  ;;  %12064 = vmatprep.mubr.msk.f32.mxu1 %vm528_vm1, %v493_v29  ;;  %v524_v16 = vlaneseq  ;;  %v3240_v29 = vld [vmem:[#allocation6 + $0x58] sm:$0xff] }
  0xfb   : > { %11971 = vmatprep.mubr.msk.f32.mxu0 %vm528_vm1, %v431_v18  ;;  %13371 = vmatprep.subr.bf16.mxu0 %v13370_v15 }
  0xfc   : > { %13373 = vmatpush3.bf16.msra.mxu0 %v13370_v15  ;;  %v14340_v17 = vshrl.u32 %v524_v16, 7 }
  0xfd   : > { %12065 = vmatmul.mubr.msk.f32.gmra.mrb[36].mxu1 %vm528_vm1, %v494_v31 }
  0xfe   : > { %11972 = vmatmul.mubr.msk.f32.gmra.mrb[38].mxu0 %vm528_vm1, %v432_v20  ;;  %12067 = vmatprep.mubr.msk.f32.mxu1 %vm528_vm1, %v495_v33  ;;  %16569 = vst [vmem:[#allocation13_spill] sm:$0xff] %v14340_v17  ;;  %v16551_v18 = vsub.s32 0, %v14340_v17 }
  0xff   : > { %11974 = vmatprep.mubr.msk.f32.mxu0 %vm528_vm1, %v433_v22 }
 0x100   : > { %v14347_v20 = vrot.slane %v521_v19, %v16551_v18 }
 0x101   : > { %12068 = vmatmul.mubr.msk.f32.gmra.mrb[38].mxu1 %vm528_vm1, %v496_v35 }
 0x102   : > { %11975 = vmatmul.mubr.msk.f32.gmra.mrb[40].mxu0 %vm528_vm1, %v434_v24  ;;  %12070 = vmatprep.mubr.msk.f32.mxu1 %vm528_vm1, %v497_v37 }
 0x103   : > { %11977 = vmatprep.mubr.msk.f32.mxu0 %vm528_vm1, %v435_v26 }
 0x105   : > { %12071 = vmatmul.mubr.msk.f32.gmra.mrb[40].mxu1 %vm528_vm1, %v498_v39 }
 0x106   : > { %11978 = vmatmul.mubr.msk.f32.gmra.mrb[42].mxu0 %vm528_vm1, %v436_v28  ;;  %12073 = vmatprep.mubr.msk.f32.mxu1 %vm528_vm1, %v499_v41  ;;  %v3239_v28 = vld [vmem:[#allocation6 + $0x50] sm:$0xff] }
 0x107   : > { %11980 = vmatprep.mubr.msk.f32.mxu0 %vm528_vm1, %v437_v30 }
 0x109   : > { %12074 = vmatmul.mubr.msk.f32.gmra.mrb[42].mxu1 %vm528_vm1, %v500_v43 }
 0x10a   : > { %11981 = vmatmul.mubr.msk.f32.gmra.mrb[44].mxu0 %vm528_vm1, %v438_v32  ;;  %12076 = vmatprep.mubr.msk.f32.mxu1 %vm528_vm1, %v501_v45  ;;  %v13374_v32 = vpack.c.bf16 %v3240_v29, %v3239_v28 }
 0x10b   : > { %11983 = vmatprep.mubr.msk.f32.mxu0 %vm528_vm1, %v439_v34 }
 0x10c   : > { %13375 = vmatprep.subr.bf16.mxu0 %v13374_v32 }
 0x10d   : > { %12077 = vmatmul.mubr.msk.f32.gmra.mrb[44].mxu1 %vm528_vm1, %v502_v47  ;;  %13377 = vmatpush3.bf16.msra.mxu0 %v13374_v32 }
 0x10e   : > { %11984 = vmatmul.mubr.msk.f32.gmra.mrb[46].mxu0 %vm528_vm1, %v440_v36  ;;  %12079 = vmatprep.mubr.msk.f32.mxu1 %vm528_vm1, %v503_v49 }
 0x10f   : > { %11986 = vmatprep.mubr.msk.f32.mxu0 %vm528_vm1, %v441_v38 }
 0x111   : > { %12080 = vmatmul.mubr.msk.f32.gmra.mrb[46].mxu1 %vm528_vm1, %v504_v51 }
 0x112   : > { %11987 = vmatmul.mubr.msk.f32.gmra.mrb[48].mxu0 %vm528_vm1, %v442_v40  ;;  %12082 = vmatprep.mubr.msk.f32.mxu1 %vm528_vm1, %v505_v53 }
 0x113   : > { %11989 = vmatprep.mubr.msk.f32.mxu0 %vm528_vm1, %v443_v42 }
 0x115   : > { %12083 = vmatmul.mubr.msk.f32.gmra.mrb[48].mxu1 %vm528_vm1, %v506_v55 }
 0x116   : > { %11990 = vmatmul.mubr.msk.f32.gmra.mrb[50].mxu0 %vm528_vm1, %v444_v44  ;;  %12085 = vmatprep.mubr.msk.f32.mxu1 %vm528_vm1, %v507_v57 }
 0x117   : > { %11992 = vmatprep.mubr.msk.f32.mxu0 %vm528_vm1, %v445_v46 }
 0x119   : > { %12086 = vmatmul.mubr.msk.f32.gmra.mrb[50].mxu1 %vm528_vm1, %v508_v59 }
 0x11a   : > { %11993 = vmatmul.mubr.msk.f32.gmra.mrb[52].mxu0 %vm528_vm1, %v446_v48  ;;  %12088 = vmatprep.mubr.msk.f32.mxu1 %vm528_vm1, %v509_v61 }
 0x11b   : > { %11995 = vmatprep.mubr.msk.f32.mxu0 %vm528_vm1, %v447_v50 }
 0x11d   : > { %12089 = vmatmul.mubr.msk.f32.gmra.mrb[52].mxu1 %vm528_vm1, %v510_v63 }
 0x11e   : > { %11996 = vmatmul.mubr.msk.f32.gmra.mrb[54].mxu0 %vm528_vm1, %v448_v52  ;;  %12091 = vmatprep.mubr.msk.f32.mxu1 %vm528_vm1, %v511_v1 }
 0x11f   : > { %11998 = vmatprep.mubr.msk.f32.mxu0 %vm528_vm1, %v449_v54 }
 0x121   : > { %12092 = vmatmul.mubr.msk.f32.gmra.mrb[54].mxu1 %vm528_vm1, %v512_v3 }
 0x122   : > { %11999 = vmatmul.mubr.msk.f32.gmra.mrb[56].mxu0 %vm528_vm1, %v450_v56  ;;  %12094 = vmatprep.mubr.msk.f32.mxu1 %vm528_vm1, %v513_v5 }
 0x123   : > { %12001 = vmatprep.mubr.msk.f32.mxu0 %vm528_vm1, %v451_v58 }
 0x125   : > { %12095 = vmatmul.mubr.msk.f32.gmra.mrb[56].mxu1 %vm528_vm1, %v514_v6 }
 0x126   : > { %12002 = vmatmul.mubr.msk.f32.gmra.mrb[58].mxu0 %vm528_vm1, %v452_v60  ;;  %12097 = vmatprep.mubr.msk.f32.mxu1 %vm528_vm1, %v515_v7 }
 0x127   : > { %12004 = vmatprep.mubr.msk.f32.mxu0 %vm528_vm1, %v453_v62 }
 0x129   : > { %12098 = vmatmul.mubr.msk.f32.gmra.mrb[58].mxu1 %vm528_vm1, %v516_v8 }
 0x12a   : > { %12005 = vmatmul.mubr.msk.f32.gmra.mrb[60].mxu0 %vm528_vm1, %v454_v0  ;;  %12100 = vmatprep.mubr.msk.f32.mxu1 %vm528_vm1, %v517_v9 }
 0x12b   : > { %12007 = vmatprep.mubr.msk.f32.mxu0 %vm528_vm1, %v455_v2 }
 0x12d   : > { %12101 = vmatmul.mubr.msk.f32.gmra.mrb[60].mxu1 %vm528_vm1, %v518_v10 }
 0x12e   : > { %12008 = vmatmul.mubr.msk.f32.gmra.mrb[62].mxu0 %vm528_vm1, %v456_v4  ;;  %12103 = vmatprep.mubr.msk.f32.mxu1 %vm528_vm1, %v519_v11 }
 0x131   : > { %12104 = vmatmul.mubr.msk.f32.gmra.mrb[62].mxu1 %vm528_vm1, %v520_v12 }
 0x185   : > { %v11916_v21 = vpop.f32.mrb[0].mxu0 }
 0x186   : > { %v989_v22 = vadd.f32 %v11916_v21, %v14347_v20  ;;  %v983_v23 = vpop.f32.mrb[1].mxu0 }
 0x187   : > { %v984_v24 = vadd.f32 %v983_v23, %v14347_v20 }
 0x188   : > { %v1623_v25 = vmul.f32 0.01, %v989_v22  ;;  %v14361_v51 = vpop.f32.mrb[0].mxu1 }
 0x189   : > { %v1622_v26 = vmul.f32 0.01, %v984_v24  ;;  %v11919_v27 = vpop.f32.mrb[2].mxu0  ;;  %v14363_v54 = vpop.f32.mrb[1].mxu1 }
 0x18a   : > { %v999_v30 = vadd.f32 %v11919_v27, %v14347_v20  ;;  %v993_v31 = vpop.f32.mrb[3].mxu0  ;;  %v1751_v35 = vmax.f32 %v989_v22, %v1623_v25 }
 0x18b   : > { %v1750_v33 = vmax.f32 %v984_v24, %v1622_v26  ;;  %v994_v34 = vadd.f32 %v993_v31, %v14347_v20 }
 0x18c   : > { %v1625_v36 = vmul.f32 0.01, %v999_v30  ;;  %v14369_v63 = vpop.f32.mrb[2].mxu1 }
 0x18d   : > { %v1624_v37 = vmul.f32 0.01, %v994_v34  ;;  %v11922_v38 = vpop.f32.mrb[4].mxu0  ;;  %12122 = vmatprep.mubr.msk.f32.mxu1 %vm1890_vm2, %v1750_v33  ;;  %v14372_v2 = vpop.f32.mrb[3].mxu1 }
 0x18e   : > { %v1009_v39 = vadd.f32 %v11922_v38, %v14347_v20  ;;  %v1003_v40 = vpop.f32.mrb[5].mxu0  ;;  %12123 = vmatmul.mubr.msk.f32.vlgmr.msra.gmra.mrb[64].mxu1 %vm1890_vm2, %v1751_v35  ;;  %v1753_v43 = vmax.f32 %v999_v30, %v1625_v36 }
 0x18f   : > { %v1752_v41 = vmax.f32 %v994_v34, %v1624_v37  ;;  %v1004_v42 = vadd.f32 %v1003_v40, %v14347_v20  ;;  %v3241_v40 = vld [vmem:[#allocation6 + $0x60] sm:$0xff] }
 0x190   : > { %v1627_v44 = vmul.f32 0.01, %v1009_v39  ;;  %v14377_v9 = vpop.f32.mrb[4].mxu1 }
 0x191   : > { %v1626_v45 = vmul.f32 0.01, %v1004_v42  ;;  %v11925_v46 = vpop.f32.mrb[6].mxu0  ;;  %12125 = vmatprep.mubr.msk.f32.mxu1 %vm1890_vm2, %v1752_v41  ;;  %v14380_v12 = vpop.f32.mrb[5].mxu1  ;;  %v3242_v41 = vld [vmem:[#allocation6 + $0x68] sm:$0xff] }
 0x192   : > { %v1019_v47 = vadd.f32 %v11925_v46, %v14347_v20  ;;  %v1013_v48 = vpop.f32.mrb[7].mxu0  ;;  %12126 = vmatmul.mubr.msk.f32.gmra.mrb[66].mxu1 %vm1890_vm2, %v1753_v43  ;;  %v1755_v52 = vmax.f32 %v1009_v39, %v1627_v44 }
 0x193   : > { %v1754_v49 = vmax.f32 %v1004_v42, %v1626_v45  ;;  %v1014_v50 = vadd.f32 %v1013_v48, %v14347_v20  ;;  %v13378_v45 = vpack.c.bf16 %v3242_v41, %v3241_v40 }
 0x194   : > { %v1629_v53 = vmul.f32 0.01, %v1019_v47  ;;  %v14385_v22 = vpop.f32.mrb[6].mxu1 }
 0x195   : > { %v1628_v55 = vmul.f32 0.01, %v1014_v50  ;;  %v11928_v56 = vpop.f32.mrb[8].mxu0  ;;  %12128 = vmatprep.mubr.msk.f32.mxu1 %vm1890_vm2, %v1754_v49  ;;  %v14388_v25 = vpop.f32.mrb[7].mxu1  ;;  %13379 = vmatprep.subr.bf16.mxu0 %v13378_v45 }
 0x196   : > { %v1029_v57 = vadd.f32 %v11928_v56, %v14347_v20  ;;  %v1023_v58 = vpop.f32.mrb[9].mxu0  ;;  %12129 = vmatmul.mubr.msk.f32.gmra.mrb[68].mxu1 %vm1890_vm2, %v1755_v52  ;;  %v1757_v61 = vmax.f32 %v1019_v47, %v1629_v53  ;;  %13381 = vmatpush3.bf16.msra.mxu0 %v13378_v45 }
 0x197   : > { %v1756_v59 = vmax.f32 %v1014_v50, %v1628_v55  ;;  %v1024_v60 = vadd.f32 %v1023_v58, %v14347_v20 }
 0x198   : > { %v1631_v62 = vmul.f32 0.01, %v1029_v57  ;;  %v14393_v32 = vpop.f32.mrb[8].mxu1 }
 0x199   : > { %v1630_v0 = vmul.f32 0.01, %v1024_v60  ;;  %v11931_v1 = vpop.f32.mrb[10].mxu0  ;;  %12131 = vmatprep.mubr.msk.f32.mxu1 %vm1890_vm2, %v1756_v59  ;;  %v14396_v35 = vpop.f32.mrb[9].mxu1 }
 0x19a   : > { %v1039_v3 = vadd.f32 %v11931_v1, %v14347_v20  ;;  %v1033_v4 = vpop.f32.mrb[11].mxu0  ;;  %12132 = vmatmul.mubr.msk.f32.gmra.mrb[70].mxu1 %vm1890_vm2, %v1757_v61  ;;  %v1759_v7 = vmax.f32 %v1029_v57, %v1631_v62 }
 0x19b   : > { %v1758_v5 = vmax.f32 %v1024_v60, %v1630_v0  ;;  %v1034_v6 = vadd.f32 %v1033_v4, %v14347_v20 }
 0x19c   : > { %v1633_v8 = vmul.f32 0.01, %v1039_v3  ;;  %v14401_v44 = vpop.f32.mrb[10].mxu1 }
 0x19d   : > { %v1632_v10 = vmul.f32 0.01, %v1034_v6  ;;  %v11934_v11 = vpop.f32.mrb[12].mxu0  ;;  %12134 = vmatprep.mubr.msk.f32.mxu1 %vm1890_vm2, %v1758_v5  ;;  %v14404_v48 = vpop.f32.mrb[11].mxu1 }
 0x19e   : > { %v1049_v13 = vadd.f32 %v11934_v11, %v14347_v20  ;;  %v1043_v14 = vpop.f32.mrb[13].mxu0  ;;  %12135 = vmatmul.mubr.msk.f32.gmra.mrb[72].mxu1 %vm1890_vm2, %v1759_v7  ;;  %v1761_v19 = vmax.f32 %v1039_v3, %v1633_v8 }
 0x19f   : > { %v1760_v15 = vmax.f32 %v1034_v6, %v1632_v10  ;;  %v1044_v16 = vadd.f32 %v1043_v14, %v14347_v20 }
 0x1a0   : > { %v1635_v21 = vmul.f32 0.01, %v1049_v13  ;;  %v14409_v57 = vpop.f32.mrb[12].mxu1 }
 0x1a1   : > { %v1634_v23 = vmul.f32 0.01, %v1044_v16  ;;  %v11937_v24 = vpop.f32.mrb[14].mxu0  ;;  %12137 = vmatprep.mubr.msk.f32.mxu1 %vm1890_vm2, %v1760_v15  ;;  %v14412_v60 = vpop.f32.mrb[13].mxu1 }
 0x1a2   : > { %v1059_v26 = vadd.f32 %v11937_v24, %v14347_v20  ;;  %v1053_v27 = vpop.f32.mrb[15].mxu0  ;;  %12138 = vmatmul.mubr.msk.f32.gmra.mrb[74].mxu1 %vm1890_vm2, %v1761_v19  ;;  %v1763_v30 = vmax.f32 %v1049_v13, %v1635_v21 }
 0x1a3   : > { %v1762_v28 = vmax.f32 %v1044_v16, %v1634_v23  ;;  %v1054_v29 = vadd.f32 %v1053_v27, %v14347_v20 }
 0x1a4   : > { %v1637_v31 = vmul.f32 0.01, %v1059_v26  ;;  %v14417_v5 = vpop.f32.mrb[14].mxu1 }
 0x1a5   : > { %v1636_v33 = vmul.f32 0.01, %v1054_v29  ;;  %v11940_v34 = vpop.f32.mrb[16].mxu0  ;;  %12140 = vmatprep.mubr.msk.f32.mxu1 %vm1890_vm2, %v1762_v28  ;;  %v14420_v8 = vpop.f32.mrb[15].mxu1 }
 0x1a6   : > { %v1069_v36 = vadd.f32 %v11940_v34, %v14347_v20  ;;  %v1063_v37 = vpop.f32.mrb[17].mxu0  ;;  %12141 = vmatmul.mubr.msk.f32.gmra.mrb[76].mxu1 %vm1890_vm2, %v1763_v30  ;;  %v1765_v42 = vmax.f32 %v1059_v26, %v1637_v31 }
 0x1a7   : > { %v1764_v38 = vmax.f32 %v1054_v29, %v1636_v33  ;;  %v1064_v39 = vadd.f32 %v1063_v37, %v14347_v20 }
 0x1a8   : > { %v1639_v43 = vmul.f32 0.01, %v1069_v36  ;;  %v14425_v19 = vpop.f32.mrb[16].mxu1 }
 0x1a9   : > { %v1638_v46 = vmul.f32 0.01, %v1064_v39  ;;  %v11943_v47 = vpop.f32.mrb[18].mxu0  ;;  %12143 = vmatprep.mubr.msk.f32.mxu1 %vm1890_vm2, %v1764_v38  ;;  %v14428_v24 = vpop.f32.mrb[17].mxu1 }
 0x1aa   : > { %v1079_v49 = vadd.f32 %v11943_v47, %v14347_v20  ;;  %v1073_v50 = vpop.f32.mrb[19].mxu0  ;;  %12144 = vmatmul.mubr.msk.f32.gmra.mrb[78].mxu1 %vm1890_vm2, %v1765_v42  ;;  %v1767_v55 = vmax.f32 %v1069_v36, %v1639_v43 }
 0x1ab   : > { %v1766_v52 = vmax.f32 %v1064_v39, %v1638_v46  ;;  %v1074_v53 = vadd.f32 %v1073_v50, %v14347_v20 }
 0x1ac   : > { %v1641_v56 = vmul.f32 0.01, %v1079_v49  ;;  %v14433_v33 = vpop.f32.mrb[18].mxu1 }
 0x1ad   : > { %v1640_v58 = vmul.f32 0.01, %v1074_v53  ;;  %v11946_v59 = vpop.f32.mrb[20].mxu0  ;;  %12146 = vmatprep.mubr.msk.f32.mxu1 %vm1890_vm2, %v1766_v52  ;;  %v14436_v37 = vpop.f32.mrb[19].mxu1 }
 0x1ae   : > { %v1089_v61 = vadd.f32 %v11946_v59, %v14347_v20  ;;  %v1083_v62 = vpop.f32.mrb[21].mxu0  ;;  %12147 = vmatmul.mubr.msk.f32.gmra.mrb[80].mxu1 %vm1890_vm2, %v1767_v55  ;;  %v1769_v3 = vmax.f32 %v1079_v49, %v1641_v56 }
 0x1af   : > { %v1768_v0 = vmax.f32 %v1074_v53, %v1640_v58  ;;  %v1084_v1 = vadd.f32 %v1083_v62, %v14347_v20 }
 0x1b0   : > { %v1643_v4 = vmul.f32 0.01, %v1089_v61  ;;  %v14441_v45 = vpop.f32.mrb[20].mxu1 }
 0x1b1   : > { %v1642_v6 = vmul.f32 0.01, %v1084_v1  ;;  %v11949_v7 = vpop.f32.mrb[22].mxu0  ;;  %12149 = vmatprep.mubr.msk.f32.mxu1 %vm1890_vm2, %v1768_v0  ;;  %v14444_v49 = vpop.f32.mrb[21].mxu1 }
 0x1b2   : > { %v1099_v10 = vadd.f32 %v11949_v7, %v14347_v20  ;;  %v1093_v11 = vpop.f32.mrb[23].mxu0  ;;  %12150 = vmatmul.mubr.msk.f32.gmra.mrb[82].mxu1 %vm1890_vm2, %v1769_v3  ;;  %v1771_v15 = vmax.f32 %v1089_v61, %v1643_v4  ;;  %v4595_v7 = vld [vmem:[#allocation6 + $0x80] sm:$0xff] }
 0x1b3   : > { %v1770_v13 = vmax.f32 %v1084_v1, %v1642_v6  ;;  %v1094_v14 = vadd.f32 %v1093_v11, %v14347_v20 }
 0x1b4   : > { %v1645_v16 = vmul.f32 0.01, %v1099_v10  ;;  %v14449_v59 = vpop.f32.mrb[22].mxu1 }
 0x1b5   : > { %v1644_v21 = vmul.f32 0.01, %v1094_v14  ;;  %v11952_v23 = vpop.f32.mrb[24].mxu0  ;;  %12152 = vmatprep.mubr.msk.f32.mxu1 %vm1890_vm2, %v1770_v13  ;;  %v14452_v0 = vpop.f32.mrb[23].mxu1 }
 0x1b6   : > { %v1109_v26 = vadd.f32 %v11952_v23, %v14347_v20  ;;  %v1103_v27 = vpop.f32.mrb[25].mxu0  ;;  %12153 = vmatmul.mubr.msk.f32.gmra.mrb[84].mxu1 %vm1890_vm2, %v1771_v15  ;;  %v1773_v30 = vmax.f32 %v1099_v10, %v1645_v16  ;;  %v4596_v10 = vld [vmem:[#allocation6 + $0x88] sm:$0xff] }
 0x1b7   : > { %v1772_v28 = vmax.f32 %v1094_v14, %v1644_v21  ;;  %v1104_v29 = vadd.f32 %v1103_v27, %v14347_v20  ;;  %v13386_v15 = vpack.c.bf16 %v4596_v10, %v4595_v7 }
 0x1b8   : > { %v1647_v31 = vmul.f32 0.01, %v1109_v26  ;;  %v14457_v14 = vpop.f32.mrb[24].mxu1 }
 0x1b9   : > { %v1646_v34 = vmul.f32 0.01, %v1104_v29  ;;  %v11955_v36 = vpop.f32.mrb[26].mxu0  ;;  %12155 = vmatprep.mubr.msk.f32.mxu1 %vm1890_vm2, %v1772_v28  ;;  %v14460_v23 = vpop.f32.mrb[25].mxu1  ;;  %13387 = vmatprep.subr.bf16.mxu1 %v13386_v15 }
 0x1ba   : > { %v1119_v38 = vadd.f32 %v11955_v36, %v14347_v20  ;;  %v1113_v39 = vpop.f32.mrb[27].mxu0  ;;  %12156 = vmatmul.mubr.msk.f32.gmra.mrb[86].mxu1 %vm1890_vm2, %v1773_v30  ;;  %v1775_v42 = vmax.f32 %v1109_v26, %v1647_v31  ;;  %v3243_v30 = vld [vmem:[#allocation6 + $0x70] sm:$0xff]  ;;  %v3244_v31 = vld [vmem:[#allocation6 + $0x78] sm:$0xff] }
 0x1bb   : > { %v1774_v40 = vmax.f32 %v1104_v29, %v1646_v34  ;;  %v1114_v41 = vadd.f32 %v1113_v39, %v14347_v20  ;;  %13389 = vmatpush3.bf16.msra.mxu1 %v13386_v15  ;;  %v13382_v39 = vpack.c.bf16 %v3244_v31, %v3243_v30 }
 0x1bc   : > { %v1649_v43 = vmul.f32 0.01, %v1119_v38 }
 0x1bd   : > { %v1648_v46 = vmul.f32 0.01, %v1114_v41  ;;  %v11958_v47 = vpop.f32.mrb[28].mxu0  ;;  %12158 = vmatprep.mubr.msk.f32.mxu1 %vm1890_vm2, %v1774_v40  ;;  %13383 = vmatprep.subr.bf16.mxu0 %v13382_v39 }
 0x1be   : > { %v1129_v50 = vadd.f32 %v11958_v47, %v14347_v20  ;;  %v1123_v52 = vpop.f32.mrb[29].mxu0  ;;  %12159 = vmatmul.mubr.msk.f32.gmra.mrb[88].mxu1 %vm1890_vm2, %v1775_v42  ;;  %v1777_v56 = vmax.f32 %v1119_v38, %v1649_v43  ;;  %v14465_v38 = vpop.f32.mrb[26].mxu1  ;;  %13385 = vmatpush3.bf16.msra.mxu0 %v13382_v39 }
 0x1bf   : > { %v1776_v53 = vmax.f32 %v1114_v41, %v1648_v46  ;;  %v1124_v55 = vadd.f32 %v1123_v52, %v14347_v20  ;;  %v14468_v42 = vpop.f32.mrb[27].mxu1 }
 0x1c0   : > { %v1651_v58 = vmul.f32 0.01, %v1129_v50 }
 0x1c1   : > { %v1650_v61 = vmul.f32 0.01, %v1124_v55  ;;  %v11961_v62 = vpop.f32.mrb[30].mxu0  ;;  %12161 = vmatprep.mubr.msk.f32.mxu1 %vm1890_vm2, %v1776_v53 }
 0x1c2   : > { %v1139_v1 = vadd.f32 %v11961_v62, %v14347_v20  ;;  %v1133_v3 = vpop.f32.mrb[31].mxu0  ;;  %12162 = vmatmul.mubr.msk.f32.gmra.mrb[90].mxu1 %vm1890_vm2, %v1777_v56  ;;  %v1779_v11 = vmax.f32 %v1129_v50, %v1651_v58 }
 0x1c3   : > { %v1778_v4 = vmax.f32 %v1124_v55, %v1650_v61  ;;  %v1134_v6 = vadd.f32 %v1133_v3, %v14347_v20  ;;  %v14473_v55 = vpop.f32.mrb[28].mxu1 }
 0x1c4   : > { %v1653_v13 = vmul.f32 0.01, %v1139_v1  ;;  %v14476_v61 = vpop.f32.mrb[29].mxu1 }
 0x1c5   : > { %v1652_v16 = vmul.f32 0.01, %v1134_v6  ;;  %v11964_v21 = vpop.f32.mrb[32].mxu0  ;;  %12164 = vmatprep.mubr.msk.f32.mxu1 %vm1890_vm2, %v1778_v4  ;;  %v14481_v10 = vpop.f32.mrb[30].mxu1 }
 0x1c6   : > { %v1149_v26 = vadd.f32 %v11964_v21, %v14347_v20  ;;  %v1143_v27 = vpop.f32.mrb[33].mxu0  ;;  %12165 = vmatmul.mubr.msk.f32.gmra.mrb[92].mxu1 %vm1890_vm2, %v1779_v11  ;;  %v1781_v34 = vmax.f32 %v1139_v1, %v1653_v13  ;;  %v14484_v15 = vpop.f32.mrb[31].mxu1 }
 0x1c7   : > { %v1780_v28 = vmax.f32 %v1134_v6, %v1652_v16  ;;  %v1144_v29 = vadd.f32 %v1143_v27, %v14347_v20 }
 0x1c8   : > { %v1655_v36 = vmul.f32 0.01, %v1149_v26  ;;  %v14489_v30 = vpop.f32.mrb[32].mxu1 }
 0x1c9   : > { %v1654_v40 = vmul.f32 0.01, %v1144_v29  ;;  %v11967_v41 = vpop.f32.mrb[34].mxu0  ;;  %12167 = vmatprep.mubr.msk.f32.mxu1 %vm1890_vm2, %v1780_v28 }
 0x1ca   : > { %v1159_v43 = vadd.f32 %v11967_v41, %v14347_v20  ;;  %v1153_v46 = vpop.f32.mrb[35].mxu0  ;;  %12168 = vmatmul.mubr.msk.f32.gmra.mrb[94].mxu1 %vm1890_vm2, %v1781_v34  ;;  %v1783_v52 = vmax.f32 %v1149_v26, %v1655_v36  ;;  %v14492_v36 = vpop.f32.mrb[33].mxu1 }
 0x1cb   : > { %v1782_v47 = vmax.f32 %v1144_v29, %v1654_v40  ;;  %v1154_v50 = vadd.f32 %v1153_v46, %v14347_v20 }
 0x1cc   : > { %v1657_v53 = vmul.f32 0.01, %v1159_v43 }
 0x1cd   : > { %v1656_v56 = vmul.f32 0.01, %v1154_v50  ;;  %v11970_v58 = vpop.f32.mrb[36].mxu0  ;;  %12170 = vmatprep.mubr.msk.f32.mxu1 %vm1890_vm2, %v1782_v47 }
 0x1ce   : > { %v1169_v62 = vadd.f32 %v11970_v58, %v14347_v20  ;;  %v1163_v1 = vpop.f32.mrb[37].mxu0  ;;  %12171 = vmatmul.mubr.msk.f32.gmra.mrb[96].mxu1 %vm1890_vm2, %v1783_v52  ;;  %v1785_v6 = vmax.f32 %v1159_v43, %v1657_v53 }
 0x1cf   : > { %v1784_v3 = vmax.f32 %v1154_v50, %v1656_v56  ;;  %v1164_v4 = vadd.f32 %v1163_v1, %v14347_v20  ;;  %v14497_v50 = vpop.f32.mrb[34].mxu1 }
 0x1d0   : > { %v1659_v7 = vmul.f32 0.01, %v1169_v62  ;;  %v14500_v56 = vpop.f32.mrb[35].mxu1 }
 0x1d1   : > { %v1658_v11 = vmul.f32 0.01, %v1164_v4  ;;  %v11973_v13 = vpop.f32.mrb[38].mxu0  ;;  %12173 = vmatprep.mubr.msk.f32.mxu1 %vm1890_vm2, %v1784_v3 }
 0x1d2   : > { %v1179_v16 = vadd.f32 %v11973_v13, %v14347_v20  ;;  %v1173_v21 = vpop.f32.mrb[39].mxu0  ;;  %12174 = vmatmul.mubr.msk.f32.gmra.mrb[98].mxu1 %vm1890_vm2, %v1785_v6  ;;  %v1787_v28 = vmax.f32 %v1169_v62, %v1659_v7  ;;  %v14505_v7 = vpop.f32.mrb[36].mxu1 }
 0x1d3   : > { %v1786_v26 = vmax.f32 %v1164_v4, %v1658_v11  ;;  %v1174_v27 = vadd.f32 %v1173_v21, %v14347_v20 }
 0x1d4   : > { %v1661_v29 = vmul.f32 0.01, %v1179_v16 }
 0x1d5   : > { %v1660_v31 = vmul.f32 0.01, %v1174_v27  ;;  %v11976_v34 = vpop.f32.mrb[40].mxu0  ;;  %12176 = vmatprep.mubr.msk.f32.mxu1 %vm1890_vm2, %v1786_v26 }
 0x1d6   : > { %v1189_v39 = vadd.f32 %v11976_v34, %v14347_v20  ;;  %v1183_v40 = vpop.f32.mrb[41].mxu0  ;;  %12177 = vmatmul.mubr.msk.f32.gmra.mrb[100].mxu1 %vm1890_vm2, %v1787_v28  ;;  %v1789_v46 = vmax.f32 %v1179_v16, %v1661_v29  ;;  %v14508_v16 = vpop.f32.mrb[37].mxu1 }
 0x1d7   : > { %v1788_v41 = vmax.f32 %v1174_v27, %v1660_v31  ;;  %v1184_v43 = vadd.f32 %v1183_v40, %v14347_v20  ;;  %v14513_v34 = vpop.f32.mrb[38].mxu1 }
 0x1d8   : > { %v1663_v47 = vmul.f32 0.01, %v1189_v39 }
 0x1d9   : > { %v1662_v52 = vmul.f32 0.01, %v1184_v43  ;;  %v11979_v53 = vpop.f32.mrb[42].mxu0  ;;  %12179 = vmatprep.mubr.msk.f32.mxu1 %vm1890_vm2, %v1788_v41  ;;  %v14516_v41 = vpop.f32.mrb[39].mxu1 }
 0x1da   : > { %v1199_v58 = vadd.f32 %v11979_v53, %v14347_v20  ;;  %v1193_v62 = vpop.f32.mrb[43].mxu0  ;;  %12180 = vmatmul.mubr.msk.f32.gmra.mrb[102].mxu1 %vm1890_vm2, %v1789_v46  ;;  %v1791_v4 = vmax.f32 %v1189_v39, %v1663_v47 }
 0x1db   : > { %v1790_v1 = vmax.f32 %v1184_v43, %v1662_v52  ;;  %v1194_v3 = vadd.f32 %v1193_v62, %v14347_v20 }
 0x1dc   : > { %v1665_v6 = vmul.f32 0.01, %v1199_v58 }
 0x1dd   : > { %v1664_v11 = vmul.f32 0.01, %v1194_v3  ;;  %v11982_v13 = vpop.f32.mrb[44].mxu0  ;;  %12182 = vmatprep.mubr.msk.f32.mxu1 %vm1890_vm2, %v1790_v1 }
 0x1de   : > { %v1209_v21 = vadd.f32 %v11982_v13, %v14347_v20  ;;  %v1203_v26 = vpop.f32.mrb[45].mxu0  ;;  %12183 = vmatmul.mubr.msk.f32.gmra.mrb[104].mxu1 %vm1890_vm2, %v1791_v4  ;;  %v1793_v29 = vmax.f32 %v1199_v58, %v1665_v6  ;;  %v14521_v58 = vpop.f32.mrb[40].mxu1 }
 0x1df   : > { %v1792_v27 = vmax.f32 %v1194_v3, %v1664_v11  ;;  %v1204_v28 = vadd.f32 %v1203_v26, %v14347_v20  ;;  %v14524_v4 = vpop.f32.mrb[41].mxu1 }
 0x1e0   : > { %v1667_v31 = vmul.f32 0.01, %v1209_v21 }
 0x1e1   : > { %v1666_v39 = vmul.f32 0.01, %v1204_v28  ;;  %v11985_v40 = vpop.f32.mrb[46].mxu0  ;;  %12185 = vmatprep.mubr.msk.f32.mxu1 %vm1890_vm2, %v1792_v27 }
 0x1e2   : > { %v1219_v43 = vadd.f32 %v11985_v40, %v14347_v20  ;;  %v1213_v46 = vpop.f32.mrb[47].mxu0  ;;  %12186 = vmatmul.mubr.msk.f32.gmra.mrb[106].mxu1 %vm1890_vm2, %v1793_v29  ;;  %v1795_v53 = vmax.f32 %v1209_v21, %v1667_v31  ;;  %v14529_v21 = vpop.f32.mrb[42].mxu1 }
 0x1e3   : > { %v1794_v47 = vmax.f32 %v1204_v28, %v1666_v39  ;;  %v1214_v52 = vadd.f32 %v1213_v46, %v14347_v20  ;;  %v14532_v39 = vpop.f32.mrb[43].mxu1 }
 0x1e4   : > { %v1669_v62 = vmul.f32 0.01, %v1219_v43 }
 0x1e5   : > { %v1668_v1 = vmul.f32 0.01, %v1214_v52  ;;  %v11988_v3 = vpop.f32.mrb[48].mxu0  ;;  %12188 = vmatprep.mubr.msk.f32.mxu1 %vm1890_vm2, %v1794_v47 }
 0x1e6   : > { %v1229_v6 = vadd.f32 %v11988_v3, %v14347_v20  ;;  %v1223_v11 = vpop.f32.mrb[49].mxu0  ;;  %12189 = vmatmul.mubr.msk.f32.gmra.mrb[108].mxu1 %vm1890_vm2, %v1795_v53  ;;  %v1797_v27 = vmax.f32 %v1219_v43, %v1669_v62  ;;  %v14537_v43 = vpop.f32.mrb[44].mxu1 }
 0x1e7   : > { %v1796_v13 = vmax.f32 %v1214_v52, %v1668_v1  ;;  %v1224_v26 = vadd.f32 %v1223_v11, %v14347_v20  ;;  %16570 = vst [vmem:[#allocation14_spill] sm:$0xff] %v14537_v43  ;;  %v14540_v11 = vpop.f32.mrb[45].mxu1 }
 0x1e8   : > { %v1671_v28 = vmul.f32 0.01, %v1229_v6 }
 0x1e9   : > { %v1670_v29 = vmul.f32 0.01, %v1224_v26  ;;  %v11991_v31 = vpop.f32.mrb[50].mxu0  ;;  %12191 = vmatprep.mubr.msk.f32.mxu1 %vm1890_vm2, %v1796_v13 }
 0x1ea   : > { %v1239_v40 = vadd.f32 %v11991_v31, %v14347_v20  ;;  %v1233_v46 = vpop.f32.mrb[51].mxu0  ;;  %12192 = vmatmul.mubr.msk.f32.gmra.mrb[110].mxu1 %vm1890_vm2, %v1797_v27  ;;  %v1799_v53 = vmax.f32 %v1229_v6, %v1671_v28  ;;  %v14545_v6 = vpop.f32.mrb[46].mxu1 }
 0x1eb   : > { %v1798_v47 = vmax.f32 %v1224_v26, %v1670_v29  ;;  %v1234_v52 = vadd.f32 %v1233_v46, %v14347_v20  ;;  %16571 = vst [vmem:[#allocation15_spill] sm:$0xff] %v14545_v6  ;;  %v14548_v17 = vpop.f32.mrb[47].mxu1 }
 0x1ec   : > { %v1673_v1 = vmul.f32 0.01, %v1239_v40  ;;  %16572 = vst [vmem:[#allocation16_spill] sm:$0xff] %v14548_v17 }
 0x1ed   : > { %v1672_v62 = vmul.f32 0.01, %v1234_v52  ;;  %v11994_v3 = vpop.f32.mrb[52].mxu0  ;;  %12194 = vmatprep.mubr.msk.f32.mxu1 %vm1890_vm2, %v1798_v47 }
 0x1ee   : > { %v1249_v13 = vadd.f32 %v11994_v3, %v14347_v20  ;;  %v1243_v18 = vpop.f32.mrb[53].mxu0  ;;  %12195 = vmatmul.mubr.msk.f32.gmra.mrb[112].mxu1 %vm1890_vm2, %v1799_v53  ;;  %v1801_v27 = vmax.f32 %v1239_v40, %v1673_v1  ;;  %v14553_v40 = vpop.f32.mrb[48].mxu1 }
 0x1ef   : > { %v1800_v31 = vmax.f32 %v1234_v52, %v1672_v62  ;;  %v1244_v26 = vadd.f32 %v1243_v18, %v14347_v20  ;;  %16573 = vst [vmem:[#allocation17_spill] sm:$0xff] %v14553_v40  ;;  %v14556_v6 = vpop.f32.mrb[49].mxu1 }
 0x1f0   : > { %v1675_v29 = vmul.f32 0.01, %v1249_v13  ;;  %16574 = vst [vmem:[#allocation18_spill] sm:$0xff] %v14556_v6 }
 0x1f1   : > { %v1674_v28 = vmul.f32 0.01, %v1244_v26  ;;  %v11997_v46 = vpop.f32.mrb[54].mxu0  ;;  %12197 = vmatprep.mubr.msk.f32.mxu1 %vm1890_vm2, %v1800_v31 }
 0x1f2   : > { %v1259_v47 = vadd.f32 %v11997_v46, %v14347_v20  ;;  %v1253_v43 = vpop.f32.mrb[55].mxu0  ;;  %12198 = vmatmul.mubr.msk.f32.gmra.mrb[114].mxu1 %vm1890_vm2, %v1801_v27  ;;  %v1803_v53 = vmax.f32 %v1249_v13, %v1675_v29  ;;  %v14561_v13 = vpop.f32.mrb[50].mxu1 }
 0x1f3   : > { %v1802_v3 = vmax.f32 %v1244_v26, %v1674_v28  ;;  %v1254_v52 = vadd.f32 %v1253_v43, %v14347_v20  ;;  %16575 = vst [vmem:[#allocation19_spill] sm:$0xff] %v14561_v13  ;;  %v14564_v40 = vpop.f32.mrb[51].mxu1 }
 0x1f4   : > { %v1677_v18 = vmul.f32 0.01, %v1259_v47  ;;  %16576 = vst [vmem:[#allocation20_spill] sm:$0xff] %v14564_v40 }
 0x1f5   : > { %v1676_v1 = vmul.f32 0.01, %v1254_v52  ;;  %v12000_v62 = vpop.f32.mrb[56].mxu0  ;;  %12200 = vmatprep.mubr.msk.f32.mxu1 %vm1890_vm2, %v1802_v3 }
 0x1f6   : > { %v1269_v31 = vadd.f32 %v12000_v62, %v14347_v20  ;;  %v1263_v17 = vpop.f32.mrb[57].mxu0  ;;  %12201 = vmatmul.mubr.msk.f32.gmra.mrb[116].mxu1 %vm1890_vm2, %v1803_v53  ;;  %v1805_v27 = vmax.f32 %v1259_v47, %v1677_v18  ;;  %v14569_v47 = vpop.f32.mrb[52].mxu1 }
 0x1f7   : > { %v1804_v46 = vmax.f32 %v1254_v52, %v1676_v1  ;;  %v1264_v26 = vadd.f32 %v1263_v17, %v14347_v20  ;;  %16577 = vst [vmem:[#allocation21_spill] sm:$0xff] %v14569_v47  ;;  %v14572_v13 = vpop.f32.mrb[53].mxu1 }
 0x1f8   : > { %v1679_v43 = vmul.f32 0.01, %v1269_v31  ;;  %16578 = vst [vmem:[#allocation22_spill] sm:$0xff] %v14572_v13 }
 0x1f9   : > { %v1678_v29 = vmul.f32 0.01, %v1264_v26  ;;  %v12003_v28 = vpop.f32.mrb[58].mxu0  ;;  %12203 = vmatprep.mubr.msk.f32.mxu1 %vm1890_vm2, %v1804_v46 }
 0x1fa   : > { %v1279_v3 = vadd.f32 %v12003_v28, %v14347_v20  ;;  %v1273_v6 = vpop.f32.mrb[59].mxu0  ;;  %12204 = vmatmul.mubr.msk.f32.gmra.mrb[118].mxu1 %vm1890_vm2, %v1805_v27  ;;  %v1807_v53 = vmax.f32 %v1269_v31, %v1679_v43  ;;  %v14577_v31 = vpop.f32.mrb[54].mxu1  ;;  %v1304_v43 = vadd.f32 %v14363_v54, %v14347_v20 }
 0x1fb   : > { %v1806_v62 = vmax.f32 %v1264_v26, %v1678_v29  ;;  %v1274_v52 = vadd.f32 %v1273_v6, %v14347_v20  ;;  %16579 = vst [vmem:[#allocation23_spill] sm:$0xff] %v14577_v31 }
 0x1fc   : > { %v1681_v17 = vmul.f32 0.01, %v1279_v3 }
 0x1fd   : > { %v1680_v18 = vmul.f32 0.01, %v1274_v52  ;;  %v12006_v1 = vpop.f32.mrb[60].mxu0  ;;  %12206 = vmatprep.mubr.msk.f32.mxu1 %vm1890_vm2, %v1806_v62  ;;  %v14582_v62 = vpop.f32.mrb[55].mxu1 }
 0x1fe   : > { %v1289_v46 = vadd.f32 %v12006_v1, %v14347_v20  ;;  %v1283_v40 = vpop.f32.mrb[61].mxu0  ;;  %12207 = vmatmul.mubr.msk.f32.gmra.mrb[120].mxu1 %vm1890_vm2, %v1807_v53  ;;  %v1809_v27 = vmax.f32 %v1279_v3, %v1681_v17  ;;  %v1309_v3 = vadd.f32 %v14361_v51, %v14347_v20  ;;  %v14589_v54 = vpop.f32.mrb[56].mxu1  ;;  %v1319_v51 = vadd.f32 %v14369_v63, %v14347_v20 }
 0x1ff   : > { %v1808_v28 = vmax.f32 %v1274_v52, %v1680_v18  ;;  %v1284_v26 = vadd.f32 %v1283_v40, %v14347_v20  ;;  %v1686_v18 = vmul.f32 0.01, %v1304_v43 }
 0x200   : > { %v1683_v6 = vmul.f32 0.01, %v1289_v46 }
 0x201   : > { %v1682_v29 = vmul.f32 0.01, %v1284_v26  ;;  %v12009_v47 = vpop.f32.mrb[62].mxu0  ;;  %12209 = vmatprep.mubr.msk.f32.mxu1 %vm1890_vm2, %v1808_v28  ;;  %v1314_v28 = vadd.f32 %v14372_v2, %v14347_v20  ;;  %v1324_v2 = vadd.f32 %v14380_v12, %v14347_v20 }
 0x202   : > { %v1299_v1 = vadd.f32 %v12009_v47, %v14347_v20  ;;  %v1293_v13 = vpop.f32.mrb[63].mxu0  ;;  %12210 = vmatmul.mubr.msk.f32.gmra.mrb[122].mxu1 %vm1890_vm2, %v1809_v27  ;;  %v1811_v53 = vmax.f32 %v1289_v46, %v1683_v6  ;;  %v14594_v47 = vpop.f32.mrb[57].mxu1  ;;  %v1814_v6 = vmax.f32 %v1304_v43, %v1686_v18  ;;  %v1329_v43 = vadd.f32 %v14377_v9, %v14347_v20 }
 0x203   : > { %v1810_v52 = vmax.f32 %v1284_v26, %v1682_v29  ;;  %v1294_v40 = vadd.f32 %v1293_v13, %v14347_v20  ;;  %v1687_v13 = vmul.f32 0.01, %v1309_v3  ;;  %v14599_v27 = vpop.f32.mrb[58].mxu1  ;;  %v1688_v29 = vmul.f32 0.01, %v1314_v28 }
 0x204   : > { %v1685_v17 = vmul.f32 0.01, %v1299_v1  ;;  %16580 = vst [vmem:[#allocation24_spill] sm:$0xff] %v14599_v27  ;;  %v1690_v12 = vmul.f32 0.01, %v1324_v2  ;;  %v1339_v9 = vadd.f32 %v14385_v22, %v14347_v20 }
 0x205   : > { %v1684_v31 = vmul.f32 0.01, %v1294_v40  ;;  %12212 = vmatprep.mubr.msk.f32.mxu1 %vm1890_vm2, %v1810_v52  ;;  %v14604_v52 = vpop.f32.mrb[59].mxu1  ;;  %v1815_v63 = vmax.f32 %v1309_v3, %v1687_v13  ;;  %v1816_v18 = vmax.f32 %v1314_v28, %v1688_v29  ;;  %v1691_v13 = vmul.f32 0.01, %v1329_v43 }
 0x206   : > { %12213 = vmatmul.mubr.msk.f32.gmra.mrb[124].mxu1 %vm1890_vm2, %v1811_v53  ;;  %v1813_v46 = vmax.f32 %v1299_v1, %v1685_v17  ;;  %v4597_v53 = vld [vmem:[#allocation6 + $0x90] sm:$0xff]  ;;  %v1689_v1 = vmul.f32 0.01, %v1319_v51  ;;  %v14610_v17 = vpop.f32.mrb[60].mxu1  ;;  %v1818_v28 = vmax.f32 %v1324_v2, %v1690_v12  ;;  %v1354_v2 = vadd.f32 %v14404_v48, %v14347_v20 }
 0x207   : > { %v1812_v26 = vmax.f32 %v1294_v40, %v1684_v31  ;;  %v4598_v31 = vld [vmem:[#allocation6 + $0x98] sm:$0xff]  ;;  %v14614_v27 = vpop.f32.mrb[61].mxu1  ;;  %v1364_v12 = vadd.f32 %v14412_v60, %v14347_v20 }
 0x208   : > { %v13390_v40 = vpack.c.bf16 %v4598_v31, %v4597_v53  ;;  %v1817_v3 = vmax.f32 %v1319_v51, %v1689_v1  ;;  %v1819_v53 = vmax.f32 %v1329_v43, %v1691_v13  ;;  %v1693_v31 = vmul.f32 0.01, %v1339_v9 }
 0x209   : > { %12215 = vmatprep.mubr.msk.f32.mxu1 %vm1890_vm2, %v1812_v26  ;;  %v1334_v26 = vadd.f32 %v14388_v25, %v14347_v20  ;;  %v1344_v25 = vadd.f32 %v14396_v35, %v14347_v20  ;;  %v1349_v51 = vadd.f32 %v14393_v32, %v14347_v20  ;;  %v1359_v1 = vadd.f32 %v14401_v44, %v14347_v20 }
 0x20a   : > { %12216 = vmatmul.mubr.msk.f32.gmra.mrb[126].mxu1 %vm1890_vm2, %v1813_v46  ;;  %13391 = vmatprep.subr.bf16.mxu1 %v13390_v40  ;;  %v14620_v46 = vpop.f32.mrb[62].mxu1  ;;  %v1821_v35 = vmax.f32 %v1339_v9, %v1693_v31  ;;  %v1696_v43 = vmul.f32 0.01, %v1354_v2  ;;  %v1698_v13 = vmul.f32 0.01, %v1364_v12  ;;  %v1374_v9 = vadd.f32 %v14420_v8, %v14347_v20 }
 0x20b   : > { %12218 = vmatprep.mubr.msk.f32.mxu1 %vm1890_vm2, %v1814_v6  ;;  %13393 = vmatpush3.bf16.msra.mxu1 %v13390_v40  ;;  %v1692_v6 = vmul.f32 0.01, %v1334_v26  ;;  %v14624_v29 = vpop.f32.mrb[63].mxu1  ;;  %v1694_v22 = vmul.f32 0.01, %v1344_v25  ;;  %v1389_v31 = vadd.f32 %v14425_v19, %v14347_v20 }
 0x20c   : > { %v1697_v48 = vmul.f32 0.01, %v1359_v1 }
 0x20d   : > { %v1820_v40 = vmax.f32 %v1334_v26, %v1692_v6  ;;  %v1369_v26 = vadd.f32 %v14409_v57, %v14347_v20  ;;  %v1826_v6 = vmax.f32 %v1364_v12, %v1698_v13  ;;  %v1424_v13 = vadd.f32 %v14460_v23, %v14347_v20 }
 0x20e   : > { %12219 = vmatmul.mubr.msk.f32.gmra.mrb[128].mxu1 %vm1890_vm2, %v1815_v63  ;;  %v1695_v63 = vmul.f32 0.01, %v1349_v51  ;;  %v1825_v44 = vmax.f32 %v1359_v1, %v1697_v48  ;;  %v1404_v1 = vadd.f32 %v14444_v49, %v14347_v20  ;;  %v1419_v48 = vadd.f32 %v14449_v59, %v14347_v20 }
 0x20f   : > { %12221 = vmatprep.mubr.msk.f32.mxu1 %vm1890_vm2, %v1816_v18  ;;  %v1822_v18 = vmax.f32 %v1344_v25, %v1694_v22  ;;  %v1699_v60 = vmul.f32 0.01, %v1369_v26  ;;  %v1700_v25 = vmul.f32 0.01, %v1374_v9  ;;  %v1394_v22 = vadd.f32 %v14436_v37, %v14347_v20 }
 0x210   : > { %v1823_v32 = vmax.f32 %v1349_v51, %v1695_v63  ;;  %v1706_v12 = vmul.f32 0.01, %v1404_v1 }
 0x211   : > { %v1827_v57 = vmax.f32 %v1369_v26, %v1699_v60  ;;  %v1828_v51 = vmax.f32 %v1374_v9, %v1700_v25  ;;  %v1704_v63 = vmul.f32 0.01, %v1394_v22  ;;  %v1429_v9 = vadd.f32 %v14457_v14, %v14347_v20 }
 0x212   : > { %12222 = vmatmul.mubr.msk.f32.gmra.mrb[130].mxu1 %vm1890_vm2, %v1817_v3  ;;  %v1824_v3 = vmax.f32 %v1354_v2, %v1696_v43  ;;  %v1399_v2 = vadd.f32 %v14433_v33, %v14347_v20  ;;  %v1834_v26 = vmax.f32 %v1404_v1, %v1706_v12  ;;  %v1710_v60 = vmul.f32 0.01, %v1424_v13 }
 0x213   : > { %12224 = vmatprep.mubr.msk.f32.mxu1 %vm1890_vm2, %v1818_v28  ;;  %v1379_v28 = vadd.f32 %v14417_v5, %v14347_v20  ;;  %v1832_v43 = vmax.f32 %v1394_v22, %v1704_v63  ;;  %v1711_v23 = vmul.f32 0.01, %v1429_v9  ;;  %v1459_v22 = vadd.f32 %v14481_v10, %v14347_v20 }
 0x214   : > { %v1705_v37 = vmul.f32 0.01, %v1399_v2  ;;  %v1838_v25 = vmax.f32 %v1424_v13, %v1710_v60  ;;  %v1484_v12 = vadd.f32 %v14508_v16, %v14347_v20  ;;  %v1509_v60 = vadd.f32 %v14521_v58, %v14347_v20  ;;  %v522_v58 = vld [vmem:[#allocation7] sm:$0xf] }
 0x215   : > { %v1701_v8 = vmul.f32 0.01, %v1379_v28  ;;  %v1839_v14 = vmax.f32 %v1429_v9, %v1711_v23  ;;  %v1514_v23 = vadd.f32 %v14532_v39, %v14347_v20 }
 0x216   : > { %12225 = vmatmul.mubr.msk.f32.gmra.mrb[132].mxu1 %vm1890_vm2, %v1819_v53  ;;  %v1384_v53 = vadd.f32 %v14428_v24, %v14347_v20  ;;  %v1703_v24 = vmul.f32 0.01, %v1389_v31  ;;  %v1833_v33 = vmax.f32 %v1399_v2, %v1705_v37  ;;  %v1464_v2 = vadd.f32 %v14492_v36, %v14347_v20 }
 0x217   : > { %12227 = vmatprep.mubr.msk.f32.mxu1 %vm1890_vm2, %v1820_v40  ;;  %v1829_v5 = vmax.f32 %v1379_v28, %v1701_v8  ;;  %v1434_v28 = vadd.f32 %v14468_v42, %v14347_v20  ;;  %v1449_v8 = vadd.f32 %v14473_v55, %v14347_v20  ;;  %v1479_v37 = vadd.f32 %v14497_v50, %v14347_v20 }
 0x218   : > { %v1702_v40 = vmul.f32 0.01, %v1384_v53  ;;  %v1831_v19 = vmax.f32 %v1389_v31, %v1703_v24  ;;  %v1718_v1 = vmul.f32 0.01, %v1464_v2  ;;  %v1494_v50 = vadd.f32 %v14516_v41, %v14347_v20 }
 0x21a   : > { %12228 = vmatmul.mubr.msk.f32.gmra.mrb[134].mxu1 %vm1890_vm2, %v1821_v35  ;;  %v1830_v35 = vmax.f32 %v1384_v53, %v1702_v40  ;;  %v1712_v53 = vmul.f32 0.01, %v1434_v28  ;;  %v1454_v40 = vadd.f32 %v14484_v15, %v14347_v20  ;;  %v1717_v15 = vmul.f32 0.01, %v1459_v22 }
 0x21b   : > { %12230 = vmatprep.mubr.msk.f32.mxu1 %vm1890_vm2, %v1822_v18  ;;  %v1409_v18 = vadd.f32 %v14441_v45, %v14347_v20  ;;  %v1724_v9 = vmul.f32 0.01, %v1494_v50 }
 0x21c   : > { %v1840_v31 = vmax.f32 %v1434_v28, %v1712_v53  ;;  %v1716_v24 = vmul.f32 0.01, %v1454_v40  ;;  %v1845_v10 = vmax.f32 %v1459_v22, %v1717_v15  ;;  %v1728_v53 = vmul.f32 0.01, %v1514_v23  ;;  %v16585_v22 = vld [vmem:[#allocation15_spill] sm:$0xff] }
 0x21d   : > { %v1707_v49 = vmul.f32 0.01, %v1409_v18  ;;  %v1852_v28 = vmax.f32 %v1494_v50, %v1724_v9  ;;  %v16589_v9 = vld [vmem:[#allocation19_spill] sm:$0xff] }
 0x21e   : > { %12231 = vmatmul.mubr.msk.f32.gmra.mrb[136].mxu1 %vm1890_vm2, %v1823_v32  ;;  %v1414_v32 = vadd.f32 %v14452_v0, %v14347_v20  ;;  %v1709_v0 = vmul.f32 0.01, %v1419_v48  ;;  %v1844_v63 = vmax.f32 %v1454_v40, %v1716_v24  ;;  %v16582_v40 = vld [vmem:[#allocation16_spill] sm:$0xff] }
 0x21f   : > { %12233 = vmatprep.mubr.msk.f32.mxu1 %vm1890_vm2, %v1824_v3  ;;  %v1835_v45 = vmax.f32 %v1409_v18, %v1707_v49  ;;  %v1846_v18 = vmax.f32 %v1464_v2, %v1718_v1  ;;  %v1721_v49 = vmul.f32 0.01, %v1479_v37 }
 0x220   : > { %v1708_v3 = vmul.f32 0.01, %v1414_v32  ;;  %v1837_v59 = vmax.f32 %v1419_v48, %v1709_v0  ;;  %v1489_v48 = vadd.f32 %v14505_v7, %v14347_v20  ;;  %v1504_v7 = vadd.f32 %v14524_v4, %v14347_v20 }
 0x221   : > { %v1849_v16 = vmax.f32 %v1479_v37, %v1721_v49  ;;  %v1727_v4 = vmul.f32 0.01, %v1509_v60 }
 0x222   : > { %12234 = vmatmul.mubr.msk.f32.gmra.mrb[138].mxu1 %vm1890_vm2, %v1825_v44  ;;  %v1836_v44 = vmax.f32 %v1414_v32, %v1708_v3  ;;  %v4600_v32 = vld [vmem:[#allocation6 + $0xa8] sm:$0xff]  ;;  %v1722_v3 = vmul.f32 0.01, %v1484_v12  ;;  %v1723_v13 = vmul.f32 0.01, %v1489_v48 }
 0x223   : > { %12236 = vmatprep.mubr.msk.f32.mxu1 %vm1890_vm2, %v1826_v6  ;;  %v1439_v6 = vadd.f32 %v14465_v38, %v14347_v20  ;;  %v1855_v39 = vmax.f32 %v1509_v60, %v1727_v4 }
 0x224   : > { %v1850_v0 = vmax.f32 %v1484_v12, %v1722_v3  ;;  %v1851_v41 = vmax.f32 %v1489_v48, %v1723_v13 }
 0x225   : > { %v1713_v42 = vmul.f32 0.01, %v1439_v6 }
 0x226   : > { %12237 = vmatmul.mubr.msk.f32.gmra.mrb[140].mxu1 %vm1890_vm2, %v1827_v57  ;;  %v1444_v57 = vadd.f32 %v14476_v61, %v14347_v20  ;;  %v1715_v61 = vmul.f32 0.01, %v1449_v8 }
 0x227   : > { %12239 = vmatprep.mubr.msk.f32.mxu1 %vm1890_vm2, %v1828_v51  ;;  %v1841_v38 = vmax.f32 %v1439_v6, %v1713_v42  ;;  %v1519_v6 = vadd.f32 %v14529_v21, %v14347_v20  ;;  %v16581_v42 = vld [vmem:[#allocation14_spill] sm:$0xff]  ;;  %v1534_v21 = vadd.f32 %v16582_v40, %v14347_v20 }
 0x228   : > { %v1714_v51 = vmul.f32 0.01, %v1444_v57  ;;  %v1843_v55 = vmax.f32 %v1449_v8, %v1715_v61  ;;  %v1529_v8 = vadd.f32 %v16581_v42, %v14347_v20 }
 0x229   : > { %v1732_v15 = vmul.f32 0.01, %v1534_v21 }
 0x22a   : > { %12240 = vmatmul.mubr.msk.f32.gmra.mrb[142].mxu1 %vm1890_vm2, %v1829_v5  ;;  %v1842_v5 = vmax.f32 %v1444_v57, %v1714_v51  ;;  %v1524_v57 = vadd.f32 %v14540_v11, %v14347_v20  ;;  %v1731_v2 = vmul.f32 0.01, %v1529_v8 }
 0x22b   : > { %12242 = vmatprep.mubr.msk.f32.mxu1 %vm1890_vm2, %v1830_v35  ;;  %v1469_v35 = vadd.f32 %v14489_v30, %v14347_v20  ;;  %v4599_v30 = vld [vmem:[#allocation6 + $0xa0] sm:$0xff] }
 0x22c   : > { %v1730_v51 = vmul.f32 0.01, %v1524_v57 }
 0x22d   : > { %v1719_v36 = vmul.f32 0.01, %v1469_v35 }
 0x22e   : > { %12243 = vmatmul.mubr.msk.f32.gmra.mrb[144].mxu1 %vm1890_vm2, %v1831_v19  ;;  %v1474_v19 = vadd.f32 %v14500_v56, %v14347_v20  ;;  %v13394_v56 = vpack.c.bf16 %v4600_v32, %v4599_v30  ;;  %v1860_v32 = vmax.f32 %v1534_v21, %v1732_v15  ;;  %v1574_v21 = vadd.f32 %v14582_v62, %v14347_v20  ;;  %v16592_v62 = vld [vmem:[#allocation23_spill] sm:$0xff] }
 0x22f   : > { %12245 = vmatprep.mubr.msk.f32.mxu1 %vm1890_vm2, %v1832_v43 }
 0x230   : > { %v1720_v43 = vmul.f32 0.01, %v1474_v19  ;;  %13395 = vmatprep.subr.bf16.mxu1 %v13394_v56 }
 0x231   : > { %13397 = vmatpush3.bf16.msra.mxu1 %v13394_v56 }
 0x232   : > { %12246 = vmatmul.mubr.msk.f32.gmra.mrb[146].mxu1 %vm1890_vm2, %v1833_v33  ;;  %v1847_v33 = vmax.f32 %v1469_v35, %v1719_v36  ;;  %v16586_v35 = vld [vmem:[#allocation18_spill] sm:$0xff] }
 0x233   : > { %12248 = vmatprep.mubr.msk.f32.mxu1 %vm1890_vm2, %v1834_v26  ;;  %v1848_v26 = vmax.f32 %v1474_v19, %v1720_v43  ;;  %v16587_v43 = vld [vmem:[#allocation17_spill] sm:$0xff] }
 0x234   : > { %v1549_v12 = vadd.f32 %v16587_v43, %v14347_v20 }
 0x236   : > { %12249 = vmatmul.mubr.msk.f32.gmra.mrb[148].mxu1 %vm1890_vm2, %v1835_v45  ;;  %v1499_v45 = vadd.f32 %v14513_v34, %v14347_v20 }
 0x237   : > { %12251 = vmatprep.mubr.msk.f32.mxu1 %vm1890_vm2, %v1836_v44 }
 0x238   : > { %v1725_v44 = vmul.f32 0.01, %v1499_v45 }
 0x23a   : > { %12252 = vmatmul.mubr.msk.f32.gmra.mrb[150].mxu1 %vm1890_vm2, %v1837_v59  ;;  %v1726_v59 = vmul.f32 0.01, %v1504_v7  ;;  %v1853_v34 = vmax.f32 %v1499_v45, %v1725_v44 }
 0x23b   : > { %12254 = vmatprep.mubr.msk.f32.mxu1 %vm1890_vm2, %v1838_v25 }
 0x23c   : > { %v1854_v25 = vmax.f32 %v1504_v7, %v1726_v59  ;;  %v1559_v7 = vadd.f32 %v16589_v9, %v14347_v20  ;;  %v16590_v59 = vld [vmem:[#allocation22_spill] sm:$0xff] }
 0x23e   : > { %12255 = vmatmul.mubr.msk.f32.gmra.mrb[152].mxu1 %vm1890_vm2, %v1839_v14  ;;  %v1729_v14 = vmul.f32 0.01, %v1519_v6  ;;  %v1737_v42 = vmul.f32 0.01, %v1559_v7 }
 0x23f   : > { %12257 = vmatprep.mubr.msk.f32.mxu1 %vm1890_vm2, %v1840_v31  ;;  %v1856_v31 = vmax.f32 %v1514_v23, %v1728_v53  ;;  %v1564_v23 = vadd.f32 %v16590_v59, %v14347_v20  ;;  %v16591_v53 = vld [vmem:[#allocation21_spill] sm:$0xff] }
 0x240   : > { %v1857_v24 = vmax.f32 %v1519_v6, %v1729_v14 }
 0x241   : > { %v1738_v40 = vmul.f32 0.01, %v1564_v23 }
 0x242   : > { %12258 = vmatmul.mubr.msk.f32.gmra.mrb[154].mxu1 %vm1890_vm2, %v1841_v38  ;;  %v16583_v38 = vld [vmem:[#allocation13_spill] sm:$0xff] }
 0x243   : > { %12260 = vmatprep.mubr.msk.f32.mxu1 %vm1890_vm2, %v1842_v5  ;;  %v16584_v61 = vsub.s32 0, %v16583_v38  ;;  %v1539_v5 = vadd.f32 %v16585_v22, %v14347_v20 }
 0x245   : > { %v14743_v11 = vrot.slane %v522_v58, %v16584_v61  ;;  %v1733_v36 = vmul.f32 0.01, %v1539_v5 }
 0x246   : > { %12261 = vmatmul.mubr.msk.f32.gmra.mrb[156].mxu1 %vm1890_vm2, %v1843_v55  ;;  %v1858_v55 = vmax.f32 %v1524_v57, %v1730_v51  ;;  %v1569_v57 = vadd.f32 %v16591_v53, %v14347_v20 }
 0x247   : > { %12263 = vmatprep.mubr.msk.f32.mxu1 %vm1890_vm2, %v1844_v63  ;;  %v1544_v63 = vadd.f32 %v16586_v35, %v14347_v20  ;;  %v1865_v35 = vmax.f32 %v1559_v7, %v1737_v42 }
 0x249   : > { %v1734_v56 = vmul.f32 0.01, %v1544_v63 }
 0x24a   : > { %12264 = vmatmul.mubr.msk.f32.gmra.mrb[158].mxu1 %vm1890_vm2, %v1845_v10 }
 0x24b   : > { %12266 = vmatprep.mubr.msk.f32.mxu1 %vm1890_vm2, %v1846_v18  ;;  %v1859_v18 = vmax.f32 %v1529_v8, %v1731_v2  ;;  %v1862_v60 = vmax.f32 %v1544_v63, %v1734_v56  ;;  %v1739_v2 = vmul.f32 0.01, %v1569_v57  ;;  %v1579_v63 = vadd.f32 %v16592_v62, %v14347_v20 }
 0x24e   : > { %12267 = vmatmul.mubr.msk.f32.gmra.mrb[160].mxu1 %vm1890_vm2, %v1847_v33  ;;  %v16588_v33 = vld [vmem:[#allocation20_spill] sm:$0xff] }
 0x24f   : > { %12269 = vmatprep.mubr.msk.f32.mxu1 %vm1890_vm2, %v1848_v26  ;;  %v1554_v49 = vadd.f32 %v16588_v33, %v14347_v20 }
 0x252   : > { %12270 = vmatmul.mubr.msk.f32.gmra.mrb[162].mxu1 %vm1890_vm2, %v1849_v16  ;;  %v1861_v16 = vmax.f32 %v1539_v5, %v1733_v36  ;;  %v1740_v36 = vmul.f32 0.01, %v1574_v21 }
 0x253   : > { %12272 = vmatprep.mubr.msk.f32.mxu1 %vm1890_vm2, %v1850_v0  ;;  %v1735_v0 = vmul.f32 0.01, %v1549_v12 }
 0x255   : > { %v1863_v14 = vmax.f32 %v1549_v12, %v1735_v0 }
 0x256   : > { %12273 = vmatmul.mubr.msk.f32.gmra.mrb[164].mxu1 %vm1890_vm2, %v1851_v41 }
 0x257   : > { %12275 = vmatprep.mubr.msk.f32.mxu1 %vm1890_vm2, %v1852_v28  ;;  %v1736_v28 = vmul.f32 0.01, %v1554_v49 }
 0x259   : > { %v1864_v51 = vmax.f32 %v1554_v49, %v1736_v28  ;;  %v1741_v49 = vmul.f32 0.01, %v1579_v63 }
 0x25a   : > { %12276 = vmatmul.mubr.msk.f32.gmra.mrb[166].mxu1 %vm1890_vm2, %v1853_v34 }
 0x25b   : > { %12278 = vmatprep.mubr.msk.f32.mxu1 %vm1890_vm2, %v1854_v25 }
 0x25e   : > { %12279 = vmatmul.mubr.msk.f32.gmra.mrb[168].mxu1 %vm1890_vm2, %v1855_v39 }
 0x25f   : > { %12281 = vmatprep.mubr.msk.f32.mxu1 %vm1890_vm2, %v1856_v31 }
 0x261   : > { %v12124_v1 = vpop.f32.mrb[64].mxu1 }
 0x262   : > { %v2347_v19 = vadd.f32 %v12124_v1, %v14743_v11  ;;  %v2341_v10 = vpop.f32.mrb[65].mxu1  ;;  %12282 = vmatmul.mubr.msk.f32.gmra.mrb[170].mxu1 %vm1890_vm2, %v1857_v24 }
 0x263   : > { %v2342_v37 = vadd.f32 %v2341_v10, %v14743_v11  ;;  %12284 = vmatprep.mubr.msk.f32.mxu1 %vm1890_vm2, %v1858_v55  ;;  %v1866_v10 = vmax.f32 %v1564_v23, %v1738_v40 }
 0x264   : > { %v2981_v30 = vmul.f32 0.01, %v2347_v19 }
 0x265   : > { %v2980_v48 = vmul.f32 0.01, %v2342_v37  ;;  %v12127_v26 = vpop.f32.mrb[66].mxu1 }
 0x266   : > { %v2357_v3 = vadd.f32 %v12127_v26, %v14743_v11  ;;  %v2351_v50 = vpop.f32.mrb[67].mxu1  ;;  %12285 = vmatmul.mubr.msk.f32.gmra.mrb[172].mxu1 %vm1890_vm2, %v1859_v18  ;;  %v3109_v41 = vmax.f32 %v2347_v19, %v2981_v30 }
 0x267   : > { %v3108_v13 = vmax.f32 %v2342_v37, %v2980_v48  ;;  %v2352_v45 = vadd.f32 %v2351_v50, %v14743_v11  ;;  %12287 = vmatprep.mubr.msk.f32.mxu1 %vm1890_vm2, %v1860_v32  ;;  %v1584_v37 = vadd.f32 %v14594_v47, %v14347_v20  ;;  %v1867_v32 = vmax.f32 %v1569_v57, %v1739_v2 }
 0x268   : > { %v2983_v44 = vmul.f32 0.01, %v2357_v3  ;;  %v1589_v47 = vadd.f32 %v14589_v54, %v14347_v20  ;;  %v16593_v54 = vld [vmem:[#allocation24_spill] sm:$0xff] }
 0x269   : > { %v2982_v34 = vmul.f32 0.01, %v2352_v45  ;;  %v12130_v4 = vpop.f32.mrb[68].mxu1  ;;  %12330 = vmatprep.mubr.msk.f32.mxu0 %vm1890_vm2, %v3108_v13  ;;  %v1742_v50 = vmul.f32 0.01, %v1584_v37  ;;  %v1599_v7 = vadd.f32 %v16593_v54, %v14347_v20  ;;  %v4601_v54 = vld [vmem:[#allocation6 + $0xb0] sm:$0xff] }
 0x26a   : > { %v2367_v6 = vadd.f32 %v12130_v4, %v14743_v11  ;;  %v2361_v25 = vpop.f32.mrb[69].mxu1  ;;  %12288 = vmatmul.mubr.msk.f32.gmra.mrb[174].mxu1 %vm1890_vm2, %v1861_v16  ;;  %12331 = vmatmul.mubr.msk.f32.vlgmr.msra.gmra.mrb[64].mxu0 %vm1890_vm2, %v3109_v41  ;;  %v3111_v8 = vmax.f32 %v2357_v3, %v2983_v44  ;;  %v1868_v3 = vmax.f32 %v1574_v21, %v1740_v36 }
 0x26b   : > { %v3110_v58 = vmax.f32 %v2352_v45, %v2982_v34  ;;  %v2362_v39 = vadd.f32 %v2361_v25, %v14743_v11  ;;  %12290 = vmatprep.mubr.msk.f32.mxu1 %vm1890_vm2, %v1862_v60  ;;  %v1594_v16 = vadd.f32 %v14604_v52, %v14347_v20  ;;  %v1869_v52 = vmax.f32 %v1579_v63, %v1741_v49 }
 0x26c   : > { %v2985_v31 = vmul.f32 0.01, %v2367_v6  ;;  %v1743_v60 = vmul.f32 0.01, %v1589_v47  ;;  %v1870_v23 = vmax.f32 %v1584_v37, %v1742_v50  ;;  %v1604_v4 = vadd.f32 %v14614_v27, %v14347_v20 }
 0x26d   : > { %v2984_v61 = vmul.f32 0.01, %v2362_v39  ;;  %v12133_v22 = vpop.f32.mrb[70].mxu1  ;;  %12333 = vmatprep.mubr.msk.f32.mxu0 %vm1890_vm2, %v3110_v58  ;;  %v1744_v34 = vmul.f32 0.01, %v1594_v16  ;;  %v1609_v27 = vadd.f32 %v14610_v17, %v14347_v20  ;;  %v1614_v21 = vadd.f32 %v14624_v29, %v14347_v20 }
 0x26e   : > { %v2377_v5 = vadd.f32 %v12133_v22, %v14743_v11  ;;  %v2371_v24 = vpop.f32.mrb[71].mxu1  ;;  %12291 = vmatmul.mubr.msk.f32.gmra.mrb[176].mxu1 %vm1890_vm2, %v1863_v14  ;;  %12334 = vmatmul.mubr.msk.f32.gmra.mrb[66].mxu0 %vm1890_vm2, %v3111_v8  ;;  %v3113_v1 = vmax.f32 %v2367_v6, %v2985_v31  ;;  %v1745_v58 = vmul.f32 0.01, %v1599_v7  ;;  %v1871_v42 = vmax.f32 %v1589_v47, %v1743_v60 }
 0x26f   : > { %v3112_v55 = vmax.f32 %v2362_v39, %v2984_v61  ;;  %v2372_v15 = vadd.f32 %v2371_v24, %v14743_v11  ;;  %12293 = vmatprep.mubr.msk.f32.mxu1 %vm1890_vm2, %v1864_v51  ;;  %v1872_v51 = vmax.f32 %v1594_v16, %v1744_v34  ;;  %v1746_v40 = vmul.f32 0.01, %v1604_v4 }
 0x270   : > { %v2987_v19 = vmul.f32 0.01, %v2377_v5  ;;  %v1873_v2 = vmax.f32 %v1599_v7, %v1745_v58  ;;  %v1619_v29 = vadd.f32 %v14620_v46, %v14347_v20  ;;  %v4602_v7 = vld [vmem:[#allocation6 + $0xb8] sm:$0xff] }
 0x271   : > { %v2986_v18 = vmul.f32 0.01, %v2372_v15  ;;  %v12136_v43 = vpop.f32.mrb[72].mxu1  ;;  %12336 = vmatprep.mubr.msk.f32.mxu0 %vm1890_vm2, %v3112_v55  ;;  %v1874_v63 = vmax.f32 %v1604_v4, %v1746_v40 }
 0x272   : > { %v2387_v12 = vadd.f32 %v12136_v43, %v14743_v11  ;;  %v2381_v30 = vpop.f32.mrb[73].mxu1  ;;  %12294 = vmatmul.mubr.msk.f32.gmra.mrb[178].mxu1 %vm1890_vm2, %v1865_v35  ;;  %12337 = vmatmul.mubr.msk.f32.gmra.mrb[68].mxu0 %vm1890_vm2, %v3113_v1  ;;  %v3115_v48 = vmax.f32 %v2377_v5, %v2987_v19  ;;  %v1748_v1 = vmul.f32 0.01, %v1614_v21  ;;  %v1749_v46 = vmul.f32 0.01, %v1619_v29 }
 0x273   : > { %v3114_v56 = vmax.f32 %v2372_v15, %v2986_v18  ;;  %v2382_v33 = vadd.f32 %v2381_v30, %v14743_v11  ;;  %12296 = vmatprep.mubr.msk.f32.mxu1 %vm1890_vm2, %v1866_v10  ;;  %v1747_v15 = vmul.f32 0.01, %v1609_v27 }
 0x274   : > { %v2989_v26 = vmul.f32 0.01, %v2387_v12 }
 0x275   : > { %v2988_v13 = vmul.f32 0.01, %v2382_v33  ;;  %v12139_v45 = vpop.f32.mrb[74].mxu1  ;;  %12339 = vmatprep.mubr.msk.f32.mxu0 %vm1890_vm2, %v3114_v56  ;;  %v1875_v20 = vmax.f32 %v1609_v27, %v1747_v15 }
 0x276   : > { %v2397_v0 = vadd.f32 %v12139_v45, %v14743_v11  ;;  %v2391_v9 = vpop.f32.mrb[75].mxu1  ;;  %12297 = vmatmul.mubr.msk.f32.gmra.mrb[180].mxu1 %vm1890_vm2, %v1867_v32  ;;  %12340 = vmatmul.mubr.msk.f32.gmra.mrb[70].mxu0 %vm1890_vm2, %v3115_v48  ;;  %v3117_v28 = vmax.f32 %v2387_v12, %v2989_v26  ;;  %v1876_v32 = vmax.f32 %v1614_v21, %v1748_v1 }
 0x277   : > { %v3116_v41 = vmax.f32 %v2382_v33, %v2988_v13  ;;  %v2392_v44 = vadd.f32 %v2391_v9, %v14743_v11  ;;  %12299 = vmatprep.mubr.msk.f32.mxu1 %vm1890_vm2, %v1868_v3  ;;  %v1877_v3 = vmax.f32 %v1619_v29, %v1749_v46 }
 0x278   : > { %v2991_v59 = vmul.f32 0.01, %v2397_v0 }
 0x279   : > { %v2990_v6 = vmul.f32 0.01, %v2392_v44  ;;  %v12142_v25 = vpop.f32.mrb[76].mxu1  ;;  %12342 = vmatprep.mubr.msk.f32.mxu0 %vm1890_vm2, %v3116_v41 }
 0x27a   : > { %v2407_v53 = vadd.f32 %v12142_v25, %v14743_v11  ;;  %v2401_v57 = vpop.f32.mrb[77].mxu1  ;;  %12300 = vmatmul.mubr.msk.f32.gmra.mrb[182].mxu1 %vm1890_vm2, %v1869_v52  ;;  %12343 = vmatmul.mubr.msk.f32.gmra.mrb[72].mxu0 %vm1890_vm2, %v3117_v28  ;;  %v3119_v8 = vmax.f32 %v2397_v0, %v2991_v59  ;;  %v13398_v52 = vpack.c.bf16 %v4602_v7, %v4601_v54 }
 0x27b   : > { %v3118_v39 = vmax.f32 %v2392_v44, %v2990_v6  ;;  %v2402_v14 = vadd.f32 %v2401_v57, %v14743_v11  ;;  %12302 = vmatprep.mubr.msk.f32.mxu1 %vm1890_vm2, %v1870_v23 }
 0x27c   : > { %v2993_v31 = vmul.f32 0.01, %v2407_v53  ;;  %13399 = vmatprep.subr.bf16.mxu1 %v13398_v52 }
 0x27d   : > { %v2992_v61 = vmul.f32 0.01, %v2402_v14  ;;  %v12145_v22 = vpop.f32.mrb[78].mxu1  ;;  %12345 = vmatprep.mubr.msk.f32.mxu0 %vm1890_vm2, %v3118_v39  ;;  %13401 = vmatpush3.bf16.msra.mxu1 %v13398_v52 }
 0x27e   : > { %v2417_v5 = vadd.f32 %v12145_v22, %v14743_v11  ;;  %v2411_v24 = vpop.f32.mrb[79].mxu1  ;;  %12303 = vmatmul.mubr.msk.f32.gmra.mrb[184].mxu1 %vm1890_vm2, %v1871_v42  ;;  %12346 = vmatmul.mubr.msk.f32.gmra.mrb[74].mxu0 %vm1890_vm2, %v3119_v8  ;;  %v3121_v35 = vmax.f32 %v2407_v53, %v2993_v31 }
 0x27f   : > { %v3120_v17 = vmax.f32 %v2402_v14, %v2992_v61  ;;  %v2412_v55 = vadd.f32 %v2411_v24, %v14743_v11  ;;  %12305 = vmatprep.mubr.msk.f32.mxu1 %vm1890_vm2, %v1872_v51 }
 0x280   : > { %v2995_v62 = vmul.f32 0.01, %v2417_v5 }
 0x281   : > { %v2994_v19 = vmul.f32 0.01, %v2412_v55  ;;  %v12148_v10 = vpop.f32.mrb[80].mxu1  ;;  %12348 = vmatprep.mubr.msk.f32.mxu0 %vm1890_vm2, %v3120_v17 }
 0x282   : > { %v2427_v36 = vadd.f32 %v12148_v10, %v14743_v11  ;;  %v2421_v37 = vpop.f32.mrb[81].mxu1  ;;  %12306 = vmatmul.mubr.msk.f32.gmra.mrb[186].mxu1 %vm1890_vm2, %v1873_v2  ;;  %12349 = vmatmul.mubr.msk.f32.gmra.mrb[76].mxu0 %vm1890_vm2, %v3121_v35  ;;  %v3123_v12 = vmax.f32 %v2417_v5, %v2995_v62 }
 0x283   : > { %v3122_v18 = vmax.f32 %v2412_v55, %v2994_v19  ;;  %v2422_v43 = vadd.f32 %v2421_v37, %v14743_v11  ;;  %12308 = vmatprep.mubr.msk.f32.mxu1 %vm1890_vm2, %v1874_v63 }
 0x284   : > { %v2997_v30 = vmul.f32 0.01, %v2427_v36 }
 0x285   : > { %v2996_v56 = vmul.f32 0.01, %v2422_v43  ;;  %v12151_v33 = vpop.f32.mrb[82].mxu1  ;;  %12351 = vmatprep.mubr.msk.f32.mxu0 %vm1890_vm2, %v3122_v18 }
 0x286   : > { %v2437_v49 = vadd.f32 %v12151_v33, %v14743_v11  ;;  %v2431_v47 = vpop.f32.mrb[83].mxu1  ;;  %12309 = vmatmul.mubr.msk.f32.gmra.mrb[188].mxu1 %vm1890_vm2, %v1875_v20  ;;  %12352 = vmatmul.mubr.msk.f32.gmra.mrb[78].mxu0 %vm1890_vm2, %v3123_v12  ;;  %v3125_v50 = vmax.f32 %v2427_v36, %v2997_v30 }
 0x287   : > { %v3124_v48 = vmax.f32 %v2422_v43, %v2996_v56  ;;  %v2432_v26 = vadd.f32 %v2431_v47, %v14743_v11  ;;  %12311 = vmatprep.mubr.msk.f32.mxu1 %vm1890_vm2, %v1876_v32 }
 0x288   : > { %v2999_v16 = vmul.f32 0.01, %v2437_v49 }
 0x289   : > { %v2998_v13 = vmul.f32 0.01, %v2432_v26  ;;  %v12154_v45 = vpop.f32.mrb[84].mxu1  ;;  %12354 = vmatprep.mubr.msk.f32.mxu0 %vm1890_vm2, %v3124_v48 }
 0x28a   : > { %v2447_v0 = vadd.f32 %v12154_v45, %v14743_v11  ;;  %v2441_v9 = vpop.f32.mrb[85].mxu1  ;;  %12312 = vmatmul.mubr.msk.f32.gmra.mrb[190].mxu1 %vm1890_vm2, %v1877_v3  ;;  %12355 = vmatmul.mubr.msk.f32.gmra.mrb[80].mxu0 %vm1890_vm2, %v3125_v50  ;;  %v3127_v60 = vmax.f32 %v2437_v49, %v2999_v16  ;;  %v5953_v45 = vld [vmem:[#allocation6 + $0xc0] sm:$0xff] }
 0x28b   : > { %v3126_v41 = vmax.f32 %v2432_v26, %v2998_v13  ;;  %v2442_v44 = vadd.f32 %v2441_v9, %v14743_v11 }
 0x28c   : > { %v3001_v28 = vmul.f32 0.01, %v2447_v0 }
 0x28d   : > { %v3000_v59 = vmul.f32 0.01, %v2442_v44  ;;  %v12157_v23 = vpop.f32.mrb[86].mxu1  ;;  %12357 = vmatprep.mubr.msk.f32.mxu0 %vm1890_vm2, %v3126_v41 }
 0x28e   : > { %v2457_v34 = vadd.f32 %v12157_v23, %v14743_v11  ;;  %v2451_v4 = vpop.f32.mrb[87].mxu1  ;;  %12358 = vmatmul.mubr.msk.f32.gmra.mrb[82].mxu0 %vm1890_vm2, %v3127_v60  ;;  %v3129_v53 = vmax.f32 %v2447_v0, %v3001_v28  ;;  %v5954_v0 = vld [vmem:[#allocation6 + $0xc8] sm:$0xff] }
 0x28f   : > { %v3128_v6 = vmax.f32 %v2442_v44, %v3000_v59  ;;  %v2452_v25 = vadd.f32 %v2451_v4, %v14743_v11  ;;  %v13402_v7 = vpack.c.bf16 %v5954_v0, %v5953_v45 }
 0x290   : > { %v3003_v57 = vmul.f32 0.01, %v2457_v34 }
 0x291   : > { %v3002_v58 = vmul.f32 0.01, %v2452_v25  ;;  %v12160_v39 = vpop.f32.mrb[88].mxu1  ;;  %12360 = vmatprep.mubr.msk.f32.mxu0 %vm1890_vm2, %v3128_v6  ;;  %13403 = vmatprep.subr.bf16.mxu0 %v13402_v7 }
 0x292   : > { %v2467_v14 = vadd.f32 %v12160_v39, %v14743_v11  ;;  %v2461_v42 = vpop.f32.mrb[89].mxu1  ;;  %12361 = vmatmul.mubr.msk.f32.gmra.mrb[84].mxu0 %vm1890_vm2, %v3129_v53  ;;  %v3131_v31 = vmax.f32 %v2457_v34, %v3003_v57 }
 0x293   : > { %v3130_v27 = vmax.f32 %v2452_v25, %v3002_v58  ;;  %v2462_v8 = vadd.f32 %v2461_v42, %v14743_v11  ;;  %13405 = vmatpush3.bf16.msra.mxu0 %v13402_v7 }
 0x294   : > { %v3005_v51 = vmul.f32 0.01, %v2467_v14 }
 0x295   : > { %v3004_v40 = vmul.f32 0.01, %v2462_v8  ;;  %v12163_v21 = vpop.f32.mrb[90].mxu1  ;;  %12363 = vmatprep.mubr.msk.f32.mxu0 %vm1890_vm2, %v3130_v27 }
 0x296   : > { %v2477_v61 = vadd.f32 %v12163_v21, %v14743_v11  ;;  %v2471_v22 = vpop.f32.mrb[91].mxu1  ;;  %12364 = vmatmul.mubr.msk.f32.gmra.mrb[86].mxu0 %vm1890_vm2, %v3131_v31  ;;  %v3133_v2 = vmax.f32 %v2467_v14, %v3005_v51 }
 0x297   : > { %v3132_v5 = vmax.f32 %v2462_v8, %v3004_v40  ;;  %v2472_v24 = vadd.f32 %v2471_v22, %v14743_v11 }
 0x298   : > { %v3007_v17 = vmul.f32 0.01, %v2477_v61 }
 0x299   : > { %v3006_v55 = vmul.f32 0.01, %v2472_v24  ;;  %v12166_v15 = vpop.f32.mrb[92].mxu1  ;;  %12366 = vmatprep.mubr.msk.f32.mxu0 %vm1890_vm2, %v3132_v5 }
 0x29a   : > { %v2487_v29 = vadd.f32 %v12166_v15, %v14743_v11  ;;  %v2481_v35 = vpop.f32.mrb[93].mxu1  ;;  %12367 = vmatmul.mubr.msk.f32.gmra.mrb[88].mxu0 %vm1890_vm2, %v3133_v2  ;;  %v3135_v1 = vmax.f32 %v2477_v61, %v3007_v17 }
 0x29b   : > { %v3134_v62 = vmax.f32 %v2472_v24, %v3006_v55  ;;  %v2482_v63 = vadd.f32 %v2481_v35, %v14743_v11 }
 0x29c   : > { %v3009_v19 = vmul.f32 0.01, %v2487_v29 }
 0x29d   : > { %v3008_v10 = vmul.f32 0.01, %v2482_v63  ;;  %v12169_v36 = vpop.f32.mrb[94].mxu1  ;;  %12369 = vmatprep.mubr.msk.f32.mxu0 %vm1890_vm2, %v3134_v62 }
 0x29e   : > { %v2497_v37 = vadd.f32 %v12169_v36, %v14743_v11  ;;  %v2491_v18 = vpop.f32.mrb[95].mxu1  ;;  %12370 = vmatmul.mubr.msk.f32.gmra.mrb[90].mxu0 %vm1890_vm2, %v3135_v1  ;;  %v3137_v46 = vmax.f32 %v2487_v29, %v3009_v19 }
 0x29f   : > { %v3136_v43 = vmax.f32 %v2482_v63, %v3008_v10  ;;  %v2492_v20 = vadd.f32 %v2491_v18, %v14743_v11 }
 0x2a0   : > { %v3011_v12 = vmul.f32 0.01, %v2497_v37 }
 0x2a1   : > { %v3010_v30 = vmul.f32 0.01, %v2492_v20  ;;  %v12172_v32 = vpop.f32.mrb[96].mxu1  ;;  %12372 = vmatprep.mubr.msk.f32.mxu0 %vm1890_vm2, %v3136_v43 }
 0x2a2   : > { %v2507_v56 = vadd.f32 %v12172_v32, %v14743_v11  ;;  %v2501_v33 = vpop.f32.mrb[97].mxu1  ;;  %12373 = vmatmul.mubr.msk.f32.gmra.mrb[92].mxu0 %vm1890_vm2, %v3137_v46  ;;  %v3139_v48 = vmax.f32 %v2497_v37, %v3011_v12 }
 0x2a3   : > { %v3138_v49 = vmax.f32 %v2492_v20, %v3010_v30  ;;  %v2502_v47 = vadd.f32 %v2501_v33, %v14743_v11 }
 0x2a4   : > { %v3013_v26 = vmul.f32 0.01, %v2507_v56 }
 0x2a5   : > { %v3012_v3 = vmul.f32 0.01, %v2502_v47  ;;  %v12175_v50 = vpop.f32.mrb[98].mxu1  ;;  %12375 = vmatprep.mubr.msk.f32.mxu0 %vm1890_vm2, %v3138_v49 }
 0x2a6   : > { %v2517_v16 = vadd.f32 %v12175_v50, %v14743_v11  ;;  %v2511_v13 = vpop.f32.mrb[99].mxu1  ;;  %12376 = vmatmul.mubr.msk.f32.gmra.mrb[94].mxu0 %vm1890_vm2, %v3139_v48  ;;  %v3141_v41 = vmax.f32 %v2507_v56, %v3013_v26 }
 0x2a7   : > { %v3140_v9 = vmax.f32 %v2502_v47, %v3012_v3  ;;  %v2512_v54 = vadd.f32 %v2511_v13, %v14743_v11 }
 0x2a8   : > { %v3015_v44 = vmul.f32 0.01, %v2517_v16 }
 0x2a9   : > { %v3014_v52 = vmul.f32 0.01, %v2512_v54  ;;  %v12178_v60 = vpop.f32.mrb[100].mxu1  ;;  %12378 = vmatprep.mubr.msk.f32.mxu0 %vm1890_vm2, %v3140_v9 }
 0x2aa   : > { %v2527_v28 = vadd.f32 %v12178_v60, %v14743_v11  ;;  %v2521_v59 = vpop.f32.mrb[101].mxu1  ;;  %12379 = vmatmul.mubr.msk.f32.gmra.mrb[96].mxu0 %vm1890_vm2, %v3141_v41  ;;  %v3143_v4 = vmax.f32 %v2517_v16, %v3015_v44 }
 0x2ab   : > { %v3142_v23 = vmax.f32 %v2512_v54, %v3014_v52  ;;  %v2522_v34 = vadd.f32 %v2521_v59, %v14743_v11 }
 0x2ac   : > { %v3017_v6 = vmul.f32 0.01, %v2527_v28 }
 0x2ad   : > { %v3016_v25 = vmul.f32 0.01, %v2522_v34  ;;  %v12181_v53 = vpop.f32.mrb[102].mxu1  ;;  %12381 = vmatprep.mubr.msk.f32.mxu0 %vm1890_vm2, %v3142_v23 }
 0x2ae   : > { %v2537_v57 = vadd.f32 %v12181_v53, %v14743_v11  ;;  %v2531_v58 = vpop.f32.mrb[103].mxu1  ;;  %12382 = vmatmul.mubr.msk.f32.gmra.mrb[98].mxu0 %vm1890_vm2, %v3143_v4  ;;  %v3145_v42 = vmax.f32 %v2527_v28, %v3017_v6 }
 0x2af   : > { %v3144_v39 = vmax.f32 %v2522_v34, %v3016_v25  ;;  %v2532_v14 = vadd.f32 %v2531_v58, %v14743_v11 }
 0x2b0   : > { %v3019_v27 = vmul.f32 0.01, %v2537_v57 }
 0x2b1   : > { %v3018_v8 = vmul.f32 0.01, %v2532_v14  ;;  %v12184_v31 = vpop.f32.mrb[104].mxu1  ;;  %12384 = vmatprep.mubr.msk.f32.mxu0 %vm1890_vm2, %v3144_v39 }
 0x2b2   : > { %v2547_v51 = vadd.f32 %v12184_v31, %v14743_v11  ;;  %v2541_v40 = vpop.f32.mrb[105].mxu1  ;;  %12385 = vmatmul.mubr.msk.f32.gmra.mrb[100].mxu0 %vm1890_vm2, %v3145_v42  ;;  %v3147_v22 = vmax.f32 %v2537_v57, %v3019_v27 }
 0x2b3   : > { %v3146_v21 = vmax.f32 %v2532_v14, %v3018_v8  ;;  %v2542_v61 = vadd.f32 %v2541_v40, %v14743_v11 }
 0x2b4   : > { %v3021_v5 = vmul.f32 0.01, %v2547_v51 }
 0x2b5   : > { %v3020_v24 = vmul.f32 0.01, %v2542_v61  ;;  %v12187_v2 = vpop.f32.mrb[106].mxu1  ;;  %12387 = vmatprep.mubr.msk.f32.mxu0 %vm1890_vm2, %v3146_v21 }
 0x2b6   : > { %v2557_v17 = vadd.f32 %v12187_v2, %v14743_v11  ;;  %v2551_v55 = vpop.f32.mrb[107].mxu1  ;;  %12388 = vmatmul.mubr.msk.f32.gmra.mrb[102].mxu0 %vm1890_vm2, %v3147_v22  ;;  %v3149_v35 = vmax.f32 %v2547_v51, %v3021_v5 }
 0x2b7   : > { %v3148_v15 = vmax.f32 %v2542_v61, %v3020_v24  ;;  %v2552_v29 = vadd.f32 %v2551_v55, %v14743_v11 }
 0x2b8   : > { %v3023_v62 = vmul.f32 0.01, %v2557_v17 }
 0x2b9   : > { %v3022_v63 = vmul.f32 0.01, %v2552_v29  ;;  %v12190_v1 = vpop.f32.mrb[108].mxu1  ;;  %12390 = vmatprep.mubr.msk.f32.mxu0 %vm1890_vm2, %v3148_v15 }
 0x2ba   : > { %v2567_v19 = vadd.f32 %v12190_v1, %v14743_v11  ;;  %v2561_v10 = vpop.f32.mrb[109].mxu1  ;;  %12391 = vmatmul.mubr.msk.f32.gmra.mrb[104].mxu0 %vm1890_vm2, %v3149_v35  ;;  %v3151_v18 = vmax.f32 %v2557_v17, %v3023_v62 }
 0x2bb   : > { %v3150_v36 = vmax.f32 %v2552_v29, %v3022_v63  ;;  %v2562_v37 = vadd.f32 %v2561_v10, %v14743_v11 }
 0x2bc   : > { %v3025_v43 = vmul.f32 0.01, %v2567_v19 }
 0x2bd   : > { %v3024_v20 = vmul.f32 0.01, %v2562_v37  ;;  %v12193_v46 = vpop.f32.mrb[110].mxu1  ;;  %12393 = vmatprep.mubr.msk.f32.mxu0 %vm1890_vm2, %v3150_v36 }
 0x2be   : > { %v2577_v12 = vadd.f32 %v12193_v46, %v14743_v11  ;;  %v2571_v30 = vpop.f32.mrb[111].mxu1  ;;  %12394 = vmatmul.mubr.msk.f32.gmra.mrb[106].mxu0 %vm1890_vm2, %v3151_v18  ;;  %v3153_v33 = vmax.f32 %v2567_v19, %v3025_v43 }
 0x2bf   : > { %v3152_v32 = vmax.f32 %v2562_v37, %v3024_v20  ;;  %v2572_v56 = vadd.f32 %v2571_v30, %v14743_v11 }
 0x2c0   : > { %v3027_v49 = vmul.f32 0.01, %v2577_v12 }
 0x2c1   : > { %v3026_v47 = vmul.f32 0.01, %v2572_v56  ;;  %v12196_v48 = vpop.f32.mrb[112].mxu1  ;;  %12396 = vmatprep.mubr.msk.f32.mxu0 %vm1890_vm2, %v3152_v32 }
 0x2c2   : > { %v2587_v26 = vadd.f32 %v12196_v48, %v14743_v11  ;;  %v2581_v3 = vpop.f32.mrb[113].mxu1  ;;  %12397 = vmatmul.mubr.msk.f32.gmra.mrb[108].mxu0 %vm1890_vm2, %v3153_v33  ;;  %v3155_v13 = vmax.f32 %v2577_v12, %v3027_v49 }
 0x2c3   : > { %v3154_v50 = vmax.f32 %v2572_v56, %v3026_v47  ;;  %v2582_v16 = vadd.f32 %v2581_v3, %v14743_v11 }
 0x2c4   : > { %v3029_v45 = vmul.f32 0.01, %v2587_v26 }
 0x2c5   : > { %v3028_v0 = vmul.f32 0.01, %v2582_v16  ;;  %v12199_v9 = vpop.f32.mrb[114].mxu1  ;;  %12399 = vmatprep.mubr.msk.f32.mxu0 %vm1890_vm2, %v3154_v50 }
 0x2c6   : > { %v2597_v54 = vadd.f32 %v12199_v9, %v14743_v11  ;;  %v2591_v7 = vpop.f32.mrb[115].mxu1  ;;  %12400 = vmatmul.mubr.msk.f32.gmra.mrb[110].mxu0 %vm1890_vm2, %v3155_v13  ;;  %v3157_v52 = vmax.f32 %v2587_v26, %v3029_v45 }
 0x2c7   : > { %v3156_v41 = vmax.f32 %v2582_v16, %v3028_v0  ;;  %v2592_v44 = vadd.f32 %v2591_v7, %v14743_v11 }
 0x2c8   : > { %v3031_v60 = vmul.f32 0.01, %v2597_v54 }
 0x2c9   : > { %v3030_v28 = vmul.f32 0.01, %v2592_v44  ;;  %v12202_v59 = vpop.f32.mrb[116].mxu1  ;;  %12402 = vmatprep.mubr.msk.f32.mxu0 %vm1890_vm2, %v3156_v41 }
 0x2ca   : > { %v2607_v23 = vadd.f32 %v12202_v59, %v14743_v11  ;;  %v2601_v34 = vpop.f32.mrb[117].mxu1  ;;  %12403 = vmatmul.mubr.msk.f32.gmra.mrb[112].mxu0 %vm1890_vm2, %v3157_v52  ;;  %v3159_v25 = vmax.f32 %v2597_v54, %v3031_v60  ;;  %v5955_v52 = vld [vmem:[#allocation6 + $0xd0] sm:$0xff]  ;;  %v5956_v60 = vld [vmem:[#allocation6 + $0xd8] sm:$0xff] }
 0x2cb   : > { %v3158_v4 = vmax.f32 %v2592_v44, %v3030_v28  ;;  %v2602_v6 = vadd.f32 %v2601_v34, %v14743_v11 }
 0x2cc   : > { %v3033_v53 = vmul.f32 0.01, %v2607_v23 }
 0x2cd   : > { %v3032_v57 = vmul.f32 0.01, %v2602_v6  ;;  %v12205_v58 = vpop.f32.mrb[118].mxu1  ;;  %12405 = vmatprep.mubr.msk.f32.mxu0 %vm1890_vm2, %v3158_v4 }
 0x2ce   : > { %v2617_v39 = vadd.f32 %v12205_v58, %v14743_v11  ;;  %v2611_v14 = vpop.f32.mrb[119].mxu1  ;;  %12406 = vmatmul.mubr.msk.f32.gmra.mrb[114].mxu0 %vm1890_vm2, %v3159_v25  ;;  %v3161_v8 = vmax.f32 %v2607_v23, %v3033_v53  ;;  %v13406_v23 = vpack.c.bf16 %v5956_v60, %v5955_v52 }
 0x2cf   : > { %v3160_v42 = vmax.f32 %v2602_v6, %v3032_v57  ;;  %v2612_v27 = vadd.f32 %v2611_v14, %v14743_v11 }
 0x2d0   : > { %v3035_v31 = vmul.f32 0.01, %v2617_v39  ;;  %13407 = vmatprep.subr.bf16.mxu0 %v13406_v23 }
 0x2d1   : > { %v3034_v51 = vmul.f32 0.01, %v2612_v27  ;;  %v12208_v40 = vpop.f32.mrb[120].mxu1  ;;  %12408 = vmatprep.mubr.msk.f32.mxu0 %vm1890_vm2, %v3160_v42  ;;  %13409 = vmatpush3.bf16.msra.mxu0 %v13406_v23 }
 0x2d2   : > { %v2627_v21 = vadd.f32 %v12208_v40, %v14743_v11  ;;  %v2621_v61 = vpop.f32.mrb[121].mxu1  ;;  %12409 = vmatmul.mubr.msk.f32.gmra.mrb[116].mxu0 %vm1890_vm2, %v3161_v8  ;;  %v3163_v24 = vmax.f32 %v2617_v39, %v3035_v31 }
 0x2d3   : > { %v3162_v22 = vmax.f32 %v2612_v27, %v3034_v51  ;;  %v2622_v5 = vadd.f32 %v2621_v61, %v14743_v11 }
 0x2d4   : > { %v3037_v2 = vmul.f32 0.01, %v2627_v21 }
 0x2d5   : > { %v3036_v17 = vmul.f32 0.01, %v2622_v5  ;;  %v12211_v55 = vpop.f32.mrb[122].mxu1  ;;  %12411 = vmatprep.mubr.msk.f32.mxu0 %vm1890_vm2, %v3162_v22 }
 0x2d6   : > { %v2637_v15 = vadd.f32 %v12211_v55, %v14743_v11  ;;  %v2631_v29 = vpop.f32.mrb[123].mxu1  ;;  %12412 = vmatmul.mubr.msk.f32.gmra.mrb[118].mxu0 %vm1890_vm2, %v3163_v24  ;;  %v3165_v63 = vmax.f32 %v2627_v21, %v3037_v2 }
 0x2d7   : > { %v3164_v35 = vmax.f32 %v2622_v5, %v3036_v17  ;;  %v2632_v62 = vadd.f32 %v2631_v29, %v14743_v11 }
 0x2d8   : > { %v3039_v1 = vmul.f32 0.01, %v2637_v15 }
 0x2d9   : > { %v3038_v19 = vmul.f32 0.01, %v2632_v62  ;;  %v12214_v10 = vpop.f32.mrb[124].mxu1  ;;  %12414 = vmatprep.mubr.msk.f32.mxu0 %vm1890_vm2, %v3164_v35 }
 0x2da   : > { %v2647_v36 = vadd.f32 %v12214_v10, %v14743_v11  ;;  %v2641_v37 = vpop.f32.mrb[125].mxu1  ;;  %12415 = vmatmul.mubr.msk.f32.gmra.mrb[120].mxu0 %vm1890_vm2, %v3165_v63  ;;  %v3167_v20 = vmax.f32 %v2637_v15, %v3039_v1 }
 0x2db   : > { %v3166_v18 = vmax.f32 %v2632_v62, %v3038_v19  ;;  %v2642_v43 = vadd.f32 %v2641_v37, %v14743_v11 }
 0x2dc   : > { %v3041_v46 = vmul.f32 0.01, %v2647_v36 }
 0x2dd   : > { %v3040_v12 = vmul.f32 0.01, %v2642_v43  ;;  %v12217_v30 = vpop.f32.mrb[126].mxu1  ;;  %12417 = vmatprep.mubr.msk.f32.mxu0 %vm1890_vm2, %v3166_v18 }
 0x2de   : > { %v2657_v32 = vadd.f32 %v12217_v30, %v14743_v11  ;;  %v2651_v56 = vpop.f32.mrb[127].mxu1  ;;  %12418 = vmatmul.mubr.msk.f32.gmra.mrb[122].mxu0 %vm1890_vm2, %v3167_v20  ;;  %v3169_v47 = vmax.f32 %v2647_v36, %v3041_v46 }
 0x2df   : > { %v3168_v33 = vmax.f32 %v2642_v43, %v3040_v12  ;;  %v2652_v49 = vadd.f32 %v2651_v56, %v14743_v11 }
 0x2e0   : > { %v3043_v48 = vmul.f32 0.01, %v2657_v32 }
 0x2e1   : > { %v3042_v26 = vmul.f32 0.01, %v2652_v49  ;;  %v12220_v3 = vpop.f32.mrb[128].mxu1  ;;  %12420 = vmatprep.mubr.msk.f32.mxu0 %vm1890_vm2, %v3168_v33 }
 0x2e2   : > { %v2667_v50 = vadd.f32 %v12220_v3, %v14743_v11  ;;  %v2661_v16 = vpop.f32.mrb[129].mxu1  ;;  %12421 = vmatmul.mubr.msk.f32.gmra.mrb[124].mxu0 %vm1890_vm2, %v3169_v47  ;;  %v3171_v0 = vmax.f32 %v2657_v32, %v3043_v48 }
 0x2e3   : > { %v3170_v13 = vmax.f32 %v2652_v49, %v3042_v26  ;;  %v2662_v45 = vadd.f32 %v2661_v16, %v14743_v11 }
 0x2e4   : > { %v3045_v9 = vmul.f32 0.01, %v2667_v50 }
 0x2e5   : > { %v3044_v54 = vmul.f32 0.01, %v2662_v45  ;;  %v12223_v7 = vpop.f32.mrb[130].mxu1  ;;  %12423 = vmatprep.mubr.msk.f32.mxu0 %vm1890_vm2, %v3170_v13 }
 0x2e6   : > { %v2677_v41 = vadd.f32 %v12223_v7, %v14743_v11  ;;  %v2671_v44 = vpop.f32.mrb[131].mxu1  ;;  %12424 = vmatmul.mubr.msk.f32.gmra.mrb[126].mxu0 %vm1890_vm2, %v3171_v0  ;;  %v3173_v34 = vmax.f32 %v2667_v50, %v3045_v9 }
 0x2e7   : > { %v3172_v28 = vmax.f32 %v2662_v45, %v3044_v54  ;;  %v2672_v59 = vadd.f32 %v2671_v44, %v14743_v11 }
 0x2e8   : > { %v3047_v4 = vmul.f32 0.01, %v2677_v41 }
 0x2e9   : > { %v3046_v6 = vmul.f32 0.01, %v2672_v59  ;;  %v12226_v25 = vpop.f32.mrb[132].mxu1  ;;  %12426 = vmatprep.mubr.msk.f32.mxu0 %vm1890_vm2, %v3172_v28 }
 0x2ea   : > { %v2687_v53 = vadd.f32 %v12226_v25, %v14743_v11  ;;  %v2681_v57 = vpop.f32.mrb[133].mxu1  ;;  %12427 = vmatmul.mubr.msk.f32.gmra.mrb[128].mxu0 %vm1890_vm2, %v3173_v34  ;;  %v3175_v14 = vmax.f32 %v2677_v41, %v3047_v4 }
 0x2eb   : > { %v3174_v58 = vmax.f32 %v2672_v59, %v3046_v6  ;;  %v2682_v39 = vadd.f32 %v2681_v57, %v14743_v11 }
 0x2ec   : > { %v3049_v42 = vmul.f32 0.01, %v2687_v53 }
 0x2ed   : > { %v3048_v27 = vmul.f32 0.01, %v2682_v39  ;;  %v12229_v8 = vpop.f32.mrb[134].mxu1  ;;  %12429 = vmatprep.mubr.msk.f32.mxu0 %vm1890_vm2, %v3174_v58 }
 0x2ee   : > { %v2697_v31 = vadd.f32 %v12229_v8, %v14743_v11  ;;  %v2691_v51 = vpop.f32.mrb[135].mxu1  ;;  %12430 = vmatmul.mubr.msk.f32.gmra.mrb[130].mxu0 %vm1890_vm2, %v3175_v14  ;;  %v3177_v61 = vmax.f32 %v2687_v53, %v3049_v42 }
 0x2ef   : > { %v3176_v40 = vmax.f32 %v2682_v39, %v3048_v27  ;;  %v2692_v21 = vadd.f32 %v2691_v51, %v14743_v11 }
 0x2f0   : > { %v3051_v22 = vmul.f32 0.01, %v2697_v31 }
 0x2f1   : > { %v3050_v5 = vmul.f32 0.01, %v2692_v21  ;;  %v12232_v24 = vpop.f32.mrb[136].mxu1  ;;  %12432 = vmatprep.mubr.msk.f32.mxu0 %vm1890_vm2, %v3176_v40 }
 0x2f2   : > { %v2707_v2 = vadd.f32 %v12232_v24, %v14743_v11  ;;  %v2701_v17 = vpop.f32.mrb[137].mxu1  ;;  %12433 = vmatmul.mubr.msk.f32.gmra.mrb[132].mxu0 %vm1890_vm2, %v3177_v61  ;;  %v3179_v29 = vmax.f32 %v2697_v31, %v3051_v22 }
 0x2f3   : > { %v3178_v55 = vmax.f32 %v2692_v21, %v3050_v5  ;;  %v2702_v15 = vadd.f32 %v2701_v17, %v14743_v11 }
 0x2f4   : > { %v3053_v35 = vmul.f32 0.01, %v2707_v2 }
 0x2f5   : > { %v3052_v62 = vmul.f32 0.01, %v2702_v15  ;;  %v12235_v63 = vpop.f32.mrb[138].mxu1  ;;  %12435 = vmatprep.mubr.msk.f32.mxu0 %vm1890_vm2, %v3178_v55 }
 0x2f6   : > { %v2717_v1 = vadd.f32 %v12235_v63, %v14743_v11  ;;  %v2711_v19 = vpop.f32.mrb[139].mxu1  ;;  %12436 = vmatmul.mubr.msk.f32.gmra.mrb[134].mxu0 %vm1890_vm2, %v3179_v29  ;;  %v3181_v37 = vmax.f32 %v2707_v2, %v3053_v35 }
 0x2f7   : > { %v3180_v10 = vmax.f32 %v2702_v15, %v3052_v62  ;;  %v2712_v36 = vadd.f32 %v2711_v19, %v14743_v11 }
 0x2f8   : > { %v3055_v18 = vmul.f32 0.01, %v2717_v1 }
 0x2f9   : > { %v3054_v43 = vmul.f32 0.01, %v2712_v36  ;;  %v12238_v20 = vpop.f32.mrb[140].mxu1  ;;  %12438 = vmatprep.mubr.msk.f32.mxu0 %vm1890_vm2, %v3180_v10 }
 0x2fa   : > { %v2727_v46 = vadd.f32 %v12238_v20, %v14743_v11  ;;  %v2721_v12 = vpop.f32.mrb[141].mxu1  ;;  %12439 = vmatmul.mubr.msk.f32.gmra.mrb[136].mxu0 %vm1890_vm2, %v3181_v37  ;;  %v3183_v56 = vmax.f32 %v2717_v1, %v3055_v18 }
 0x2fb   : > { %v3182_v30 = vmax.f32 %v2712_v36, %v3054_v43  ;;  %v2722_v32 = vadd.f32 %v2721_v12, %v14743_v11 }
 0x2fc   : > { %v3057_v33 = vmul.f32 0.01, %v2727_v46 }
 0x2fd   : > { %v3056_v49 = vmul.f32 0.01, %v2722_v32  ;;  %v12241_v47 = vpop.f32.mrb[142].mxu1  ;;  %12441 = vmatprep.mubr.msk.f32.mxu0 %vm1890_vm2, %v3182_v30 }
 0x2fe   : > { %v2737_v48 = vadd.f32 %v12241_v47, %v14743_v11  ;;  %v2731_v26 = vpop.f32.mrb[143].mxu1  ;;  %12442 = vmatmul.mubr.msk.f32.gmra.mrb[138].mxu0 %vm1890_vm2, %v3183_v56  ;;  %v3185_v16 = vmax.f32 %v2727_v46, %v3057_v33 }
 0x2ff   : > { %v3184_v3 = vmax.f32 %v2722_v32, %v3056_v49  ;;  %v2732_v50 = vadd.f32 %v2731_v26, %v14743_v11 }
 0x300   : > { %v3059_v13 = vmul.f32 0.01, %v2737_v48 }
 0x301   : > { %v3058_v45 = vmul.f32 0.01, %v2732_v50  ;;  %v12244_v0 = vpop.f32.mrb[144].mxu1  ;;  %12444 = vmatprep.mubr.msk.f32.mxu0 %vm1890_vm2, %v3184_v3 }
 0x302   : > { %v2747_v9 = vadd.f32 %v12244_v0, %v14743_v11  ;;  %v2741_v54 = vpop.f32.mrb[145].mxu1  ;;  %12445 = vmatmul.mubr.msk.f32.gmra.mrb[140].mxu0 %vm1890_vm2, %v3185_v16  ;;  %v3187_v44 = vmax.f32 %v2737_v48, %v3059_v13 }
 0x303   : > { %v3186_v7 = vmax.f32 %v2732_v50, %v3058_v45  ;;  %v2742_v41 = vadd.f32 %v2741_v54, %v14743_v11 }
 0x304   : > { %v3061_v52 = vmul.f32 0.01, %v2747_v9 }
 0x305   : > { %v3060_v60 = vmul.f32 0.01, %v2742_v41  ;;  %v12247_v28 = vpop.f32.mrb[146].mxu1  ;;  %12447 = vmatprep.mubr.msk.f32.mxu0 %vm1890_vm2, %v3186_v7 }
 0x306   : > { %v2757_v59 = vadd.f32 %v12247_v28, %v14743_v11  ;;  %v2751_v23 = vpop.f32.mrb[147].mxu1  ;;  %12448 = vmatmul.mubr.msk.f32.gmra.mrb[142].mxu0 %vm1890_vm2, %v3187_v44  ;;  %v3189_v6 = vmax.f32 %v2747_v9, %v3061_v52 }
 0x307   : > { %v3188_v34 = vmax.f32 %v2742_v41, %v3060_v60  ;;  %v2752_v4 = vadd.f32 %v2751_v23, %v14743_v11 }
 0x308   : > { %v3063_v25 = vmul.f32 0.01, %v2757_v59 }
 0x309   : > { %v3062_v53 = vmul.f32 0.01, %v2752_v4  ;;  %v12250_v57 = vpop.f32.mrb[148].mxu1  ;;  %12450 = vmatprep.mubr.msk.f32.mxu0 %vm1890_vm2, %v3188_v34 }
 0x30a   : > { %v2767_v58 = vadd.f32 %v12250_v57, %v14743_v11  ;;  %v2761_v39 = vpop.f32.mrb[149].mxu1  ;;  %12451 = vmatmul.mubr.msk.f32.gmra.mrb[144].mxu0 %vm1890_vm2, %v3189_v6  ;;  %v3191_v27 = vmax.f32 %v2757_v59, %v3063_v25  ;;  %v5957_v6 = vld [vmem:[#allocation6 + $0xe0] sm:$0xff]  ;;  %v5958_v25 = vld [vmem:[#allocation6 + $0xe8] sm:$0xff] }
 0x30b   : > { %v3190_v14 = vmax.f32 %v2752_v4, %v3062_v53  ;;  %v2762_v42 = vadd.f32 %v2761_v39, %v14743_v11 }
 0x30c   : > { %v3065_v8 = vmul.f32 0.01, %v2767_v58 }
 0x30d   : > { %v3064_v31 = vmul.f32 0.01, %v2762_v42  ;;  %v12253_v51 = vpop.f32.mrb[150].mxu1  ;;  %12453 = vmatprep.mubr.msk.f32.mxu0 %vm1890_vm2, %v3190_v14 }
 0x30e   : > { %v2777_v40 = vadd.f32 %v12253_v51, %v14743_v11  ;;  %v2771_v21 = vpop.f32.mrb[151].mxu1  ;;  %12454 = vmatmul.mubr.msk.f32.gmra.mrb[146].mxu0 %vm1890_vm2, %v3191_v27  ;;  %v3193_v5 = vmax.f32 %v2767_v58, %v3065_v8  ;;  %v13410_v58 = vpack.c.bf16 %v5958_v25, %v5957_v6 }
 0x30f   : > { %v3192_v61 = vmax.f32 %v2762_v42, %v3064_v31  ;;  %v2772_v22 = vadd.f32 %v2771_v21, %v14743_v11 }
 0x310   : > { %v3067_v24 = vmul.f32 0.01, %v2777_v40  ;;  %13411 = vmatprep.subr.bf16.mxu0 %v13410_v58 }
 0x311   : > { %v3066_v2 = vmul.f32 0.01, %v2772_v22  ;;  %v12256_v17 = vpop.f32.mrb[152].mxu1  ;;  %12456 = vmatprep.mubr.msk.f32.mxu0 %vm1890_vm2, %v3192_v61  ;;  %13413 = vmatpush3.bf16.msra.mxu0 %v13410_v58 }
 0x312   : > { %v2787_v55 = vadd.f32 %v12256_v17, %v14743_v11  ;;  %v2781_v15 = vpop.f32.mrb[153].mxu1  ;;  %12457 = vmatmul.mubr.msk.f32.gmra.mrb[148].mxu0 %vm1890_vm2, %v3193_v5  ;;  %v3195_v62 = vmax.f32 %v2777_v40, %v3067_v24 }
 0x313   : > { %v3194_v29 = vmax.f32 %v2772_v22, %v3066_v2  ;;  %v2782_v35 = vadd.f32 %v2781_v15, %v14743_v11 }
 0x314   : > { %v3069_v63 = vmul.f32 0.01, %v2787_v55 }
 0x315   : > { %v3068_v1 = vmul.f32 0.01, %v2782_v35  ;;  %v12259_v19 = vpop.f32.mrb[154].mxu1  ;;  %12459 = vmatprep.mubr.msk.f32.mxu0 %vm1890_vm2, %v3194_v29 }
 0x316   : > { %v2797_v10 = vadd.f32 %v12259_v19, %v14743_v11  ;;  %v2791_v36 = vpop.f32.mrb[155].mxu1  ;;  %12460 = vmatmul.mubr.msk.f32.gmra.mrb[150].mxu0 %vm1890_vm2, %v3195_v62  ;;  %v3197_v43 = vmax.f32 %v2787_v55, %v3069_v63 }
 0x317   : > { %v3196_v37 = vmax.f32 %v2782_v35, %v3068_v1  ;;  %v2792_v18 = vadd.f32 %v2791_v36, %v14743_v11 }
 0x318   : > { %v3071_v20 = vmul.f32 0.01, %v2797_v10 }
 0x319   : > { %v3070_v46 = vmul.f32 0.01, %v2792_v18  ;;  %v12262_v12 = vpop.f32.mrb[156].mxu1  ;;  %12462 = vmatprep.mubr.msk.f32.mxu0 %vm1890_vm2, %v3196_v37 }
 0x31a   : > { %v2807_v30 = vadd.f32 %v12262_v12, %v14743_v11  ;;  %v2801_v32 = vpop.f32.mrb[157].mxu1  ;;  %12463 = vmatmul.mubr.msk.f32.gmra.mrb[152].mxu0 %vm1890_vm2, %v3197_v43  ;;  %v3199_v49 = vmax.f32 %v2797_v10, %v3071_v20  ;;  %v3247_v12 = vsub.s32 1, %v16583_v38 }
 0x31b   : > { %v3198_v56 = vmax.f32 %v2792_v18, %v3070_v46  ;;  %v2802_v33 = vadd.f32 %v2801_v32, %v14743_v11 }
 0x31c   : > { %v3073_v47 = vmul.f32 0.01, %v2807_v30 }
 0x31d   : > { %v3072_v48 = vmul.f32 0.01, %v2802_v33  ;;  %v12265_v26 = vpop.f32.mrb[158].mxu1  ;;  %12465 = vmatprep.mubr.msk.f32.mxu0 %vm1890_vm2, %v3198_v56 }
 0x31e   : > { %v2817_v3 = vadd.f32 %v12265_v26, %v14743_v11  ;;  %v2811_v50 = vpop.f32.mrb[159].mxu1  ;;  %12466 = vmatmul.mubr.msk.f32.gmra.mrb[154].mxu0 %vm1890_vm2, %v3199_v49  ;;  %v3201_v45 = vmax.f32 %v2807_v30, %v3073_v47 }
 0x31f   : > { %v3200_v16 = vmax.f32 %v2802_v33, %v3072_v48  ;;  %v2812_v13 = vadd.f32 %v2811_v50, %v14743_v11 }
 0x320   : > { %v3075_v0 = vmul.f32 0.01, %v2817_v3 }
 0x321   : > { %v3074_v9 = vmul.f32 0.01, %v2812_v13  ;;  %v12268_v54 = vpop.f32.mrb[160].mxu1  ;;  %12468 = vmatprep.mubr.msk.f32.mxu0 %vm1890_vm2, %v3200_v16 }
 0x322   : > { %v2827_v7 = vadd.f32 %v12268_v54, %v14743_v11  ;;  %v2821_v41 = vpop.f32.mrb[161].mxu1  ;;  %12469 = vmatmul.mubr.msk.f32.gmra.mrb[156].mxu0 %vm1890_vm2, %v3201_v45  ;;  %v3203_v60 = vmax.f32 %v2817_v3, %v3075_v0  ;;  %v13566_v3 = vld [vmem:[#allocation7] sm:$0xf] }
 0x323   : > { %v3202_v44 = vmax.f32 %v2812_v13, %v3074_v9  ;;  %v2822_v52 = vadd.f32 %v2821_v41, %v14743_v11  ;;  %v15019_v50 = vrot.slane %v13566_v3, %v3247_v12 }
 0x324   : > { %v3077_v28 = vmul.f32 0.01, %v2827_v7 }
 0x325   : > { %v3076_v59 = vmul.f32 0.01, %v2822_v52  ;;  %v12271_v23 = vpop.f32.mrb[162].mxu1  ;;  %12471 = vmatprep.mubr.msk.f32.mxu0 %vm1890_vm2, %v3202_v44 }
 0x326   : > { %v2837_v34 = vadd.f32 %v12271_v23, %v14743_v11  ;;  %v2831_v4 = vpop.f32.mrb[163].mxu1  ;;  %12472 = vmatmul.mubr.msk.f32.gmra.mrb[158].mxu0 %vm1890_vm2, %v3203_v60  ;;  %v3205_v39 = vmax.f32 %v2827_v7, %v3077_v28 }
 0x327   : > { %v3204_v53 = vmax.f32 %v2822_v52, %v3076_v59  ;;  %v2832_v57 = vadd.f32 %v2831_v4, %v14743_v11 }
 0x328   : > { %v3079_v14 = vmul.f32 0.01, %v2837_v34 }
 0x329   : > { %v3078_v42 = vmul.f32 0.01, %v2832_v57  ;;  %v12274_v27 = vpop.f32.mrb[164].mxu1  ;;  %12474 = vmatprep.mubr.msk.f32.mxu0 %vm1890_vm2, %v3204_v53 }
 0x32a   : > { %v2847_v8 = vadd.f32 %v12274_v27, %v14743_v11  ;;  %v2841_v31 = vpop.f32.mrb[165].mxu1  ;;  %12475 = vmatmul.mubr.msk.f32.gmra.mrb[160].mxu0 %vm1890_vm2, %v3205_v39  ;;  %v3207_v21 = vmax.f32 %v2837_v34, %v3079_v14 }
 0x32b   : > { %v3206_v51 = vmax.f32 %v2832_v57, %v3078_v42  ;;  %v2842_v40 = vadd.f32 %v2841_v31, %v14743_v11 }
 0x32c   : > { %v3081_v61 = vmul.f32 0.01, %v2847_v8 }
 0x32d   : > { %v3080_v22 = vmul.f32 0.01, %v2842_v40  ;;  %v12277_v5 = vpop.f32.mrb[166].mxu1  ;;  %12477 = vmatprep.mubr.msk.f32.mxu0 %vm1890_vm2, %v3206_v51 }
 0x32e   : > { %v2857_v24 = vadd.f32 %v12277_v5, %v14743_v11  ;;  %v2851_v2 = vpop.f32.mrb[167].mxu1  ;;  %12478 = vmatmul.mubr.msk.f32.gmra.mrb[162].mxu0 %vm1890_vm2, %v3207_v21  ;;  %v3209_v15 = vmax.f32 %v2847_v8, %v3081_v61 }
 0x32f   : > { %v3208_v17 = vmax.f32 %v2842_v40, %v3080_v22  ;;  %v2852_v55 = vadd.f32 %v2851_v2, %v14743_v11 }
 0x330   : > { %v3083_v29 = vmul.f32 0.01, %v2857_v24 }
 0x331   : > { %v3082_v35 = vmul.f32 0.01, %v2852_v55  ;;  %v12280_v62 = vpop.f32.mrb[168].mxu1  ;;  %12480 = vmatprep.mubr.msk.f32.mxu0 %vm1890_vm2, %v3208_v17 }
 0x332   : > { %v2867_v63 = vadd.f32 %v12280_v62, %v14743_v11  ;;  %v2861_v1 = vpop.f32.mrb[169].mxu1  ;;  %12481 = vmatmul.mubr.msk.f32.gmra.mrb[164].mxu0 %vm1890_vm2, %v3209_v15  ;;  %v3211_v36 = vmax.f32 %v2857_v24, %v3083_v29 }
 0x333   : > { %v3210_v19 = vmax.f32 %v2852_v55, %v3082_v35  ;;  %v2862_v10 = vadd.f32 %v2861_v1, %v14743_v11 }
 0x334   : > { %v3085_v37 = vmul.f32 0.01, %v2867_v63 }
 0x335   : > { %v3084_v18 = vmul.f32 0.01, %v2862_v10  ;;  %v12283_v43 = vpop.f32.mrb[170].mxu1  ;;  %12483 = vmatprep.mubr.msk.f32.mxu0 %vm1890_vm2, %v3210_v19 }
 0x336   : > { %v2877_v20 = vadd.f32 %v12283_v43, %v14743_v11  ;;  %v2871_v46 = vpop.f32.mrb[171].mxu1  ;;  %12484 = vmatmul.mubr.msk.f32.gmra.mrb[166].mxu0 %vm1890_vm2, %v3211_v36  ;;  %v3213_v56 = vmax.f32 %v2867_v63, %v3085_v37 }
 0x337   : > { %v3212_v30 = vmax.f32 %v2862_v10, %v3084_v18  ;;  %v2872_v32 = vadd.f32 %v2871_v46, %v14743_v11 }
 0x338   : > { %v3087_v33 = vmul.f32 0.01, %v2877_v20 }
 0x339   : > { %v3086_v49 = vmul.f32 0.01, %v2872_v32  ;;  %v12286_v47 = vpop.f32.mrb[172].mxu1  ;;  %12486 = vmatprep.mubr.msk.f32.mxu0 %vm1890_vm2, %v3212_v30 }
 0x33a   : > { %v2887_v48 = vadd.f32 %v12286_v47, %v14743_v11  ;;  %v2881_v26 = vpop.f32.mrb[173].mxu1  ;;  %12487 = vmatmul.mubr.msk.f32.gmra.mrb[168].mxu0 %vm1890_vm2, %v3213_v56  ;;  %v3215_v45 = vmax.f32 %v2877_v20, %v3087_v33 }
 0x33b   : > { %v3214_v16 = vmax.f32 %v2872_v32, %v3086_v49  ;;  %v2882_v13 = vadd.f32 %v2881_v26, %v14743_v11 }
 0x33c   : > { %v3089_v0 = vmul.f32 0.01, %v2887_v48 }
 0x33d   : > { %v3088_v9 = vmul.f32 0.01, %v2882_v13  ;;  %v12289_v54 = vpop.f32.mrb[174].mxu1  ;;  %v12332_v7 = vpop.f32.mrb[64].mxu0  ;;  %12489 = vmatprep.mubr.msk.f32.mxu0 %vm1890_vm2, %v3214_v16 }
 0x33e   : > { %v2897_v41 = vadd.f32 %v12289_v54, %v14743_v11  ;;  %v3705_v44 = vadd.f32 %v12332_v7, %v15019_v50  ;;  %v2891_v52 = vpop.f32.mrb[175].mxu1  ;;  %v3699_v60 = vpop.f32.mrb[65].mxu0  ;;  %12490 = vmatmul.mubr.msk.f32.gmra.mrb[170].mxu0 %vm1890_vm2, %v3215_v45  ;;  %v3217_v34 = vmax.f32 %v2887_v48, %v3089_v0 }
 0x33f   : > { %v3216_v28 = vmax.f32 %v2882_v13, %v3088_v9  ;;  %v2892_v59 = vadd.f32 %v2891_v52, %v14743_v11  ;;  %v3700_v23 = vadd.f32 %v3699_v60, %v15019_v50 }
 0x340   : > { %v3091_v4 = vmul.f32 0.01, %v2897_v41  ;;  %v4339_v6 = vmul.f32 0.01, %v3705_v44 }
 0x341   : > { %v3090_v25 = vmul.f32 0.01, %v2892_v59  ;;  %v4338_v53 = vmul.f32 0.01, %v3700_v23  ;;  %v12292_v57 = vpop.f32.mrb[176].mxu1  ;;  %v12335_v58 = vpop.f32.mrb[66].mxu0  ;;  %12492 = vmatprep.mubr.msk.f32.mxu0 %vm1890_vm2, %v3216_v28 }
 0x342   : > { %v2907_v39 = vadd.f32 %v12292_v57, %v14743_v11  ;;  %v3715_v14 = vadd.f32 %v12335_v58, %v15019_v50  ;;  %v2901_v42 = vpop.f32.mrb[177].mxu1  ;;  %v3709_v27 = vpop.f32.mrb[67].mxu0  ;;  %12493 = vmatmul.mubr.msk.f32.gmra.mrb[172].mxu0 %vm1890_vm2, %v3217_v34  ;;  %v3219_v21 = vmax.f32 %v2897_v41, %v3091_v4  ;;  %v4467_v5 = vmax.f32 %v3705_v44, %v4339_v6 }
 0x343   : > { %v3218_v8 = vmax.f32 %v2892_v59, %v3090_v25  ;;  %v4466_v31 = vmax.f32 %v3700_v23, %v4338_v53  ;;  %v2902_v51 = vadd.f32 %v2901_v42, %v14743_v11  ;;  %v3710_v40 = vadd.f32 %v3709_v27, %v15019_v50 }
 0x344   : > { %v3093_v61 = vmul.f32 0.01, %v2907_v39  ;;  %v4341_v22 = vmul.f32 0.01, %v3715_v14 }
 0x345   : > { %v3092_v24 = vmul.f32 0.01, %v2902_v51  ;;  %v4340_v2 = vmul.f32 0.01, %v3710_v40  ;;  %v12295_v17 = vpop.f32.mrb[178].mxu1  ;;  %v12338_v55 = vpop.f32.mrb[68].mxu0  ;;  %12495 = vmatprep.mubr.msk.f32.mxu0 %vm1890_vm2, %v3218_v8  ;;  %12538 = vmatprep.mubr.msk.f32.mxu1 %vm1890_vm2, %v4466_v31 }
 0x346   : > { %v2917_v15 = vadd.f32 %v12295_v17, %v14743_v11  ;;  %v3725_v29 = vadd.f32 %v12338_v55, %v15019_v50  ;;  %v2911_v35 = vpop.f32.mrb[179].mxu1  ;;  %v3719_v62 = vpop.f32.mrb[69].mxu0  ;;  %12496 = vmatmul.mubr.msk.f32.gmra.mrb[174].mxu0 %vm1890_vm2, %v3219_v21  ;;  %12539 = vmatmul.mubr.msk.f32.vlgmr.msra.gmra.mrb[192].mxu1 %vm1890_vm2, %v4467_v5  ;;  %v3221_v36 = vmax.f32 %v2907_v39, %v3093_v61 }
 0x347   : > { %v3220_v63 = vmax.f32 %v2902_v51, %v3092_v24  ;;  %v4468_v1 = vmax.f32 %v3710_v40, %v4340_v2  ;;  %v2912_v19 = vadd.f32 %v2911_v35, %v14743_v11  ;;  %v3720_v10 = vadd.f32 %v3719_v62, %v15019_v50 }
 0x348   : > { %v3095_v37 = vmul.f32 0.01, %v2917_v15  ;;  %v4343_v18 = vmul.f32 0.01, %v3725_v29  ;;  %v4469_v43 = vmax.f32 %v3715_v14, %v4341_v22 }
 0x349   : > { %v3094_v20 = vmul.f32 0.01, %v2912_v19  ;;  %v4342_v46 = vmul.f32 0.01, %v3720_v10  ;;  %v12298_v30 = vpop.f32.mrb[180].mxu1  ;;  %v12341_v32 = vpop.f32.mrb[70].mxu0  ;;  %12498 = vmatprep.mubr.msk.f32.mxu0 %vm1890_vm2, %v3220_v63  ;;  %12541 = vmatprep.mubr.msk.f32.mxu1 %vm1890_vm2, %v4468_v1 }
 0x34a   : > { %v2927_v56 = vadd.f32 %v12298_v30, %v14743_v11  ;;  %v3735_v33 = vadd.f32 %v12341_v32, %v15019_v50  ;;  %v2921_v49 = vpop.f32.mrb[181].mxu1  ;;  %v3729_v47 = vpop.f32.mrb[71].mxu0  ;;  %12499 = vmatmul.mubr.msk.f32.gmra.mrb[176].mxu0 %vm1890_vm2, %v3221_v36  ;;  %12542 = vmatmul.mubr.msk.f32.gmra.mrb[194].mxu1 %vm1890_vm2, %v4469_v43  ;;  %v3223_v13 = vmax.f32 %v2917_v15, %v3095_v37 }
 0x34b   : > { %v3222_v48 = vmax.f32 %v2912_v19, %v3094_v20  ;;  %v4470_v26 = vmax.f32 %v3720_v10, %v4342_v46  ;;  %v2922_v3 = vadd.f32 %v2921_v49, %v14743_v11  ;;  %v3730_v16 = vadd.f32 %v3729_v47, %v15019_v50 }
 0x34c   : > { %v3097_v45 = vmul.f32 0.01, %v2927_v56  ;;  %v4345_v0 = vmul.f32 0.01, %v3735_v33  ;;  %v4471_v9 = vmax.f32 %v3725_v29, %v4343_v18 }
 0x34d   : > { %v3096_v54 = vmul.f32 0.01, %v2922_v3  ;;  %v4344_v7 = vmul.f32 0.01, %v3730_v16  ;;  %v12301_v41 = vpop.f32.mrb[182].mxu1  ;;  %v12344_v44 = vpop.f32.mrb[72].mxu0  ;;  %12501 = vmatprep.mubr.msk.f32.mxu0 %vm1890_vm2, %v3222_v48  ;;  %12544 = vmatprep.mubr.msk.f32.mxu1 %vm1890_vm2, %v4470_v26 }
 0x34e   : > { %v2937_v52 = vadd.f32 %v12301_v41, %v14743_v11  ;;  %v3745_v60 = vadd.f32 %v12344_v44, %v15019_v50  ;;  %v2931_v28 = vpop.f32.mrb[183].mxu1  ;;  %v3739_v59 = vpop.f32.mrb[73].mxu0  ;;  %12502 = vmatmul.mubr.msk.f32.gmra.mrb[178].mxu0 %vm1890_vm2, %v3223_v13  ;;  %12545 = vmatmul.mubr.msk.f32.gmra.mrb[196].mxu1 %vm1890_vm2, %v4471_v9  ;;  %v3225_v25 = vmax.f32 %v2927_v56, %v3097_v45 }
 0x34f   : > { %v3224_v23 = vmax.f32 %v2922_v3, %v3096_v54  ;;  %v4472_v34 = vmax.f32 %v3730_v16, %v4344_v7  ;;  %v2932_v4 = vadd.f32 %v2931_v28, %v14743_v11  ;;  %v3740_v6 = vadd.f32 %v3739_v59, %v15019_v50 }
 0x350   : > { %v3099_v53 = vmul.f32 0.01, %v2937_v52  ;;  %v4347_v57 = vmul.f32 0.01, %v3745_v60  ;;  %v4473_v58 = vmax.f32 %v3735_v33, %v4345_v0 }
 0x351   : > { %v3098_v39 = vmul.f32 0.01, %v2932_v4  ;;  %v4346_v14 = vmul.f32 0.01, %v3740_v6  ;;  %v12304_v42 = vpop.f32.mrb[184].mxu1  ;;  %v12347_v27 = vpop.f32.mrb[74].mxu0  ;;  %12504 = vmatprep.mubr.msk.f32.mxu0 %vm1890_vm2, %v3224_v23  ;;  %12547 = vmatprep.mubr.msk.f32.mxu1 %vm1890_vm2, %v4472_v34 }
 0x352   : > { %v2947_v8 = vadd.f32 %v12304_v42, %v14743_v11  ;;  %v3755_v31 = vadd.f32 %v12347_v27, %v15019_v50  ;;  %v2941_v51 = vpop.f32.mrb[185].mxu1  ;;  %v3749_v40 = vpop.f32.mrb[75].mxu0  ;;  %12505 = vmatmul.mubr.msk.f32.gmra.mrb[180].mxu0 %vm1890_vm2, %v3225_v25  ;;  %12548 = vmatmul.mubr.msk.f32.gmra.mrb[198].mxu1 %vm1890_vm2, %v4473_v58  ;;  %v3227_v24 = vmax.f32 %v2937_v52, %v3099_v53 }
 0x353   : > { %v3226_v21 = vmax.f32 %v2932_v4, %v3098_v39  ;;  %v4474_v61 = vmax.f32 %v3740_v6, %v4346_v14  ;;  %v2942_v22 = vadd.f32 %v2941_v51, %v14743_v11  ;;  %v3750_v5 = vadd.f32 %v3749_v40, %v15019_v50 }
 0x354   : > { %v3101_v2 = vmul.f32 0.01, %v2947_v8  ;;  %v4349_v17 = vmul.f32 0.01, %v3755_v31  ;;  %v4475_v55 = vmax.f32 %v3745_v60, %v4347_v57 }
 0x355   : > { %v3100_v15 = vmul.f32 0.01, %v2942_v22  ;;  %v4348_v29 = vmul.f32 0.01, %v3750_v5  ;;  %v12307_v35 = vpop.f32.mrb[186].mxu1  ;;  %v12350_v62 = vpop.f32.mrb[76].mxu0  ;;  %12507 = vmatprep.mubr.msk.f32.mxu0 %vm1890_vm2, %v3226_v21  ;;  %12550 = vmatprep.mubr.msk.f32.mxu1 %vm1890_vm2, %v4474_v61 }
 0x356   : > { %v2957_v63 = vadd.f32 %v12307_v35, %v14743_v11  ;;  %v3765_v1 = vadd.f32 %v12350_v62, %v15019_v50  ;;  %v2951_v19 = vpop.f32.mrb[187].mxu1  ;;  %v3759_v10 = vpop.f32.mrb[77].mxu0  ;;  %12508 = vmatmul.mubr.msk.f32.gmra.mrb[182].mxu0 %vm1890_vm2, %v3227_v24  ;;  %12551 = vmatmul.mubr.msk.f32.gmra.mrb[200].mxu1 %vm1890_vm2, %v4475_v55  ;;  %v3229_v20 = vmax.f32 %v2947_v8, %v3101_v2  ;;  %v5959_v35 = vld [vmem:[#allocation6 + $0xf0] sm:$0xff]  ;;  %v5960_v62 = vld [vmem:[#allocation6 + $0xf8] sm:$0xff] }
 0x357   : > { %v3228_v36 = vmax.f32 %v2942_v22, %v3100_v15  ;;  %v4476_v37 = vmax.f32 %v3750_v5, %v4348_v29  ;;  %v2952_v18 = vadd.f32 %v2951_v19, %v14743_v11  ;;  %v3760_v43 = vadd.f32 %v3759_v10, %v15019_v50 }
 0x358   : > { %v3103_v46 = vmul.f32 0.01, %v2957_v63  ;;  %v4351_v30 = vmul.f32 0.01, %v3765_v1  ;;  %v4477_v32 = vmax.f32 %v3755_v31, %v4349_v17  ;;  %v13414_v19 = vpack.c.bf16 %v5960_v62, %v5959_v35 }
 0x359   : > { %v3102_v56 = vmul.f32 0.01, %v2952_v18  ;;  %v4350_v33 = vmul.f32 0.01, %v3760_v43  ;;  %v12310_v49 = vpop.f32.mrb[188].mxu1  ;;  %v12353_v47 = vpop.f32.mrb[78].mxu0  ;;  %12510 = vmatprep.mubr.msk.f32.mxu0 %vm1890_vm2, %v3228_v36  ;;  %12553 = vmatprep.mubr.msk.f32.mxu1 %vm1890_vm2, %v4476_v37 }
 0x35a   : > { %v2967_v48 = vadd.f32 %v12310_v49, %v14743_v11  ;;  %v3775_v26 = vadd.f32 %v12353_v47, %v15019_v50  ;;  %v2961_v3 = vpop.f32.mrb[189].mxu1  ;;  %v3769_v16 = vpop.f32.mrb[79].mxu0  ;;  %12511 = vmatmul.mubr.msk.f32.gmra.mrb[184].mxu0 %vm1890_vm2, %v3229_v20  ;;  %12554 = vmatmul.mubr.msk.f32.gmra.mrb[202].mxu1 %vm1890_vm2, %v4477_v32  ;;  %v3231_v54 = vmax.f32 %v2957_v63, %v3103_v46 }
 0x35b   : > { %v3230_v13 = vmax.f32 %v2952_v18, %v3102_v56  ;;  %v4478_v45 = vmax.f32 %v3760_v43, %v4350_v33  ;;  %v2962_v0 = vadd.f32 %v2961_v3, %v14743_v11  ;;  %v3770_v9 = vadd.f32 %v3769_v16, %v15019_v50  ;;  %13415 = vmatprep.subr.bf16.mxu0 %v13414_v19 }
 0x35c   : > { %v3105_v7 = vmul.f32 0.01, %v2967_v48  ;;  %v4353_v41 = vmul.f32 0.01, %v3775_v26  ;;  %v4479_v44 = vmax.f32 %v3765_v1, %v4351_v30  ;;  %13417 = vmatpush3.bf16.msra.mxu0 %v13414_v19 }
 0x35d   : > { %v3104_v52 = vmul.f32 0.01, %v2962_v0  ;;  %v4352_v60 = vmul.f32 0.01, %v3770_v9  ;;  %v12313_v28 = vpop.f32.mrb[190].mxu1  ;;  %v12356_v59 = vpop.f32.mrb[80].mxu0  ;;  %12513 = vmatprep.mubr.msk.f32.mxu0 %vm1890_vm2, %v3230_v13  ;;  %12556 = vmatprep.mubr.msk.f32.mxu1 %vm1890_vm2, %v4478_v45 }
 0x35e   : > { %v2977_v23 = vadd.f32 %v12313_v28, %v14743_v11  ;;  %v3785_v34 = vadd.f32 %v12356_v59, %v15019_v50  ;;  %v2971_v4 = vpop.f32.mrb[191].mxu1  ;;  %v3779_v6 = vpop.f32.mrb[81].mxu0  ;;  %12514 = vmatmul.mubr.msk.f32.gmra.mrb[186].mxu0 %vm1890_vm2, %v3231_v54  ;;  %12557 = vmatmul.mubr.msk.f32.gmra.mrb[204].mxu1 %vm1890_vm2, %v4479_v44  ;;  %v3233_v39 = vmax.f32 %v2967_v48, %v3105_v7 }
 0x35f   : > { %v3232_v25 = vmax.f32 %v2962_v0, %v3104_v52  ;;  %v4480_v53 = vmax.f32 %v3770_v9, %v4352_v60  ;;  %v2972_v57 = vadd.f32 %v2971_v4, %v14743_v11  ;;  %v3780_v58 = vadd.f32 %v3779_v6, %v15019_v50 }
 0x360   : > { %v3107_v14 = vmul.f32 0.01, %v2977_v23  ;;  %v4355_v42 = vmul.f32 0.01, %v3785_v34  ;;  %v4481_v27 = vmax.f32 %v3775_v26, %v4353_v41 }
 0x361   : > { %v3106_v8 = vmul.f32 0.01, %v2972_v57  ;;  %v4354_v31 = vmul.f32 0.01, %v3780_v58  ;;  %v12359_v51 = vpop.f32.mrb[82].mxu0  ;;  %12516 = vmatprep.mubr.msk.f32.mxu0 %vm1890_vm2, %v3232_v25  ;;  %12559 = vmatprep.mubr.msk.f32.mxu1 %vm1890_vm2, %v4480_v53 }
 0x362   : > { %v3795_v40 = vadd.f32 %v12359_v51, %v15019_v50  ;;  %v3789_v21 = vpop.f32.mrb[83].mxu0  ;;  %12517 = vmatmul.mubr.msk.f32.gmra.mrb[188].mxu0 %vm1890_vm2, %v3233_v39  ;;  %12560 = vmatmul.mubr.msk.f32.gmra.mrb[206].mxu1 %vm1890_vm2, %v4481_v27  ;;  %v3235_v5 = vmax.f32 %v2977_v23, %v3107_v14  ;;  %v4483_v24 = vmax.f32 %v3785_v34, %v4355_v42 }
 0x363   : > { %v3234_v11 = vmax.f32 %v2972_v57, %v3106_v8  ;;  %v4482_v61 = vmax.f32 %v3780_v58, %v4354_v31  ;;  %v3790_v22 = vadd.f32 %v3789_v21, %v15019_v50 }
 0x364   : > { %v4357_v2 = vmul.f32 0.01, %v3795_v40 }
 0x365   : > { %v4356_v17 = vmul.f32 0.01, %v3790_v22  ;;  %v12362_v55 = vpop.f32.mrb[84].mxu0  ;;  %12519 = vmatprep.mubr.msk.f32.mxu0 %vm1890_vm2, %v3234_v11  ;;  %12562 = vmatprep.mubr.msk.f32.mxu1 %vm1890_vm2, %v4482_v61 }
 0x366   : > { %v3805_v15 = vadd.f32 %v12362_v55, %v15019_v50  ;;  %v3799_v29 = vpop.f32.mrb[85].mxu0  ;;  %12520 = vmatmul.mubr.msk.f32.gmra.mrb[190].mxu0 %vm1890_vm2, %v3235_v5  ;;  %12563 = vmatmul.mubr.msk.f32.gmra.mrb[208].mxu1 %vm1890_vm2, %v4483_v24  ;;  %v4485_v10 = vmax.f32 %v3795_v40, %v4357_v2 }
 0x367   : > { %v4484_v63 = vmax.f32 %v3790_v22, %v4356_v17  ;;  %v3800_v1 = vadd.f32 %v3799_v29, %v15019_v50  ;;  %v7312_v29 = vld [vmem:[#allocation6 + $0x108] sm:$0xff] }
 0x368   : > { %v4359_v36 = vmul.f32 0.01, %v3805_v15 }
 0x369   : > { %v4358_v37 = vmul.f32 0.01, %v3800_v1  ;;  %v12365_v18 = vpop.f32.mrb[86].mxu0  ;;  %12565 = vmatprep.mubr.msk.f32.mxu1 %vm1890_vm2, %v4484_v63 }
 0x36a   : > { %v3815_v43 = vadd.f32 %v12365_v18, %v15019_v50  ;;  %v3809_v20 = vpop.f32.mrb[87].mxu0  ;;  %12566 = vmatmul.mubr.msk.f32.gmra.mrb[210].mxu1 %vm1890_vm2, %v4485_v10  ;;  %v4487_v32 = vmax.f32 %v3805_v15, %v4359_v36  ;;  %v7311_v15 = vld [vmem:[#allocation6 + $0x100] sm:$0xff] }
 0x36b   : > { %v4486_v46 = vmax.f32 %v3800_v1, %v4358_v37  ;;  %v3810_v30 = vadd.f32 %v3809_v20, %v15019_v50  ;;  %v13418_v63 = vpack.c.bf16 %v7312_v29, %v7311_v15 }
 0x36c   : > { %v4361_v56 = vmul.f32 0.01, %v3815_v43 }
 0x36d   : > { %v4360_v33 = vmul.f32 0.01, %v3810_v30  ;;  %v12368_v49 = vpop.f32.mrb[88].mxu0  ;;  %12568 = vmatprep.mubr.msk.f32.mxu1 %vm1890_vm2, %v4486_v46  ;;  %13419 = vmatprep.subr.bf16.mxu1 %v13418_v63 }
 0x36e   : > { %v3825_v47 = vadd.f32 %v12368_v49, %v15019_v50  ;;  %v3819_v48 = vpop.f32.mrb[89].mxu0  ;;  %12569 = vmatmul.mubr.msk.f32.gmra.mrb[212].mxu1 %vm1890_vm2, %v4487_v32  ;;  %v4489_v16 = vmax.f32 %v3815_v43, %v4361_v56 }
 0x36f   : > { %v4488_v26 = vmax.f32 %v3810_v30, %v4360_v33  ;;  %v3820_v3 = vadd.f32 %v3819_v48, %v15019_v50  ;;  %13421 = vmatpush3.bf16.msra.mxu1 %v13418_v63 }
 0x370   : > { %v4363_v13 = vmul.f32 0.01, %v3825_v47 }
 0x371   : > { %v4362_v45 = vmul.f32 0.01, %v3820_v3  ;;  %v12371_v0 = vpop.f32.mrb[90].mxu0  ;;  %12571 = vmatprep.mubr.msk.f32.mxu1 %vm1890_vm2, %v4488_v26 }
 0x372   : > { %v3835_v9 = vadd.f32 %v12371_v0, %v15019_v50  ;;  %v3829_v54 = vpop.f32.mrb[91].mxu0  ;;  %12572 = vmatmul.mubr.msk.f32.gmra.mrb[214].mxu1 %vm1890_vm2, %v4489_v16  ;;  %v4491_v44 = vmax.f32 %v3825_v47, %v4363_v13 }
 0x373   : > { %v4490_v7 = vmax.f32 %v3820_v3, %v4362_v45  ;;  %v3830_v41 = vadd.f32 %v3829_v54, %v15019_v50 }
 0x374   : > { %v4365_v52 = vmul.f32 0.01, %v3835_v9 }
 0x375   : > { %v4364_v60 = vmul.f32 0.01, %v3830_v41  ;;  %v12374_v28 = vpop.f32.mrb[92].mxu0  ;;  %12574 = vmatprep.mubr.msk.f32.mxu1 %vm1890_vm2, %v4490_v7 }
 0x376   : > { %v3845_v59 = vadd.f32 %v12374_v28, %v15019_v50  ;;  %v3839_v23 = vpop.f32.mrb[93].mxu0  ;;  %12575 = vmatmul.mubr.msk.f32.gmra.mrb[216].mxu1 %vm1890_vm2, %v4491_v44  ;;  %v4493_v6 = vmax.f32 %v3835_v9, %v4365_v52 }
 0x377   : > { %v4492_v34 = vmax.f32 %v3830_v41, %v4364_v60  ;;  %v3840_v4 = vadd.f32 %v3839_v23, %v15019_v50 }
 0x378   : > { %v4367_v25 = vmul.f32 0.01, %v3845_v59 }
 0x379   : > { %v4366_v53 = vmul.f32 0.01, %v3840_v4  ;;  %v12377_v57 = vpop.f32.mrb[94].mxu0  ;;  %12577 = vmatprep.mubr.msk.f32.mxu1 %vm1890_vm2, %v4492_v34 }
 0x37a   : > { %v3855_v58 = vadd.f32 %v12377_v57, %v15019_v50  ;;  %v3849_v39 = vpop.f32.mrb[95].mxu0  ;;  %12578 = vmatmul.mubr.msk.f32.gmra.mrb[218].mxu1 %vm1890_vm2, %v4493_v6  ;;  %v4495_v27 = vmax.f32 %v3845_v59, %v4367_v25 }
 0x37b   : > { %v4494_v14 = vmax.f32 %v3840_v4, %v4366_v53  ;;  %v3850_v42 = vadd.f32 %v3849_v39, %v15019_v50 }
 0x37c   : > { %v4369_v8 = vmul.f32 0.01, %v3855_v58 }
 0x37d   : > { %v4368_v31 = vmul.f32 0.01, %v3850_v42  ;;  %v12380_v51 = vpop.f32.mrb[96].mxu0  ;;  %12580 = vmatprep.mubr.msk.f32.mxu1 %vm1890_vm2, %v4494_v14 }
 0x37e   : > { %v3865_v40 = vadd.f32 %v12380_v51, %v15019_v50  ;;  %v3859_v21 = vpop.f32.mrb[97].mxu0  ;;  %12581 = vmatmul.mubr.msk.f32.gmra.mrb[220].mxu1 %vm1890_vm2, %v4495_v27  ;;  %v4497_v22 = vmax.f32 %v3855_v58, %v4369_v8 }
 0x37f   : > { %v4496_v11 = vmax.f32 %v3850_v42, %v4368_v31  ;;  %v3860_v61 = vadd.f32 %v3859_v21, %v15019_v50 }
 0x380   : > { %v4371_v5 = vmul.f32 0.01, %v3865_v40 }
 0x381   : > { %v4370_v24 = vmul.f32 0.01, %v3860_v61  ;;  %v12383_v2 = vpop.f32.mrb[98].mxu0  ;;  %12583 = vmatprep.mubr.msk.f32.mxu1 %vm1890_vm2, %v4496_v11 }
 0x382   : > { %v3875_v17 = vadd.f32 %v12383_v2, %v15019_v50  ;;  %v3869_v55 = vpop.f32.mrb[99].mxu0  ;;  %12584 = vmatmul.mubr.msk.f32.gmra.mrb[222].mxu1 %vm1890_vm2, %v4497_v22  ;;  %v4499_v1 = vmax.f32 %v3865_v40, %v4371_v5 }
 0x383   : > { %v4498_v35 = vmax.f32 %v3860_v61, %v4370_v24  ;;  %v3870_v62 = vadd.f32 %v3869_v55, %v15019_v50 }
 0x384   : > { %v4373_v19 = vmul.f32 0.01, %v3875_v17 }
 0x385   : > { %v4372_v10 = vmul.f32 0.01, %v3870_v62  ;;  %v12386_v36 = vpop.f32.mrb[100].mxu0  ;;  %12586 = vmatprep.mubr.msk.f32.mxu1 %vm1890_vm2, %v4498_v35 }
 0x386   : > { %v3885_v37 = vadd.f32 %v12386_v36, %v15019_v50  ;;  %v3879_v18 = vpop.f32.mrb[101].mxu0  ;;  %12587 = vmatmul.mubr.msk.f32.gmra.mrb[224].mxu1 %vm1890_vm2, %v4499_v1  ;;  %v4501_v46 = vmax.f32 %v3875_v17, %v4373_v19 }
 0x387   : > { %v4500_v43 = vmax.f32 %v3870_v62, %v4372_v10  ;;  %v3880_v20 = vadd.f32 %v3879_v18, %v15019_v50 }
 0x388   : > { %v4375_v30 = vmul.f32 0.01, %v3885_v37 }
 0x389   : > { %v4374_v32 = vmul.f32 0.01, %v3880_v20  ;;  %v12389_v56 = vpop.f32.mrb[102].mxu0  ;;  %12589 = vmatprep.mubr.msk.f32.mxu1 %vm1890_vm2, %v4500_v43 }
 0x38a   : > { %v3895_v33 = vadd.f32 %v12389_v56, %v15019_v50  ;;  %v3889_v49 = vpop.f32.mrb[103].mxu0  ;;  %12590 = vmatmul.mubr.msk.f32.gmra.mrb[226].mxu1 %vm1890_vm2, %v4501_v46  ;;  %v4503_v26 = vmax.f32 %v3885_v37, %v4375_v30 }
 0x38b   : > { %v4502_v47 = vmax.f32 %v3880_v20, %v4374_v32  ;;  %v3890_v48 = vadd.f32 %v3889_v49, %v15019_v50 }
 0x38c   : > { %v4377_v3 = vmul.f32 0.01, %v3895_v33 }
 0x38d   : > { %v4376_v16 = vmul.f32 0.01, %v3890_v48  ;;  %v12392_v13 = vpop.f32.mrb[104].mxu0  ;;  %12592 = vmatprep.mubr.msk.f32.mxu1 %vm1890_vm2, %v4502_v47 }
 0x38e   : > { %v3905_v45 = vadd.f32 %v12392_v13, %v15019_v50  ;;  %v3899_v0 = vpop.f32.mrb[105].mxu0  ;;  %12593 = vmatmul.mubr.msk.f32.gmra.mrb[228].mxu1 %vm1890_vm2, %v4503_v26  ;;  %v4505_v7 = vmax.f32 %v3895_v33, %v4377_v3 }
 0x38f   : > { %v4504_v9 = vmax.f32 %v3890_v48, %v4376_v16  ;;  %v3900_v54 = vadd.f32 %v3899_v0, %v15019_v50 }
 0x390   : > { %v4379_v41 = vmul.f32 0.01, %v3905_v45 }
 0x391   : > { %v4378_v44 = vmul.f32 0.01, %v3900_v54  ;;  %v12395_v52 = vpop.f32.mrb[106].mxu0  ;;  %12595 = vmatprep.mubr.msk.f32.mxu1 %vm1890_vm2, %v4504_v9 }
 0x392   : > { %v3915_v60 = vadd.f32 %v12395_v52, %v15019_v50  ;;  %v3909_v28 = vpop.f32.mrb[107].mxu0  ;;  %12596 = vmatmul.mubr.msk.f32.gmra.mrb[230].mxu1 %vm1890_vm2, %v4505_v7  ;;  %v4507_v34 = vmax.f32 %v3905_v45, %v4379_v41 }
 0x393   : > { %v4506_v59 = vmax.f32 %v3900_v54, %v4378_v44  ;;  %v3910_v23 = vadd.f32 %v3909_v28, %v15019_v50 }
 0x394   : > { %v4381_v4 = vmul.f32 0.01, %v3915_v60 }
 0x395   : > { %v4380_v6 = vmul.f32 0.01, %v3910_v23  ;;  %v12398_v25 = vpop.f32.mrb[108].mxu0  ;;  %12598 = vmatprep.mubr.msk.f32.mxu1 %vm1890_vm2, %v4506_v59 }
 0x396   : > { %v3925_v53 = vadd.f32 %v12398_v25, %v15019_v50  ;;  %v3919_v57 = vpop.f32.mrb[109].mxu0  ;;  %12599 = vmatmul.mubr.msk.f32.gmra.mrb[232].mxu1 %vm1890_vm2, %v4507_v34  ;;  %v4509_v14 = vmax.f32 %v3915_v60, %v4381_v4 }
 0x397   : > { %v4508_v58 = vmax.f32 %v3910_v23, %v4380_v6  ;;  %v3920_v39 = vadd.f32 %v3919_v57, %v15019_v50 }
 0x398   : > { %v4383_v42 = vmul.f32 0.01, %v3925_v53 }
 0x399   : > { %v4382_v27 = vmul.f32 0.01, %v3920_v39  ;;  %v12401_v8 = vpop.f32.mrb[110].mxu0  ;;  %12601 = vmatprep.mubr.msk.f32.mxu1 %vm1890_vm2, %v4508_v58 }
 0x39a   : > { %v3935_v31 = vadd.f32 %v12401_v8, %v15019_v50  ;;  %v3929_v51 = vpop.f32.mrb[111].mxu0  ;;  %12602 = vmatmul.mubr.msk.f32.gmra.mrb[234].mxu1 %vm1890_vm2, %v4509_v14  ;;  %v4511_v11 = vmax.f32 %v3925_v53, %v4383_v42 }
 0x39b   : > { %v4510_v40 = vmax.f32 %v3920_v39, %v4382_v27  ;;  %v3930_v21 = vadd.f32 %v3929_v51, %v15019_v50 }
 0x39c   : > { %v4385_v61 = vmul.f32 0.01, %v3935_v31 }
 0x39d   : > { %v4384_v22 = vmul.f32 0.01, %v3930_v21  ;;  %v12404_v5 = vpop.f32.mrb[112].mxu0  ;;  %12604 = vmatprep.mubr.msk.f32.mxu1 %vm1890_vm2, %v4510_v40 }
 0x39e   : > { %v3945_v24 = vadd.f32 %v12404_v5, %v15019_v50  ;;  %v3939_v2 = vpop.f32.mrb[113].mxu0  ;;  %12605 = vmatmul.mubr.msk.f32.gmra.mrb[236].mxu1 %vm1890_vm2, %v4511_v11  ;;  %v4513_v15 = vmax.f32 %v3935_v31, %v4385_v61 }
 0x39f   : > { %v4512_v17 = vmax.f32 %v3930_v21, %v4384_v22  ;;  %v3940_v55 = vadd.f32 %v3939_v2, %v15019_v50 }
 0x3a0   : > { %v4387_v29 = vmul.f32 0.01, %v3945_v24 }
 0x3a1   : > { %v4386_v35 = vmul.f32 0.01, %v3940_v55  ;;  %v12407_v62 = vpop.f32.mrb[114].mxu0  ;;  %12607 = vmatprep.mubr.msk.f32.mxu1 %vm1890_vm2, %v4512_v17 }
 0x3a2   : > { %v3955_v63 = vadd.f32 %v12407_v62, %v15019_v50  ;;  %v3949_v1 = vpop.f32.mrb[115].mxu0  ;;  %12608 = vmatmul.mubr.msk.f32.gmra.mrb[238].mxu1 %vm1890_vm2, %v4513_v15  ;;  %v4515_v36 = vmax.f32 %v3945_v24, %v4387_v29 }
 0x3a3   : > { %v4514_v19 = vmax.f32 %v3940_v55, %v4386_v35  ;;  %v3950_v10 = vadd.f32 %v3949_v1, %v15019_v50 }
 0x3a4   : > { %v4389_v37 = vmul.f32 0.01, %v3955_v63 }
 0x3a5   : > { %v4388_v18 = vmul.f32 0.01, %v3950_v10  ;;  %v12410_v43 = vpop.f32.mrb[116].mxu0  ;;  %12610 = vmatprep.mubr.msk.f32.mxu1 %vm1890_vm2, %v4514_v19 }
 0x3a6   : > { %v3965_v20 = vadd.f32 %v12410_v43, %v15019_v50  ;;  %v3959_v46 = vpop.f32.mrb[117].mxu0  ;;  %12611 = vmatmul.mubr.msk.f32.gmra.mrb[240].mxu1 %vm1890_vm2, %v4515_v36  ;;  %v4517_v56 = vmax.f32 %v3955_v63, %v4389_v37  ;;  %v7313_v43 = vld [vmem:[#allocation6 + $0x110] sm:$0xff] }
 0x3a7   : > { %v4516_v30 = vmax.f32 %v3950_v10, %v4388_v18  ;;  %v3960_v32 = vadd.f32 %v3959_v46, %v15019_v50 }
 0x3a8   : > { %v4391_v33 = vmul.f32 0.01, %v3965_v20 }
 0x3a9   : > { %v4390_v49 = vmul.f32 0.01, %v3960_v32  ;;  %v12413_v47 = vpop.f32.mrb[118].mxu0  ;;  %12613 = vmatprep.mubr.msk.f32.mxu1 %vm1890_vm2, %v4516_v30 }
 0x3aa   : > { %v3975_v48 = vadd.f32 %v12413_v47, %v15019_v50  ;;  %v3969_v26 = vpop.f32.mrb[119].mxu0  ;;  %12614 = vmatmul.mubr.msk.f32.gmra.mrb[242].mxu1 %vm1890_vm2, %v4517_v56  ;;  %v4519_v13 = vmax.f32 %v3965_v20, %v4391_v33  ;;  %v7314_v20 = vld [vmem:[#allocation6 + $0x118] sm:$0xff] }
 0x3ab   : > { %v4518_v3 = vmax.f32 %v3960_v32, %v4390_v49  ;;  %v3970_v16 = vadd.f32 %v3969_v26, %v15019_v50  ;;  %v13422_v46 = vpack.c.bf16 %v7314_v20, %v7313_v43 }
 0x3ac   : > { %v4393_v45 = vmul.f32 0.01, %v3975_v48 }
 0x3ad   : > { %v4392_v0 = vmul.f32 0.01, %v3970_v16  ;;  %v12416_v9 = vpop.f32.mrb[120].mxu0  ;;  %12616 = vmatprep.mubr.msk.f32.mxu1 %vm1890_vm2, %v4518_v3  ;;  %13423 = vmatprep.subr.bf16.mxu1 %v13422_v46 }
 0x3ae   : > { %v3985_v54 = vadd.f32 %v12416_v9, %v15019_v50  ;;  %v3979_v7 = vpop.f32.mrb[121].mxu0  ;;  %12617 = vmatmul.mubr.msk.f32.gmra.mrb[244].mxu1 %vm1890_vm2, %v4519_v13  ;;  %v4521_v52 = vmax.f32 %v3975_v48, %v4393_v45 }
 0x3af   : > { %v4520_v41 = vmax.f32 %v3970_v16, %v4392_v0  ;;  %v3980_v44 = vadd.f32 %v3979_v7, %v15019_v50  ;;  %13425 = vmatpush3.bf16.msra.mxu1 %v13422_v46 }
 0x3b0   : > { %v4395_v60 = vmul.f32 0.01, %v3985_v54 }
 0x3b1   : > { %v4394_v28 = vmul.f32 0.01, %v3980_v44  ;;  %v12419_v59 = vpop.f32.mrb[122].mxu0  ;;  %12619 = vmatprep.mubr.msk.f32.mxu1 %vm1890_vm2, %v4520_v41 }
 0x3b2   : > { %v3995_v23 = vadd.f32 %v12419_v59, %v15019_v50  ;;  %v3989_v34 = vpop.f32.mrb[123].mxu0  ;;  %12620 = vmatmul.mubr.msk.f32.gmra.mrb[246].mxu1 %vm1890_vm2, %v4521_v52  ;;  %v4523_v25 = vmax.f32 %v3985_v54, %v4395_v60 }
 0x3b3   : > { %v4522_v4 = vmax.f32 %v3980_v44, %v4394_v28  ;;  %v3990_v6 = vadd.f32 %v3989_v34, %v15019_v50 }
 0x3b4   : > { %v4397_v53 = vmul.f32 0.01, %v3995_v23 }
 0x3b5   : > { %v4396_v57 = vmul.f32 0.01, %v3990_v6  ;;  %v12422_v58 = vpop.f32.mrb[124].mxu0  ;;  %12622 = vmatprep.mubr.msk.f32.mxu1 %vm1890_vm2, %v4522_v4 }
 0x3b6   : > { %v4005_v39 = vadd.f32 %v12422_v58, %v15019_v50  ;;  %v3999_v14 = vpop.f32.mrb[125].mxu0  ;;  %12623 = vmatmul.mubr.msk.f32.gmra.mrb[248].mxu1 %vm1890_vm2, %v4523_v25  ;;  %v4525_v8 = vmax.f32 %v3995_v23, %v4397_v53 }
 0x3b7   : > { %v4524_v42 = vmax.f32 %v3990_v6, %v4396_v57  ;;  %v4000_v27 = vadd.f32 %v3999_v14, %v15019_v50 }
 0x3b8   : > { %v4399_v31 = vmul.f32 0.01, %v4005_v39 }
 0x3b9   : > { %v4398_v51 = vmul.f32 0.01, %v4000_v27  ;;  %v12425_v40 = vpop.f32.mrb[126].mxu0  ;;  %12625 = vmatprep.mubr.msk.f32.mxu1 %vm1890_vm2, %v4524_v42 }
 0x3ba   : > { %v4015_v21 = vadd.f32 %v12425_v40, %v15019_v50  ;;  %v4009_v11 = vpop.f32.mrb[127].mxu0  ;;  %12626 = vmatmul.mubr.msk.f32.gmra.mrb[250].mxu1 %vm1890_vm2, %v4525_v8  ;;  %v4527_v5 = vmax.f32 %v4005_v39, %v4399_v31 }
 0x3bb   : > { %v4526_v61 = vmax.f32 %v4000_v27, %v4398_v51  ;;  %v4010_v22 = vadd.f32 %v4009_v11, %v15019_v50 }
 0x3bc   : > { %v4401_v24 = vmul.f32 0.01, %v4015_v21 }
 0x3bd   : > { %v4400_v2 = vmul.f32 0.01, %v4010_v22  ;;  %v12428_v17 = vpop.f32.mrb[128].mxu0  ;;  %12628 = vmatprep.mubr.msk.f32.mxu1 %vm1890_vm2, %v4526_v61 }
 0x3be   : > { %v4025_v55 = vadd.f32 %v12428_v17, %v15019_v50  ;;  %v4019_v15 = vpop.f32.mrb[129].mxu0  ;;  %12629 = vmatmul.mubr.msk.f32.gmra.mrb[252].mxu1 %vm1890_vm2, %v4527_v5  ;;  %v4529_v62 = vmax.f32 %v4015_v21, %v4401_v24 }
 0x3bf   : > { %v4528_v29 = vmax.f32 %v4010_v22, %v4400_v2  ;;  %v4020_v35 = vadd.f32 %v4019_v15, %v15019_v50 }
 0x3c0   : > { %v4403_v63 = vmul.f32 0.01, %v4025_v55 }
 0x3c1   : > { %v4402_v1 = vmul.f32 0.01, %v4020_v35  ;;  %v12431_v19 = vpop.f32.mrb[130].mxu0  ;;  %12631 = vmatprep.mubr.msk.f32.mxu1 %vm1890_vm2, %v4528_v29 }
 0x3c2   : > { %v4035_v10 = vadd.f32 %v12431_v19, %v15019_v50  ;;  %v4029_v36 = vpop.f32.mrb[131].mxu0  ;;  %12632 = vmatmul.mubr.msk.f32.gmra.mrb[254].mxu1 %vm1890_vm2, %v4529_v62  ;;  %v4531_v30 = vmax.f32 %v4025_v55, %v4403_v63 }
 0x3c3   : > { %v4530_v37 = vmax.f32 %v4020_v35, %v4402_v1  ;;  %v4030_v18 = vadd.f32 %v4029_v36, %v15019_v50 }
 0x3c4   : > { %v4405_v32 = vmul.f32 0.01, %v4035_v10 }
 0x3c5   : > { %v4404_v56 = vmul.f32 0.01, %v4030_v18  ;;  %v12434_v33 = vpop.f32.mrb[132].mxu0  ;;  %12634 = vmatprep.mubr.msk.f32.mxu1 %vm1890_vm2, %v4530_v37 }
 0x3c6   : > { %v4045_v49 = vadd.f32 %v12434_v33, %v15019_v50  ;;  %v4039_v47 = vpop.f32.mrb[133].mxu0  ;;  %12635 = vmatmul.mubr.msk.f32.gmra.mrb[0].mxu1 %vm1890_vm2, %v4531_v30  ;;  %v4533_v3 = vmax.f32 %v4035_v10, %v4405_v32 }
 0x3c7   : > { %v4532_v48 = vmax.f32 %v4030_v18, %v4404_v56  ;;  %v4040_v26 = vadd.f32 %v4039_v47, %v15019_v50 }
 0x3c8   : > { %v4407_v16 = vmul.f32 0.01, %v4045_v49 }
 0x3c9   : > { %v4406_v13 = vmul.f32 0.01, %v4040_v26  ;;  %v12437_v45 = vpop.f32.mrb[134].mxu0  ;;  %12637 = vmatprep.mubr.msk.f32.mxu1 %vm1890_vm2, %v4532_v48 }
 0x3ca   : > { %v4055_v0 = vadd.f32 %v12437_v45, %v15019_v50  ;;  %v4049_v9 = vpop.f32.mrb[135].mxu0  ;;  %12638 = vmatmul.mubr.msk.f32.gmra.mrb[2].mxu1 %vm1890_vm2, %v4533_v3  ;;  %v4535_v41 = vmax.f32 %v4045_v49, %v4407_v16 }
 0x3cb   : > { %v4534_v54 = vmax.f32 %v4040_v26, %v4406_v13  ;;  %v4050_v7 = vadd.f32 %v4049_v9, %v15019_v50 }
 0x3cc   : > { %v4409_v44 = vmul.f32 0.01, %v4055_v0 }
 0x3cd   : > { %v4408_v52 = vmul.f32 0.01, %v4050_v7  ;;  %v12440_v60 = vpop.f32.mrb[136].mxu0  ;;  %12640 = vmatprep.mubr.msk.f32.mxu1 %vm1890_vm2, %v4534_v54 }
 0x3ce   : > { %v4065_v28 = vadd.f32 %v12440_v60, %v15019_v50  ;;  %v4059_v59 = vpop.f32.mrb[137].mxu0  ;;  %12641 = vmatmul.mubr.msk.f32.gmra.mrb[4].mxu1 %vm1890_vm2, %v4535_v41  ;;  %v4537_v4 = vmax.f32 %v4055_v0, %v4409_v44 }
 0x3cf   : > { %v4536_v23 = vmax.f32 %v4050_v7, %v4408_v52  ;;  %v4060_v34 = vadd.f32 %v4059_v59, %v15019_v50 }
 0x3d0   : > { %v4411_v6 = vmul.f32 0.01, %v4065_v28 }
 0x3d1   : > { %v4410_v25 = vmul.f32 0.01, %v4060_v34  ;;  %v12443_v53 = vpop.f32.mrb[138].mxu0  ;;  %12643 = vmatprep.mubr.msk.f32.mxu1 %vm1890_vm2, %v4536_v23 }
 0x3d2   : > { %v4075_v57 = vadd.f32 %v12443_v53, %v15019_v50  ;;  %v4069_v58 = vpop.f32.mrb[139].mxu0  ;;  %12644 = vmatmul.mubr.msk.f32.gmra.mrb[6].mxu1 %vm1890_vm2, %v4537_v4  ;;  %v4539_v42 = vmax.f32 %v4065_v28, %v4411_v6 }
 0x3d3   : > { %v4538_v39 = vmax.f32 %v4060_v34, %v4410_v25  ;;  %v4070_v14 = vadd.f32 %v4069_v58, %v15019_v50 }
 0x3d4   : > { %v4413_v27 = vmul.f32 0.01, %v4075_v57 }
 0x3d5   : > { %v4412_v8 = vmul.f32 0.01, %v4070_v14  ;;  %v12446_v31 = vpop.f32.mrb[140].mxu0  ;;  %12646 = vmatprep.mubr.msk.f32.mxu1 %vm1890_vm2, %v4538_v39 }
 0x3d6   : > { %v4085_v51 = vadd.f32 %v12446_v31, %v15019_v50  ;;  %v4079_v40 = vpop.f32.mrb[141].mxu0  ;;  %12647 = vmatmul.mubr.msk.f32.gmra.mrb[8].mxu1 %vm1890_vm2, %v4539_v42  ;;  %v4541_v61 = vmax.f32 %v4075_v57, %v4413_v27 }
 0x3d7   : > { %v4540_v21 = vmax.f32 %v4070_v14, %v4412_v8  ;;  %v4080_v11 = vadd.f32 %v4079_v40, %v15019_v50 }
 0x3d8   : > { %v4415_v22 = vmul.f32 0.01, %v4085_v51 }
 0x3d9   : > { %v4414_v5 = vmul.f32 0.01, %v4080_v11  ;;  %v12449_v24 = vpop.f32.mrb[142].mxu0  ;;  %12649 = vmatprep.mubr.msk.f32.mxu1 %vm1890_vm2, %v4540_v21 }
 0x3da   : > { %v4095_v2 = vadd.f32 %v12449_v24, %v15019_v50  ;;  %v4089_v17 = vpop.f32.mrb[143].mxu0  ;;  %12650 = vmatmul.mubr.msk.f32.gmra.mrb[10].mxu1 %vm1890_vm2, %v4541_v61  ;;  %v4543_v29 = vmax.f32 %v4085_v51, %v4415_v22 }
 0x3db   : > { %v4542_v55 = vmax.f32 %v4080_v11, %v4414_v5  ;;  %v4090_v15 = vadd.f32 %v4089_v17, %v15019_v50 }
 0x3dc   : > { %v4417_v35 = vmul.f32 0.01, %v4095_v2 }
 0x3dd   : > { %v4416_v62 = vmul.f32 0.01, %v4090_v15  ;;  %v12452_v63 = vpop.f32.mrb[144].mxu0  ;;  %12652 = vmatprep.mubr.msk.f32.mxu1 %vm1890_vm2, %v4542_v55 }
 0x3de   : > { %v4105_v1 = vadd.f32 %v12452_v63, %v15019_v50  ;;  %v4099_v19 = vpop.f32.mrb[145].mxu0  ;;  %12653 = vmatmul.mubr.msk.f32.gmra.mrb[12].mxu1 %vm1890_vm2, %v4543_v29  ;;  %v4545_v37 = vmax.f32 %v4095_v2, %v4417_v35 }
 0x3df   : > { %v4544_v10 = vmax.f32 %v4090_v15, %v4416_v62  ;;  %v4100_v36 = vadd.f32 %v4099_v19, %v15019_v50 }
 0x3e0   : > { %v4419_v18 = vmul.f32 0.01, %v4105_v1 }
 0x3e1   : > { %v4418_v43 = vmul.f32 0.01, %v4100_v36  ;;  %v12455_v20 = vpop.f32.mrb[146].mxu0  ;;  %12655 = vmatprep.mubr.msk.f32.mxu1 %vm1890_vm2, %v4544_v10 }
 0x3e2   : > { %v4115_v46 = vadd.f32 %v12455_v20, %v15019_v50  ;;  %v4109_v30 = vpop.f32.mrb[147].mxu0  ;;  %12656 = vmatmul.mubr.msk.f32.gmra.mrb[14].mxu1 %vm1890_vm2, %v4545_v37  ;;  %v4547_v33 = vmax.f32 %v4105_v1, %v4419_v18 }
 0x3e3   : > { %v4546_v32 = vmax.f32 %v4100_v36, %v4418_v43  ;;  %v4110_v56 = vadd.f32 %v4109_v30, %v15019_v50 }
 0x3e4   : > { %v4421_v49 = vmul.f32 0.01, %v4115_v46 }
 0x3e5   : > { %v4420_v47 = vmul.f32 0.01, %v4110_v56  ;;  %v12458_v48 = vpop.f32.mrb[148].mxu0  ;;  %12658 = vmatprep.mubr.msk.f32.mxu1 %vm1890_vm2, %v4546_v32 }
 0x3e6   : > { %v4125_v26 = vadd.f32 %v12458_v48, %v15019_v50  ;;  %v4119_v3 = vpop.f32.mrb[149].mxu0  ;;  %12659 = vmatmul.mubr.msk.f32.gmra.mrb[16].mxu1 %vm1890_vm2, %v4547_v33  ;;  %v4549_v45 = vmax.f32 %v4115_v46, %v4421_v49  ;;  %v7315_v48 = vld [vmem:[#allocation6 + $0x120] sm:$0xff] }
 0x3e7   : > { %v4548_v16 = vmax.f32 %v4110_v56, %v4420_v47  ;;  %v4120_v13 = vadd.f32 %v4119_v3, %v15019_v50 }
 0x3e8   : > { %v4423_v0 = vmul.f32 0.01, %v4125_v26 }
 0x3e9   : > { %v4422_v9 = vmul.f32 0.01, %v4120_v13  ;;  %v12461_v54 = vpop.f32.mrb[150].mxu0  ;;  %12661 = vmatprep.mubr.msk.f32.mxu1 %vm1890_vm2, %v4548_v16 }
 0x3ea   : > { %v4135_v7 = vadd.f32 %v12461_v54, %v15019_v50  ;;  %v4129_v41 = vpop.f32.mrb[151].mxu0  ;;  %12662 = vmatmul.mubr.msk.f32.gmra.mrb[18].mxu1 %vm1890_vm2, %v4549_v45  ;;  %v4551_v60 = vmax.f32 %v4125_v26, %v4423_v0  ;;  %v7316_v26 = vld [vmem:[#allocation6 + $0x128] sm:$0xff] }
 0x3eb   : > { %v4550_v44 = vmax.f32 %v4120_v13, %v4422_v9  ;;  %v4130_v52 = vadd.f32 %v4129_v41, %v15019_v50  ;;  %v13426_v3 = vpack.c.bf16 %v7316_v26, %v7315_v48 }
 0x3ec   : > { %v4425_v28 = vmul.f32 0.01, %v4135_v7 }
 0x3ed   : > { %v4424_v59 = vmul.f32 0.01, %v4130_v52  ;;  %v12464_v23 = vpop.f32.mrb[152].mxu0  ;;  %12664 = vmatprep.mubr.msk.f32.mxu1 %vm1890_vm2, %v4550_v44  ;;  %13427 = vmatprep.subr.bf16.mxu1 %v13426_v3 }
 0x3ee   : > { %v4145_v34 = vadd.f32 %v12464_v23, %v15019_v50  ;;  %v4139_v4 = vpop.f32.mrb[153].mxu0  ;;  %12665 = vmatmul.mubr.msk.f32.gmra.mrb[20].mxu1 %vm1890_vm2, %v4551_v60  ;;  %v4553_v53 = vmax.f32 %v4135_v7, %v4425_v28 }
 0x3ef   : > { %v4552_v6 = vmax.f32 %v4130_v52, %v4424_v59  ;;  %v4140_v25 = vadd.f32 %v4139_v4, %v15019_v50  ;;  %13429 = vmatpush3.bf16.msra.mxu1 %v13426_v3 }
 0x3f0   : > { %v4427_v57 = vmul.f32 0.01, %v4145_v34 }
 0x3f1   : > { %v4426_v58 = vmul.f32 0.01, %v4140_v25  ;;  %v12467_v39 = vpop.f32.mrb[154].mxu0  ;;  %12667 = vmatprep.mubr.msk.f32.mxu1 %vm1890_vm2, %v4552_v6 }
 0x3f2   : > { %v4155_v14 = vadd.f32 %v12467_v39, %v15019_v50  ;;  %v4149_v42 = vpop.f32.mrb[155].mxu0  ;;  %12668 = vmatmul.mubr.msk.f32.gmra.mrb[22].mxu1 %vm1890_vm2, %v4553_v53  ;;  %v4555_v31 = vmax.f32 %v4145_v34, %v4427_v57 }
 0x3f3   : > { %v4554_v27 = vmax.f32 %v4140_v25, %v4426_v58  ;;  %v4150_v8 = vadd.f32 %v4149_v42, %v15019_v50 }
 0x3f4   : > { %v4429_v51 = vmul.f32 0.01, %v4155_v14 }
 0x3f5   : > { %v4428_v40 = vmul.f32 0.01, %v4150_v8  ;;  %v12470_v21 = vpop.f32.mrb[156].mxu0  ;;  %12670 = vmatprep.mubr.msk.f32.mxu1 %vm1890_vm2, %v4554_v27 }
 0x3f6   : > { %v4165_v11 = vadd.f32 %v12470_v21, %v15019_v50  ;;  %v4159_v61 = vpop.f32.mrb[157].mxu0  ;;  %12671 = vmatmul.mubr.msk.f32.gmra.mrb[24].mxu1 %vm1890_vm2, %v4555_v31  ;;  %v4557_v24 = vmax.f32 %v4155_v14, %v4429_v51 }
 0x3f7   : > { %v4556_v22 = vmax.f32 %v4150_v8, %v4428_v40  ;;  %v4160_v5 = vadd.f32 %v4159_v61, %v15019_v50 }
 0x3f8   : > { %v4431_v2 = vmul.f32 0.01, %v4165_v11 }
 0x3f9   : > { %v4430_v17 = vmul.f32 0.01, %v4160_v5  ;;  %v12473_v55 = vpop.f32.mrb[158].mxu0  ;;  %12673 = vmatprep.mubr.msk.f32.mxu1 %vm1890_vm2, %v4556_v22 }
 0x3fa   : > { %v4175_v15 = vadd.f32 %v12473_v55, %v15019_v50  ;;  %v4169_v29 = vpop.f32.mrb[159].mxu0  ;;  %12674 = vmatmul.mubr.msk.f32.gmra.mrb[26].mxu1 %vm1890_vm2, %v4557_v24  ;;  %v4559_v63 = vmax.f32 %v4165_v11, %v4431_v2 }
 0x3fb   : > { %v4558_v35 = vmax.f32 %v4160_v5, %v4430_v17  ;;  %v4170_v62 = vadd.f32 %v4169_v29, %v15019_v50 }
 0x3fc   : > { %v4433_v1 = vmul.f32 0.01, %v4175_v15 }
 0x3fd   : > { %v4432_v19 = vmul.f32 0.01, %v4170_v62  ;;  %v12476_v10 = vpop.f32.mrb[160].mxu0  ;;  %12676 = vmatprep.mubr.msk.f32.mxu1 %vm1890_vm2, %v4558_v35  ;;  %v13567_v35 = vld [vmem:[%s321_s12] sm:$0x3] }
 0x3fe   : > { %v4185_v36 = vadd.f32 %v12476_v10, %v15019_v50  ;;  %v4179_v37 = vpop.f32.mrb[161].mxu0  ;;  %12677 = vmatmul.mubr.msk.f32.gmra.mrb[28].mxu1 %vm1890_vm2, %v4559_v63  ;;  %v4561_v20 = vmax.f32 %v4175_v15, %v4433_v1 }
 0x3ff   : > { %v4560_v18 = vmax.f32 %v4170_v62, %v4432_v19  ;;  %v4180_v43 = vadd.f32 %v4179_v37, %v15019_v50  ;;  %v15282_v62 = vrot.slane %v13567_v35, %v3247_v12 }
 0x400   : > { %v4435_v46 = vmul.f32 0.01, %v4185_v36 }
 0x401   : > { %v4434_v30 = vmul.f32 0.01, %v4180_v43  ;;  %v12479_v32 = vpop.f32.mrb[162].mxu0  ;;  %12679 = vmatprep.mubr.msk.f32.mxu1 %vm1890_vm2, %v4560_v18 }
 0x402   : > { %v4195_v56 = vadd.f32 %v12479_v32, %v15019_v50  ;;  %v4189_v33 = vpop.f32.mrb[163].mxu0  ;;  %12680 = vmatmul.mubr.msk.f32.gmra.mrb[30].mxu1 %vm1890_vm2, %v4561_v20  ;;  %v4563_v16 = vmax.f32 %v4185_v36, %v4435_v46 }
 0x403   : > { %v4562_v49 = vmax.f32 %v4180_v43, %v4434_v30  ;;  %v4190_v47 = vadd.f32 %v4189_v33, %v15019_v50 }
 0x404   : > { %v4437_v13 = vmul.f32 0.01, %v4195_v56 }
 0x405   : > { %v4436_v45 = vmul.f32 0.01, %v4190_v47  ;;  %v12482_v0 = vpop.f32.mrb[164].mxu0  ;;  %12682 = vmatprep.mubr.msk.f32.mxu1 %vm1890_vm2, %v4562_v49 }
 0x406   : > { %v4205_v9 = vadd.f32 %v12482_v0, %v15019_v50  ;;  %v4199_v54 = vpop.f32.mrb[165].mxu0  ;;  %12683 = vmatmul.mubr.msk.f32.gmra.mrb[32].mxu1 %vm1890_vm2, %v4563_v16  ;;  %v4565_v44 = vmax.f32 %v4195_v56, %v4437_v13 }
 0x407   : > { %v4564_v7 = vmax.f32 %v4190_v47, %v4436_v45  ;;  %v4200_v41 = vadd.f32 %v4199_v54, %v15019_v50 }
 0x408   : > { %v4439_v52 = vmul.f32 0.01, %v4205_v9 }
 0x409   : > { %v4438_v60 = vmul.f32 0.01, %v4200_v41  ;;  %v12485_v28 = vpop.f32.mrb[166].mxu0  ;;  %12685 = vmatprep.mubr.msk.f32.mxu1 %vm1890_vm2, %v4564_v7 }
 0x40a   : > { %v4215_v59 = vadd.f32 %v12485_v28, %v15019_v50  ;;  %v4209_v23 = vpop.f32.mrb[167].mxu0  ;;  %12686 = vmatmul.mubr.msk.f32.gmra.mrb[34].mxu1 %vm1890_vm2, %v4565_v44  ;;  %v4567_v6 = vmax.f32 %v4205_v9, %v4439_v52 }
 0x40b   : > { %v4566_v34 = vmax.f32 %v4200_v41, %v4438_v60  ;;  %v4210_v4 = vadd.f32 %v4209_v23, %v15019_v50 }
 0x40c   : > { %v4441_v25 = vmul.f32 0.01, %v4215_v59 }
 0x40d   : > { %v4440_v53 = vmul.f32 0.01, %v4210_v4  ;;  %v12488_v57 = vpop.f32.mrb[168].mxu0  ;;  %12688 = vmatprep.mubr.msk.f32.mxu1 %vm1890_vm2, %v4566_v34 }
 0x40e   : > { %v4225_v58 = vadd.f32 %v12488_v57, %v15019_v50  ;;  %v4219_v39 = vpop.f32.mrb[169].mxu0  ;;  %12689 = vmatmul.mubr.msk.f32.gmra.mrb[36].mxu1 %vm1890_vm2, %v4567_v6  ;;  %v4569_v27 = vmax.f32 %v4215_v59, %v4441_v25 }
 0x40f   : > { %v4568_v14 = vmax.f32 %v4210_v4, %v4440_v53  ;;  %v4220_v42 = vadd.f32 %v4219_v39, %v15019_v50 }
 0x410   : > { %v4443_v8 = vmul.f32 0.01, %v4225_v58 }
 0x411   : > { %v4442_v31 = vmul.f32 0.01, %v4220_v42  ;;  %v12491_v51 = vpop.f32.mrb[170].mxu0  ;;  %12691 = vmatprep.mubr.msk.f32.mxu1 %vm1890_vm2, %v4568_v14 }
 0x412   : > { %v4235_v40 = vadd.f32 %v12491_v51, %v15019_v50  ;;  %v4229_v21 = vpop.f32.mrb[171].mxu0  ;;  %12692 = vmatmul.mubr.msk.f32.gmra.mrb[38].mxu1 %vm1890_vm2, %v4569_v27  ;;  %v4571_v22 = vmax.f32 %v4225_v58, %v4443_v8 }
 0x413   : > { %v4570_v11 = vmax.f32 %v4220_v42, %v4442_v31  ;;  %v4230_v61 = vadd.f32 %v4229_v21, %v15019_v50 }
 0x414   : > { %v4445_v5 = vmul.f32 0.01, %v4235_v40 }
 0x415   : > { %v4444_v24 = vmul.f32 0.01, %v4230_v61  ;;  %v12494_v2 = vpop.f32.mrb[172].mxu0  ;;  %12694 = vmatprep.mubr.msk.f32.mxu1 %vm1890_vm2, %v4570_v11 }
 0x416   : > { %v4245_v17 = vadd.f32 %v12494_v2, %v15019_v50  ;;  %v4239_v55 = vpop.f32.mrb[173].mxu0  ;;  %12695 = vmatmul.mubr.msk.f32.gmra.mrb[40].mxu1 %vm1890_vm2, %v4571_v22  ;;  %v4573_v63 = vmax.f32 %v4235_v40, %v4445_v5 }
 0x417   : > { %v4572_v15 = vmax.f32 %v4230_v61, %v4444_v24  ;;  %v4240_v29 = vadd.f32 %v4239_v55, %v15019_v50 }
 0x418   : > { %v4447_v1 = vmul.f32 0.01, %v4245_v17 }
 0x419   : > { %v4446_v19 = vmul.f32 0.01, %v4240_v29  ;;  %v12497_v10 = vpop.f32.mrb[174].mxu0  ;;  %12697 = vmatprep.mubr.msk.f32.mxu1 %vm1890_vm2, %v4572_v15  ;;  %v12540_v37 = vpop.f32.mrb[192].mxu1 }
 0x41a   : > { %v4255_v36 = vadd.f32 %v12497_v10, %v15019_v50  ;;  %v4249_v18 = vpop.f32.mrb[175].mxu0  ;;  %v5063_v20 = vadd.f32 %v12540_v37, %v15282_v62  ;;  %v5057_v30 = vpop.f32.mrb[193].mxu1  ;;  %12698 = vmatmul.mubr.msk.f32.gmra.mrb[42].mxu1 %vm1890_vm2, %v4573_v63  ;;  %v4575_v32 = vmax.f32 %v4245_v17, %v4447_v1 }
 0x41b   : > { %v4574_v43 = vmax.f32 %v4240_v29, %v4446_v19  ;;  %v4250_v46 = vadd.f32 %v4249_v18, %v15019_v50  ;;  %v5058_v12 = vadd.f32 %v5057_v30, %v15282_v62 }
 0x41c   : > { %v4449_v56 = vmul.f32 0.01, %v4255_v36  ;;  %v5697_v47 = vmul.f32 0.01, %v5063_v20 }
 0x41d   : > { %v4448_v33 = vmul.f32 0.01, %v4250_v46  ;;  %v12500_v49 = vpop.f32.mrb[176].mxu0  ;;  %12700 = vmatprep.mubr.msk.f32.mxu1 %vm1890_vm2, %v4574_v43  ;;  %v5696_v48 = vmul.f32 0.01, %v5058_v12  ;;  %v12543_v3 = vpop.f32.mrb[194].mxu1 }
 0x41e   : > { %v4265_v26 = vadd.f32 %v12500_v49, %v15019_v50  ;;  %v4259_v16 = vpop.f32.mrb[177].mxu0  ;;  %v5073_v45 = vadd.f32 %v12543_v3, %v15282_v62  ;;  %v5067_v9 = vpop.f32.mrb[195].mxu1  ;;  %12701 = vmatmul.mubr.msk.f32.gmra.mrb[44].mxu1 %vm1890_vm2, %v4575_v32  ;;  %v4577_v41 = vmax.f32 %v4255_v36, %v4449_v56  ;;  %v5825_v28 = vmax.f32 %v5063_v20, %v5697_v47 }
 0x41f   : > { %v4576_v13 = vmax.f32 %v4250_v46, %v4448_v33  ;;  %v4260_v0 = vadd.f32 %v4259_v16, %v15019_v50  ;;  %v5824_v54 = vmax.f32 %v5058_v12, %v5696_v48  ;;  %v5068_v7 = vadd.f32 %v5067_v9, %v15282_v62 }
 0x420   : > { %v4451_v44 = vmul.f32 0.01, %v4265_v26  ;;  %v5699_v59 = vmul.f32 0.01, %v5073_v45 }
 0x421   : > { %v4450_v52 = vmul.f32 0.01, %v4260_v0  ;;  %v12503_v60 = vpop.f32.mrb[178].mxu0  ;;  %12703 = vmatprep.mubr.msk.f32.mxu1 %vm1890_vm2, %v4576_v13  ;;  %v5698_v23 = vmul.f32 0.01, %v5068_v7  ;;  %v12546_v4 = vpop.f32.mrb[196].mxu1  ;;  %12746 = vmatprep.mubr.msk.f32.mxu0 %vm1890_vm2, %v5824_v54 }
 0x422   : > { %v4275_v34 = vadd.f32 %v12503_v60, %v15019_v50  ;;  %v4269_v6 = vpop.f32.mrb[179].mxu0  ;;  %v5083_v53 = vadd.f32 %v12546_v4, %v15282_v62  ;;  %v5077_v58 = vpop.f32.mrb[197].mxu1  ;;  %12704 = vmatmul.mubr.msk.f32.gmra.mrb[46].mxu1 %vm1890_vm2, %v4577_v41  ;;  %12747 = vmatmul.mubr.msk.f32.vlgmr.msra.gmra.mrb[192].mxu0 %vm1890_vm2, %v5825_v28  ;;  %v4579_v42 = vmax.f32 %v4265_v26, %v4451_v44 }
 0x423   : > { %v4578_v25 = vmax.f32 %v4260_v0, %v4450_v52  ;;  %v4270_v57 = vadd.f32 %v4269_v6, %v15019_v50  ;;  %v5826_v39 = vmax.f32 %v5068_v7, %v5698_v23  ;;  %v5078_v14 = vadd.f32 %v5077_v58, %v15282_v62 }
 0x424   : > { %v4453_v27 = vmul.f32 0.01, %v4275_v34  ;;  %v5827_v51 = vmax.f32 %v5073_v45, %v5699_v59  ;;  %v5701_v40 = vmul.f32 0.01, %v5083_v53 }
 0x425   : > { %v4452_v8 = vmul.f32 0.01, %v4270_v57  ;;  %v12506_v31 = vpop.f32.mrb[180].mxu0  ;;  %12706 = vmatprep.mubr.msk.f32.mxu1 %vm1890_vm2, %v4578_v25  ;;  %v5700_v21 = vmul.f32 0.01, %v5078_v14  ;;  %v12549_v61 = vpop.f32.mrb[198].mxu1  ;;  %12749 = vmatprep.mubr.msk.f32.mxu0 %vm1890_vm2, %v5826_v39 }
 0x426   : > { %v4285_v11 = vadd.f32 %v12506_v31, %v15019_v50  ;;  %v4279_v22 = vpop.f32.mrb[181].mxu0  ;;  %v5093_v24 = vadd.f32 %v12549_v61, %v15282_v62  ;;  %v5087_v17 = vpop.f32.mrb[199].mxu1  ;;  %12707 = vmatmul.mubr.msk.f32.gmra.mrb[48].mxu1 %vm1890_vm2, %v4579_v42  ;;  %12750 = vmatmul.mubr.msk.f32.gmra.mrb[194].mxu0 %vm1890_vm2, %v5827_v51  ;;  %v4581_v29 = vmax.f32 %v4275_v34, %v4453_v27 }
 0x427   : > { %v4580_v5 = vmax.f32 %v4270_v57, %v4452_v8  ;;  %v4280_v2 = vadd.f32 %v4279_v22, %v15019_v50  ;;  %v5828_v55 = vmax.f32 %v5078_v14, %v5700_v21  ;;  %v5088_v15 = vadd.f32 %v5087_v17, %v15282_v62 }
 0x428   : > { %v4455_v35 = vmul.f32 0.01, %v4285_v11  ;;  %v5829_v19 = vmax.f32 %v5083_v53, %v5701_v40  ;;  %v5703_v10 = vmul.f32 0.01, %v5093_v24 }
 0x429   : > { %v4454_v63 = vmul.f32 0.01, %v4280_v2  ;;  %v12509_v1 = vpop.f32.mrb[182].mxu0  ;;  %12709 = vmatprep.mubr.msk.f32.mxu1 %vm1890_vm2, %v4580_v5  ;;  %v5702_v36 = vmul.f32 0.01, %v5088_v15  ;;  %v12552_v18 = vpop.f32.mrb[200].mxu1  ;;  %12752 = vmatprep.mubr.msk.f32.mxu0 %vm1890_vm2, %v5828_v55 }
 0x42a   : > { %v4295_v37 = vadd.f32 %v12509_v1, %v15019_v50  ;;  %v4289_v43 = vpop.f32.mrb[183].mxu0  ;;  %v5103_v46 = vadd.f32 %v12552_v18, %v15282_v62  ;;  %v5097_v12 = vpop.f32.mrb[201].mxu1  ;;  %12710 = vmatmul.mubr.msk.f32.gmra.mrb[50].mxu1 %vm1890_vm2, %v4581_v29  ;;  %12753 = vmatmul.mubr.msk.f32.gmra.mrb[196].mxu0 %vm1890_vm2, %v5829_v19  ;;  %v4583_v33 = vmax.f32 %v4285_v11, %v4455_v35 }
 0x42b   : > { %v4582_v20 = vmax.f32 %v4280_v2, %v4454_v63  ;;  %v4290_v30 = vadd.f32 %v4289_v43, %v15019_v50  ;;  %v5830_v32 = vmax.f32 %v5088_v15, %v5702_v36  ;;  %v5098_v56 = vadd.f32 %v5097_v12, %v15282_v62 }
 0x42c   : > { %v4457_v49 = vmul.f32 0.01, %v4295_v37  ;;  %v5831_v26 = vmax.f32 %v5093_v24, %v5703_v10  ;;  %v5705_v3 = vmul.f32 0.01, %v5103_v46 }
 0x42d   : > { %v4456_v47 = vmul.f32 0.01, %v4290_v30  ;;  %v12512_v48 = vpop.f32.mrb[184].mxu0  ;;  %12712 = vmatprep.mubr.msk.f32.mxu1 %vm1890_vm2, %v4582_v20  ;;  %v5704_v16 = vmul.f32 0.01, %v5098_v56  ;;  %v12555_v45 = vpop.f32.mrb[202].mxu1  ;;  %12755 = vmatprep.mubr.msk.f32.mxu0 %vm1890_vm2, %v5830_v32 }
 0x42e   : > { %v4305_v13 = vadd.f32 %v12512_v48, %v15019_v50  ;;  %v4299_v0 = vpop.f32.mrb[185].mxu0  ;;  %v5113_v54 = vadd.f32 %v12555_v45, %v15282_v62  ;;  %v5107_v41 = vpop.f32.mrb[203].mxu1  ;;  %12713 = vmatmul.mubr.msk.f32.gmra.mrb[52].mxu1 %vm1890_vm2, %v4583_v33  ;;  %12756 = vmatmul.mubr.msk.f32.gmra.mrb[198].mxu0 %vm1890_vm2, %v5831_v26  ;;  %v4585_v60 = vmax.f32 %v4295_v37, %v4457_v49 }
 0x42f   : > { %v4584_v9 = vmax.f32 %v4290_v30, %v4456_v47  ;;  %v4300_v7 = vadd.f32 %v4299_v0, %v15019_v50  ;;  %v5832_v44 = vmax.f32 %v5098_v56, %v5704_v16  ;;  %v5108_v52 = vadd.f32 %v5107_v41, %v15282_v62 }
 0x430   : > { %v4459_v28 = vmul.f32 0.01, %v4305_v13  ;;  %v5833_v34 = vmax.f32 %v5103_v46, %v5705_v3  ;;  %v5707_v4 = vmul.f32 0.01, %v5113_v54 }
 0x431   : > { %v4458_v59 = vmul.f32 0.01, %v4300_v7  ;;  %v12515_v23 = vpop.f32.mrb[186].mxu0  ;;  %12715 = vmatprep.mubr.msk.f32.mxu1 %vm1890_vm2, %v4584_v9  ;;  %v5706_v6 = vmul.f32 0.01, %v5108_v52  ;;  %v12558_v53 = vpop.f32.mrb[204].mxu1  ;;  %12758 = vmatprep.mubr.msk.f32.mxu0 %vm1890_vm2, %v5832_v44 }
 0x432   : > { %v4315_v25 = vadd.f32 %v12515_v23, %v15019_v50  ;;  %v4309_v57 = vpop.f32.mrb[187].mxu0  ;;  %v5123_v39 = vadd.f32 %v12558_v53, %v15282_v62  ;;  %v5117_v42 = vpop.f32.mrb[205].mxu1  ;;  %12716 = vmatmul.mubr.msk.f32.gmra.mrb[54].mxu1 %vm1890_vm2, %v4585_v60  ;;  %12759 = vmatmul.mubr.msk.f32.gmra.mrb[200].mxu0 %vm1890_vm2, %v5833_v34  ;;  %v4587_v31 = vmax.f32 %v4305_v13, %v4459_v28 }
 0x433   : > { %v4586_v58 = vmax.f32 %v4300_v7, %v4458_v59  ;;  %v4310_v14 = vadd.f32 %v4309_v57, %v15019_v50  ;;  %v5834_v27 = vmax.f32 %v5108_v52, %v5706_v6  ;;  %v5118_v8 = vadd.f32 %v5117_v42, %v15282_v62  ;;  %v7318_v6 = vld [vmem:[#allocation6 + $0x138] sm:$0xff] }
 0x434   : > { %v4461_v51 = vmul.f32 0.01, %v4315_v25  ;;  %v5835_v11 = vmax.f32 %v5113_v54, %v5707_v4  ;;  %v5709_v61 = vmul.f32 0.01, %v5123_v39  ;;  %v7317_v4 = vld [vmem:[#allocation6 + $0x130] sm:$0xff] }
 0x435   : > { %v4460_v40 = vmul.f32 0.01, %v4310_v14  ;;  %v12518_v21 = vpop.f32.mrb[188].mxu0  ;;  %12718 = vmatprep.mubr.msk.f32.mxu1 %vm1890_vm2, %v4586_v58  ;;  %v5708_v22 = vmul.f32 0.01, %v5118_v8  ;;  %v12561_v24 = vpop.f32.mrb[206].mxu1  ;;  %12761 = vmatprep.mubr.msk.f32.mxu0 %vm1890_vm2, %v5834_v27  ;;  %v13430_v57 = vpack.c.bf16 %v7318_v6, %v7317_v4 }
 0x436   : > { %v4325_v5 = vadd.f32 %v12518_v21, %v15019_v50  ;;  %v4319_v2 = vpop.f32.mrb[189].mxu0  ;;  %v5133_v55 = vadd.f32 %v12561_v24, %v15282_v62  ;;  %v5127_v29 = vpop.f32.mrb[207].mxu1  ;;  %12719 = vmatmul.mubr.msk.f32.gmra.mrb[56].mxu1 %vm1890_vm2, %v4587_v31  ;;  %12762 = vmatmul.mubr.msk.f32.gmra.mrb[202].mxu0 %vm1890_vm2, %v5835_v11  ;;  %v4589_v1 = vmax.f32 %v4315_v25, %v4461_v51 }
 0x437   : > { %v4588_v17 = vmax.f32 %v4310_v14, %v4460_v40  ;;  %v4320_v15 = vadd.f32 %v4319_v2, %v15019_v50  ;;  %v5836_v35 = vmax.f32 %v5118_v8, %v5708_v22  ;;  %v5128_v63 = vadd.f32 %v5127_v29, %v15282_v62  ;;  %13431 = vmatprep.subr.bf16.mxu1 %v13430_v57 }
 0x438   : > { %v4463_v19 = vmul.f32 0.01, %v4325_v5  ;;  %v5837_v37 = vmax.f32 %v5123_v39, %v5709_v61  ;;  %v5711_v18 = vmul.f32 0.01, %v5133_v55  ;;  %13433 = vmatpush3.bf16.msra.mxu1 %v13430_v57 }
 0x439   : > { %v4462_v10 = vmul.f32 0.01, %v4320_v15  ;;  %v12521_v36 = vpop.f32.mrb[190].mxu0  ;;  %12721 = vmatprep.mubr.msk.f32.mxu1 %vm1890_vm2, %v4588_v17  ;;  %v5710_v43 = vmul.f32 0.01, %v5128_v63  ;;  %v12564_v46 = vpop.f32.mrb[208].mxu1  ;;  %12764 = vmatprep.mubr.msk.f32.mxu0 %vm1890_vm2, %v5836_v35 }
 0x43a   : > { %v4335_v20 = vadd.f32 %v12521_v36, %v15019_v50  ;;  %v4329_v30 = vpop.f32.mrb[191].mxu0  ;;  %v5143_v32 = vadd.f32 %v12564_v46, %v15282_v62  ;;  %v5137_v33 = vpop.f32.mrb[209].mxu1  ;;  %12722 = vmatmul.mubr.msk.f32.gmra.mrb[58].mxu1 %vm1890_vm2, %v4589_v1  ;;  %12765 = vmatmul.mubr.msk.f32.gmra.mrb[204].mxu0 %vm1890_vm2, %v5837_v37  ;;  %v4591_v48 = vmax.f32 %v4325_v5, %v4463_v19 }
 0x43b   : > { %v4590_v12 = vmax.f32 %v4320_v15, %v4462_v10  ;;  %v4330_v56 = vadd.f32 %v4329_v30, %v15019_v50  ;;  %v5838_v49 = vmax.f32 %v5128_v63, %v5710_v43  ;;  %v5138_v47 = vadd.f32 %v5137_v33, %v15282_v62 }
 0x43c   : > { %v4465_v26 = vmul.f32 0.01, %v4335_v20  ;;  %v5839_v16 = vmax.f32 %v5133_v55, %v5711_v18  ;;  %v5713_v13 = vmul.f32 0.01, %v5143_v32 }
 0x43d   : > { %v4464_v3 = vmul.f32 0.01, %v4330_v56  ;;  %12724 = vmatprep.mubr.msk.f32.mxu1 %vm1890_vm2, %v4590_v12  ;;  %v5712_v45 = vmul.f32 0.01, %v5138_v47  ;;  %v12567_v0 = vpop.f32.mrb[210].mxu1  ;;  %12767 = vmatprep.mubr.msk.f32.mxu0 %vm1890_vm2, %v5838_v49 }
 0x43e   : > { %v5153_v9 = vadd.f32 %v12567_v0, %v15282_v62  ;;  %v5147_v54 = vpop.f32.mrb[211].mxu1  ;;  %12725 = vmatmul.mubr.msk.f32.gmra.mrb[60].mxu1 %vm1890_vm2, %v4591_v48  ;;  %12768 = vmatmul.mubr.msk.f32.gmra.mrb[206].mxu0 %vm1890_vm2, %v5839_v16  ;;  %v4593_v44 = vmax.f32 %v4335_v20, %v4465_v26  ;;  %v5841_v52 = vmax.f32 %v5143_v32, %v5713_v13 }
 0x43f   : > { %v4592_v50 = vmax.f32 %v4330_v56, %v4464_v3  ;;  %v5840_v7 = vmax.f32 %v5138_v47, %v5712_v45  ;;  %v5148_v41 = vadd.f32 %v5147_v54, %v15282_v62 }
 0x440   : > { %v5715_v60 = vmul.f32 0.01, %v5153_v9 }
 0x441   : > { %12727 = vmatprep.mubr.msk.f32.mxu1 %vm1890_vm2, %v4592_v50  ;;  %v5714_v28 = vmul.f32 0.01, %v5148_v41  ;;  %v12570_v59 = vpop.f32.mrb[212].mxu1  ;;  %12770 = vmatprep.mubr.msk.f32.mxu0 %vm1890_vm2, %v5840_v7 }
 0x442   : > { %v5163_v23 = vadd.f32 %v12570_v59, %v15282_v62  ;;  %v5157_v34 = vpop.f32.mrb[213].mxu1  ;;  %12728 = vmatmul.mubr.msk.f32.gmra.mrb[62].mxu1 %vm1890_vm2, %v4593_v44  ;;  %12771 = vmatmul.mubr.msk.f32.gmra.mrb[208].mxu0 %vm1890_vm2, %v5841_v52  ;;  %v5843_v58 = vmax.f32 %v5153_v9, %v5715_v60  ;;  %v8668_v59 = vld [vmem:[%s16545_s5] sm:$0xff] }
 0x443   : > { %v5842_v25 = vmax.f32 %v5148_v41, %v5714_v28  ;;  %v5158_v53 = vadd.f32 %v5157_v34, %v15282_v62 }
 0x444   : > { %v5717_v39 = vmul.f32 0.01, %v5163_v23 }
 0x445   : > { %v5716_v14 = vmul.f32 0.01, %v5158_v53  ;;  %v12573_v42 = vpop.f32.mrb[214].mxu1  ;;  %12773 = vmatprep.mubr.msk.f32.mxu0 %vm1890_vm2, %v5842_v25 }
 0x446   : > { %v5173_v27 = vadd.f32 %v12573_v42, %v15282_v62  ;;  %v5167_v8 = vpop.f32.mrb[215].mxu1  ;;  %12774 = vmatmul.mubr.msk.f32.gmra.mrb[210].mxu0 %vm1890_vm2, %v5843_v58  ;;  %v5845_v40 = vmax.f32 %v5163_v23, %v5717_v39  ;;  %v8669_v23 = vld [vmem:[%s16545_s5 + $0x8] sm:$0xff] }
 0x447   : > { %v5844_v31 = vmax.f32 %v5158_v53, %v5716_v14  ;;  %v5168_v51 = vadd.f32 %v5167_v8, %v15282_v62  ;;  %v13434_v6 = vpack.c.bf16 %v8669_v23, %v8668_v59 }
 0x448   : > { %v5719_v21 = vmul.f32 0.01, %v5173_v27 }
 0x449   : > { %v5718_v11 = vmul.f32 0.01, %v5168_v51  ;;  %v12576_v61 = vpop.f32.mrb[216].mxu1  ;;  %12776 = vmatprep.mubr.msk.f32.mxu0 %vm1890_vm2, %v5844_v31  ;;  %13435 = vmatprep.subr.bf16.mxu0 %v13434_v6 }
 0x44a   : > { %v5183_v22 = vadd.f32 %v12576_v61, %v15282_v62  ;;  %v5177_v5 = vpop.f32.mrb[217].mxu1  ;;  %12777 = vmatmul.mubr.msk.f32.gmra.mrb[212].mxu0 %vm1890_vm2, %v5845_v40  ;;  %v5847_v17 = vmax.f32 %v5173_v27, %v5719_v21 }
 0x44b   : > { %v5846_v24 = vmax.f32 %v5168_v51, %v5718_v11  ;;  %v5178_v2 = vadd.f32 %v5177_v5, %v15282_v62  ;;  %13437 = vmatpush3.bf16.msra.mxu0 %v13434_v6 }
 0x44c   : > { %v5721_v55 = vmul.f32 0.01, %v5183_v22 }
 0x44d   : > { %v5720_v15 = vmul.f32 0.01, %v5178_v2  ;;  %v12579_v29 = vpop.f32.mrb[218].mxu1  ;;  %12779 = vmatprep.mubr.msk.f32.mxu0 %vm1890_vm2, %v5846_v24 }
 0x44e   : > { %v5193_v35 = vadd.f32 %v12579_v29, %v15282_v62  ;;  %v5187_v63 = vpop.f32.mrb[219].mxu1  ;;  %12780 = vmatmul.mubr.msk.f32.gmra.mrb[214].mxu0 %vm1890_vm2, %v5847_v17  ;;  %v5849_v10 = vmax.f32 %v5183_v22, %v5721_v55 }
 0x44f   : > { %v5848_v1 = vmax.f32 %v5178_v2, %v5720_v15  ;;  %v5188_v19 = vadd.f32 %v5187_v63, %v15282_v62 }
 0x450   : > { %v5723_v36 = vmul.f32 0.01, %v5193_v35 }
 0x451   : > { %v5722_v37 = vmul.f32 0.01, %v5188_v19  ;;  %v12582_v18 = vpop.f32.mrb[220].mxu1  ;;  %12782 = vmatprep.mubr.msk.f32.mxu0 %vm1890_vm2, %v5848_v1 }
 0x452   : > { %v5203_v43 = vadd.f32 %v12582_v18, %v15282_v62  ;;  %v5197_v20 = vpop.f32.mrb[221].mxu1  ;;  %12783 = vmatmul.mubr.msk.f32.gmra.mrb[216].mxu0 %vm1890_vm2, %v5849_v10  ;;  %v5851_v12 = vmax.f32 %v5193_v35, %v5723_v36 }
 0x453   : > { %v5850_v46 = vmax.f32 %v5188_v19, %v5722_v37  ;;  %v5198_v30 = vadd.f32 %v5197_v20, %v15282_v62 }
 0x454   : > { %v5725_v32 = vmul.f32 0.01, %v5203_v43 }
 0x455   : > { %v5724_v56 = vmul.f32 0.01, %v5198_v30  ;;  %v12585_v33 = vpop.f32.mrb[222].mxu1  ;;  %12785 = vmatprep.mubr.msk.f32.mxu0 %vm1890_vm2, %v5850_v46 }
 0x456   : > { %v5213_v49 = vadd.f32 %v12585_v33, %v15282_v62  ;;  %v5207_v47 = vpop.f32.mrb[223].mxu1  ;;  %12786 = vmatmul.mubr.msk.f32.gmra.mrb[218].mxu0 %vm1890_vm2, %v5851_v12  ;;  %v5853_v3 = vmax.f32 %v5203_v43, %v5725_v32 }
 0x457   : > { %v5852_v48 = vmax.f32 %v5198_v30, %v5724_v56  ;;  %v5208_v26 = vadd.f32 %v5207_v47, %v15282_v62 }
 0x458   : > { %v5727_v16 = vmul.f32 0.01, %v5213_v49 }
 0x459   : > { %v5726_v13 = vmul.f32 0.01, %v5208_v26  ;;  %v12588_v45 = vpop.f32.mrb[224].mxu1  ;;  %12788 = vmatprep.mubr.msk.f32.mxu0 %vm1890_vm2, %v5852_v48 }
 0x45a   : > { %v5223_v0 = vadd.f32 %v12588_v45, %v15282_v62  ;;  %v5217_v50 = vpop.f32.mrb[225].mxu1  ;;  %12789 = vmatmul.mubr.msk.f32.gmra.mrb[220].mxu0 %vm1890_vm2, %v5853_v3  ;;  %v5855_v7 = vmax.f32 %v5213_v49, %v5727_v16 }
 0x45b   : > { %v5854_v9 = vmax.f32 %v5208_v26, %v5726_v13  ;;  %v5218_v54 = vadd.f32 %v5217_v50, %v15282_v62 }
 0x45c   : > { %v5729_v41 = vmul.f32 0.01, %v5223_v0 }
 0x45d   : > { %v5728_v44 = vmul.f32 0.01, %v5218_v54  ;;  %v12591_v52 = vpop.f32.mrb[226].mxu1  ;;  %12791 = vmatprep.mubr.msk.f32.mxu0 %vm1890_vm2, %v5854_v9 }
 0x45e   : > { %v5233_v60 = vadd.f32 %v12591_v52, %v15282_v62  ;;  %v5227_v28 = vpop.f32.mrb[227].mxu1  ;;  %12792 = vmatmul.mubr.msk.f32.gmra.mrb[222].mxu0 %vm1890_vm2, %v5855_v7  ;;  %v5857_v25 = vmax.f32 %v5223_v0, %v5729_v41 }
 0x45f   : > { %v5856_v34 = vmax.f32 %v5218_v54, %v5728_v44  ;;  %v5228_v4 = vadd.f32 %v5227_v28, %v15282_v62 }
 0x460   : > { %v5731_v53 = vmul.f32 0.01, %v5233_v60 }
 0x461   : > { %v5730_v57 = vmul.f32 0.01, %v5228_v4  ;;  %v12594_v58 = vpop.f32.mrb[228].mxu1  ;;  %12794 = vmatprep.mubr.msk.f32.mxu0 %vm1890_vm2, %v5856_v34 }
 0x462   : > { %v5243_v39 = vadd.f32 %v12594_v58, %v15282_v62  ;;  %v5237_v14 = vpop.f32.mrb[229].mxu1  ;;  %12795 = vmatmul.mubr.msk.f32.gmra.mrb[224].mxu0 %vm1890_vm2, %v5857_v25  ;;  %v5859_v8 = vmax.f32 %v5233_v60, %v5731_v53 }
 0x463   : > { %v5858_v42 = vmax.f32 %v5228_v4, %v5730_v57  ;;  %v5238_v27 = vadd.f32 %v5237_v14, %v15282_v62 }
 0x464   : > { %v5733_v31 = vmul.f32 0.01, %v5243_v39 }
 0x465   : > { %v5732_v51 = vmul.f32 0.01, %v5238_v27  ;;  %v12597_v40 = vpop.f32.mrb[230].mxu1  ;;  %12797 = vmatprep.mubr.msk.f32.mxu0 %vm1890_vm2, %v5858_v42 }
 0x466   : > { %v5253_v21 = vadd.f32 %v12597_v40, %v15282_v62  ;;  %v5247_v11 = vpop.f32.mrb[231].mxu1  ;;  %12798 = vmatmul.mubr.msk.f32.gmra.mrb[226].mxu0 %vm1890_vm2, %v5859_v8  ;;  %v5861_v5 = vmax.f32 %v5243_v39, %v5733_v31 }
 0x467   : > { %v5860_v61 = vmax.f32 %v5238_v27, %v5732_v51  ;;  %v5248_v22 = vadd.f32 %v5247_v11, %v15282_v62 }
 0x468   : > { %v5735_v24 = vmul.f32 0.01, %v5253_v21 }
 0x469   : > { %v5734_v2 = vmul.f32 0.01, %v5248_v22  ;;  %v12600_v17 = vpop.f32.mrb[232].mxu1  ;;  %12800 = vmatprep.mubr.msk.f32.mxu0 %vm1890_vm2, %v5860_v61 }
 0x46a   : > { %v5263_v55 = vadd.f32 %v12600_v17, %v15282_v62  ;;  %v5257_v15 = vpop.f32.mrb[233].mxu1  ;;  %12801 = vmatmul.mubr.msk.f32.gmra.mrb[228].mxu0 %vm1890_vm2, %v5861_v5  ;;  %v5863_v63 = vmax.f32 %v5253_v21, %v5735_v24 }
 0x46b   : > { %v5862_v29 = vmax.f32 %v5248_v22, %v5734_v2  ;;  %v5258_v35 = vadd.f32 %v5257_v15, %v15282_v62 }
 0x46c   : > { %v5737_v1 = vmul.f32 0.01, %v5263_v55 }
 0x46d   : > { %v5736_v19 = vmul.f32 0.01, %v5258_v35  ;;  %v12603_v10 = vpop.f32.mrb[234].mxu1  ;;  %12803 = vmatprep.mubr.msk.f32.mxu0 %vm1890_vm2, %v5862_v29 }
 0x46e   : > { %v5273_v36 = vadd.f32 %v12603_v10, %v15282_v62  ;;  %v5267_v37 = vpop.f32.mrb[235].mxu1  ;;  %12804 = vmatmul.mubr.msk.f32.gmra.mrb[230].mxu0 %vm1890_vm2, %v5863_v63  ;;  %v5865_v20 = vmax.f32 %v5263_v55, %v5737_v1 }
 0x46f   : > { %v5864_v18 = vmax.f32 %v5258_v35, %v5736_v19  ;;  %v5268_v43 = vadd.f32 %v5267_v37, %v15282_v62 }
 0x470   : > { %v5739_v46 = vmul.f32 0.01, %v5273_v36 }
 0x471   : > { %v5738_v30 = vmul.f32 0.01, %v5268_v43  ;;  %v12606_v12 = vpop.f32.mrb[236].mxu1  ;;  %12806 = vmatprep.mubr.msk.f32.mxu0 %vm1890_vm2, %v5864_v18 }
 0x472   : > { %v5283_v32 = vadd.f32 %v12606_v12, %v15282_v62  ;;  %v5277_v56 = vpop.f32.mrb[237].mxu1  ;;  %12807 = vmatmul.mubr.msk.f32.gmra.mrb[232].mxu0 %vm1890_vm2, %v5865_v20  ;;  %v5867_v47 = vmax.f32 %v5273_v36, %v5739_v46 }
 0x473   : > { %v5866_v33 = vmax.f32 %v5268_v43, %v5738_v30  ;;  %v5278_v49 = vadd.f32 %v5277_v56, %v15282_v62 }
 0x474   : > { %v5741_v48 = vmul.f32 0.01, %v5283_v32 }
 0x475   : > { %v5740_v26 = vmul.f32 0.01, %v5278_v49  ;;  %v12609_v3 = vpop.f32.mrb[238].mxu1  ;;  %12809 = vmatprep.mubr.msk.f32.mxu0 %vm1890_vm2, %v5866_v33 }
 0x476   : > { %v5293_v16 = vadd.f32 %v12609_v3, %v15282_v62  ;;  %v5287_v13 = vpop.f32.mrb[239].mxu1  ;;  %12810 = vmatmul.mubr.msk.f32.gmra.mrb[234].mxu0 %vm1890_vm2, %v5867_v47  ;;  %v5869_v50 = vmax.f32 %v5283_v32, %v5741_v48 }
 0x477   : > { %v5868_v45 = vmax.f32 %v5278_v49, %v5740_v26  ;;  %v5288_v0 = vadd.f32 %v5287_v13, %v15282_v62 }
 0x478   : > { %v5743_v9 = vmul.f32 0.01, %v5293_v16 }
 0x479   : > { %v5742_v54 = vmul.f32 0.01, %v5288_v0  ;;  %v12612_v7 = vpop.f32.mrb[240].mxu1  ;;  %12812 = vmatprep.mubr.msk.f32.mxu0 %vm1890_vm2, %v5868_v45 }
 0x47a   : > { %v5303_v41 = vadd.f32 %v12612_v7, %v15282_v62  ;;  %v5297_v44 = vpop.f32.mrb[241].mxu1  ;;  %12813 = vmatmul.mubr.msk.f32.gmra.mrb[236].mxu0 %vm1890_vm2, %v5869_v50  ;;  %v5871_v28 = vmax.f32 %v5293_v16, %v5743_v9 }
 0x47b   : > { %v5870_v52 = vmax.f32 %v5288_v0, %v5742_v54  ;;  %v5298_v60 = vadd.f32 %v5297_v44, %v15282_v62 }
 0x47c   : > { %v5745_v59 = vmul.f32 0.01, %v5303_v41 }
 0x47d   : > { %v5744_v23 = vmul.f32 0.01, %v5298_v60  ;;  %v12615_v34 = vpop.f32.mrb[242].mxu1  ;;  %12815 = vmatprep.mubr.msk.f32.mxu0 %vm1890_vm2, %v5870_v52 }
 0x47e   : > { %v5313_v4 = vadd.f32 %v12615_v34, %v15282_v62  ;;  %v5307_v6 = vpop.f32.mrb[243].mxu1  ;;  %12816 = vmatmul.mubr.msk.f32.gmra.mrb[238].mxu0 %vm1890_vm2, %v5871_v28  ;;  %v5873_v57 = vmax.f32 %v5303_v41, %v5745_v59 }
 0x47f   : > { %v5872_v25 = vmax.f32 %v5298_v60, %v5744_v23  ;;  %v5308_v53 = vadd.f32 %v5307_v6, %v15282_v62 }
 0x480   : > { %v5747_v58 = vmul.f32 0.01, %v5313_v4 }
 0x481   : > { %v5746_v39 = vmul.f32 0.01, %v5308_v53  ;;  %v12618_v14 = vpop.f32.mrb[244].mxu1  ;;  %12818 = vmatprep.mubr.msk.f32.mxu0 %vm1890_vm2, %v5872_v25 }
 0x482   : > { %v5323_v42 = vadd.f32 %v12618_v14, %v15282_v62  ;;  %v5317_v27 = vpop.f32.mrb[245].mxu1  ;;  %12819 = vmatmul.mubr.msk.f32.gmra.mrb[240].mxu0 %vm1890_vm2, %v5873_v57  ;;  %v5875_v51 = vmax.f32 %v5313_v4, %v5747_v58  ;;  %v8671_v14 = vld [vmem:[%s16545_s5 + $0x18] sm:$0xff] }
 0x483   : > { %v5874_v8 = vmax.f32 %v5308_v53, %v5746_v39  ;;  %v5318_v31 = vadd.f32 %v5317_v27, %v15282_v62  ;;  %v8670_v39 = vld [vmem:[%s16545_s5 + $0x10] sm:$0xff] }
 0x484   : > { %v5749_v40 = vmul.f32 0.01, %v5323_v42 }
 0x485   : > { %v5748_v21 = vmul.f32 0.01, %v5318_v31  ;;  %v12621_v11 = vpop.f32.mrb[246].mxu1  ;;  %12821 = vmatprep.mubr.msk.f32.mxu0 %vm1890_vm2, %v5874_v8 }
 0x486   : > { %v5333_v61 = vadd.f32 %v12621_v11, %v15282_v62  ;;  %v5327_v22 = vpop.f32.mrb[247].mxu1  ;;  %12822 = vmatmul.mubr.msk.f32.gmra.mrb[242].mxu0 %vm1890_vm2, %v5875_v51  ;;  %v5877_v2 = vmax.f32 %v5323_v42, %v5749_v40  ;;  %v13438_v42 = vpack.c.bf16 %v8671_v14, %v8670_v39 }
 0x487   : > { %v5876_v5 = vmax.f32 %v5318_v31, %v5748_v21  ;;  %v5328_v24 = vadd.f32 %v5327_v22, %v15282_v62 }
 0x488   : > { %v5751_v17 = vmul.f32 0.01, %v5333_v61  ;;  %13439 = vmatprep.subr.bf16.mxu0 %v13438_v42 }
 0x489   : > { %v5750_v55 = vmul.f32 0.01, %v5328_v24  ;;  %v12624_v15 = vpop.f32.mrb[248].mxu1  ;;  %12824 = vmatprep.mubr.msk.f32.mxu0 %vm1890_vm2, %v5876_v5  ;;  %13441 = vmatpush3.bf16.msra.mxu0 %v13438_v42 }
 0x48a   : > { %v5343_v29 = vadd.f32 %v12624_v15, %v15282_v62  ;;  %v5337_v35 = vpop.f32.mrb[249].mxu1  ;;  %12825 = vmatmul.mubr.msk.f32.gmra.mrb[244].mxu0 %vm1890_vm2, %v5877_v2  ;;  %v5879_v19 = vmax.f32 %v5333_v61, %v5751_v17 }
 0x48b   : > { %v5878_v63 = vmax.f32 %v5328_v24, %v5750_v55  ;;  %v5338_v1 = vadd.f32 %v5337_v35, %v15282_v62 }
 0x48c   : > { %v5753_v10 = vmul.f32 0.01, %v5343_v29 }
 0x48d   : > { %v5752_v36 = vmul.f32 0.01, %v5338_v1  ;;  %v12627_v37 = vpop.f32.mrb[250].mxu1  ;;  %12827 = vmatprep.mubr.msk.f32.mxu0 %vm1890_vm2, %v5878_v63 }
 0x48e   : > { %v5353_v18 = vadd.f32 %v12627_v37, %v15282_v62  ;;  %v5347_v43 = vpop.f32.mrb[251].mxu1  ;;  %12828 = vmatmul.mubr.msk.f32.gmra.mrb[246].mxu0 %vm1890_vm2, %v5879_v19  ;;  %v5881_v30 = vmax.f32 %v5343_v29, %v5753_v10 }
 0x48f   : > { %v5880_v20 = vmax.f32 %v5338_v1, %v5752_v36  ;;  %v5348_v46 = vadd.f32 %v5347_v43, %v15282_v62 }
 0x490   : > { %v5755_v12 = vmul.f32 0.01, %v5353_v18 }
 0x491   : > { %v5754_v32 = vmul.f32 0.01, %v5348_v46  ;;  %v12630_v56 = vpop.f32.mrb[252].mxu1  ;;  %12830 = vmatprep.mubr.msk.f32.mxu0 %vm1890_vm2, %v5880_v20 }
 0x492   : > { %v5363_v33 = vadd.f32 %v12630_v56, %v15282_v62  ;;  %v5357_v49 = vpop.f32.mrb[253].mxu1  ;;  %12831 = vmatmul.mubr.msk.f32.gmra.mrb[248].mxu0 %vm1890_vm2, %v5881_v30  ;;  %v5883_v26 = vmax.f32 %v5353_v18, %v5755_v12 }
 0x493   : > { %v5882_v47 = vmax.f32 %v5348_v46, %v5754_v32  ;;  %v5358_v48 = vadd.f32 %v5357_v49, %v15282_v62 }
 0x494   : > { %v5757_v3 = vmul.f32 0.01, %v5363_v33 }
 0x495   : > { %v5756_v16 = vmul.f32 0.01, %v5358_v48  ;;  %v12633_v13 = vpop.f32.mrb[254].mxu1  ;;  %12833 = vmatprep.mubr.msk.f32.mxu0 %vm1890_vm2, %v5882_v47 }
 0x496   : > { %v5373_v45 = vadd.f32 %v12633_v13, %v15282_v62  ;;  %v5367_v0 = vpop.f32.mrb[255].mxu1  ;;  %12834 = vmatmul.mubr.msk.f32.gmra.mrb[250].mxu0 %vm1890_vm2, %v5883_v26  ;;  %v5885_v54 = vmax.f32 %v5363_v33, %v5757_v3 }
 0x497   : > { %v5884_v50 = vmax.f32 %v5358_v48, %v5756_v16  ;;  %v5368_v9 = vadd.f32 %v5367_v0, %v15282_v62 }
 0x498   : > { %v5759_v7 = vmul.f32 0.01, %v5373_v45 }
 0x499   : > { %v5758_v41 = vmul.f32 0.01, %v5368_v9  ;;  %v12636_v44 = vpop.f32.mrb[0].mxu1  ;;  %12836 = vmatprep.mubr.msk.f32.mxu0 %vm1890_vm2, %v5884_v50 }
 0x49a   : > { %v5383_v52 = vadd.f32 %v12636_v44, %v15282_v62  ;;  %v5377_v60 = vpop.f32.mrb[1].mxu1  ;;  %12837 = vmatmul.mubr.msk.f32.gmra.mrb[252].mxu0 %vm1890_vm2, %v5885_v54  ;;  %v5887_v23 = vmax.f32 %v5373_v45, %v5759_v7 }
 0x49b   : > { %v5886_v28 = vmax.f32 %v5368_v9, %v5758_v41  ;;  %v5378_v59 = vadd.f32 %v5377_v60, %v15282_v62 }
 0x49c   : > { %v5761_v34 = vmul.f32 0.01, %v5383_v52 }
 0x49d   : > { %v5760_v4 = vmul.f32 0.01, %v5378_v59  ;;  %v12639_v6 = vpop.f32.mrb[2].mxu1  ;;  %12839 = vmatprep.mubr.msk.f32.mxu0 %vm1890_vm2, %v5886_v28 }
 0x49e   : > { %v5393_v25 = vadd.f32 %v12639_v6, %v15282_v62  ;;  %v5387_v53 = vpop.f32.mrb[3].mxu1  ;;  %12840 = vmatmul.mubr.msk.f32.gmra.mrb[254].mxu0 %vm1890_vm2, %v5887_v23  ;;  %v5889_v27 = vmax.f32 %v5383_v52, %v5761_v34 }
 0x49f   : > { %v5888_v57 = vmax.f32 %v5378_v59, %v5760_v4  ;;  %v5388_v58 = vadd.f32 %v5387_v53, %v15282_v62 }
 0x4a0   : > { %v5763_v8 = vmul.f32 0.01, %v5393_v25 }
 0x4a1   : > { %v5762_v31 = vmul.f32 0.01, %v5388_v58  ;;  %v12642_v51 = vpop.f32.mrb[4].mxu1  ;;  %12842 = vmatprep.mubr.msk.f32.mxu0 %vm1890_vm2, %v5888_v57 }
 0x4a2   : > { %v5403_v40 = vadd.f32 %v12642_v51, %v15282_v62  ;;  %v5397_v21 = vpop.f32.mrb[5].mxu1  ;;  %12843 = vmatmul.mubr.msk.f32.gmra.mrb[0].mxu0 %vm1890_vm2, %v5889_v27  ;;  %v5891_v22 = vmax.f32 %v5393_v25, %v5763_v8 }
 0x4a3   : > { %v5890_v11 = vmax.f32 %v5388_v58, %v5762_v31  ;;  %v5398_v61 = vadd.f32 %v5397_v21, %v15282_v62 }
 0x4a4   : > { %v5765_v5 = vmul.f32 0.01, %v5403_v40 }
 0x4a5   : > { %v5764_v24 = vmul.f32 0.01, %v5398_v61  ;;  %v12645_v2 = vpop.f32.mrb[6].mxu1  ;;  %12845 = vmatprep.mubr.msk.f32.mxu0 %vm1890_vm2, %v5890_v11 }
 0x4a6   : > { %v5413_v17 = vadd.f32 %v12645_v2, %v15282_v62  ;;  %v5407_v55 = vpop.f32.mrb[7].mxu1  ;;  %12846 = vmatmul.mubr.msk.f32.gmra.mrb[2].mxu0 %vm1890_vm2, %v5891_v22  ;;  %v5893_v35 = vmax.f32 %v5403_v40, %v5765_v5 }
 0x4a7   : > { %v5892_v15 = vmax.f32 %v5398_v61, %v5764_v24  ;;  %v5408_v29 = vadd.f32 %v5407_v55, %v15282_v62 }
 0x4a8   : > { %v5767_v63 = vmul.f32 0.01, %v5413_v17 }
 0x4a9   : > { %v5766_v1 = vmul.f32 0.01, %v5408_v29  ;;  %v12648_v19 = vpop.f32.mrb[8].mxu1  ;;  %12848 = vmatprep.mubr.msk.f32.mxu0 %vm1890_vm2, %v5892_v15 }
 0x4aa   : > { %v5423_v10 = vadd.f32 %v12648_v19, %v15282_v62  ;;  %v5417_v36 = vpop.f32.mrb[9].mxu1  ;;  %12849 = vmatmul.mubr.msk.f32.gmra.mrb[4].mxu0 %vm1890_vm2, %v5893_v35  ;;  %v5895_v43 = vmax.f32 %v5413_v17, %v5767_v63 }
 0x4ab   : > { %v5894_v37 = vmax.f32 %v5408_v29, %v5766_v1  ;;  %v5418_v18 = vadd.f32 %v5417_v36, %v15282_v62 }
 0x4ac   : > { %v5769_v20 = vmul.f32 0.01, %v5423_v10 }
 0x4ad   : > { %v5768_v46 = vmul.f32 0.01, %v5418_v18  ;;  %v12651_v30 = vpop.f32.mrb[10].mxu1  ;;  %12851 = vmatprep.mubr.msk.f32.mxu0 %vm1890_vm2, %v5894_v37 }
 0x4ae   : > { %v5433_v12 = vadd.f32 %v12651_v30, %v15282_v62  ;;  %v5427_v32 = vpop.f32.mrb[11].mxu1  ;;  %12852 = vmatmul.mubr.msk.f32.gmra.mrb[6].mxu0 %vm1890_vm2, %v5895_v43  ;;  %v5897_v49 = vmax.f32 %v5423_v10, %v5769_v20 }
 0x4af   : > { %v5896_v56 = vmax.f32 %v5418_v18, %v5768_v46  ;;  %v5428_v33 = vadd.f32 %v5427_v32, %v15282_v62 }
 0x4b0   : > { %v5771_v47 = vmul.f32 0.01, %v5433_v12 }
 0x4b1   : > { %v5770_v48 = vmul.f32 0.01, %v5428_v33  ;;  %v12654_v26 = vpop.f32.mrb[12].mxu1  ;;  %12854 = vmatprep.mubr.msk.f32.mxu0 %vm1890_vm2, %v5896_v56 }
 0x4b2   : > { %v5443_v3 = vadd.f32 %v12654_v26, %v15282_v62  ;;  %v5437_v16 = vpop.f32.mrb[13].mxu1  ;;  %12855 = vmatmul.mubr.msk.f32.gmra.mrb[8].mxu0 %vm1890_vm2, %v5897_v49  ;;  %v5899_v0 = vmax.f32 %v5433_v12, %v5771_v47 }
 0x4b3   : > { %v5898_v13 = vmax.f32 %v5428_v33, %v5770_v48  ;;  %v5438_v45 = vadd.f32 %v5437_v16, %v15282_v62 }
 0x4b4   : > { %v5773_v50 = vmul.f32 0.01, %v5443_v3 }
 0x4b5   : > { %v5772_v9 = vmul.f32 0.01, %v5438_v45  ;;  %v12657_v54 = vpop.f32.mrb[14].mxu1  ;;  %12857 = vmatprep.mubr.msk.f32.mxu0 %vm1890_vm2, %v5898_v13 }
 0x4b6   : > { %v5453_v7 = vadd.f32 %v12657_v54, %v15282_v62  ;;  %v5447_v41 = vpop.f32.mrb[15].mxu1  ;;  %12858 = vmatmul.mubr.msk.f32.gmra.mrb[10].mxu0 %vm1890_vm2, %v5899_v0  ;;  %v5901_v60 = vmax.f32 %v5443_v3, %v5773_v50 }
 0x4b7   : > { %v5900_v44 = vmax.f32 %v5438_v45, %v5772_v9  ;;  %v5448_v52 = vadd.f32 %v5447_v41, %v15282_v62 }
 0x4b8   : > { %v5775_v28 = vmul.f32 0.01, %v5453_v7 }
 0x4b9   : > { %v5774_v59 = vmul.f32 0.01, %v5448_v52  ;;  %v12660_v23 = vpop.f32.mrb[16].mxu1  ;;  %12860 = vmatprep.mubr.msk.f32.mxu0 %vm1890_vm2, %v5900_v44 }
 0x4ba   : > { %v5463_v34 = vadd.f32 %v12660_v23, %v15282_v62  ;;  %v5457_v4 = vpop.f32.mrb[17].mxu1  ;;  %12861 = vmatmul.mubr.msk.f32.gmra.mrb[12].mxu0 %vm1890_vm2, %v5901_v60  ;;  %v5903_v53 = vmax.f32 %v5453_v7, %v5775_v28 }
 0x4bb   : > { %v5902_v6 = vmax.f32 %v5448_v52, %v5774_v59  ;;  %v5458_v25 = vadd.f32 %v5457_v4, %v15282_v62 }
 0x4bc   : > { %v5777_v57 = vmul.f32 0.01, %v5463_v34 }
 0x4bd   : > { %v5776_v58 = vmul.f32 0.01, %v5458_v25  ;;  %v12663_v39 = vpop.f32.mrb[18].mxu1  ;;  %12863 = vmatprep.mubr.msk.f32.mxu0 %vm1890_vm2, %v5902_v6 }
 0x4be   : > { %v5473_v14 = vadd.f32 %v12663_v39, %v15282_v62  ;;  %v5467_v42 = vpop.f32.mrb[19].mxu1  ;;  %12864 = vmatmul.mubr.msk.f32.gmra.mrb[14].mxu0 %vm1890_vm2, %v5903_v53  ;;  %v5905_v31 = vmax.f32 %v5463_v34, %v5777_v57 }
 0x4bf   : > { %v5904_v27 = vmax.f32 %v5458_v25, %v5776_v58  ;;  %v5468_v8 = vadd.f32 %v5467_v42, %v15282_v62 }
 0x4c0   : > { %v5779_v51 = vmul.f32 0.01, %v5473_v14 }
 0x4c1   : > { %v5778_v40 = vmul.f32 0.01, %v5468_v8  ;;  %v12666_v21 = vpop.f32.mrb[20].mxu1  ;;  %12866 = vmatprep.mubr.msk.f32.mxu0 %vm1890_vm2, %v5904_v27 }
 0x4c2   : > { %v5483_v11 = vadd.f32 %v12666_v21, %v15282_v62  ;;  %v5477_v61 = vpop.f32.mrb[21].mxu1  ;;  %12867 = vmatmul.mubr.msk.f32.gmra.mrb[16].mxu0 %vm1890_vm2, %v5905_v31  ;;  %v5907_v24 = vmax.f32 %v5473_v14, %v5779_v51  ;;  %v8673_v21 = vld [vmem:[%s16545_s5 + $0x28] sm:$0xff] }
 0x4c3   : > { %v5906_v22 = vmax.f32 %v5468_v8, %v5778_v40  ;;  %v5478_v5 = vadd.f32 %v5477_v61, %v15282_v62  ;;  %v8672_v40 = vld [vmem:[%s16545_s5 + $0x20] sm:$0xff] }
 0x4c4   : > { %v5781_v2 = vmul.f32 0.01, %v5483_v11 }
 0x4c5   : > { %v5780_v17 = vmul.f32 0.01, %v5478_v5  ;;  %v12669_v55 = vpop.f32.mrb[22].mxu1  ;;  %12869 = vmatprep.mubr.msk.f32.mxu0 %vm1890_vm2, %v5906_v22 }
 0x4c6   : > { %v5493_v15 = vadd.f32 %v12669_v55, %v15282_v62  ;;  %v5487_v29 = vpop.f32.mrb[23].mxu1  ;;  %12870 = vmatmul.mubr.msk.f32.gmra.mrb[18].mxu0 %vm1890_vm2, %v5907_v24  ;;  %v5909_v1 = vmax.f32 %v5483_v11, %v5781_v2  ;;  %v13442_v11 = vpack.c.bf16 %v8673_v21, %v8672_v40 }
 0x4c7   : > { %v5908_v35 = vmax.f32 %v5478_v5, %v5780_v17  ;;  %v5488_v63 = vadd.f32 %v5487_v29, %v15282_v62 }
 0x4c8   : > { %v5783_v19 = vmul.f32 0.01, %v5493_v15  ;;  %13443 = vmatprep.subr.bf16.mxu0 %v13442_v11 }
 0x4c9   : > { %v5782_v10 = vmul.f32 0.01, %v5488_v63  ;;  %v12672_v36 = vpop.f32.mrb[24].mxu1  ;;  %12872 = vmatprep.mubr.msk.f32.mxu0 %vm1890_vm2, %v5908_v35  ;;  %13445 = vmatpush3.bf16.msra.mxu0 %v13442_v11 }
 0x4ca   : > { %v5503_v37 = vadd.f32 %v12672_v36, %v15282_v62  ;;  %v5497_v18 = vpop.f32.mrb[25].mxu1  ;;  %12873 = vmatmul.mubr.msk.f32.gmra.mrb[20].mxu0 %vm1890_vm2, %v5909_v1  ;;  %v5911_v46 = vmax.f32 %v5493_v15, %v5783_v19 }
 0x4cb   : > { %v5910_v43 = vmax.f32 %v5488_v63, %v5782_v10  ;;  %v5498_v20 = vadd.f32 %v5497_v18, %v15282_v62 }
 0x4cc   : > { %v5785_v30 = vmul.f32 0.01, %v5503_v37 }
 0x4cd   : > { %v5784_v12 = vmul.f32 0.01, %v5498_v20  ;;  %v12675_v32 = vpop.f32.mrb[26].mxu1  ;;  %12875 = vmatprep.mubr.msk.f32.mxu0 %vm1890_vm2, %v5910_v43 }
 0x4ce   : > { %v5513_v56 = vadd.f32 %v12675_v32, %v15282_v62  ;;  %v5507_v33 = vpop.f32.mrb[27].mxu1  ;;  %12876 = vmatmul.mubr.msk.f32.gmra.mrb[22].mxu0 %vm1890_vm2, %v5911_v46  ;;  %v5913_v48 = vmax.f32 %v5503_v37, %v5785_v30 }
 0x4cf   : > { %v5912_v49 = vmax.f32 %v5498_v20, %v5784_v12  ;;  %v5508_v47 = vadd.f32 %v5507_v33, %v15282_v62 }
 0x4d0   : > { %v5787_v26 = vmul.f32 0.01, %v5513_v56 }
 0x4d1   : > { %v5786_v3 = vmul.f32 0.01, %v5508_v47  ;;  %v12678_v16 = vpop.f32.mrb[28].mxu1  ;;  %12878 = vmatprep.mubr.msk.f32.mxu0 %vm1890_vm2, %v5912_v49 }
 0x4d2   : > { %v5523_v13 = vadd.f32 %v12678_v16, %v15282_v62  ;;  %v5517_v45 = vpop.f32.mrb[29].mxu1  ;;  %12879 = vmatmul.mubr.msk.f32.gmra.mrb[24].mxu0 %vm1890_vm2, %v5913_v48  ;;  %v5915_v9 = vmax.f32 %v5513_v56, %v5787_v26 }
 0x4d3   : > { %v5914_v0 = vmax.f32 %v5508_v47, %v5786_v3  ;;  %v5518_v50 = vadd.f32 %v5517_v45, %v15282_v62  ;;  %v5963_v45 = vsub.s32 2, %v16583_v38 }
 0x4d4   : > { %v5789_v54 = vmul.f32 0.01, %v5523_v13 }
 0x4d5   : > { %v5788_v7 = vmul.f32 0.01, %v5518_v50  ;;  %v12681_v41 = vpop.f32.mrb[30].mxu1  ;;  %12881 = vmatprep.mubr.msk.f32.mxu0 %vm1890_vm2, %v5914_v0 }
 0x4d6   : > { %v5533_v44 = vadd.f32 %v12681_v41, %v15282_v62  ;;  %v5527_v52 = vpop.f32.mrb[31].mxu1  ;;  %12882 = vmatmul.mubr.msk.f32.gmra.mrb[26].mxu0 %vm1890_vm2, %v5915_v9  ;;  %v5917_v59 = vmax.f32 %v5523_v13, %v5789_v54 }
 0x4d7   : > { %v5916_v60 = vmax.f32 %v5518_v50, %v5788_v7  ;;  %v5528_v28 = vadd.f32 %v5527_v52, %v15282_v62 }
 0x4d8   : > { %v5791_v23 = vmul.f32 0.01, %v5533_v44 }
 0x4d9   : > { %v5790_v34 = vmul.f32 0.01, %v5528_v28  ;;  %v12684_v4 = vpop.f32.mrb[32].mxu1  ;;  %12884 = vmatprep.mubr.msk.f32.mxu0 %vm1890_vm2, %v5916_v60  ;;  %v13568_v60 = vld [vmem:[#allocation7] sm:$0xf] }
 0x4da   : > { %v5543_v6 = vadd.f32 %v12684_v4, %v15282_v62  ;;  %v5537_v25 = vpop.f32.mrb[33].mxu1  ;;  %12885 = vmatmul.mubr.msk.f32.gmra.mrb[28].mxu0 %vm1890_vm2, %v5917_v59  ;;  %v5919_v58 = vmax.f32 %v5533_v44, %v5791_v23 }
 0x4db   : > { %v5918_v53 = vmax.f32 %v5528_v28, %v5790_v34  ;;  %v5538_v57 = vadd.f32 %v5537_v25, %v15282_v62  ;;  %v15559_v28 = vrot.slane %v13568_v60, %v5963_v45 }
 0x4dc   : > { %v5793_v39 = vmul.f32 0.01, %v5543_v6 }
 0x4dd   : > { %v5792_v14 = vmul.f32 0.01, %v5538_v57  ;;  %v12687_v42 = vpop.f32.mrb[34].mxu1  ;;  %12887 = vmatprep.mubr.msk.f32.mxu0 %vm1890_vm2, %v5918_v53 }
 0x4de   : > { %v5553_v27 = vadd.f32 %v12687_v42, %v15282_v62  ;;  %v5547_v8 = vpop.f32.mrb[35].mxu1  ;;  %12888 = vmatmul.mubr.msk.f32.gmra.mrb[30].mxu0 %vm1890_vm2, %v5919_v58  ;;  %v5921_v61 = vmax.f32 %v5543_v6, %v5793_v39 }
 0x4df   : > { %v5920_v31 = vmax.f32 %v5538_v57, %v5792_v14  ;;  %v5548_v51 = vadd.f32 %v5547_v8, %v15282_v62 }
 0x4e0   : > { %v5795_v22 = vmul.f32 0.01, %v5553_v27 }
 0x4e1   : > { %v5794_v5 = vmul.f32 0.01, %v5548_v51  ;;  %v12690_v24 = vpop.f32.mrb[36].mxu1  ;;  %12890 = vmatprep.mubr.msk.f32.mxu0 %vm1890_vm2, %v5920_v31 }
 0x4e2   : > { %v5563_v2 = vadd.f32 %v12690_v24, %v15282_v62  ;;  %v5557_v17 = vpop.f32.mrb[37].mxu1  ;;  %12891 = vmatmul.mubr.msk.f32.gmra.mrb[32].mxu0 %vm1890_vm2, %v5921_v61  ;;  %v5923_v29 = vmax.f32 %v5553_v27, %v5795_v22 }
 0x4e3   : > { %v5922_v55 = vmax.f32 %v5548_v51, %v5794_v5  ;;  %v5558_v15 = vadd.f32 %v5557_v17, %v15282_v62 }
 0x4e4   : > { %v5797_v35 = vmul.f32 0.01, %v5563_v2 }
 0x4e5   : > { %v5796_v63 = vmul.f32 0.01, %v5558_v15  ;;  %v12693_v1 = vpop.f32.mrb[38].mxu1  ;;  %12893 = vmatprep.mubr.msk.f32.mxu0 %vm1890_vm2, %v5922_v55 }
 0x4e6   : > { %v5573_v19 = vadd.f32 %v12693_v1, %v15282_v62  ;;  %v5567_v10 = vpop.f32.mrb[39].mxu1  ;;  %12894 = vmatmul.mubr.msk.f32.gmra.mrb[34].mxu0 %vm1890_vm2, %v5923_v29  ;;  %v5925_v18 = vmax.f32 %v5563_v2, %v5797_v35 }
 0x4e7   : > { %v5924_v36 = vmax.f32 %v5558_v15, %v5796_v63  ;;  %v5568_v37 = vadd.f32 %v5567_v10, %v15282_v62 }
 0x4e8   : > { %v5799_v43 = vmul.f32 0.01, %v5573_v19 }
 0x4e9   : > { %v5798_v20 = vmul.f32 0.01, %v5568_v37  ;;  %v12696_v46 = vpop.f32.mrb[40].mxu1  ;;  %12896 = vmatprep.mubr.msk.f32.mxu0 %vm1890_vm2, %v5924_v36 }
 0x4ea   : > { %v5583_v30 = vadd.f32 %v12696_v46, %v15282_v62  ;;  %v5577_v12 = vpop.f32.mrb[41].mxu1  ;;  %12897 = vmatmul.mubr.msk.f32.gmra.mrb[36].mxu0 %vm1890_vm2, %v5925_v18  ;;  %v5927_v33 = vmax.f32 %v5573_v19, %v5799_v43 }
 0x4eb   : > { %v5926_v32 = vmax.f32 %v5568_v37, %v5798_v20  ;;  %v5578_v56 = vadd.f32 %v5577_v12, %v15282_v62 }
 0x4ec   : > { %v5801_v49 = vmul.f32 0.01, %v5583_v30 }
 0x4ed   : > { %v5800_v47 = vmul.f32 0.01, %v5578_v56  ;;  %v12699_v48 = vpop.f32.mrb[42].mxu1  ;;  %12899 = vmatprep.mubr.msk.f32.mxu0 %vm1890_vm2, %v5926_v32 }
 0x4ee   : > { %v5593_v26 = vadd.f32 %v12699_v48, %v15282_v62  ;;  %v5587_v3 = vpop.f32.mrb[43].mxu1  ;;  %12900 = vmatmul.mubr.msk.f32.gmra.mrb[38].mxu0 %vm1890_vm2, %v5927_v33  ;;  %v5929_v0 = vmax.f32 %v5583_v30, %v5801_v49 }
 0x4ef   : > { %v5928_v16 = vmax.f32 %v5578_v56, %v5800_v47  ;;  %v5588_v13 = vadd.f32 %v5587_v3, %v15282_v62 }
 0x4f0   : > { %v5803_v50 = vmul.f32 0.01, %v5593_v26 }
 0x4f1   : > { %v5802_v9 = vmul.f32 0.01, %v5588_v13  ;;  %v12702_v54 = vpop.f32.mrb[44].mxu1  ;;  %12902 = vmatprep.mubr.msk.f32.mxu0 %vm1890_vm2, %v5928_v16 }
 0x4f2   : > { %v5603_v7 = vadd.f32 %v12702_v54, %v15282_v62  ;;  %v5597_v41 = vpop.f32.mrb[45].mxu1  ;;  %12903 = vmatmul.mubr.msk.f32.gmra.mrb[40].mxu0 %vm1890_vm2, %v5929_v0  ;;  %v5931_v59 = vmax.f32 %v5593_v26, %v5803_v50 }
 0x4f3   : > { %v5930_v44 = vmax.f32 %v5588_v13, %v5802_v9  ;;  %v5598_v52 = vadd.f32 %v5597_v41, %v15282_v62 }
 0x4f4   : > { %v5805_v23 = vmul.f32 0.01, %v5603_v7 }
 0x4f5   : > { %v5804_v34 = vmul.f32 0.01, %v5598_v52  ;;  %v12705_v4 = vpop.f32.mrb[46].mxu1  ;;  %12905 = vmatprep.mubr.msk.f32.mxu0 %vm1890_vm2, %v5930_v44  ;;  %v12748_v25 = vpop.f32.mrb[192].mxu0 }
 0x4f6   : > { %v5613_v6 = vadd.f32 %v12705_v4, %v15282_v62  ;;  %v5607_v53 = vpop.f32.mrb[47].mxu1  ;;  %v6421_v58 = vadd.f32 %v12748_v25, %v15559_v28  ;;  %v6415_v14 = vpop.f32.mrb[193].mxu0  ;;  %12906 = vmatmul.mubr.msk.f32.gmra.mrb[42].mxu0 %vm1890_vm2, %v5931_v59  ;;  %v5933_v27 = vmax.f32 %v5603_v7, %v5805_v23 }
 0x4f7   : > { %v5932_v57 = vmax.f32 %v5598_v52, %v5804_v34  ;;  %v5608_v39 = vadd.f32 %v5607_v53, %v15282_v62  ;;  %v6416_v42 = vadd.f32 %v6415_v14, %v15559_v28 }
 0x4f8   : > { %v5807_v8 = vmul.f32 0.01, %v5613_v6  ;;  %v7055_v40 = vmul.f32 0.01, %v6421_v58 }
 0x4f9   : > { %v5806_v31 = vmul.f32 0.01, %v5608_v39  ;;  %v12708_v51 = vpop.f32.mrb[48].mxu1  ;;  %12908 = vmatprep.mubr.msk.f32.mxu0 %vm1890_vm2, %v5932_v57  ;;  %v7054_v21 = vmul.f32 0.01, %v6416_v42  ;;  %v12751_v61 = vpop.f32.mrb[194].mxu0 }
 0x4fa   : > { %v5623_v11 = vadd.f32 %v12708_v51, %v15282_v62  ;;  %v5617_v22 = vpop.f32.mrb[49].mxu1  ;;  %v6431_v24 = vadd.f32 %v12751_v61, %v15559_v28  ;;  %v6425_v17 = vpop.f32.mrb[195].mxu0  ;;  %12909 = vmatmul.mubr.msk.f32.gmra.mrb[44].mxu0 %vm1890_vm2, %v5933_v27  ;;  %v5935_v29 = vmax.f32 %v5613_v6, %v5807_v8  ;;  %v7183_v19 = vmax.f32 %v6421_v58, %v7055_v40 }
 0x4fb   : > { %v5934_v5 = vmax.f32 %v5608_v39, %v5806_v31  ;;  %v5618_v2 = vadd.f32 %v5617_v22, %v15282_v62  ;;  %v7182_v55 = vmax.f32 %v6416_v42, %v7054_v21  ;;  %v6426_v15 = vadd.f32 %v6425_v17, %v15559_v28 }
 0x4fc   : > { %v5809_v35 = vmul.f32 0.01, %v5623_v11  ;;  %v7057_v10 = vmul.f32 0.01, %v6431_v24 }
 0x4fd   : > { %v5808_v63 = vmul.f32 0.01, %v5618_v2  ;;  %v12711_v1 = vpop.f32.mrb[50].mxu1  ;;  %12911 = vmatprep.mubr.msk.f32.mxu0 %vm1890_vm2, %v5934_v5  ;;  %v7056_v36 = vmul.f32 0.01, %v6426_v15  ;;  %v12754_v18 = vpop.f32.mrb[196].mxu0  ;;  %12954 = vmatprep.mubr.msk.f32.mxu1 %vm1890_vm2, %v7182_v55 }
 0x4fe   : > { %v5633_v37 = vadd.f32 %v12711_v1, %v15282_v62  ;;  %v5627_v43 = vpop.f32.mrb[51].mxu1  ;;  %v6441_v46 = vadd.f32 %v12754_v18, %v15559_v28  ;;  %v6435_v12 = vpop.f32.mrb[197].mxu0  ;;  %12912 = vmatmul.mubr.msk.f32.gmra.mrb[46].mxu0 %vm1890_vm2, %v5935_v29  ;;  %12955 = vmatmul.mubr.msk.f32.vlgmr.msra.gmra.mrb[64].mxu1 %vm1890_vm2, %v7183_v19  ;;  %v5937_v33 = vmax.f32 %v5623_v11, %v5809_v35 }
 0x4ff   : > { %v5936_v20 = vmax.f32 %v5618_v2, %v5808_v63  ;;  %v5628_v30 = vadd.f32 %v5627_v43, %v15282_v62  ;;  %v7184_v32 = vmax.f32 %v6426_v15, %v7056_v36  ;;  %v6436_v56 = vadd.f32 %v6435_v12, %v15559_v28 }
 0x500   : > { %v5811_v49 = vmul.f32 0.01, %v5633_v37  ;;  %v7185_v26 = vmax.f32 %v6431_v24, %v7057_v10  ;;  %v7059_v3 = vmul.f32 0.01, %v6441_v46 }
 0x501   : > { %v5810_v47 = vmul.f32 0.01, %v5628_v30  ;;  %v12714_v48 = vpop.f32.mrb[52].mxu1  ;;  %12914 = vmatprep.mubr.msk.f32.mxu0 %vm1890_vm2, %v5936_v20  ;;  %v7058_v16 = vmul.f32 0.01, %v6436_v56  ;;  %v12757_v45 = vpop.f32.mrb[198].mxu0  ;;  %12957 = vmatprep.mubr.msk.f32.mxu1 %vm1890_vm2, %v7184_v32 }
 0x502   : > { %v5643_v13 = vadd.f32 %v12714_v48, %v15282_v62  ;;  %v5637_v0 = vpop.f32.mrb[53].mxu1  ;;  %v6451_v9 = vadd.f32 %v12757_v45, %v15559_v28  ;;  %v6445_v7 = vpop.f32.mrb[199].mxu0  ;;  %12915 = vmatmul.mubr.msk.f32.gmra.mrb[48].mxu0 %vm1890_vm2, %v5937_v33  ;;  %12958 = vmatmul.mubr.msk.f32.gmra.mrb[66].mxu1 %vm1890_vm2, %v7185_v26  ;;  %v5939_v52 = vmax.f32 %v5633_v37, %v5811_v49 }
 0x503   : > { %v5938_v50 = vmax.f32 %v5628_v30, %v5810_v47  ;;  %v5638_v54 = vadd.f32 %v5637_v0, %v15282_v62  ;;  %v7186_v41 = vmax.f32 %v6436_v56, %v7058_v16  ;;  %v6446_v44 = vadd.f32 %v6445_v7, %v15559_v28 }
 0x504   : > { %v5813_v60 = vmul.f32 0.01, %v5643_v13  ;;  %v7187_v34 = vmax.f32 %v6441_v46, %v7059_v3  ;;  %v7061_v4 = vmul.f32 0.01, %v6451_v9 }
 0x505   : > { %v5812_v59 = vmul.f32 0.01, %v5638_v54  ;;  %v12717_v23 = vpop.f32.mrb[54].mxu1  ;;  %12917 = vmatprep.mubr.msk.f32.mxu0 %vm1890_vm2, %v5938_v50  ;;  %v7060_v6 = vmul.f32 0.01, %v6446_v44  ;;  %v12760_v53 = vpop.f32.mrb[200].mxu0  ;;  %12960 = vmatprep.mubr.msk.f32.mxu1 %vm1890_vm2, %v7186_v41 }
 0x506   : > { %v5653_v25 = vadd.f32 %v12717_v23, %v15282_v62  ;;  %v5647_v57 = vpop.f32.mrb[55].mxu1  ;;  %v6461_v39 = vadd.f32 %v12760_v53, %v15559_v28  ;;  %v6455_v42 = vpop.f32.mrb[201].mxu0  ;;  %12918 = vmatmul.mubr.msk.f32.gmra.mrb[50].mxu0 %vm1890_vm2, %v5939_v52  ;;  %12961 = vmatmul.mubr.msk.f32.gmra.mrb[68].mxu1 %vm1890_vm2, %v7187_v34  ;;  %v5941_v31 = vmax.f32 %v5643_v13, %v5813_v60 }
 0x507   : > { %v5940_v58 = vmax.f32 %v5638_v54, %v5812_v59  ;;  %v5648_v14 = vadd.f32 %v5647_v57, %v15282_v62  ;;  %v7188_v27 = vmax.f32 %v6446_v44, %v7060_v6  ;;  %v6456_v8 = vadd.f32 %v6455_v42, %v15559_v28 }
 0x508   : > { %v5815_v51 = vmul.f32 0.01, %v5653_v25  ;;  %v7189_v11 = vmax.f32 %v6451_v9, %v7061_v4  ;;  %v7063_v61 = vmul.f32 0.01, %v6461_v39 }
 0x509   : > { %v5814_v40 = vmul.f32 0.01, %v5648_v14  ;;  %v12720_v21 = vpop.f32.mrb[56].mxu1  ;;  %12920 = vmatprep.mubr.msk.f32.mxu0 %vm1890_vm2, %v5940_v58  ;;  %v7062_v22 = vmul.f32 0.01, %v6456_v8  ;;  %v12763_v24 = vpop.f32.mrb[202].mxu0  ;;  %12963 = vmatprep.mubr.msk.f32.mxu1 %vm1890_vm2, %v7188_v27 }
 0x50a   : > { %v5663_v5 = vadd.f32 %v12720_v21, %v15282_v62  ;;  %v5657_v2 = vpop.f32.mrb[57].mxu1  ;;  %v6471_v55 = vadd.f32 %v12763_v24, %v15559_v28  ;;  %v6465_v29 = vpop.f32.mrb[203].mxu0  ;;  %12921 = vmatmul.mubr.msk.f32.gmra.mrb[52].mxu0 %vm1890_vm2, %v5941_v31  ;;  %12964 = vmatmul.mubr.msk.f32.gmra.mrb[70].mxu1 %vm1890_vm2, %v7189_v11  ;;  %v5943_v1 = vmax.f32 %v5653_v25, %v5815_v51 }
 0x50b   : > { %v5942_v17 = vmax.f32 %v5648_v14, %v5814_v40  ;;  %v5658_v15 = vadd.f32 %v5657_v2, %v15282_v62  ;;  %v7190_v35 = vmax.f32 %v6456_v8, %v7062_v22  ;;  %v6466_v63 = vadd.f32 %v6465_v29, %v15559_v28 }
 0x50c   : > { %v5817_v19 = vmul.f32 0.01, %v5663_v5  ;;  %v7191_v37 = vmax.f32 %v6461_v39, %v7063_v61  ;;  %v7065_v18 = vmul.f32 0.01, %v6471_v55 }
 0x50d   : > { %v5816_v10 = vmul.f32 0.01, %v5658_v15  ;;  %v12723_v36 = vpop.f32.mrb[58].mxu1  ;;  %12923 = vmatprep.mubr.msk.f32.mxu0 %vm1890_vm2, %v5942_v17  ;;  %v7064_v43 = vmul.f32 0.01, %v6466_v63  ;;  %v12766_v46 = vpop.f32.mrb[204].mxu0  ;;  %12966 = vmatprep.mubr.msk.f32.mxu1 %vm1890_vm2, %v7190_v35 }
 0x50e   : > { %v5673_v20 = vadd.f32 %v12723_v36, %v15282_v62  ;;  %v5667_v30 = vpop.f32.mrb[59].mxu1  ;;  %v6481_v32 = vadd.f32 %v12766_v46, %v15559_v28  ;;  %v6475_v33 = vpop.f32.mrb[205].mxu0  ;;  %12924 = vmatmul.mubr.msk.f32.gmra.mrb[54].mxu0 %vm1890_vm2, %v5943_v1  ;;  %12967 = vmatmul.mubr.msk.f32.gmra.mrb[72].mxu1 %vm1890_vm2, %v7191_v37  ;;  %v5945_v48 = vmax.f32 %v5663_v5, %v5817_v19 }
 0x50f   : > { %v5944_v12 = vmax.f32 %v5658_v15, %v5816_v10  ;;  %v5668_v56 = vadd.f32 %v5667_v30, %v15282_v62  ;;  %v7192_v49 = vmax.f32 %v6466_v63, %v7064_v43  ;;  %v6476_v47 = vadd.f32 %v6475_v33, %v15559_v28  ;;  %v8675_v43 = vld [vmem:[%s16545_s5 + $0x38] sm:$0xff] }
 0x510   : > { %v5819_v26 = vmul.f32 0.01, %v5673_v20  ;;  %v7193_v13 = vmax.f32 %v6471_v55, %v7065_v18  ;;  %v7067_v45 = vmul.f32 0.01, %v6481_v32  ;;  %v8674_v18 = vld [vmem:[%s16545_s5 + $0x30] sm:$0xff] }
 0x511   : > { %v5818_v3 = vmul.f32 0.01, %v5668_v56  ;;  %v12726_v16 = vpop.f32.mrb[60].mxu1  ;;  %12926 = vmatprep.mubr.msk.f32.mxu0 %vm1890_vm2, %v5944_v12  ;;  %v7066_v0 = vmul.f32 0.01, %v6476_v47  ;;  %v12769_v9 = vpop.f32.mrb[206].mxu0  ;;  %12969 = vmatprep.mubr.msk.f32.mxu1 %vm1890_vm2, %v7192_v49  ;;  %v13446_v30 = vpack.c.bf16 %v8675_v43, %v8674_v18 }
 0x512   : > { %v5683_v50 = vadd.f32 %v12726_v16, %v15282_v62  ;;  %v5677_v54 = vpop.f32.mrb[61].mxu1  ;;  %v6491_v41 = vadd.f32 %v12769_v9, %v15559_v28  ;;  %v6485_v52 = vpop.f32.mrb[207].mxu0  ;;  %12927 = vmatmul.mubr.msk.f32.gmra.mrb[56].mxu0 %vm1890_vm2, %v5945_v48  ;;  %12970 = vmatmul.mubr.msk.f32.gmra.mrb[74].mxu1 %vm1890_vm2, %v7193_v13  ;;  %v5947_v23 = vmax.f32 %v5673_v20, %v5819_v26 }
 0x513   : > { %v5946_v7 = vmax.f32 %v5668_v56, %v5818_v3  ;;  %v5678_v44 = vadd.f32 %v5677_v54, %v15282_v62  ;;  %v7194_v60 = vmax.f32 %v6476_v47, %v7066_v0  ;;  %v6486_v59 = vadd.f32 %v6485_v52, %v15559_v28  ;;  %13447 = vmatprep.subr.bf16.mxu0 %v13446_v30 }
 0x514   : > { %v5821_v34 = vmul.f32 0.01, %v5683_v50  ;;  %v7195_v25 = vmax.f32 %v6481_v32, %v7067_v45  ;;  %v7069_v53 = vmul.f32 0.01, %v6491_v41  ;;  %13449 = vmatpush3.bf16.msra.mxu0 %v13446_v30 }
 0x515   : > { %v5820_v4 = vmul.f32 0.01, %v5678_v44  ;;  %v12729_v6 = vpop.f32.mrb[62].mxu1  ;;  %12929 = vmatprep.mubr.msk.f32.mxu0 %vm1890_vm2, %v5946_v7  ;;  %v7068_v57 = vmul.f32 0.01, %v6486_v59  ;;  %v12772_v39 = vpop.f32.mrb[208].mxu0  ;;  %12972 = vmatprep.mubr.msk.f32.mxu1 %vm1890_vm2, %v7194_v60 }
 0x516   : > { %v5693_v58 = vadd.f32 %v12729_v6, %v15282_v62  ;;  %v5687_v14 = vpop.f32.mrb[63].mxu1  ;;  %v6501_v27 = vadd.f32 %v12772_v39, %v15559_v28  ;;  %v6495_v31 = vpop.f32.mrb[209].mxu0  ;;  %12930 = vmatmul.mubr.msk.f32.gmra.mrb[58].mxu0 %vm1890_vm2, %v5947_v23  ;;  %12973 = vmatmul.mubr.msk.f32.gmra.mrb[76].mxu1 %vm1890_vm2, %v7195_v25  ;;  %v5949_v21 = vmax.f32 %v5683_v50, %v5821_v34 }
 0x517   : > { %v5948_v42 = vmax.f32 %v5678_v44, %v5820_v4  ;;  %v5688_v8 = vadd.f32 %v5687_v14, %v15282_v62  ;;  %v7196_v51 = vmax.f32 %v6486_v59, %v7068_v57  ;;  %v6496_v40 = vadd.f32 %v6495_v31, %v15559_v28 }
 0x518   : > { %v5823_v11 = vmul.f32 0.01, %v5693_v58  ;;  %v7197_v22 = vmax.f32 %v6491_v41, %v7069_v53  ;;  %v7071_v5 = vmul.f32 0.01, %v6501_v27 }
 0x519   : > { %v5822_v61 = vmul.f32 0.01, %v5688_v8  ;;  %12932 = vmatprep.mubr.msk.f32.mxu0 %vm1890_vm2, %v5948_v42  ;;  %v7070_v24 = vmul.f32 0.01, %v6496_v40  ;;  %v12775_v2 = vpop.f32.mrb[210].mxu0  ;;  %12975 = vmatprep.mubr.msk.f32.mxu1 %vm1890_vm2, %v7196_v51 }
 0x51a   : > { %v6511_v17 = vadd.f32 %v12775_v2, %v15559_v28  ;;  %v6505_v55 = vpop.f32.mrb[211].mxu0  ;;  %12933 = vmatmul.mubr.msk.f32.gmra.mrb[60].mxu0 %vm1890_vm2, %v5949_v21  ;;  %12976 = vmatmul.mubr.msk.f32.gmra.mrb[78].mxu1 %vm1890_vm2, %v7197_v22  ;;  %v5951_v35 = vmax.f32 %v5693_v58, %v5823_v11  ;;  %v7199_v63 = vmax.f32 %v6501_v27, %v7071_v5 }
 0x51b   : > { %v5950_v62 = vmax.f32 %v5688_v8, %v5822_v61  ;;  %v7198_v15 = vmax.f32 %v6496_v40, %v7070_v24  ;;  %v6506_v29 = vadd.f32 %v6505_v55, %v15559_v28 }
 0x51c   : > { %v7073_v1 = vmul.f32 0.01, %v6511_v17 }
 0x51d   : > { %12935 = vmatprep.mubr.msk.f32.mxu0 %vm1890_vm2, %v5950_v62  ;;  %v7072_v19 = vmul.f32 0.01, %v6506_v29  ;;  %v12778_v10 = vpop.f32.mrb[212].mxu0  ;;  %12978 = vmatprep.mubr.msk.f32.mxu1 %vm1890_vm2, %v7198_v15 }
 0x51e   : > { %v6521_v36 = vadd.f32 %v12778_v10, %v15559_v28  ;;  %v6515_v37 = vpop.f32.mrb[213].mxu0  ;;  %12936 = vmatmul.mubr.msk.f32.gmra.mrb[62].mxu0 %vm1890_vm2, %v5951_v35  ;;  %12979 = vmatmul.mubr.msk.f32.gmra.mrb[80].mxu1 %vm1890_vm2, %v7199_v63  ;;  %v7201_v12 = vmax.f32 %v6511_v17, %v7073_v1 }
 0x51f   : > { %v7200_v20 = vmax.f32 %v6506_v29, %v7072_v19  ;;  %v6516_v46 = vadd.f32 %v6515_v37, %v15559_v28 }
 0x520   : > { %v7075_v32 = vmul.f32 0.01, %v6521_v36 }
 0x521   : > { %v7074_v56 = vmul.f32 0.01, %v6516_v46  ;;  %v12781_v33 = vpop.f32.mrb[214].mxu0  ;;  %12981 = vmatprep.mubr.msk.f32.mxu1 %vm1890_vm2, %v7200_v20 }
 0x522   : > { %v6531_v49 = vadd.f32 %v12781_v33, %v15559_v28  ;;  %v6525_v47 = vpop.f32.mrb[215].mxu0  ;;  %12982 = vmatmul.mubr.msk.f32.gmra.mrb[82].mxu1 %vm1890_vm2, %v7201_v12  ;;  %v7203_v3 = vmax.f32 %v6521_v36, %v7075_v32 }
 0x523   : > { %v7202_v48 = vmax.f32 %v6516_v46, %v7074_v56  ;;  %v6526_v26 = vadd.f32 %v6525_v47, %v15559_v28 }
 0x524   : > { %v7077_v16 = vmul.f32 0.01, %v6531_v49 }
 0x525   : > { %v7076_v13 = vmul.f32 0.01, %v6526_v26  ;;  %v12784_v45 = vpop.f32.mrb[216].mxu0  ;;  %12984 = vmatprep.mubr.msk.f32.mxu1 %vm1890_vm2, %v7202_v48 }
 0x526   : > { %v6541_v0 = vadd.f32 %v12784_v45, %v15559_v28  ;;  %v6535_v50 = vpop.f32.mrb[217].mxu0  ;;  %12985 = vmatmul.mubr.msk.f32.gmra.mrb[84].mxu1 %vm1890_vm2, %v7203_v3  ;;  %v7205_v7 = vmax.f32 %v6531_v49, %v7077_v16 }
 0x527   : > { %v7204_v9 = vmax.f32 %v6526_v26, %v7076_v13  ;;  %v6536_v54 = vadd.f32 %v6535_v50, %v15559_v28 }
 0x528   : > { %v7079_v41 = vmul.f32 0.01, %v6541_v0 }
 0x529   : > { %v7078_v44 = vmul.f32 0.01, %v6536_v54  ;;  %v12787_v52 = vpop.f32.mrb[218].mxu0  ;;  %12987 = vmatprep.mubr.msk.f32.mxu1 %vm1890_vm2, %v7204_v9 }
 0x52a   : > { %v6551_v60 = vadd.f32 %v12787_v52, %v15559_v28  ;;  %v6545_v59 = vpop.f32.mrb[219].mxu0  ;;  %12988 = vmatmul.mubr.msk.f32.gmra.mrb[86].mxu1 %vm1890_vm2, %v7205_v7  ;;  %v7207_v4 = vmax.f32 %v6541_v0, %v7079_v41 }
 0x52b   : > { %v7206_v23 = vmax.f32 %v6536_v54, %v7078_v44  ;;  %v6546_v34 = vadd.f32 %v6545_v59, %v15559_v28 }
 0x52c   : > { %v7081_v6 = vmul.f32 0.01, %v6551_v60 }
 0x52d   : > { %v7080_v25 = vmul.f32 0.01, %v6546_v34  ;;  %v12790_v53 = vpop.f32.mrb[220].mxu0  ;;  %12990 = vmatprep.mubr.msk.f32.mxu1 %vm1890_vm2, %v7206_v23 }
 0x52e   : > { %v6561_v57 = vadd.f32 %v12790_v53, %v15559_v28  ;;  %v6555_v58 = vpop.f32.mrb[221].mxu0  ;;  %12991 = vmatmul.mubr.msk.f32.gmra.mrb[88].mxu1 %vm1890_vm2, %v7207_v4  ;;  %v7209_v42 = vmax.f32 %v6551_v60, %v7081_v6 }
 0x52f   : > { %v7208_v39 = vmax.f32 %v6546_v34, %v7080_v25  ;;  %v6556_v14 = vadd.f32 %v6555_v58, %v15559_v28 }
 0x530   : > { %v7083_v27 = vmul.f32 0.01, %v6561_v57 }
 0x531   : > { %v7082_v8 = vmul.f32 0.01, %v6556_v14  ;;  %v12793_v31 = vpop.f32.mrb[222].mxu0  ;;  %12993 = vmatprep.mubr.msk.f32.mxu1 %vm1890_vm2, %v7208_v39 }
 0x532   : > { %v6571_v51 = vadd.f32 %v12793_v31, %v15559_v28  ;;  %v6565_v40 = vpop.f32.mrb[223].mxu0  ;;  %12994 = vmatmul.mubr.msk.f32.gmra.mrb[90].mxu1 %vm1890_vm2, %v7209_v42  ;;  %v7211_v61 = vmax.f32 %v6561_v57, %v7083_v27 }
 0x533   : > { %v7210_v21 = vmax.f32 %v6556_v14, %v7082_v8  ;;  %v6566_v11 = vadd.f32 %v6565_v40, %v15559_v28 }
 0x534   : > { %v7085_v22 = vmul.f32 0.01, %v6571_v51 }
 0x535   : > { %v7084_v5 = vmul.f32 0.01, %v6566_v11  ;;  %v12796_v24 = vpop.f32.mrb[224].mxu0  ;;  %12996 = vmatprep.mubr.msk.f32.mxu1 %vm1890_vm2, %v7210_v21 }
 0x536   : > { %v6581_v2 = vadd.f32 %v12796_v24, %v15559_v28  ;;  %v6575_v62 = vpop.f32.mrb[225].mxu0  ;;  %12997 = vmatmul.mubr.msk.f32.gmra.mrb[92].mxu1 %vm1890_vm2, %v7211_v61  ;;  %v7213_v15 = vmax.f32 %v6571_v51, %v7085_v22 }
 0x537   : > { %v7212_v17 = vmax.f32 %v6566_v11, %v7084_v5  ;;  %v6576_v55 = vadd.f32 %v6575_v62, %v15559_v28 }
 0x538   : > { %v7087_v29 = vmul.f32 0.01, %v6581_v2 }
 0x539   : > { %v7086_v35 = vmul.f32 0.01, %v6576_v55  ;;  %v12799_v63 = vpop.f32.mrb[226].mxu0  ;;  %12999 = vmatprep.mubr.msk.f32.mxu1 %vm1890_vm2, %v7212_v17 }
 0x53a   : > { %v6591_v1 = vadd.f32 %v12799_v63, %v15559_v28  ;;  %v6585_v19 = vpop.f32.mrb[227].mxu0  ;;  %13000 = vmatmul.mubr.msk.f32.gmra.mrb[94].mxu1 %vm1890_vm2, %v7213_v15  ;;  %v7215_v37 = vmax.f32 %v6581_v2, %v7087_v29 }
 0x53b   : > { %v7214_v10 = vmax.f32 %v6576_v55, %v7086_v35  ;;  %v6586_v36 = vadd.f32 %v6585_v19, %v15559_v28 }
 0x53c   : > { %v7089_v18 = vmul.f32 0.01, %v6591_v1 }
 0x53d   : > { %v7088_v43 = vmul.f32 0.01, %v6586_v36  ;;  %v12802_v20 = vpop.f32.mrb[228].mxu0  ;;  %13002 = vmatprep.mubr.msk.f32.mxu1 %vm1890_vm2, %v7214_v10 }
 0x53e   : > { %v6601_v46 = vadd.f32 %v12802_v20, %v15559_v28  ;;  %v6595_v30 = vpop.f32.mrb[229].mxu0  ;;  %13003 = vmatmul.mubr.msk.f32.gmra.mrb[96].mxu1 %vm1890_vm2, %v7215_v37  ;;  %v7217_v56 = vmax.f32 %v6591_v1, %v7089_v18 }
 0x53f   : > { %v7216_v12 = vmax.f32 %v6586_v36, %v7088_v43  ;;  %v6596_v32 = vadd.f32 %v6595_v30, %v15559_v28 }
 0x540   : > { %v7091_v33 = vmul.f32 0.01, %v6601_v46 }
 0x541   : > { %v7090_v49 = vmul.f32 0.01, %v6596_v32  ;;  %v12805_v47 = vpop.f32.mrb[230].mxu0  ;;  %13005 = vmatprep.mubr.msk.f32.mxu1 %vm1890_vm2, %v7216_v12 }
 0x542   : > { %v6611_v48 = vadd.f32 %v12805_v47, %v15559_v28  ;;  %v6605_v26 = vpop.f32.mrb[231].mxu0  ;;  %13006 = vmatmul.mubr.msk.f32.gmra.mrb[98].mxu1 %vm1890_vm2, %v7217_v56  ;;  %v7219_v13 = vmax.f32 %v6601_v46, %v7091_v33 }
 0x543   : > { %v7218_v3 = vmax.f32 %v6596_v32, %v7090_v49  ;;  %v6606_v16 = vadd.f32 %v6605_v26, %v15559_v28 }
 0x544   : > { %v7093_v45 = vmul.f32 0.01, %v6611_v48 }
 0x545   : > { %v7092_v0 = vmul.f32 0.01, %v6606_v16  ;;  %v12808_v50 = vpop.f32.mrb[232].mxu0  ;;  %13008 = vmatprep.mubr.msk.f32.mxu1 %vm1890_vm2, %v7218_v3 }
 0x546   : > { %v6621_v9 = vadd.f32 %v12808_v50, %v15559_v28  ;;  %v6615_v54 = vpop.f32.mrb[233].mxu0  ;;  %13009 = vmatmul.mubr.msk.f32.gmra.mrb[100].mxu1 %vm1890_vm2, %v7219_v13  ;;  %v7221_v44 = vmax.f32 %v6611_v48, %v7093_v45 }
 0x547   : > { %v7220_v7 = vmax.f32 %v6606_v16, %v7092_v0  ;;  %v6616_v41 = vadd.f32 %v6615_v54, %v15559_v28 }
 0x548   : > { %v7095_v52 = vmul.f32 0.01, %v6621_v9 }
 0x549   : > { %v7094_v60 = vmul.f32 0.01, %v6616_v41  ;;  %v12811_v59 = vpop.f32.mrb[234].mxu0  ;;  %13011 = vmatprep.mubr.msk.f32.mxu1 %vm1890_vm2, %v7220_v7 }
 0x54a   : > { %v6631_v23 = vadd.f32 %v12811_v59, %v15559_v28  ;;  %v6625_v34 = vpop.f32.mrb[235].mxu0  ;;  %13012 = vmatmul.mubr.msk.f32.gmra.mrb[102].mxu1 %vm1890_vm2, %v7221_v44  ;;  %v7223_v25 = vmax.f32 %v6621_v9, %v7095_v52 }
 0x54b   : > { %v7222_v4 = vmax.f32 %v6616_v41, %v7094_v60  ;;  %v6626_v6 = vadd.f32 %v6625_v34, %v15559_v28 }
 0x54c   : > { %v7097_v53 = vmul.f32 0.01, %v6631_v23 }
 0x54d   : > { %v7096_v57 = vmul.f32 0.01, %v6626_v6  ;;  %v12814_v58 = vpop.f32.mrb[236].mxu0  ;;  %13014 = vmatprep.mubr.msk.f32.mxu1 %vm1890_vm2, %v7222_v4 }
 0x54e   : > { %v6641_v39 = vadd.f32 %v12814_v58, %v15559_v28  ;;  %v6635_v14 = vpop.f32.mrb[237].mxu0  ;;  %13015 = vmatmul.mubr.msk.f32.gmra.mrb[104].mxu1 %vm1890_vm2, %v7223_v25  ;;  %v7225_v8 = vmax.f32 %v6631_v23, %v7097_v53 }
 0x54f   : > { %v7224_v42 = vmax.f32 %v6626_v6, %v7096_v57  ;;  %v6636_v27 = vadd.f32 %v6635_v14, %v15559_v28 }
 0x550   : > { %v7099_v31 = vmul.f32 0.01, %v6641_v39 }
 0x551   : > { %v7098_v51 = vmul.f32 0.01, %v6636_v27  ;;  %v12817_v40 = vpop.f32.mrb[238].mxu0  ;;  %13017 = vmatprep.mubr.msk.f32.mxu1 %vm1890_vm2, %v7224_v42 }
 0x552   : > { %v6651_v21 = vadd.f32 %v12817_v40, %v15559_v28  ;;  %v6645_v11 = vpop.f32.mrb[239].mxu0  ;;  %13018 = vmatmul.mubr.msk.f32.gmra.mrb[106].mxu1 %vm1890_vm2, %v7225_v8  ;;  %v7227_v5 = vmax.f32 %v6641_v39, %v7099_v31 }
 0x553   : > { %v7226_v61 = vmax.f32 %v6636_v27, %v7098_v51  ;;  %v6646_v22 = vadd.f32 %v6645_v11, %v15559_v28 }
 0x554   : > { %v7101_v24 = vmul.f32 0.01, %v6651_v21 }
 0x555   : > { %v7100_v2 = vmul.f32 0.01, %v6646_v22  ;;  %v12820_v62 = vpop.f32.mrb[240].mxu0  ;;  %13020 = vmatprep.mubr.msk.f32.mxu1 %vm1890_vm2, %v7226_v61 }
 0x556   : > { %v6661_v17 = vadd.f32 %v12820_v62, %v15559_v28  ;;  %v6655_v55 = vpop.f32.mrb[241].mxu0  ;;  %13021 = vmatmul.mubr.msk.f32.gmra.mrb[108].mxu1 %vm1890_vm2, %v7227_v5  ;;  %v7229_v35 = vmax.f32 %v6651_v21, %v7101_v24 }
 0x557   : > { %v7228_v15 = vmax.f32 %v6646_v22, %v7100_v2  ;;  %v6656_v29 = vadd.f32 %v6655_v55, %v15559_v28 }
 0x558   : > { %v7103_v63 = vmul.f32 0.01, %v6661_v17 }
 0x559   : > { %v7102_v1 = vmul.f32 0.01, %v6656_v29  ;;  %v12823_v19 = vpop.f32.mrb[242].mxu0  ;;  %13023 = vmatprep.mubr.msk.f32.mxu1 %vm1890_vm2, %v7228_v15 }
 0x55a   : > { %v6671_v10 = vadd.f32 %v12823_v19, %v15559_v28  ;;  %v6665_v36 = vpop.f32.mrb[243].mxu0  ;;  %13024 = vmatmul.mubr.msk.f32.gmra.mrb[110].mxu1 %vm1890_vm2, %v7229_v35  ;;  %v7231_v43 = vmax.f32 %v6661_v17, %v7103_v63 }
 0x55b   : > { %v7230_v37 = vmax.f32 %v6656_v29, %v7102_v1  ;;  %v6666_v18 = vadd.f32 %v6665_v36, %v15559_v28 }
 0x55c   : > { %v7105_v20 = vmul.f32 0.01, %v6671_v10 }
 0x55d   : > { %v7104_v46 = vmul.f32 0.01, %v6666_v18  ;;  %v12826_v30 = vpop.f32.mrb[244].mxu0  ;;  %13026 = vmatprep.mubr.msk.f32.mxu1 %vm1890_vm2, %v7230_v37 }
 0x55e   : > { %v6681_v12 = vadd.f32 %v12826_v30, %v15559_v28  ;;  %v6675_v32 = vpop.f32.mrb[245].mxu0  ;;  %13027 = vmatmul.mubr.msk.f32.gmra.mrb[112].mxu1 %vm1890_vm2, %v7231_v43  ;;  %v7233_v49 = vmax.f32 %v6671_v10, %v7105_v20 }
 0x55f   : > { %v7232_v56 = vmax.f32 %v6666_v18, %v7104_v46  ;;  %v6676_v33 = vadd.f32 %v6675_v32, %v15559_v28 }
 0x560   : > { %v7107_v47 = vmul.f32 0.01, %v6681_v12 }
 0x561   : > { %v7106_v48 = vmul.f32 0.01, %v6676_v33  ;;  %v12829_v26 = vpop.f32.mrb[246].mxu0  ;;  %13029 = vmatprep.mubr.msk.f32.mxu1 %vm1890_vm2, %v7232_v56 }
 0x562   : > { %v6691_v3 = vadd.f32 %v12829_v26, %v15559_v28  ;;  %v6685_v16 = vpop.f32.mrb[247].mxu0  ;;  %13030 = vmatmul.mubr.msk.f32.gmra.mrb[114].mxu1 %vm1890_vm2, %v7233_v49  ;;  %v7235_v0 = vmax.f32 %v6681_v12, %v7107_v47 }
 0x563   : > { %v7234_v13 = vmax.f32 %v6676_v33, %v7106_v48  ;;  %v6686_v45 = vadd.f32 %v6685_v16, %v15559_v28 }
 0x564   : > { %v7109_v50 = vmul.f32 0.01, %v6691_v3 }
 0x565   : > { %v7108_v9 = vmul.f32 0.01, %v6686_v45  ;;  %v12832_v54 = vpop.f32.mrb[248].mxu0  ;;  %13032 = vmatprep.mubr.msk.f32.mxu1 %vm1890_vm2, %v7234_v13 }
 0x566   : > { %v6701_v7 = vadd.f32 %v12832_v54, %v15559_v28  ;;  %v6695_v41 = vpop.f32.mrb[249].mxu0  ;;  %13033 = vmatmul.mubr.msk.f32.gmra.mrb[116].mxu1 %vm1890_vm2, %v7235_v0  ;;  %v7237_v60 = vmax.f32 %v6691_v3, %v7109_v50 }
 0x567   : > { %v7236_v44 = vmax.f32 %v6686_v45, %v7108_v9  ;;  %v6696_v52 = vadd.f32 %v6695_v41, %v15559_v28 }
 0x568   : > { %v7111_v59 = vmul.f32 0.01, %v6701_v7 }
 0x569   : > { %v7110_v23 = vmul.f32 0.01, %v6696_v52  ;;  %v12835_v34 = vpop.f32.mrb[250].mxu0  ;;  %13035 = vmatprep.mubr.msk.f32.mxu1 %vm1890_vm2, %v7236_v44 }
 0x56a   : > { %v6711_v4 = vadd.f32 %v12835_v34, %v15559_v28  ;;  %v6705_v6 = vpop.f32.mrb[251].mxu0  ;;  %13036 = vmatmul.mubr.msk.f32.gmra.mrb[118].mxu1 %vm1890_vm2, %v7237_v60  ;;  %v7239_v57 = vmax.f32 %v6701_v7, %v7111_v59 }
 0x56b   : > { %v7238_v25 = vmax.f32 %v6696_v52, %v7110_v23  ;;  %v6706_v53 = vadd.f32 %v6705_v6, %v15559_v28 }
 0x56c   : > { %v7113_v58 = vmul.f32 0.01, %v6711_v4 }
 0x56d   : > { %v7112_v39 = vmul.f32 0.01, %v6706_v53  ;;  %v12838_v14 = vpop.f32.mrb[252].mxu0  ;;  %13038 = vmatprep.mubr.msk.f32.mxu1 %vm1890_vm2, %v7238_v25 }
 0x56e   : > { %v6721_v42 = vadd.f32 %v12838_v14, %v15559_v28  ;;  %v6715_v27 = vpop.f32.mrb[253].mxu0  ;;  %13039 = vmatmul.mubr.msk.f32.gmra.mrb[120].mxu1 %vm1890_vm2, %v7239_v57  ;;  %v7241_v51 = vmax.f32 %v6711_v4, %v7113_v58 }
 0x56f   : > { %v7240_v8 = vmax.f32 %v6706_v53, %v7112_v39  ;;  %v6716_v31 = vadd.f32 %v6715_v27, %v15559_v28 }
 0x570   : > { %v7115_v40 = vmul.f32 0.01, %v6721_v42 }
 0x571   : > { %v7114_v21 = vmul.f32 0.01, %v6716_v31  ;;  %v12841_v11 = vpop.f32.mrb[254].mxu0  ;;  %13041 = vmatprep.mubr.msk.f32.mxu1 %vm1890_vm2, %v7240_v8 }
 0x572   : > { %v6731_v61 = vadd.f32 %v12841_v11, %v15559_v28  ;;  %v6725_v22 = vpop.f32.mrb[255].mxu0  ;;  %13042 = vmatmul.mubr.msk.f32.gmra.mrb[122].mxu1 %vm1890_vm2, %v7241_v51  ;;  %v7243_v2 = vmax.f32 %v6721_v42, %v7115_v40 }
 0x573   : > { %v7242_v5 = vmax.f32 %v6716_v31, %v7114_v21  ;;  %v6726_v24 = vadd.f32 %v6725_v22, %v15559_v28 }
 0x574   : > { %v7117_v62 = vmul.f32 0.01, %v6731_v61 }
 0x575   : > { %v7116_v17 = vmul.f32 0.01, %v6726_v24  ;;  %v12844_v55 = vpop.f32.mrb[0].mxu0  ;;  %13044 = vmatprep.mubr.msk.f32.mxu1 %vm1890_vm2, %v7242_v5 }
 0x576   : > { %v6741_v15 = vadd.f32 %v12844_v55, %v15559_v28  ;;  %v6735_v29 = vpop.f32.mrb[1].mxu0  ;;  %13045 = vmatmul.mubr.msk.f32.gmra.mrb[124].mxu1 %vm1890_vm2, %v7243_v2  ;;  %v7245_v1 = vmax.f32 %v6731_v61, %v7117_v62 }
 0x577   : > { %v7244_v35 = vmax.f32 %v6726_v24, %v7116_v17  ;;  %v6736_v63 = vadd.f32 %v6735_v29, %v15559_v28 }
 0x578   : > { %v7119_v19 = vmul.f32 0.01, %v6741_v15 }
 0x579   : > { %v7118_v10 = vmul.f32 0.01, %v6736_v63  ;;  %v12847_v36 = vpop.f32.mrb[2].mxu0  ;;  %13047 = vmatprep.mubr.msk.f32.mxu1 %vm1890_vm2, %v7244_v35 }
 0x57a   : > { %v6751_v37 = vadd.f32 %v12847_v36, %v15559_v28  ;;  %v6745_v18 = vpop.f32.mrb[3].mxu0  ;;  %13048 = vmatmul.mubr.msk.f32.gmra.mrb[126].mxu1 %vm1890_vm2, %v7245_v1  ;;  %v7247_v46 = vmax.f32 %v6741_v15, %v7119_v19 }
 0x57b   : > { %v7246_v43 = vmax.f32 %v6736_v63, %v7118_v10  ;;  %v6746_v20 = vadd.f32 %v6745_v18, %v15559_v28 }
 0x57c   : > { %v7121_v30 = vmul.f32 0.01, %v6751_v37 }
 0x57d   : > { %v7120_v12 = vmul.f32 0.01, %v6746_v20  ;;  %v12850_v32 = vpop.f32.mrb[4].mxu0  ;;  %13050 = vmatprep.mubr.msk.f32.mxu1 %vm1890_vm2, %v7246_v43 }
 0x57e   : > { %v6761_v56 = vadd.f32 %v12850_v32, %v15559_v28  ;;  %v6755_v33 = vpop.f32.mrb[5].mxu0  ;;  %13051 = vmatmul.mubr.msk.f32.gmra.mrb[128].mxu1 %vm1890_vm2, %v7247_v46  ;;  %v7249_v48 = vmax.f32 %v6751_v37, %v7121_v30 }
 0x57f   : > { %v7248_v49 = vmax.f32 %v6746_v20, %v7120_v12  ;;  %v6756_v47 = vadd.f32 %v6755_v33, %v15559_v28 }
 0x580   : > { %v7123_v26 = vmul.f32 0.01, %v6761_v56 }
 0x581   : > { %v7122_v3 = vmul.f32 0.01, %v6756_v47  ;;  %v12853_v16 = vpop.f32.mrb[6].mxu0  ;;  %13053 = vmatprep.mubr.msk.f32.mxu1 %vm1890_vm2, %v7248_v49 }
 0x582   : > { %v6771_v13 = vadd.f32 %v12853_v16, %v15559_v28  ;;  %v6765_v45 = vpop.f32.mrb[7].mxu0  ;;  %13054 = vmatmul.mubr.msk.f32.gmra.mrb[130].mxu1 %vm1890_vm2, %v7249_v48  ;;  %v7251_v9 = vmax.f32 %v6761_v56, %v7123_v26 }
 0x583   : > { %v7250_v0 = vmax.f32 %v6756_v47, %v7122_v3  ;;  %v6766_v50 = vadd.f32 %v6765_v45, %v15559_v28 }
 0x584   : > { %v7125_v54 = vmul.f32 0.01, %v6771_v13 }
 0x585   : > { %v7124_v7 = vmul.f32 0.01, %v6766_v50  ;;  %v12856_v41 = vpop.f32.mrb[8].mxu0  ;;  %13056 = vmatprep.mubr.msk.f32.mxu1 %vm1890_vm2, %v7250_v0 }
 0x586   : > { %v6781_v44 = vadd.f32 %v12856_v41, %v15559_v28  ;;  %v6775_v52 = vpop.f32.mrb[9].mxu0  ;;  %13057 = vmatmul.mubr.msk.f32.gmra.mrb[132].mxu1 %vm1890_vm2, %v7251_v9  ;;  %v7253_v23 = vmax.f32 %v6771_v13, %v7125_v54 }
 0x587   : > { %v7252_v60 = vmax.f32 %v6766_v50, %v7124_v7  ;;  %v6776_v59 = vadd.f32 %v6775_v52, %v15559_v28 }
 0x588   : > { %v7127_v34 = vmul.f32 0.01, %v6781_v44 }
 0x589   : > { %v7126_v4 = vmul.f32 0.01, %v6776_v59  ;;  %v12859_v6 = vpop.f32.mrb[10].mxu0  ;;  %13059 = vmatprep.mubr.msk.f32.mxu1 %vm1890_vm2, %v7252_v60 }
 0x58a   : > { %v6791_v25 = vadd.f32 %v12859_v6, %v15559_v28  ;;  %v6785_v53 = vpop.f32.mrb[11].mxu0  ;;  %13060 = vmatmul.mubr.msk.f32.gmra.mrb[134].mxu1 %vm1890_vm2, %v7253_v23  ;;  %v7255_v39 = vmax.f32 %v6781_v44, %v7127_v34 }
 0x58b   : > { %v7254_v57 = vmax.f32 %v6776_v59, %v7126_v4  ;;  %v6786_v58 = vadd.f32 %v6785_v53, %v15559_v28 }
 0x58c   : > { %v7129_v14 = vmul.f32 0.01, %v6791_v25 }
 0x58d   : > { %v7128_v42 = vmul.f32 0.01, %v6786_v58  ;;  %v12862_v27 = vpop.f32.mrb[12].mxu0  ;;  %13062 = vmatprep.mubr.msk.f32.mxu1 %vm1890_vm2, %v7254_v57 }
 0x58e   : > { %v6801_v8 = vadd.f32 %v12862_v27, %v15559_v28  ;;  %v6795_v31 = vpop.f32.mrb[13].mxu0  ;;  %13063 = vmatmul.mubr.msk.f32.gmra.mrb[136].mxu1 %vm1890_vm2, %v7255_v39  ;;  %v7257_v21 = vmax.f32 %v6791_v25, %v7129_v14 }
 0x58f   : > { %v7256_v51 = vmax.f32 %v6786_v58, %v7128_v42  ;;  %v6796_v40 = vadd.f32 %v6795_v31, %v15559_v28 }
 0x590   : > { %v7131_v11 = vmul.f32 0.01, %v6801_v8 }
 0x591   : > { %v7130_v61 = vmul.f32 0.01, %v6796_v40  ;;  %v12865_v22 = vpop.f32.mrb[14].mxu0  ;;  %13065 = vmatprep.mubr.msk.f32.mxu1 %vm1890_vm2, %v7256_v51 }
 0x592   : > { %v6811_v5 = vadd.f32 %v12865_v22, %v15559_v28  ;;  %v6805_v24 = vpop.f32.mrb[15].mxu0  ;;  %13066 = vmatmul.mubr.msk.f32.gmra.mrb[138].mxu1 %vm1890_vm2, %v7257_v21  ;;  %v7259_v17 = vmax.f32 %v6801_v8, %v7131_v11 }
 0x593   : > { %v7258_v2 = vmax.f32 %v6796_v40, %v7130_v61  ;;  %v6806_v62 = vadd.f32 %v6805_v24, %v15559_v28 }
 0x594   : > { %v7133_v55 = vmul.f32 0.01, %v6811_v5 }
 0x595   : > { %v7132_v15 = vmul.f32 0.01, %v6806_v62  ;;  %v12868_v29 = vpop.f32.mrb[16].mxu0  ;;  %13068 = vmatprep.mubr.msk.f32.mxu1 %vm1890_vm2, %v7258_v2 }
 0x596   : > { %v6821_v35 = vadd.f32 %v12868_v29, %v15559_v28  ;;  %v6815_v63 = vpop.f32.mrb[17].mxu0  ;;  %13069 = vmatmul.mubr.msk.f32.gmra.mrb[140].mxu1 %vm1890_vm2, %v7259_v17  ;;  %v7261_v10 = vmax.f32 %v6811_v5, %v7133_v55 }
 0x597   : > { %v7260_v1 = vmax.f32 %v6806_v62, %v7132_v15  ;;  %v6816_v19 = vadd.f32 %v6815_v63, %v15559_v28 }
 0x598   : > { %v7135_v36 = vmul.f32 0.01, %v6821_v35 }
 0x599   : > { %v7134_v37 = vmul.f32 0.01, %v6816_v19  ;;  %v12871_v18 = vpop.f32.mrb[18].mxu0  ;;  %13071 = vmatprep.mubr.msk.f32.mxu1 %vm1890_vm2, %v7260_v1 }
 0x59a   : > { %v6831_v43 = vadd.f32 %v12871_v18, %v15559_v28  ;;  %v6825_v20 = vpop.f32.mrb[19].mxu0  ;;  %13072 = vmatmul.mubr.msk.f32.gmra.mrb[142].mxu1 %vm1890_vm2, %v7261_v10  ;;  %v7263_v12 = vmax.f32 %v6821_v35, %v7135_v36 }
 0x59b   : > { %v7262_v46 = vmax.f32 %v6816_v19, %v7134_v37  ;;  %v6826_v30 = vadd.f32 %v6825_v20, %v15559_v28 }
 0x59c   : > { %v7137_v32 = vmul.f32 0.01, %v6831_v43 }
 0x59d   : > { %v7136_v56 = vmul.f32 0.01, %v6826_v30  ;;  %v12874_v33 = vpop.f32.mrb[20].mxu0  ;;  %13074 = vmatprep.mubr.msk.f32.mxu1 %vm1890_vm2, %v7262_v46 }
 0x59e   : > { %v6841_v49 = vadd.f32 %v12874_v33, %v15559_v28  ;;  %v6835_v47 = vpop.f32.mrb[21].mxu0  ;;  %13075 = vmatmul.mubr.msk.f32.gmra.mrb[144].mxu1 %vm1890_vm2, %v7263_v12  ;;  %v7265_v3 = vmax.f32 %v6831_v43, %v7137_v32 }
 0x59f   : > { %v7264_v48 = vmax.f32 %v6826_v30, %v7136_v56  ;;  %v6836_v26 = vadd.f32 %v6835_v47, %v15559_v28 }
 0x5a0   : > { %v7139_v16 = vmul.f32 0.01, %v6841_v49 }
 0x5a1   : > { %v7138_v13 = vmul.f32 0.01, %v6836_v26  ;;  %v12877_v45 = vpop.f32.mrb[22].mxu0  ;;  %13077 = vmatprep.mubr.msk.f32.mxu1 %vm1890_vm2, %v7264_v48 }
 0x5a2   : > { %v6851_v0 = vadd.f32 %v12877_v45, %v15559_v28  ;;  %v6845_v50 = vpop.f32.mrb[23].mxu0  ;;  %13078 = vmatmul.mubr.msk.f32.gmra.mrb[146].mxu1 %vm1890_vm2, %v7265_v3  ;;  %v7267_v7 = vmax.f32 %v6841_v49, %v7139_v16 }
 0x5a3   : > { %v7266_v9 = vmax.f32 %v6836_v26, %v7138_v13  ;;  %v6846_v54 = vadd.f32 %v6845_v50, %v15559_v28 }
 0x5a4   : > { %v7141_v41 = vmul.f32 0.01, %v6851_v0 }
 0x5a5   : > { %v7140_v44 = vmul.f32 0.01, %v6846_v54  ;;  %v12880_v52 = vpop.f32.mrb[24].mxu0  ;;  %13080 = vmatprep.mubr.msk.f32.mxu1 %vm1890_vm2, %v7266_v9 }
 0x5a6   : > { %v6861_v60 = vadd.f32 %v12880_v52, %v15559_v28  ;;  %v6855_v59 = vpop.f32.mrb[25].mxu0  ;;  %13081 = vmatmul.mubr.msk.f32.gmra.mrb[148].mxu1 %vm1890_vm2, %v7267_v7  ;;  %v7269_v4 = vmax.f32 %v6851_v0, %v7141_v41 }
 0x5a7   : > { %v7268_v23 = vmax.f32 %v6846_v54, %v7140_v44  ;;  %v6856_v34 = vadd.f32 %v6855_v59, %v15559_v28 }
 0x5a8   : > { %v7143_v6 = vmul.f32 0.01, %v6861_v60 }
 0x5a9   : > { %v7142_v25 = vmul.f32 0.01, %v6856_v34  ;;  %v12883_v53 = vpop.f32.mrb[26].mxu0  ;;  %13083 = vmatprep.mubr.msk.f32.mxu1 %vm1890_vm2, %v7268_v23 }
 0x5aa   : > { %v6871_v57 = vadd.f32 %v12883_v53, %v15559_v28  ;;  %v6865_v58 = vpop.f32.mrb[27].mxu0  ;;  %13084 = vmatmul.mubr.msk.f32.gmra.mrb[150].mxu1 %vm1890_vm2, %v7269_v4  ;;  %v7271_v42 = vmax.f32 %v6861_v60, %v7143_v6 }
 0x5ab   : > { %v7270_v39 = vmax.f32 %v6856_v34, %v7142_v25  ;;  %v6866_v14 = vadd.f32 %v6865_v58, %v15559_v28 }
 0x5ac   : > { %v7145_v27 = vmul.f32 0.01, %v6871_v57 }
 0x5ad   : > { %v7144_v8 = vmul.f32 0.01, %v6866_v14  ;;  %v12886_v31 = vpop.f32.mrb[28].mxu0  ;;  %13086 = vmatprep.mubr.msk.f32.mxu1 %vm1890_vm2, %v7270_v39 }
 0x5ae   : > { %v6881_v51 = vadd.f32 %v12886_v31, %v15559_v28  ;;  %v6875_v40 = vpop.f32.mrb[29].mxu0  ;;  %13087 = vmatmul.mubr.msk.f32.gmra.mrb[152].mxu1 %vm1890_vm2, %v7271_v42  ;;  %v7273_v61 = vmax.f32 %v6871_v57, %v7145_v27 }
 0x5af   : > { %v7272_v21 = vmax.f32 %v6866_v14, %v7144_v8  ;;  %v6876_v11 = vadd.f32 %v6875_v40, %v15559_v28  ;;  %v7321_v8 = vsub.s32 3, %v16583_v38 }
 0x5b0   : > { %v7147_v22 = vmul.f32 0.01, %v6881_v51 }
 0x5b1   : > { %v7146_v5 = vmul.f32 0.01, %v6876_v11  ;;  %v12889_v24 = vpop.f32.mrb[30].mxu0  ;;  %13089 = vmatprep.mubr.msk.f32.mxu1 %vm1890_vm2, %v7272_v21 }
 0x5b2   : > { %v6891_v2 = vadd.f32 %v12889_v24, %v15559_v28  ;;  %v6885_v62 = vpop.f32.mrb[31].mxu0  ;;  %13090 = vmatmul.mubr.msk.f32.gmra.mrb[154].mxu1 %vm1890_vm2, %v7273_v61  ;;  %v7275_v15 = vmax.f32 %v6881_v51, %v7147_v22  ;;  %v13569_v24 = vld [vmem:[#allocation7] sm:$0xf] }
 0x5b3   : > { %v7274_v17 = vmax.f32 %v6876_v11, %v7146_v5  ;;  %v6886_v55 = vadd.f32 %v6885_v62, %v15559_v28 }
 0x5b4   : > { %v7149_v29 = vmul.f32 0.01, %v6891_v2 }
 0x5b5   : > { %v7148_v35 = vmul.f32 0.01, %v6886_v55  ;;  %v12892_v63 = vpop.f32.mrb[32].mxu0  ;;  %13092 = vmatprep.mubr.msk.f32.mxu1 %vm1890_vm2, %v7274_v17 }
 0x5b6   : > { %v6901_v1 = vadd.f32 %v12892_v63, %v15559_v28  ;;  %v6895_v19 = vpop.f32.mrb[33].mxu0  ;;  %13093 = vmatmul.mubr.msk.f32.gmra.mrb[156].mxu1 %vm1890_vm2, %v7275_v15  ;;  %v7277_v37 = vmax.f32 %v6891_v2, %v7149_v29  ;;  %v15824_v2 = vrot.slane %v13569_v24, %v7321_v8 }
 0x5b7   : > { %v7276_v10 = vmax.f32 %v6886_v55, %v7148_v35  ;;  %v6896_v36 = vadd.f32 %v6895_v19, %v15559_v28 }
 0x5b8   : > { %v7151_v18 = vmul.f32 0.01, %v6901_v1 }
 0x5b9   : > { %v7150_v43 = vmul.f32 0.01, %v6896_v36  ;;  %v12895_v20 = vpop.f32.mrb[34].mxu0  ;;  %13095 = vmatprep.mubr.msk.f32.mxu1 %vm1890_vm2, %v7276_v10 }
 0x5ba   : > { %v6911_v46 = vadd.f32 %v12895_v20, %v15559_v28  ;;  %v6905_v30 = vpop.f32.mrb[35].mxu0  ;;  %13096 = vmatmul.mubr.msk.f32.gmra.mrb[158].mxu1 %vm1890_vm2, %v7277_v37  ;;  %v7279_v56 = vmax.f32 %v6901_v1, %v7151_v18 }
 0x5bb   : > { %v7278_v12 = vmax.f32 %v6896_v36, %v7150_v43  ;;  %v6906_v32 = vadd.f32 %v6905_v30, %v15559_v28 }
 0x5bc   : > { %v7153_v33 = vmul.f32 0.01, %v6911_v46 }
 0x5bd   : > { %v7152_v49 = vmul.f32 0.01, %v6906_v32  ;;  %v12898_v47 = vpop.f32.mrb[36].mxu0  ;;  %13098 = vmatprep.mubr.msk.f32.mxu1 %vm1890_vm2, %v7278_v12 }
 0x5be   : > { %v6921_v48 = vadd.f32 %v12898_v47, %v15559_v28  ;;  %v6915_v26 = vpop.f32.mrb[37].mxu0  ;;  %13099 = vmatmul.mubr.msk.f32.gmra.mrb[160].mxu1 %vm1890_vm2, %v7279_v56  ;;  %v7281_v13 = vmax.f32 %v6911_v46, %v7153_v33 }
 0x5bf   : > { %v7280_v3 = vmax.f32 %v6906_v32, %v7152_v49  ;;  %v6916_v16 = vadd.f32 %v6915_v26, %v15559_v28 }
 0x5c0   : > { %v7155_v45 = vmul.f32 0.01, %v6921_v48 }
 0x5c1   : > { %v7154_v0 = vmul.f32 0.01, %v6916_v16  ;;  %v12901_v50 = vpop.f32.mrb[38].mxu0  ;;  %13101 = vmatprep.mubr.msk.f32.mxu1 %vm1890_vm2, %v7280_v3 }
 0x5c2   : > { %v6931_v9 = vadd.f32 %v12901_v50, %v15559_v28  ;;  %v6925_v54 = vpop.f32.mrb[39].mxu0  ;;  %13102 = vmatmul.mubr.msk.f32.gmra.mrb[162].mxu1 %vm1890_vm2, %v7281_v13  ;;  %v7283_v44 = vmax.f32 %v6921_v48, %v7155_v45 }
 0x5c3   : > { %v7282_v7 = vmax.f32 %v6916_v16, %v7154_v0  ;;  %v6926_v41 = vadd.f32 %v6925_v54, %v15559_v28 }
 0x5c4   : > { %v7157_v52 = vmul.f32 0.01, %v6931_v9 }
 0x5c5   : > { %v7156_v60 = vmul.f32 0.01, %v6926_v41  ;;  %v12904_v59 = vpop.f32.mrb[40].mxu0  ;;  %13104 = vmatprep.mubr.msk.f32.mxu1 %vm1890_vm2, %v7282_v7 }
 0x5c6   : > { %v6941_v23 = vadd.f32 %v12904_v59, %v15559_v28  ;;  %v6935_v34 = vpop.f32.mrb[41].mxu0  ;;  %13105 = vmatmul.mubr.msk.f32.gmra.mrb[164].mxu1 %vm1890_vm2, %v7283_v44  ;;  %v7285_v25 = vmax.f32 %v6931_v9, %v7157_v52 }
 0x5c7   : > { %v7284_v4 = vmax.f32 %v6926_v41, %v7156_v60  ;;  %v6936_v6 = vadd.f32 %v6935_v34, %v15559_v28 }
 0x5c8   : > { %v7159_v53 = vmul.f32 0.01, %v6941_v23 }
 0x5c9   : > { %v7158_v57 = vmul.f32 0.01, %v6936_v6  ;;  %v12907_v58 = vpop.f32.mrb[42].mxu0  ;;  %13107 = vmatprep.mubr.msk.f32.mxu1 %vm1890_vm2, %v7284_v4 }
 0x5ca   : > { %v6951_v39 = vadd.f32 %v12907_v58, %v15559_v28  ;;  %v6945_v14 = vpop.f32.mrb[43].mxu0  ;;  %13108 = vmatmul.mubr.msk.f32.gmra.mrb[166].mxu1 %vm1890_vm2, %v7285_v25  ;;  %v7287_v31 = vmax.f32 %v6941_v23, %v7159_v53 }
 0x5cb   : > { %v7286_v42 = vmax.f32 %v6936_v6, %v7158_v57  ;;  %v6946_v27 = vadd.f32 %v6945_v14, %v15559_v28 }
 0x5cc   : > { %v7161_v51 = vmul.f32 0.01, %v6951_v39 }
 0x5cd   : > { %v7160_v40 = vmul.f32 0.01, %v6946_v27  ;;  %v12910_v21 = vpop.f32.mrb[44].mxu0  ;;  %13110 = vmatprep.mubr.msk.f32.mxu1 %vm1890_vm2, %v7286_v42 }
 0x5ce   : > { %v6961_v11 = vadd.f32 %v12910_v21, %v15559_v28  ;;  %v6955_v61 = vpop.f32.mrb[45].mxu0  ;;  %13111 = vmatmul.mubr.msk.f32.gmra.mrb[168].mxu1 %vm1890_vm2, %v7287_v31  ;;  %v7289_v62 = vmax.f32 %v6951_v39, %v7161_v51 }
 0x5cf   : > { %v7288_v22 = vmax.f32 %v6946_v27, %v7160_v40  ;;  %v6956_v5 = vadd.f32 %v6955_v61, %v15559_v28 }
 0x5d0   : > { %v7163_v17 = vmul.f32 0.01, %v6961_v11 }
 0x5d1   : > { %v7162_v38 = vmul.f32 0.01, %v6956_v5  ;;  %v12913_v55 = vpop.f32.mrb[46].mxu0  ;;  %13113 = vmatprep.mubr.msk.f32.mxu1 %vm1890_vm2, %v7288_v22  ;;  %v12956_v29 = vpop.f32.mrb[64].mxu1 }
 0x5d2   : > { %v6971_v15 = vadd.f32 %v12913_v55, %v15559_v28  ;;  %v6965_v35 = vpop.f32.mrb[47].mxu0  ;;  %v7779_v1 = vadd.f32 %v12956_v29, %v15824_v2  ;;  %v7773_v10 = vpop.f32.mrb[65].mxu1  ;;  %13114 = vmatmul.mubr.msk.f32.gmra.mrb[170].mxu1 %vm1890_vm2, %v7289_v62  ;;  %v7291_v37 = vmax.f32 %v6961_v11, %v7163_v17 }
 0x5d3   : > { %v7290_v63 = vmax.f32 %v6956_v5, %v7162_v38  ;;  %v6966_v19 = vadd.f32 %v6965_v35, %v15559_v28  ;;  %v7774_v36 = vadd.f32 %v7773_v10, %v15824_v2 }
 0x5d4   : > { %v7165_v18 = vmul.f32 0.01, %v6971_v15  ;;  %v8413_v46 = vmul.f32 0.01, %v7779_v1 }
 0x5d5   : > { %v7164_v43 = vmul.f32 0.01, %v6966_v19  ;;  %v12916_v20 = vpop.f32.mrb[48].mxu0  ;;  %13116 = vmatprep.mubr.msk.f32.mxu1 %vm1890_vm2, %v7290_v63  ;;  %v8412_v30 = vmul.f32 0.01, %v7774_v36  ;;  %v12959_v32 = vpop.f32.mrb[66].mxu1 }
 0x5d6   : > { %v6981_v12 = vadd.f32 %v12916_v20, %v15559_v28  ;;  %v6975_v56 = vpop.f32.mrb[49].mxu0  ;;  %v7789_v49 = vadd.f32 %v12959_v32, %v15824_v2  ;;  %v7783_v48 = vpop.f32.mrb[67].mxu1  ;;  %13117 = vmatmul.mubr.msk.f32.gmra.mrb[172].mxu1 %vm1890_vm2, %v7291_v37  ;;  %v7293_v16 = vmax.f32 %v6971_v15, %v7165_v18  ;;  %v8541_v50 = vmax.f32 %v7779_v1, %v8413_v46 }
 0x5d7   : > { %v7292_v33 = vmax.f32 %v6966_v19, %v7164_v43  ;;  %v6976_v47 = vadd.f32 %v6975_v56, %v15559_v28  ;;  %v8540_v26 = vmax.f32 %v7774_v36, %v8412_v30  ;;  %v7784_v3 = vadd.f32 %v7783_v48, %v15824_v2 }
 0x5d8   : > { %v7167_v13 = vmul.f32 0.01, %v6981_v12  ;;  %v8415_v9 = vmul.f32 0.01, %v7789_v49 }
 0x5d9   : > { %v7166_v45 = vmul.f32 0.01, %v6976_v47  ;;  %v12919_v0 = vpop.f32.mrb[50].mxu0  ;;  %13119 = vmatprep.mubr.msk.f32.mxu1 %vm1890_vm2, %v7292_v33  ;;  %v8414_v54 = vmul.f32 0.01, %v7784_v3  ;;  %v12962_v41 = vpop.f32.mrb[68].mxu1  ;;  %13162 = vmatprep.mubr.msk.f32.mxu0 %vm1890_vm2, %v8540_v26 }
 0x5da   : > { %v6991_v7 = vadd.f32 %v12919_v0, %v15559_v28  ;;  %v6985_v44 = vpop.f32.mrb[51].mxu0  ;;  %v7799_v60 = vadd.f32 %v12962_v41, %v15824_v2  ;;  %v7793_v23 = vpop.f32.mrb[69].mxu1  ;;  %13120 = vmatmul.mubr.msk.f32.gmra.mrb[174].mxu1 %vm1890_vm2, %v7293_v16  ;;  %13163 = vmatmul.mubr.msk.f32.vlgmr.msra.gmra.mrb[64].mxu0 %vm1890_vm2, %v8541_v50  ;;  %v7295_v6 = vmax.f32 %v6981_v12, %v7167_v13 }
 0x5db   : > { %v7294_v52 = vmax.f32 %v6976_v47, %v7166_v45  ;;  %v6986_v59 = vadd.f32 %v6985_v44, %v15559_v28  ;;  %v8542_v34 = vmax.f32 %v7784_v3, %v8414_v54  ;;  %v7794_v4 = vadd.f32 %v7793_v23, %v15824_v2 }
 0x5dc   : > { %v7169_v25 = vmul.f32 0.01, %v6991_v7  ;;  %v8543_v58 = vmax.f32 %v7789_v49, %v8415_v9  ;;  %v8417_v39 = vmul.f32 0.01, %v7799_v60 }
 0x5dd   : > { %v7168_v53 = vmul.f32 0.01, %v6986_v59  ;;  %v12922_v57 = vpop.f32.mrb[52].mxu0  ;;  %13122 = vmatprep.mubr.msk.f32.mxu1 %vm1890_vm2, %v7294_v52  ;;  %v8416_v14 = vmul.f32 0.01, %v7794_v4  ;;  %v12965_v27 = vpop.f32.mrb[70].mxu1  ;;  %13165 = vmatprep.mubr.msk.f32.mxu0 %vm1890_vm2, %v8542_v34 }
 0x5de   : > { %v7001_v42 = vadd.f32 %v12922_v57, %v15559_v28  ;;  %v6995_v8 = vpop.f32.mrb[53].mxu0  ;;  %v7809_v51 = vadd.f32 %v12965_v27, %v15824_v2  ;;  %v7803_v21 = vpop.f32.mrb[71].mxu1  ;;  %13123 = vmatmul.mubr.msk.f32.gmra.mrb[176].mxu1 %vm1890_vm2, %v7295_v6  ;;  %13166 = vmatmul.mubr.msk.f32.gmra.mrb[66].mxu0 %vm1890_vm2, %v8543_v58  ;;  %v7297_v22 = vmax.f32 %v6991_v7, %v7169_v25 }
 0x5df   : > { %v7296_v31 = vmax.f32 %v6986_v59, %v7168_v53  ;;  %v6996_v40 = vadd.f32 %v6995_v8, %v15559_v28  ;;  %v8544_v11 = vmax.f32 %v7794_v4, %v8416_v14  ;;  %v7804_v61 = vadd.f32 %v7803_v21, %v15824_v2 }
 0x5e0   : > { %v7171_v5 = vmul.f32 0.01, %v7001_v42  ;;  %v8545_v17 = vmax.f32 %v7799_v60, %v8417_v39  ;;  %v8419_v38 = vmul.f32 0.01, %v7809_v51 }
 0x5e1   : > { %v7170_v24 = vmul.f32 0.01, %v6996_v40  ;;  %v12925_v62 = vpop.f32.mrb[54].mxu0  ;;  %13125 = vmatprep.mubr.msk.f32.mxu1 %vm1890_vm2, %v7296_v31  ;;  %v8418_v55 = vmul.f32 0.01, %v7804_v61  ;;  %v12968_v29 = vpop.f32.mrb[72].mxu1  ;;  %13168 = vmatprep.mubr.msk.f32.mxu0 %vm1890_vm2, %v8544_v11 }
 0x5e2   : > { %v7011_v15 = vadd.f32 %v12925_v62, %v15559_v28  ;;  %v7005_v35 = vpop.f32.mrb[55].mxu0  ;;  %v7819_v1 = vadd.f32 %v12968_v29, %v15824_v2  ;;  %v7813_v10 = vpop.f32.mrb[73].mxu1  ;;  %13126 = vmatmul.mubr.msk.f32.gmra.mrb[178].mxu1 %vm1890_vm2, %v7297_v22  ;;  %13169 = vmatmul.mubr.msk.f32.gmra.mrb[68].mxu0 %vm1890_vm2, %v8545_v17  ;;  %v7299_v18 = vmax.f32 %v7001_v42, %v7171_v5 }
 0x5e3   : > { %v7298_v63 = vmax.f32 %v6996_v40, %v7170_v24  ;;  %v7006_v19 = vadd.f32 %v7005_v35, %v15559_v28  ;;  %v8546_v36 = vmax.f32 %v7804_v61, %v8418_v55  ;;  %v7814_v37 = vadd.f32 %v7813_v10, %v15824_v2 }
 0x5e4   : > { %v7173_v43 = vmul.f32 0.01, %v7011_v15  ;;  %v8547_v30 = vmax.f32 %v7809_v51, %v8419_v38  ;;  %v8421_v12 = vmul.f32 0.01, %v7819_v1 }
 0x5e5   : > { %v7172_v20 = vmul.f32 0.01, %v7006_v19  ;;  %v12928_v46 = vpop.f32.mrb[56].mxu0  ;;  %13128 = vmatprep.mubr.msk.f32.mxu1 %vm1890_vm2, %v7298_v63  ;;  %v8420_v32 = vmul.f32 0.01, %v7814_v37  ;;  %v12971_v33 = vpop.f32.mrb[74].mxu1  ;;  %13171 = vmatprep.mubr.msk.f32.mxu0 %vm1890_vm2, %v8546_v36 }
 0x5e6   : > { %v7021_v56 = vadd.f32 %v12928_v46, %v15559_v28  ;;  %v7015_v49 = vpop.f32.mrb[57].mxu0  ;;  %v7829_v48 = vadd.f32 %v12971_v33, %v15824_v2  ;;  %v7823_v3 = vpop.f32.mrb[75].mxu1  ;;  %13129 = vmatmul.mubr.msk.f32.gmra.mrb[180].mxu1 %vm1890_vm2, %v7299_v18  ;;  %13172 = vmatmul.mubr.msk.f32.gmra.mrb[70].mxu0 %vm1890_vm2, %v8547_v30  ;;  %v7301_v45 = vmax.f32 %v7011_v15, %v7173_v43 }
 0x5e7   : > { %v7300_v47 = vmax.f32 %v7006_v19, %v7172_v20  ;;  %v7016_v26 = vadd.f32 %v7015_v49, %v15559_v28  ;;  %v8548_v16 = vmax.f32 %v7814_v37, %v8420_v32  ;;  %v7824_v13 = vadd.f32 %v7823_v3, %v15824_v2 }
 0x5e8   : > { %v7175_v0 = vmul.f32 0.01, %v7021_v56  ;;  %v8549_v54 = vmax.f32 %v7819_v1, %v8421_v12  ;;  %v8423_v7 = vmul.f32 0.01, %v7829_v48 }
 0x5e9   : > { %v7174_v50 = vmul.f32 0.01, %v7016_v26  ;;  %v12931_v9 = vpop.f32.mrb[58].mxu0  ;;  %13131 = vmatprep.mubr.msk.f32.mxu1 %vm1890_vm2, %v7300_v47  ;;  %v8422_v41 = vmul.f32 0.01, %v7824_v13  ;;  %v12974_v52 = vpop.f32.mrb[76].mxu1  ;;  %13174 = vmatprep.mubr.msk.f32.mxu0 %vm1890_vm2, %v8548_v16 }
 0x5ea   : > { %v7031_v44 = vadd.f32 %v12931_v9, %v15559_v28  ;;  %v7025_v60 = vpop.f32.mrb[59].mxu0  ;;  %v7839_v23 = vadd.f32 %v12974_v52, %v15824_v2  ;;  %v7833_v4 = vpop.f32.mrb[77].mxu1  ;;  %13132 = vmatmul.mubr.msk.f32.gmra.mrb[182].mxu1 %vm1890_vm2, %v7301_v45  ;;  %13175 = vmatmul.mubr.msk.f32.gmra.mrb[72].mxu0 %vm1890_vm2, %v8549_v54  ;;  %v7303_v53 = vmax.f32 %v7021_v56, %v7175_v0 }
 0x5eb   : > { %v7302_v59 = vmax.f32 %v7016_v26, %v7174_v50  ;;  %v7026_v34 = vadd.f32 %v7025_v60, %v15559_v28  ;;  %v8550_v6 = vmax.f32 %v7824_v13, %v8422_v41  ;;  %v7834_v25 = vadd.f32 %v7833_v4, %v15824_v2 }
 0x5ec   : > { %v7177_v57 = vmul.f32 0.01, %v7031_v44  ;;  %v8551_v14 = vmax.f32 %v7829_v48, %v8423_v7  ;;  %v8425_v42 = vmul.f32 0.01, %v7839_v23 }
 0x5ed   : > { %v7176_v58 = vmul.f32 0.01, %v7026_v34  ;;  %v12934_v39 = vpop.f32.mrb[60].mxu0  ;;  %13134 = vmatprep.mubr.msk.f32.mxu1 %vm1890_vm2, %v7302_v59  ;;  %v8424_v27 = vmul.f32 0.01, %v7834_v25  ;;  %v12977_v31 = vpop.f32.mrb[78].mxu1  ;;  %13177 = vmatprep.mubr.msk.f32.mxu0 %vm1890_vm2, %v8550_v6 }
 0x5ee   : > { %v7041_v8 = vadd.f32 %v12934_v39, %v15559_v28  ;;  %v7035_v51 = vpop.f32.mrb[61].mxu0  ;;  %v7849_v21 = vadd.f32 %v12977_v31, %v15824_v2  ;;  %v7843_v61 = vpop.f32.mrb[79].mxu1  ;;  %13135 = vmatmul.mubr.msk.f32.gmra.mrb[184].mxu1 %vm1890_vm2, %v7303_v53  ;;  %13178 = vmatmul.mubr.msk.f32.gmra.mrb[74].mxu0 %vm1890_vm2, %v8551_v14  ;;  %v7305_v24 = vmax.f32 %v7031_v44, %v7177_v57 }
 0x5ef   : > { %v7304_v40 = vmax.f32 %v7026_v34, %v7176_v58  ;;  %v7036_v11 = vadd.f32 %v7035_v51, %v15559_v28  ;;  %v8552_v22 = vmax.f32 %v7834_v25, %v8424_v27  ;;  %v7844_v5 = vadd.f32 %v7843_v61, %v15824_v2 }
 0x5f0   : > { %v7179_v62 = vmul.f32 0.01, %v7041_v8  ;;  %v8553_v55 = vmax.f32 %v7839_v23, %v8425_v42  ;;  %v8427_v15 = vmul.f32 0.01, %v7849_v21 }
 0x5f1   : > { %v7178_v17 = vmul.f32 0.01, %v7036_v11  ;;  %v12937_v38 = vpop.f32.mrb[62].mxu0  ;;  %13137 = vmatprep.mubr.msk.f32.mxu1 %vm1890_vm2, %v7304_v40  ;;  %v8426_v29 = vmul.f32 0.01, %v7844_v5  ;;  %v12980_v63 = vpop.f32.mrb[80].mxu1  ;;  %13180 = vmatprep.mubr.msk.f32.mxu0 %vm1890_vm2, %v8552_v22 }
 0x5f2   : > { %v7051_v35 = vadd.f32 %v12937_v38, %v15559_v28  ;;  %v7045_v1 = vpop.f32.mrb[63].mxu0  ;;  %v7859_v10 = vadd.f32 %v12980_v63, %v15824_v2  ;;  %v7853_v37 = vpop.f32.mrb[81].mxu1  ;;  %13138 = vmatmul.mubr.msk.f32.gmra.mrb[186].mxu1 %vm1890_vm2, %v7305_v24  ;;  %13181 = vmatmul.mubr.msk.f32.gmra.mrb[76].mxu0 %vm1890_vm2, %v8553_v55  ;;  %v7307_v20 = vmax.f32 %v7041_v8, %v7179_v62 }
 0x5f3   : > { %v7306_v19 = vmax.f32 %v7036_v11, %v7178_v17  ;;  %v7046_v36 = vadd.f32 %v7045_v1, %v15559_v28  ;;  %v8554_v18 = vmax.f32 %v7844_v5, %v8426_v29  ;;  %v7854_v43 = vadd.f32 %v7853_v37, %v15824_v2 }
 0x5f4   : > { %v7181_v46 = vmul.f32 0.01, %v7051_v35  ;;  %v8555_v12 = vmax.f32 %v7849_v21, %v8427_v15  ;;  %v8429_v32 = vmul.f32 0.01, %v7859_v10 }
 0x5f5   : > { %v7180_v30 = vmul.f32 0.01, %v7046_v36  ;;  %13140 = vmatprep.mubr.msk.f32.mxu1 %vm1890_vm2, %v7306_v19  ;;  %v8428_v56 = vmul.f32 0.01, %v7854_v43  ;;  %v12983_v33 = vpop.f32.mrb[82].mxu1  ;;  %13183 = vmatprep.mubr.msk.f32.mxu0 %vm1890_vm2, %v8554_v18 }
 0x5f6   : > { %v7869_v49 = vadd.f32 %v12983_v33, %v15824_v2  ;;  %v7863_v47 = vpop.f32.mrb[83].mxu1  ;;  %13141 = vmatmul.mubr.msk.f32.gmra.mrb[188].mxu1 %vm1890_vm2, %v7307_v20  ;;  %13184 = vmatmul.mubr.msk.f32.gmra.mrb[78].mxu0 %vm1890_vm2, %v8555_v12  ;;  %v7309_v3 = vmax.f32 %v7051_v35, %v7181_v46  ;;  %v8557_v16 = vmax.f32 %v7859_v10, %v8429_v32 }
 0x5f7   : > { %v7308_v28 = vmax.f32 %v7046_v36, %v7180_v30  ;;  %v8556_v48 = vmax.f32 %v7854_v43, %v8428_v56  ;;  %v7864_v26 = vadd.f32 %v7863_v47, %v15824_v2 }
 0x5f8   : > { %v8431_v13 = vmul.f32 0.01, %v7869_v49 }
 0x5f9   : > { %13143 = vmatprep.mubr.msk.f32.mxu1 %vm1890_vm2, %v7308_v28  ;;  %v8430_v45 = vmul.f32 0.01, %v7864_v26  ;;  %v12986_v0 = vpop.f32.mrb[84].mxu1  ;;  %13186 = vmatprep.mubr.msk.f32.mxu0 %vm1890_vm2, %v8556_v48 }
 0x5fa   : > { %v7879_v50 = vadd.f32 %v12986_v0, %v15824_v2  ;;  %v7873_v9 = vpop.f32.mrb[85].mxu1  ;;  %13144 = vmatmul.mubr.msk.f32.gmra.mrb[190].mxu1 %vm1890_vm2, %v7309_v3  ;;  %13187 = vmatmul.mubr.msk.f32.gmra.mrb[80].mxu0 %vm1890_vm2, %v8557_v16  ;;  %v8559_v41 = vmax.f32 %v7869_v49, %v8431_v13 }
 0x5fb   : > { %v8558_v54 = vmax.f32 %v7864_v26, %v8430_v45  ;;  %v7874_v7 = vadd.f32 %v7873_v9, %v15824_v2 }
 0x5fc   : > { %v8433_v44 = vmul.f32 0.01, %v7879_v50 }
 0x5fd   : > { %v8432_v52 = vmul.f32 0.01, %v7874_v7  ;;  %v12989_v60 = vpop.f32.mrb[86].mxu1  ;;  %13189 = vmatprep.mubr.msk.f32.mxu0 %vm1890_vm2, %v8558_v54 }
 0x5fe   : > { %v7889_v59 = vadd.f32 %v12989_v60, %v15824_v2  ;;  %v7883_v23 = vpop.f32.mrb[87].mxu1  ;;  %13190 = vmatmul.mubr.msk.f32.gmra.mrb[82].mxu0 %vm1890_vm2, %v8559_v41  ;;  %v8561_v6 = vmax.f32 %v7879_v50, %v8433_v44 }
 0x5ff   : > { %v8560_v34 = vmax.f32 %v7874_v7, %v8432_v52  ;;  %v7884_v4 = vadd.f32 %v7883_v23, %v15824_v2 }
 0x600   : > { %v8435_v25 = vmul.f32 0.01, %v7889_v59 }
 0x601   : > { %v8434_v53 = vmul.f32 0.01, %v7884_v4  ;;  %v12992_v57 = vpop.f32.mrb[88].mxu1  ;;  %13192 = vmatprep.mubr.msk.f32.mxu0 %vm1890_vm2, %v8560_v34 }
 0x602   : > { %v7899_v58 = vadd.f32 %v12992_v57, %v15824_v2  ;;  %v7893_v39 = vpop.f32.mrb[89].mxu1  ;;  %13193 = vmatmul.mubr.msk.f32.gmra.mrb[84].mxu0 %vm1890_vm2, %v8561_v6  ;;  %v8563_v27 = vmax.f32 %v7889_v59, %v8435_v25 }
 0x603   : > { %v8562_v14 = vmax.f32 %v7884_v4, %v8434_v53  ;;  %v7894_v42 = vadd.f32 %v7893_v39, %v15824_v2 }
 0x604   : > { %v8437_v8 = vmul.f32 0.01, %v7899_v58 }
 0x605   : > { %v8436_v31 = vmul.f32 0.01, %v7894_v42  ;;  %v12995_v51 = vpop.f32.mrb[90].mxu1  ;;  %13195 = vmatprep.mubr.msk.f32.mxu0 %vm1890_vm2, %v8562_v14 }
 0x606   : > { %v7909_v40 = vadd.f32 %v12995_v51, %v15824_v2  ;;  %v7903_v21 = vpop.f32.mrb[91].mxu1  ;;  %13196 = vmatmul.mubr.msk.f32.gmra.mrb[86].mxu0 %vm1890_vm2, %v8563_v27  ;;  %v8565_v22 = vmax.f32 %v7899_v58, %v8437_v8 }
 0x607   : > { %v8564_v11 = vmax.f32 %v7894_v42, %v8436_v31  ;;  %v7904_v61 = vadd.f32 %v7903_v21, %v15824_v2 }
 0x608   : > { %v8439_v5 = vmul.f32 0.01, %v7909_v40 }
 0x609   : > { %v8438_v24 = vmul.f32 0.01, %v7904_v61  ;;  %v12998_v62 = vpop.f32.mrb[92].mxu1  ;;  %13198 = vmatprep.mubr.msk.f32.mxu0 %vm1890_vm2, %v8564_v11 }
 0x60a   : > { %v7919_v17 = vadd.f32 %v12998_v62, %v15824_v2  ;;  %v7913_v38 = vpop.f32.mrb[93].mxu1  ;;  %13199 = vmatmul.mubr.msk.f32.gmra.mrb[88].mxu0 %vm1890_vm2, %v8565_v22  ;;  %v8567_v29 = vmax.f32 %v7909_v40, %v8439_v5 }
 0x60b   : > { %v8566_v55 = vmax.f32 %v7904_v61, %v8438_v24  ;;  %v7914_v15 = vadd.f32 %v7913_v38, %v15824_v2 }
 0x60c   : > { %v8441_v35 = vmul.f32 0.01, %v7919_v17 }
 0x60d   : > { %v8440_v63 = vmul.f32 0.01, %v7914_v15  ;;  %v13001_v1 = vpop.f32.mrb[94].mxu1  ;;  %13201 = vmatprep.mubr.msk.f32.mxu0 %vm1890_vm2, %v8566_v55 }
 0x60e   : > { %v7929_v19 = vadd.f32 %v13001_v1, %v15824_v2  ;;  %v7923_v10 = vpop.f32.mrb[95].mxu1  ;;  %13202 = vmatmul.mubr.msk.f32.gmra.mrb[90].mxu0 %vm1890_vm2, %v8567_v29  ;;  %v8569_v18 = vmax.f32 %v7919_v17, %v8441_v35 }
 0x60f   : > { %v8568_v36 = vmax.f32 %v7914_v15, %v8440_v63  ;;  %v7924_v37 = vadd.f32 %v7923_v10, %v15824_v2 }
 0x610   : > { %v8443_v43 = vmul.f32 0.01, %v7929_v19 }
 0x611   : > { %v8442_v20 = vmul.f32 0.01, %v7924_v37  ;;  %v13004_v46 = vpop.f32.mrb[96].mxu1  ;;  %13204 = vmatprep.mubr.msk.f32.mxu0 %vm1890_vm2, %v8568_v36 }
 0x612   : > { %v7939_v30 = vadd.f32 %v13004_v46, %v15824_v2  ;;  %v7933_v12 = vpop.f32.mrb[97].mxu1  ;;  %13205 = vmatmul.mubr.msk.f32.gmra.mrb[92].mxu0 %vm1890_vm2, %v8569_v18  ;;  %v8571_v33 = vmax.f32 %v7929_v19, %v8443_v43 }
 0x613   : > { %v8570_v32 = vmax.f32 %v7924_v37, %v8442_v20  ;;  %v7934_v56 = vadd.f32 %v7933_v12, %v15824_v2 }
 0x614   : > { %v8445_v28 = vmul.f32 0.01, %v7939_v30 }
 0x615   : > { %v8444_v49 = vmul.f32 0.01, %v7934_v56  ;;  %v13007_v47 = vpop.f32.mrb[98].mxu1  ;;  %13207 = vmatprep.mubr.msk.f32.mxu0 %vm1890_vm2, %v8570_v32 }
 0x616   : > { %v7949_v48 = vadd.f32 %v13007_v47, %v15824_v2  ;;  %v7943_v26 = vpop.f32.mrb[99].mxu1  ;;  %13208 = vmatmul.mubr.msk.f32.gmra.mrb[94].mxu0 %vm1890_vm2, %v8571_v33  ;;  %v8573_v13 = vmax.f32 %v7939_v30, %v8445_v28 }
 0x617   : > { %v8572_v3 = vmax.f32 %v7934_v56, %v8444_v49  ;;  %v7944_v16 = vadd.f32 %v7943_v26, %v15824_v2 }
 0x618   : > { %v8447_v45 = vmul.f32 0.01, %v7949_v48 }
 0x619   : > { %v8446_v0 = vmul.f32 0.01, %v7944_v16  ;;  %v13010_v50 = vpop.f32.mrb[100].mxu1  ;;  %13210 = vmatprep.mubr.msk.f32.mxu0 %vm1890_vm2, %v8572_v3 }
 0x61a   : > { %v7959_v9 = vadd.f32 %v13010_v50, %v15824_v2  ;;  %v7953_v54 = vpop.f32.mrb[101].mxu1  ;;  %13211 = vmatmul.mubr.msk.f32.gmra.mrb[96].mxu0 %vm1890_vm2, %v8573_v13  ;;  %v8575_v44 = vmax.f32 %v7949_v48, %v8447_v45 }
 0x61b   : > { %v8574_v7 = vmax.f32 %v7944_v16, %v8446_v0  ;;  %v7954_v41 = vadd.f32 %v7953_v54, %v15824_v2 }
 0x61c   : > { %v8449_v52 = vmul.f32 0.01, %v7959_v9 }
 0x61d   : > { %v8448_v60 = vmul.f32 0.01, %v7954_v41  ;;  %v13013_v59 = vpop.f32.mrb[102].mxu1  ;;  %13213 = vmatprep.mubr.msk.f32.mxu0 %vm1890_vm2, %v8574_v7 }
 0x61e   : > { %v7969_v23 = vadd.f32 %v13013_v59, %v15824_v2  ;;  %v7963_v34 = vpop.f32.mrb[103].mxu1  ;;  %13214 = vmatmul.mubr.msk.f32.gmra.mrb[98].mxu0 %vm1890_vm2, %v8575_v44  ;;  %v8577_v25 = vmax.f32 %v7959_v9, %v8449_v52 }
 0x61f   : > { %v8576_v4 = vmax.f32 %v7954_v41, %v8448_v60  ;;  %v7964_v6 = vadd.f32 %v7963_v34, %v15824_v2 }
 0x620   : > { %v8451_v53 = vmul.f32 0.01, %v7969_v23 }
 0x621   : > { %v8450_v57 = vmul.f32 0.01, %v7964_v6  ;;  %v13016_v58 = vpop.f32.mrb[104].mxu1  ;;  %13216 = vmatprep.mubr.msk.f32.mxu0 %vm1890_vm2, %v8576_v4 }
 0x622   : > { %v7979_v39 = vadd.f32 %v13016_v58, %v15824_v2  ;;  %v7973_v14 = vpop.f32.mrb[105].mxu1  ;;  %13217 = vmatmul.mubr.msk.f32.gmra.mrb[100].mxu0 %vm1890_vm2, %v8577_v25  ;;  %v8579_v8 = vmax.f32 %v7969_v23, %v8451_v53 }
 0x623   : > { %v8578_v42 = vmax.f32 %v7964_v6, %v8450_v57  ;;  %v7974_v27 = vadd.f32 %v7973_v14, %v15824_v2 }
 0x624   : > { %v8453_v31 = vmul.f32 0.01, %v7979_v39 }
 0x625   : > { %v8452_v51 = vmul.f32 0.01, %v7974_v27  ;;  %v13019_v40 = vpop.f32.mrb[106].mxu1  ;;  %13219 = vmatprep.mubr.msk.f32.mxu0 %vm1890_vm2, %v8578_v42 }
 0x626   : > { %v7989_v21 = vadd.f32 %v13019_v40, %v15824_v2  ;;  %v7983_v11 = vpop.f32.mrb[107].mxu1  ;;  %13220 = vmatmul.mubr.msk.f32.gmra.mrb[102].mxu0 %vm1890_vm2, %v8579_v8  ;;  %v8581_v5 = vmax.f32 %v7979_v39, %v8453_v31 }
 0x627   : > { %v8580_v61 = vmax.f32 %v7974_v27, %v8452_v51  ;;  %v7984_v22 = vadd.f32 %v7983_v11, %v15824_v2 }
 0x628   : > { %v8455_v24 = vmul.f32 0.01, %v7989_v21 }
 0x629   : > { %v8454_v62 = vmul.f32 0.01, %v7984_v22  ;;  %v13022_v17 = vpop.f32.mrb[108].mxu1  ;;  %13222 = vmatprep.mubr.msk.f32.mxu0 %vm1890_vm2, %v8580_v61 }
 0x62a   : > { %v7999_v38 = vadd.f32 %v13022_v17, %v15824_v2  ;;  %v7993_v55 = vpop.f32.mrb[109].mxu1  ;;  %13223 = vmatmul.mubr.msk.f32.gmra.mrb[104].mxu0 %vm1890_vm2, %v8581_v5  ;;  %v8583_v35 = vmax.f32 %v7989_v21, %v8455_v24 }
 0x62b   : > { %v8582_v15 = vmax.f32 %v7984_v22, %v8454_v62  ;;  %v7994_v29 = vadd.f32 %v7993_v55, %v15824_v2 }
 0x62c   : > { %v8457_v63 = vmul.f32 0.01, %v7999_v38 }
 0x62d   : > { %v8456_v1 = vmul.f32 0.01, %v7994_v29  ;;  %v13025_v19 = vpop.f32.mrb[110].mxu1  ;;  %13225 = vmatprep.mubr.msk.f32.mxu0 %vm1890_vm2, %v8582_v15 }
 0x62e   : > { %v8009_v10 = vadd.f32 %v13025_v19, %v15824_v2  ;;  %v8003_v36 = vpop.f32.mrb[111].mxu1  ;;  %13226 = vmatmul.mubr.msk.f32.gmra.mrb[106].mxu0 %vm1890_vm2, %v8583_v35  ;;  %v8585_v43 = vmax.f32 %v7999_v38, %v8457_v63 }
 0x62f   : > { %v8584_v37 = vmax.f32 %v7994_v29, %v8456_v1  ;;  %v8004_v18 = vadd.f32 %v8003_v36, %v15824_v2 }
 0x630   : > { %v8459_v20 = vmul.f32 0.01, %v8009_v10 }
 0x631   : > { %v8458_v46 = vmul.f32 0.01, %v8004_v18  ;;  %v13028_v30 = vpop.f32.mrb[112].mxu1  ;;  %13228 = vmatprep.mubr.msk.f32.mxu0 %vm1890_vm2, %v8584_v37 }
 0x632   : > { %v8019_v12 = vadd.f32 %v13028_v30, %v15824_v2  ;;  %v8013_v32 = vpop.f32.mrb[113].mxu1  ;;  %13229 = vmatmul.mubr.msk.f32.gmra.mrb[108].mxu0 %vm1890_vm2, %v8585_v43  ;;  %v8587_v28 = vmax.f32 %v8009_v10, %v8459_v20 }
 0x633   : > { %v8586_v56 = vmax.f32 %v8004_v18, %v8458_v46  ;;  %v8014_v33 = vadd.f32 %v8013_v32, %v15824_v2 }
 0x634   : > { %v8461_v49 = vmul.f32 0.01, %v8019_v12 }
 0x635   : > { %v8460_v47 = vmul.f32 0.01, %v8014_v33  ;;  %v13031_v48 = vpop.f32.mrb[114].mxu1  ;;  %13231 = vmatprep.mubr.msk.f32.mxu0 %vm1890_vm2, %v8586_v56 }
 0x636   : > { %v8029_v26 = vadd.f32 %v13031_v48, %v15824_v2  ;;  %v8023_v3 = vpop.f32.mrb[115].mxu1  ;;  %13232 = vmatmul.mubr.msk.f32.gmra.mrb[110].mxu0 %vm1890_vm2, %v8587_v28  ;;  %v8589_v45 = vmax.f32 %v8019_v12, %v8461_v49 }
 0x637   : > { %v8588_v16 = vmax.f32 %v8014_v33, %v8460_v47  ;;  %v8024_v13 = vadd.f32 %v8023_v3, %v15824_v2 }
 0x638   : > { %v8463_v0 = vmul.f32 0.01, %v8029_v26 }
 0x639   : > { %v8462_v50 = vmul.f32 0.01, %v8024_v13  ;;  %v13034_v9 = vpop.f32.mrb[116].mxu1  ;;  %13234 = vmatprep.mubr.msk.f32.mxu0 %vm1890_vm2, %v8588_v16 }
 0x63a   : > { %v8039_v54 = vadd.f32 %v13034_v9, %v15824_v2  ;;  %v8033_v7 = vpop.f32.mrb[117].mxu1  ;;  %13235 = vmatmul.mubr.msk.f32.gmra.mrb[112].mxu0 %vm1890_vm2, %v8589_v45  ;;  %v8591_v52 = vmax.f32 %v8029_v26, %v8463_v0 }
 0x63b   : > { %v8590_v41 = vmax.f32 %v8024_v13, %v8462_v50  ;;  %v8034_v44 = vadd.f32 %v8033_v7, %v15824_v2 }
 0x63c   : > { %v8465_v60 = vmul.f32 0.01, %v8039_v54 }
 0x63d   : > { %v8464_v59 = vmul.f32 0.01, %v8034_v44  ;;  %v13037_v23 = vpop.f32.mrb[118].mxu1  ;;  %13237 = vmatprep.mubr.msk.f32.mxu0 %vm1890_vm2, %v8590_v41 }
 0x63e   : > { %v8049_v34 = vadd.f32 %v13037_v23, %v15824_v2  ;;  %v8043_v4 = vpop.f32.mrb[119].mxu1  ;;  %13238 = vmatmul.mubr.msk.f32.gmra.mrb[114].mxu0 %vm1890_vm2, %v8591_v52  ;;  %v8593_v53 = vmax.f32 %v8039_v54, %v8465_v60 }
 0x63f   : > { %v8592_v6 = vmax.f32 %v8034_v44, %v8464_v59  ;;  %v8044_v25 = vadd.f32 %v8043_v4, %v15824_v2 }
 0x640   : > { %v8467_v57 = vmul.f32 0.01, %v8049_v34 }
 0x641   : > { %v8466_v58 = vmul.f32 0.01, %v8044_v25  ;;  %v13040_v39 = vpop.f32.mrb[120].mxu1  ;;  %13240 = vmatprep.mubr.msk.f32.mxu0 %vm1890_vm2, %v8592_v6 }
 0x642   : > { %v8059_v14 = vadd.f32 %v13040_v39, %v15824_v2  ;;  %v8053_v42 = vpop.f32.mrb[121].mxu1  ;;  %13241 = vmatmul.mubr.msk.f32.gmra.mrb[116].mxu0 %vm1890_vm2, %v8593_v53  ;;  %v8595_v31 = vmax.f32 %v8049_v34, %v8467_v57 }
 0x643   : > { %v8594_v27 = vmax.f32 %v8044_v25, %v8466_v58  ;;  %v8054_v8 = vadd.f32 %v8053_v42, %v15824_v2 }
 0x644   : > { %v8469_v51 = vmul.f32 0.01, %v8059_v14 }
 0x645   : > { %v8468_v40 = vmul.f32 0.01, %v8054_v8  ;;  %v13043_v21 = vpop.f32.mrb[122].mxu1  ;;  %13243 = vmatprep.mubr.msk.f32.mxu0 %vm1890_vm2, %v8594_v27 }
 0x646   : > { %v8069_v11 = vadd.f32 %v13043_v21, %v15824_v2  ;;  %v8063_v61 = vpop.f32.mrb[123].mxu1  ;;  %13244 = vmatmul.mubr.msk.f32.gmra.mrb[118].mxu0 %vm1890_vm2, %v8595_v31  ;;  %v8597_v24 = vmax.f32 %v8059_v14, %v8469_v51 }
 0x647   : > { %v8596_v22 = vmax.f32 %v8054_v8, %v8468_v40  ;;  %v8064_v5 = vadd.f32 %v8063_v61, %v15824_v2 }
 0x648   : > { %v8471_v62 = vmul.f32 0.01, %v8069_v11 }
 0x649   : > { %v8470_v17 = vmul.f32 0.01, %v8064_v5  ;;  %v13046_v38 = vpop.f32.mrb[124].mxu1  ;;  %13246 = vmatprep.mubr.msk.f32.mxu0 %vm1890_vm2, %v8596_v22 }
 0x64a   : > { %v8079_v55 = vadd.f32 %v13046_v38, %v15824_v2  ;;  %v8073_v15 = vpop.f32.mrb[125].mxu1  ;;  %13247 = vmatmul.mubr.msk.f32.gmra.mrb[120].mxu0 %vm1890_vm2, %v8597_v24  ;;  %v8599_v63 = vmax.f32 %v8069_v11, %v8471_v62 }
 0x64b   : > { %v8598_v29 = vmax.f32 %v8064_v5, %v8470_v17  ;;  %v8074_v35 = vadd.f32 %v8073_v15, %v15824_v2 }
 0x64c   : > { %v8473_v1 = vmul.f32 0.01, %v8079_v55 }
 0x64d   : > { %v8472_v19 = vmul.f32 0.01, %v8074_v35  ;;  %v13049_v10 = vpop.f32.mrb[126].mxu1  ;;  %13249 = vmatprep.mubr.msk.f32.mxu0 %vm1890_vm2, %v8598_v29 }
 0x64e   : > { %v8089_v36 = vadd.f32 %v13049_v10, %v15824_v2  ;;  %v8083_v37 = vpop.f32.mrb[127].mxu1  ;;  %13250 = vmatmul.mubr.msk.f32.gmra.mrb[122].mxu0 %vm1890_vm2, %v8599_v63  ;;  %v8601_v20 = vmax.f32 %v8079_v55, %v8473_v1 }
 0x64f   : > { %v8600_v18 = vmax.f32 %v8074_v35, %v8472_v19  ;;  %v8084_v43 = vadd.f32 %v8083_v37, %v15824_v2 }
 0x650   : > { %v8475_v46 = vmul.f32 0.01, %v8089_v36 }
 0x651   : > { %v8474_v30 = vmul.f32 0.01, %v8084_v43  ;;  %v13052_v12 = vpop.f32.mrb[128].mxu1  ;;  %13252 = vmatprep.mubr.msk.f32.mxu0 %vm1890_vm2, %v8600_v18 }
 0x652   : > { %v8099_v32 = vadd.f32 %v13052_v12, %v15824_v2  ;;  %v8093_v56 = vpop.f32.mrb[129].mxu1  ;;  %13253 = vmatmul.mubr.msk.f32.gmra.mrb[124].mxu0 %vm1890_vm2, %v8601_v20  ;;  %v8603_v49 = vmax.f32 %v8089_v36, %v8475_v46 }
 0x653   : > { %v8602_v33 = vmax.f32 %v8084_v43, %v8474_v30  ;;  %v8094_v28 = vadd.f32 %v8093_v56, %v15824_v2 }
 0x654   : > { %v8477_v47 = vmul.f32 0.01, %v8099_v32 }
 0x655   : > { %v8476_v48 = vmul.f32 0.01, %v8094_v28  ;;  %v13055_v26 = vpop.f32.mrb[130].mxu1  ;;  %13255 = vmatprep.mubr.msk.f32.mxu0 %vm1890_vm2, %v8602_v33 }
 0x656   : > { %v8109_v3 = vadd.f32 %v13055_v26, %v15824_v2  ;;  %v8103_v16 = vpop.f32.mrb[131].mxu1  ;;  %13256 = vmatmul.mubr.msk.f32.gmra.mrb[126].mxu0 %vm1890_vm2, %v8603_v49  ;;  %v8605_v0 = vmax.f32 %v8099_v32, %v8477_v47 }
 0x657   : > { %v8604_v13 = vmax.f32 %v8094_v28, %v8476_v48  ;;  %v8104_v45 = vadd.f32 %v8103_v16, %v15824_v2 }
 0x658   : > { %v8479_v50 = vmul.f32 0.01, %v8109_v3 }
 0x659   : > { %v8478_v9 = vmul.f32 0.01, %v8104_v45  ;;  %v13058_v54 = vpop.f32.mrb[132].mxu1  ;;  %13258 = vmatprep.mubr.msk.f32.mxu0 %vm1890_vm2, %v8604_v13 }
 0x65a   : > { %v8119_v7 = vadd.f32 %v13058_v54, %v15824_v2  ;;  %v8113_v41 = vpop.f32.mrb[133].mxu1  ;;  %13259 = vmatmul.mubr.msk.f32.gmra.mrb[128].mxu0 %vm1890_vm2, %v8605_v0  ;;  %v8607_v60 = vmax.f32 %v8109_v3, %v8479_v50 }
 0x65b   : > { %v8606_v44 = vmax.f32 %v8104_v45, %v8478_v9  ;;  %v8114_v52 = vadd.f32 %v8113_v41, %v15824_v2 }
 0x65c   : > { %v8481_v59 = vmul.f32 0.01, %v8119_v7 }
 0x65d   : > { %v8480_v23 = vmul.f32 0.01, %v8114_v52  ;;  %v13061_v34 = vpop.f32.mrb[134].mxu1  ;;  %13261 = vmatprep.mubr.msk.f32.mxu0 %vm1890_vm2, %v8606_v44 }
 0x65e   : > { %v8129_v4 = vadd.f32 %v13061_v34, %v15824_v2  ;;  %v8123_v6 = vpop.f32.mrb[135].mxu1  ;;  %13262 = vmatmul.mubr.msk.f32.gmra.mrb[130].mxu0 %vm1890_vm2, %v8607_v60  ;;  %v8609_v57 = vmax.f32 %v8119_v7, %v8481_v59 }
 0x65f   : > { %v8608_v25 = vmax.f32 %v8114_v52, %v8480_v23  ;;  %v8124_v53 = vadd.f32 %v8123_v6, %v15824_v2 }
 0x660   : > { %v8483_v58 = vmul.f32 0.01, %v8129_v4 }
 0x661   : > { %v8482_v39 = vmul.f32 0.01, %v8124_v53  ;;  %v13064_v14 = vpop.f32.mrb[136].mxu1  ;;  %13264 = vmatprep.mubr.msk.f32.mxu0 %vm1890_vm2, %v8608_v25 }
 0x662   : > { %v8139_v42 = vadd.f32 %v13064_v14, %v15824_v2  ;;  %v8133_v27 = vpop.f32.mrb[137].mxu1  ;;  %13265 = vmatmul.mubr.msk.f32.gmra.mrb[132].mxu0 %vm1890_vm2, %v8609_v57  ;;  %v8611_v51 = vmax.f32 %v8129_v4, %v8483_v58 }
 0x663   : > { %v8610_v8 = vmax.f32 %v8124_v53, %v8482_v39  ;;  %v8134_v31 = vadd.f32 %v8133_v27, %v15824_v2 }
 0x664   : > { %v8485_v40 = vmul.f32 0.01, %v8139_v42 }
 0x665   : > { %v8484_v21 = vmul.f32 0.01, %v8134_v31  ;;  %v13067_v11 = vpop.f32.mrb[138].mxu1  ;;  %13267 = vmatprep.mubr.msk.f32.mxu0 %vm1890_vm2, %v8610_v8 }
 0x666   : > { %v8149_v61 = vadd.f32 %v13067_v11, %v15824_v2  ;;  %v8143_v22 = vpop.f32.mrb[139].mxu1  ;;  %13268 = vmatmul.mubr.msk.f32.gmra.mrb[134].mxu0 %vm1890_vm2, %v8611_v51  ;;  %v8613_v62 = vmax.f32 %v8139_v42, %v8485_v40 }
 0x667   : > { %v8612_v5 = vmax.f32 %v8134_v31, %v8484_v21  ;;  %v8144_v24 = vadd.f32 %v8143_v22, %v15824_v2 }
 0x668   : > { %v8487_v17 = vmul.f32 0.01, %v8149_v61 }
 0x669   : > { %v8486_v38 = vmul.f32 0.01, %v8144_v24  ;;  %v13070_v55 = vpop.f32.mrb[140].mxu1  ;;  %13270 = vmatprep.mubr.msk.f32.mxu0 %vm1890_vm2, %v8612_v5 }
 0x66a   : > { %v8159_v15 = vadd.f32 %v13070_v55, %v15824_v2  ;;  %v8153_v29 = vpop.f32.mrb[141].mxu1  ;;  %13271 = vmatmul.mubr.msk.f32.gmra.mrb[136].mxu0 %vm1890_vm2, %v8613_v62  ;;  %v8615_v1 = vmax.f32 %v8149_v61, %v8487_v17 }
 0x66b   : > { %v8614_v35 = vmax.f32 %v8144_v24, %v8486_v38  ;;  %v8154_v63 = vadd.f32 %v8153_v29, %v15824_v2 }
 0x66c   : > { %v8489_v19 = vmul.f32 0.01, %v8159_v15 }
 0x66d   : > { %v8488_v10 = vmul.f32 0.01, %v8154_v63  ;;  %v13073_v36 = vpop.f32.mrb[142].mxu1  ;;  %13273 = vmatprep.mubr.msk.f32.mxu0 %vm1890_vm2, %v8614_v35 }
 0x66e   : > { %v8169_v37 = vadd.f32 %v13073_v36, %v15824_v2  ;;  %v8163_v18 = vpop.f32.mrb[143].mxu1  ;;  %13274 = vmatmul.mubr.msk.f32.gmra.mrb[138].mxu0 %vm1890_vm2, %v8615_v1  ;;  %v8617_v46 = vmax.f32 %v8159_v15, %v8489_v19 }
 0x66f   : > { %v8616_v43 = vmax.f32 %v8154_v63, %v8488_v10  ;;  %v8164_v20 = vadd.f32 %v8163_v18, %v15824_v2 }
 0x670   : > { %v8491_v30 = vmul.f32 0.01, %v8169_v37 }
 0x671   : > { %v8490_v12 = vmul.f32 0.01, %v8164_v20  ;;  %v13076_v32 = vpop.f32.mrb[144].mxu1  ;;  %13276 = vmatprep.mubr.msk.f32.mxu0 %vm1890_vm2, %v8616_v43 }
 0x672   : > { %v8179_v56 = vadd.f32 %v13076_v32, %v15824_v2  ;;  %v8173_v33 = vpop.f32.mrb[145].mxu1  ;;  %13277 = vmatmul.mubr.msk.f32.gmra.mrb[140].mxu0 %vm1890_vm2, %v8617_v46  ;;  %v8619_v47 = vmax.f32 %v8169_v37, %v8491_v30 }
 0x673   : > { %v8618_v28 = vmax.f32 %v8164_v20, %v8490_v12  ;;  %v8174_v49 = vadd.f32 %v8173_v33, %v15824_v2 }
 0x674   : > { %v8493_v48 = vmul.f32 0.01, %v8179_v56 }
 0x675   : > { %v8492_v26 = vmul.f32 0.01, %v8174_v49  ;;  %v13079_v3 = vpop.f32.mrb[146].mxu1  ;;  %13279 = vmatprep.mubr.msk.f32.mxu0 %vm1890_vm2, %v8618_v28 }
 0x676   : > { %v8189_v16 = vadd.f32 %v13079_v3, %v15824_v2  ;;  %v8183_v13 = vpop.f32.mrb[147].mxu1  ;;  %13280 = vmatmul.mubr.msk.f32.gmra.mrb[142].mxu0 %vm1890_vm2, %v8619_v47  ;;  %v8621_v50 = vmax.f32 %v8179_v56, %v8493_v48 }
 0x677   : > { %v8620_v45 = vmax.f32 %v8174_v49, %v8492_v26  ;;  %v8184_v0 = vadd.f32 %v8183_v13, %v15824_v2 }
 0x678   : > { %v8495_v9 = vmul.f32 0.01, %v8189_v16 }
 0x679   : > { %v8494_v54 = vmul.f32 0.01, %v8184_v0  ;;  %v13082_v7 = vpop.f32.mrb[148].mxu1  ;;  %13282 = vmatprep.mubr.msk.f32.mxu0 %vm1890_vm2, %v8620_v45 }
 0x67a   : > { %v8199_v41 = vadd.f32 %v13082_v7, %v15824_v2  ;;  %v8193_v44 = vpop.f32.mrb[149].mxu1  ;;  %13283 = vmatmul.mubr.msk.f32.gmra.mrb[144].mxu0 %vm1890_vm2, %v8621_v50  ;;  %v8623_v59 = vmax.f32 %v8189_v16, %v8495_v9 }
 0x67b   : > { %v8622_v52 = vmax.f32 %v8184_v0, %v8494_v54  ;;  %v8194_v60 = vadd.f32 %v8193_v44, %v15824_v2 }
 0x67c   : > { %v8497_v23 = vmul.f32 0.01, %v8199_v41 }
 0x67d   : > { %v8496_v34 = vmul.f32 0.01, %v8194_v60  ;;  %v13085_v4 = vpop.f32.mrb[150].mxu1  ;;  %13285 = vmatprep.mubr.msk.f32.mxu0 %vm1890_vm2, %v8622_v52 }
 0x67e   : > { %v8209_v6 = vadd.f32 %v13085_v4, %v15824_v2  ;;  %v8203_v25 = vpop.f32.mrb[151].mxu1  ;;  %13286 = vmatmul.mubr.msk.f32.gmra.mrb[146].mxu0 %vm1890_vm2, %v8623_v59  ;;  %v8625_v58 = vmax.f32 %v8199_v41, %v8497_v23 }
 0x67f   : > { %v8624_v53 = vmax.f32 %v8194_v60, %v8496_v34  ;;  %v8204_v57 = vadd.f32 %v8203_v25, %v15824_v2 }
 0x680   : > { %v8499_v39 = vmul.f32 0.01, %v8209_v6 }
 0x681   : > { %v8498_v14 = vmul.f32 0.01, %v8204_v57  ;;  %v13088_v42 = vpop.f32.mrb[152].mxu1  ;;  %13288 = vmatprep.mubr.msk.f32.mxu0 %vm1890_vm2, %v8624_v53 }
 0x682   : > { %v8219_v27 = vadd.f32 %v13088_v42, %v15824_v2  ;;  %v8213_v8 = vpop.f32.mrb[153].mxu1  ;;  %13289 = vmatmul.mubr.msk.f32.gmra.mrb[148].mxu0 %vm1890_vm2, %v8625_v58  ;;  %v8627_v40 = vmax.f32 %v8209_v6, %v8499_v39 }
 0x683   : > { %v8626_v31 = vmax.f32 %v8204_v57, %v8498_v14  ;;  %v8214_v51 = vadd.f32 %v8213_v8, %v15824_v2 }
 0x684   : > { %v8501_v21 = vmul.f32 0.01, %v8219_v27 }
 0x685   : > { %v8500_v11 = vmul.f32 0.01, %v8214_v51  ;;  %v13091_v61 = vpop.f32.mrb[154].mxu1  ;;  %13291 = vmatprep.mubr.msk.f32.mxu0 %vm1890_vm2, %v8626_v31 }
 0x686   : > { %v8229_v22 = vadd.f32 %v13091_v61, %v15824_v2  ;;  %v8223_v5 = vpop.f32.mrb[155].mxu1  ;;  %13292 = vmatmul.mubr.msk.f32.gmra.mrb[150].mxu0 %vm1890_vm2, %v8627_v40  ;;  %v8629_v17 = vmax.f32 %v8219_v27, %v8501_v21 }
 0x687   : > { %v8628_v24 = vmax.f32 %v8214_v51, %v8500_v11  ;;  %v8224_v62 = vadd.f32 %v8223_v5, %v15824_v2 }
 0x688   : > { %v8503_v38 = vmul.f32 0.01, %v8229_v22 }
 0x689   : > { %v8502_v55 = vmul.f32 0.01, %v8224_v62  ;;  %v13094_v15 = vpop.f32.mrb[156].mxu1  ;;  %13294 = vmatprep.mubr.msk.f32.mxu0 %vm1890_vm2, %v8628_v24 }
 0x68a   : > { %v8239_v29 = vadd.f32 %v13094_v15, %v15824_v2  ;;  %v8233_v35 = vpop.f32.mrb[157].mxu1  ;;  %13295 = vmatmul.mubr.msk.f32.gmra.mrb[152].mxu0 %vm1890_vm2, %v8629_v17  ;;  %v8631_v19 = vmax.f32 %v8229_v22, %v8503_v38 }
 0x68b   : > { %v8630_v63 = vmax.f32 %v8224_v62, %v8502_v55  ;;  %v8234_v1 = vadd.f32 %v8233_v35, %v15824_v2 }
 0x68c   : > { %v8505_v10 = vmul.f32 0.01, %v8239_v29 }
 0x68d   : > { %v8504_v36 = vmul.f32 0.01, %v8234_v1  ;;  %v13097_v37 = vpop.f32.mrb[158].mxu1  ;;  %13297 = vmatprep.mubr.msk.f32.mxu0 %vm1890_vm2, %v8630_v63 }
 0x68e   : > { %v8249_v18 = vadd.f32 %v13097_v37, %v15824_v2  ;;  %v8243_v43 = vpop.f32.mrb[159].mxu1  ;;  %13298 = vmatmul.mubr.msk.f32.gmra.mrb[154].mxu0 %vm1890_vm2, %v8631_v19  ;;  %v8633_v30 = vmax.f32 %v8239_v29, %v8505_v10  ;;  %v16085_v10 = vld [vmem:[#allocation9] ss:$0 sm:$0xff] }
 0x68f   : > { %v8632_v20 = vmax.f32 %v8234_v1, %v8504_v36  ;;  %v8244_v46 = vadd.f32 %v8243_v43, %v15824_v2 }
 0x690   : > { %v8507_v12 = vmul.f32 0.01, %v8249_v18 }
 0x691   : > { %v8506_v32 = vmul.f32 0.01, %v8244_v46  ;;  %v13100_v56 = vpop.f32.mrb[160].mxu1  ;;  %13300 = vmatprep.mubr.msk.f32.mxu0 %vm1890_vm2, %v8632_v20 }
 0x692   : > { %v8259_v33 = vadd.f32 %v13100_v56, %v15824_v2  ;;  %v8253_v28 = vpop.f32.mrb[161].mxu1  ;;  %13301 = vmatmul.mubr.msk.f32.gmra.mrb[156].mxu0 %vm1890_vm2, %v8633_v30  ;;  %v8635_v48 = vmax.f32 %v8249_v18, %v8507_v12 }
 0x693   : > { %v8634_v49 = vmax.f32 %v8244_v46, %v8506_v32  ;;  %v8254_v47 = vadd.f32 %v8253_v28, %v15824_v2 }
 0x694   : > { %v8509_v26 = vmul.f32 0.01, %v8259_v33 }
 0x695   : > { %v8508_v3 = vmul.f32 0.01, %v8254_v47  ;;  %v13103_v16 = vpop.f32.mrb[162].mxu1  ;;  %13303 = vmatprep.mubr.msk.f32.mxu0 %vm1890_vm2, %v8634_v49 }
 0x696   : > { %v8269_v13 = vadd.f32 %v13103_v16, %v15824_v2  ;;  %v8263_v45 = vpop.f32.mrb[163].mxu1  ;;  %13304 = vmatmul.mubr.msk.f32.gmra.mrb[158].mxu0 %vm1890_vm2, %v8635_v48  ;;  %v8637_v9 = vmax.f32 %v8259_v33, %v8509_v26 }
 0x697   : > { %v8636_v0 = vmax.f32 %v8254_v47, %v8508_v3  ;;  %v8264_v50 = vadd.f32 %v8263_v45, %v15824_v2 }
 0x698   : > { %v8511_v54 = vmul.f32 0.01, %v8269_v13 }
 0x699   : > { %v8510_v7 = vmul.f32 0.01, %v8264_v50  ;;  %v13106_v41 = vpop.f32.mrb[164].mxu1  ;;  %13306 = vmatprep.mubr.msk.f32.mxu0 %vm1890_vm2, %v8636_v0 }
 0x69a   : > { %v8279_v44 = vadd.f32 %v13106_v41, %v15824_v2  ;;  %v8273_v52 = vpop.f32.mrb[165].mxu1  ;;  %13307 = vmatmul.mubr.msk.f32.gmra.mrb[160].mxu0 %vm1890_vm2, %v8637_v9  ;;  %v8639_v23 = vmax.f32 %v8269_v13, %v8511_v54 }
 0x69b   : > { %v8638_v60 = vmax.f32 %v8264_v50, %v8510_v7  ;;  %v8274_v59 = vadd.f32 %v8273_v52, %v15824_v2 }
 0x69c   : > { %v8513_v34 = vmul.f32 0.01, %v8279_v44 }
 0x69d   : > { %v8512_v4 = vmul.f32 0.01, %v8274_v59  ;;  %v13109_v6 = vpop.f32.mrb[166].mxu1  ;;  %13309 = vmatprep.mubr.msk.f32.mxu0 %vm1890_vm2, %v8638_v60 }
 0x69e   : > { %v8289_v25 = vadd.f32 %v13109_v6, %v15824_v2  ;;  %v8283_v53 = vpop.f32.mrb[167].mxu1  ;;  %13310 = vmatmul.mubr.msk.f32.gmra.mrb[162].mxu0 %vm1890_vm2, %v8639_v23  ;;  %v8641_v39 = vmax.f32 %v8279_v44, %v8513_v34 }
 0x69f   : > { %v8640_v57 = vmax.f32 %v8274_v59, %v8512_v4  ;;  %v8284_v58 = vadd.f32 %v8283_v53, %v15824_v2 }
 0x6a0   : > { %v8515_v14 = vmul.f32 0.01, %v8289_v25 }
 0x6a1   : > { %v8514_v42 = vmul.f32 0.01, %v8284_v58  ;;  %v13112_v27 = vpop.f32.mrb[168].mxu1  ;;  %13312 = vmatprep.mubr.msk.f32.mxu0 %vm1890_vm2, %v8640_v57 }
 0x6a2   : > { %v8299_v8 = vadd.f32 %v13112_v27, %v15824_v2  ;;  %v8293_v31 = vpop.f32.mrb[169].mxu1  ;;  %13313 = vmatmul.mubr.msk.f32.gmra.mrb[164].mxu0 %vm1890_vm2, %v8641_v39  ;;  %v8643_v21 = vmax.f32 %v8289_v25, %v8515_v14 }
 0x6a3   : > { %v8642_v51 = vmax.f32 %v8284_v58, %v8514_v42  ;;  %v8294_v40 = vadd.f32 %v8293_v31, %v15824_v2 }
 0x6a4   : > { %v8517_v11 = vmul.f32 0.01, %v8299_v8 }
 0x6a5   : > { %v8516_v61 = vmul.f32 0.01, %v8294_v40  ;;  %v13115_v22 = vpop.f32.mrb[170].mxu1  ;;  %13315 = vmatprep.mubr.msk.f32.mxu0 %vm1890_vm2, %v8642_v51 }
 0x6a6   : > { %v8309_v5 = vadd.f32 %v13115_v22, %v15824_v2  ;;  %v8303_v24 = vpop.f32.mrb[171].mxu1  ;;  %13316 = vmatmul.mubr.msk.f32.gmra.mrb[166].mxu0 %vm1890_vm2, %v8643_v21  ;;  %v8645_v38 = vmax.f32 %v8299_v8, %v8517_v11 }
 0x6a7   : > { %v8644_v62 = vmax.f32 %v8294_v40, %v8516_v61  ;;  %v8304_v17 = vadd.f32 %v8303_v24, %v15824_v2 }
 0x6a8   : > { %v8519_v55 = vmul.f32 0.01, %v8309_v5 }
 0x6a9   : > { %v8518_v15 = vmul.f32 0.01, %v8304_v17  ;;  %v13118_v29 = vpop.f32.mrb[172].mxu1  ;;  %13318 = vmatprep.mubr.msk.f32.mxu0 %vm1890_vm2, %v8644_v62 }
 0x6aa   : > { %v8319_v35 = vadd.f32 %v13118_v29, %v15824_v2  ;;  %v8313_v63 = vpop.f32.mrb[173].mxu1  ;;  %13319 = vmatmul.mubr.msk.f32.gmra.mrb[168].mxu0 %vm1890_vm2, %v8645_v38  ;;  %v8647_v36 = vmax.f32 %v8309_v5, %v8519_v55 }
 0x6ab   : > { %v8646_v1 = vmax.f32 %v8304_v17, %v8518_v15  ;;  %v8314_v19 = vadd.f32 %v8313_v63, %v15824_v2 }
 0x6ac   : > { %v8521_v37 = vmul.f32 0.01, %v8319_v35 }
 0x6ad   : > { %v8520_v18 = vmul.f32 0.01, %v8314_v19  ;;  %v13121_v43 = vpop.f32.mrb[174].mxu1  ;;  %13321 = vmatprep.mubr.msk.f32.mxu0 %vm1890_vm2, %v8646_v1  ;;  %v13164_v46 = vpop.f32.mrb[64].mxu0 }
 0x6ae   : > { %v8329_v20 = vadd.f32 %v13121_v43, %v15824_v2  ;;  %v8323_v30 = vpop.f32.mrb[175].mxu1  ;;  %v9139_v32 = vadd.f32 %v13164_v46, %v16085_v10  ;;  %v9133_v33 = vpop.f32.mrb[65].mxu0  ;;  %13322 = vmatmul.mubr.msk.f32.gmra.mrb[170].mxu0 %vm1890_vm2, %v8647_v36  ;;  %v8649_v49 = vmax.f32 %v8319_v35, %v8521_v37 }
 0x6af   : > { %v8648_v12 = vmax.f32 %v8314_v19, %v8520_v18  ;;  %v8324_v56 = vadd.f32 %v8323_v30, %v15824_v2  ;;  %v9134_v28 = vadd.f32 %v16085_v10, %v9133_v33 }
 0x6b0   : > { %v8523_v47 = vmul.f32 0.01, %v8329_v20  ;;  %9774 = vst.msk [vmem:[%s16091_s21 + $0x8] sm:$0xff] %vm9772_vm3, %v9139_v32 }
 0x6b1   : > { %v8522_v48 = vmul.f32 0.01, %v8324_v56  ;;  %v13124_v26 = vpop.f32.mrb[176].mxu1  ;;  %13324 = vmatprep.mubr.msk.f32.mxu0 %vm1890_vm2, %v8648_v12  ;;  %9773 = vst.msk [vmem:[%s16091_s21] sm:$0xff] %vm9772_vm3, %v9134_v28  ;;  %v13167_v16 = vpop.f32.mrb[66].mxu0 }
 0x6b2   : > { %v8339_v3 = vadd.f32 %v13124_v26, %v15824_v2  ;;  %v8333_v13 = vpop.f32.mrb[177].mxu1  ;;  %v9149_v0 = vadd.f32 %v13167_v16, %v16085_v10  ;;  %v9143_v9 = vpop.f32.mrb[67].mxu0  ;;  %13325 = vmatmul.mubr.msk.f32.gmra.mrb[172].mxu0 %vm1890_vm2, %v8649_v49  ;;  %v8651_v7 = vmax.f32 %v8329_v20, %v8523_v47 }
 0x6b3   : > { %v8650_v45 = vmax.f32 %v8324_v56, %v8522_v48  ;;  %v8334_v50 = vadd.f32 %v8333_v13, %v15824_v2  ;;  %v9144_v54 = vadd.f32 %v16085_v10, %v9143_v9 }
 0x6b4   : > { %v8525_v41 = vmul.f32 0.01, %v8339_v3  ;;  %9776 = vst.msk [vmem:[%s16091_s21 + $0x18] sm:$0xff] %vm9772_vm3, %v9149_v0 }
 0x6b5   : > { %v8524_v44 = vmul.f32 0.01, %v8334_v50  ;;  %v13127_v52 = vpop.f32.mrb[178].mxu1  ;;  %13327 = vmatprep.mubr.msk.f32.mxu0 %vm1890_vm2, %v8650_v45  ;;  %9775 = vst.msk [vmem:[%s16091_s21 + $0x10] sm:$0xff] %vm9772_vm3, %v9144_v54  ;;  %v13170_v59 = vpop.f32.mrb[68].mxu0 }
 0x6b6   : > { %v8349_v60 = vadd.f32 %v13127_v52, %v15824_v2  ;;  %v8343_v23 = vpop.f32.mrb[179].mxu1  ;;  %v9159_v4 = vadd.f32 %v13170_v59, %v16085_v10  ;;  %v9153_v25 = vpop.f32.mrb[69].mxu0  ;;  %13328 = vmatmul.mubr.msk.f32.gmra.mrb[174].mxu0 %vm1890_vm2, %v8651_v7  ;;  %v8653_v57 = vmax.f32 %v8339_v3, %v8525_v41 }
 0x6b7   : > { %v8652_v34 = vmax.f32 %v8334_v50, %v8524_v44  ;;  %v8344_v6 = vadd.f32 %v8343_v23, %v15824_v2  ;;  %v9154_v53 = vadd.f32 %v16085_v10, %v9153_v25 }
 0x6b8   : > { %v8527_v58 = vmul.f32 0.01, %v8349_v60  ;;  %9778 = vst.msk [vmem:[%s16091_s21 + $0x28] sm:$0xff] %vm9772_vm3, %v9159_v4 }
 0x6b9   : > { %v8526_v39 = vmul.f32 0.01, %v8344_v6  ;;  %v13130_v14 = vpop.f32.mrb[180].mxu1  ;;  %13330 = vmatprep.mubr.msk.f32.mxu0 %vm1890_vm2, %v8652_v34  ;;  %9777 = vst.msk [vmem:[%s16091_s21 + $0x20] sm:$0xff] %vm9772_vm3, %v9154_v53  ;;  %v13173_v27 = vpop.f32.mrb[70].mxu0 }
 0x6ba   : > { %v8359_v42 = vadd.f32 %v13130_v14, %v15824_v2  ;;  %v8353_v8 = vpop.f32.mrb[181].mxu1  ;;  %v9169_v51 = vadd.f32 %v13173_v27, %v16085_v10  ;;  %v9163_v21 = vpop.f32.mrb[71].mxu0  ;;  %13331 = vmatmul.mubr.msk.f32.gmra.mrb[176].mxu0 %vm1890_vm2, %v8653_v57  ;;  %v8655_v61 = vmax.f32 %v8349_v60, %v8527_v58 }
 0x6bb   : > { %v8654_v31 = vmax.f32 %v8344_v6, %v8526_v39  ;;  %v8354_v40 = vadd.f32 %v8353_v8, %v15824_v2  ;;  %v9164_v11 = vadd.f32 %v16085_v10, %v9163_v21 }
 0x6bc   : > { %v8529_v22 = vmul.f32 0.01, %v8359_v42  ;;  %9780 = vst.msk [vmem:[%s16091_s21 + $0x38] sm:$0xff] %vm9772_vm3, %v9169_v51 }
 0x6bd   : > { %v8528_v5 = vmul.f32 0.01, %v8354_v40  ;;  %v13133_v24 = vpop.f32.mrb[182].mxu1  ;;  %13333 = vmatprep.mubr.msk.f32.mxu0 %vm1890_vm2, %v8654_v31  ;;  %9779 = vst.msk [vmem:[%s16091_s21 + $0x30] sm:$0xff] %vm9772_vm3, %v9164_v11  ;;  %v13176_v17 = vpop.f32.mrb[72].mxu0 }
 0x6be   : > { %v8369_v62 = vadd.f32 %v13133_v24, %v15824_v2  ;;  %v8363_v38 = vpop.f32.mrb[183].mxu1  ;;  %v9179_v15 = vadd.f32 %v13176_v17, %v16085_v10  ;;  %v9173_v35 = vpop.f32.mrb[73].mxu0  ;;  %13334 = vmatmul.mubr.msk.f32.gmra.mrb[178].mxu0 %vm1890_vm2, %v8655_v61  ;;  %v8657_v1 = vmax.f32 %v8359_v42, %v8529_v22 }
 0x6bf   : > { %v8656_v55 = vmax.f32 %v8354_v40, %v8528_v5  ;;  %v8364_v29 = vadd.f32 %v8363_v38, %v15824_v2  ;;  %v9174_v63 = vadd.f32 %v16085_v10, %v9173_v35 }
 0x6c0   : > { %v8531_v19 = vmul.f32 0.01, %v8369_v62  ;;  %9782 = vst.msk [vmem:[%s16091_s21 + $0x48] sm:$0xff] %vm9772_vm3, %v9179_v15 }
 0x6c1   : > { %v8530_v36 = vmul.f32 0.01, %v8364_v29  ;;  %v13136_v37 = vpop.f32.mrb[184].mxu1  ;;  %13336 = vmatprep.mubr.msk.f32.mxu0 %vm1890_vm2, %v8656_v55  ;;  %9781 = vst.msk [vmem:[%s16091_s21 + $0x40] sm:$0xff] %vm9772_vm3, %v9174_v63  ;;  %v13179_v43 = vpop.f32.mrb[74].mxu0 }
 0x6c2   : > { %v8379_v18 = vadd.f32 %v13136_v37, %v15824_v2  ;;  %v8373_v20 = vpop.f32.mrb[185].mxu1  ;;  %v9189_v30 = vadd.f32 %v13179_v43, %v16085_v10  ;;  %v9183_v32 = vpop.f32.mrb[75].mxu0  ;;  %13337 = vmatmul.mubr.msk.f32.gmra.mrb[180].mxu0 %vm1890_vm2, %v8657_v1  ;;  %v8659_v33 = vmax.f32 %v8369_v62, %v8531_v19 }
 0x6c3   : > { %v8658_v46 = vmax.f32 %v8364_v29, %v8530_v36  ;;  %v8374_v12 = vadd.f32 %v8373_v20, %v15824_v2  ;;  %v9184_v56 = vadd.f32 %v16085_v10, %v9183_v32 }
 0x6c4   : > { %v8533_v28 = vmul.f32 0.01, %v8379_v18  ;;  %9784 = vst.msk [vmem:[%s16091_s21 + $0x58] sm:$0xff] %vm9772_vm3, %v9189_v30 }
 0x6c5   : > { %v8532_v49 = vmul.f32 0.01, %v8374_v12  ;;  %v13139_v47 = vpop.f32.mrb[186].mxu1  ;;  %13339 = vmatprep.mubr.msk.f32.mxu0 %vm1890_vm2, %v8658_v46  ;;  %9783 = vst.msk [vmem:[%s16091_s21 + $0x50] sm:$0xff] %vm9772_vm3, %v9184_v56  ;;  %v13182_v26 = vpop.f32.mrb[76].mxu0 }
 0x6c6   : > { %v8389_v48 = vadd.f32 %v13139_v47, %v15824_v2  ;;  %v8383_v3 = vpop.f32.mrb[187].mxu1  ;;  %v9199_v13 = vadd.f32 %v13182_v26, %v16085_v10  ;;  %v9193_v0 = vpop.f32.mrb[77].mxu0  ;;  %13340 = vmatmul.mubr.msk.f32.gmra.mrb[182].mxu0 %vm1890_vm2, %v8659_v33  ;;  %v8661_v9 = vmax.f32 %v8379_v18, %v8533_v28 }
 0x6c7   : > { %v8660_v16 = vmax.f32 %v8374_v12, %v8532_v49  ;;  %v8384_v45 = vadd.f32 %v8383_v3, %v15824_v2  ;;  %v9194_v50 = vadd.f32 %v16085_v10, %v9193_v0 }
 0x6c8   : > { %v8535_v54 = vmul.f32 0.01, %v8389_v48  ;;  %9786 = vst.msk [vmem:[%s16091_s21 + $0x68] sm:$0xff] %vm9772_vm3, %v9199_v13 }
 0x6c9   : > { %v8534_v7 = vmul.f32 0.01, %v8384_v45  ;;  %v13142_v41 = vpop.f32.mrb[188].mxu1  ;;  %13342 = vmatprep.mubr.msk.f32.mxu0 %vm1890_vm2, %v8660_v16  ;;  %9785 = vst.msk [vmem:[%s16091_s21 + $0x60] sm:$0xff] %vm9772_vm3, %v9194_v50  ;;  %v13185_v52 = vpop.f32.mrb[78].mxu0 }
 0x6ca   : > { %v8399_v44 = vadd.f32 %v13142_v41, %v15824_v2  ;;  %v8393_v60 = vpop.f32.mrb[189].mxu1  ;;  %v9209_v23 = vadd.f32 %v13185_v52, %v16085_v10  ;;  %v9203_v4 = vpop.f32.mrb[79].mxu0  ;;  %13343 = vmatmul.mubr.msk.f32.gmra.mrb[184].mxu0 %vm1890_vm2, %v8661_v9  ;;  %v8663_v25 = vmax.f32 %v8389_v48, %v8535_v54 }
 0x6cb   : > { %v8662_v59 = vmax.f32 %v8384_v45, %v8534_v7  ;;  %v8394_v34 = vadd.f32 %v8393_v60, %v15824_v2  ;;  %v9204_v6 = vadd.f32 %v16085_v10, %v9203_v4 }
 0x6cc   : > { %v8537_v53 = vmul.f32 0.01, %v8399_v44  ;;  %9788 = vst.msk [vmem:[%s16091_s21 + $0x78] sm:$0xff] %vm9772_vm3, %v9209_v23 }
 0x6cd   : > { %v8536_v57 = vmul.f32 0.01, %v8394_v34  ;;  %v13145_v58 = vpop.f32.mrb[190].mxu1  ;;  %13345 = vmatprep.mubr.msk.f32.mxu0 %vm1890_vm2, %v8662_v59  ;;  %9787 = vst.msk [vmem:[%s16091_s21 + $0x70] sm:$0xff] %vm9772_vm3, %v9204_v6  ;;  %v13188_v14 = vpop.f32.mrb[80].mxu0 }
 0x6ce   : > { %v8409_v39 = vadd.f32 %v13145_v58, %v15824_v2  ;;  %v8403_v42 = vpop.f32.mrb[191].mxu1  ;;  %v9219_v8 = vadd.f32 %v13188_v14, %v16085_v10  ;;  %v9213_v51 = vpop.f32.mrb[81].mxu0  ;;  %13346 = vmatmul.mubr.msk.f32.gmra.mrb[186].mxu0 %vm1890_vm2, %v8663_v25  ;;  %v8665_v21 = vmax.f32 %v8399_v44, %v8537_v53 }
 0x6cf   : > { %v8664_v27 = vmax.f32 %v8394_v34, %v8536_v57  ;;  %v8404_v31 = vadd.f32 %v8403_v42, %v15824_v2  ;;  %v9214_v40 = vadd.f32 %v16085_v10, %v9213_v51 }
 0x6d0   : > { %v8539_v11 = vmul.f32 0.01, %v8409_v39  ;;  %9790 = vst.msk [vmem:[%s16091_s21 + $0x88] sm:$0xff] %vm9772_vm3, %v9219_v8 }
 0x6d1   : > { %v8538_v61 = vmul.f32 0.01, %v8404_v31  ;;  %13348 = vmatprep.mubr.msk.f32.mxu0 %vm1890_vm2, %v8664_v27  ;;  %9789 = vst.msk [vmem:[%s16091_s21 + $0x80] sm:$0xff] %vm9772_vm3, %v9214_v40  ;;  %v13191_v22 = vpop.f32.mrb[82].mxu0 }
 0x6d2   : > { %v9229_v5 = vadd.f32 %v13191_v22, %v16085_v10  ;;  %v9223_v24 = vpop.f32.mrb[83].mxu0  ;;  %13349 = vmatmul.mubr.msk.f32.gmra.mrb[188].mxu0 %vm1890_vm2, %v8665_v21  ;;  %v8667_v17 = vmax.f32 %v8409_v39, %v8539_v11 }
 0x6d3   : > { %v8666_v2 = vmax.f32 %v8404_v31, %v8538_v61  ;;  %v9224_v62 = vadd.f32 %v16085_v10, %v9223_v24 }
 0x6d4   : > { %9792 = vst.msk [vmem:[%s16091_s21 + $0x98] sm:$0xff] %vm9772_vm3, %v9229_v5 }
 0x6d5   : > { %13351 = vmatprep.mubr.msk.f32.mxu0 %vm1890_vm2, %v8666_v2  ;;  %9791 = vst.msk [vmem:[%s16091_s21 + $0x90] sm:$0xff] %vm9772_vm3, %v9224_v62  ;;  %v13194_v38 = vpop.f32.mrb[84].mxu0 }
 0x6d6   : > { %v9239_v55 = vadd.f32 %v13194_v38, %v16085_v10  ;;  %v9233_v15 = vpop.f32.mrb[85].mxu0  ;;  %13352 = vmatmul.mubr.msk.f32.gmra.mrb[190].mxu0 %vm1890_vm2, %v8667_v17 }
 0x6d7   : > { %v9234_v29 = vadd.f32 %v16085_v10, %v9233_v15 }
 0x6d8   : > { %9794 = vst.msk [vmem:[%s16091_s21 + $0xa8] sm:$0xff] %vm9772_vm3, %v9239_v55 }
 0x6d9   : > { %9793 = vst.msk [vmem:[%s16091_s21 + $0xa0] sm:$0xff] %vm9772_vm3, %v9234_v29  ;;  %v13197_v35 = vpop.f32.mrb[86].mxu0 }
 0x6da   : > { %v9249_v63 = vadd.f32 %v13197_v35, %v16085_v10  ;;  %v9243_v1 = vpop.f32.mrb[87].mxu0 }
 0x6db   : > { %v9244_v19 = vadd.f32 %v16085_v10, %v9243_v1 }
 0x6dc   : > { %9796 = vst.msk [vmem:[%s16091_s21 + $0xb8] sm:$0xff] %vm9772_vm3, %v9249_v63 }
 0x6dd   : > { %9795 = vst.msk [vmem:[%s16091_s21 + $0xb0] sm:$0xff] %vm9772_vm3, %v9244_v19  ;;  %v13200_v36 = vpop.f32.mrb[88].mxu0 }
 0x6de   : > { %v9259_v37 = vadd.f32 %v13200_v36, %v16085_v10  ;;  %v9253_v18 = vpop.f32.mrb[89].mxu0 }
 0x6df   : > { %v9254_v43 = vadd.f32 %v16085_v10, %v9253_v18 }
 0x6e0   : > { %9798 = vst.msk [vmem:[%s16091_s21 + $0xc8] sm:$0xff] %vm9772_vm3, %v9259_v37 }
 0x6e1   : > { %9797 = vst.msk [vmem:[%s16091_s21 + $0xc0] sm:$0xff] %vm9772_vm3, %v9254_v43  ;;  %v13203_v20 = vpop.f32.mrb[90].mxu0 }
 0x6e2   : > { %v9269_v46 = vadd.f32 %v13203_v20, %v16085_v10  ;;  %v9263_v30 = vpop.f32.mrb[91].mxu0 }
 0x6e3   : > { %v9264_v12 = vadd.f32 %v16085_v10, %v9263_v30 }
 0x6e4   : > { %9800 = vst.msk [vmem:[%s16091_s21 + $0xd8] sm:$0xff] %vm9772_vm3, %v9269_v46 }
 0x6e5   : > { %9799 = vst.msk [vmem:[%s16091_s21 + $0xd0] sm:$0xff] %vm9772_vm3, %v9264_v12  ;;  %v13206_v32 = vpop.f32.mrb[92].mxu0 }
 0x6e6   : > { %v9279_v56 = vadd.f32 %v13206_v32, %v16085_v10  ;;  %v9273_v33 = vpop.f32.mrb[93].mxu0 }
 0x6e7   : > { %v9274_v28 = vadd.f32 %v16085_v10, %v9273_v33 }
 0x6e8   : > { %9802 = vst.msk [vmem:[%s16091_s21 + $0xe8] sm:$0xff] %vm9772_vm3, %v9279_v56 }
 0x6e9   : > { %9801 = vst.msk [vmem:[%s16091_s21 + $0xe0] sm:$0xff] %vm9772_vm3, %v9274_v28  ;;  %v13209_v49 = vpop.f32.mrb[94].mxu0 }
 0x6ea   : > { %v9289_v47 = vadd.f32 %v13209_v49, %v16085_v10  ;;  %v9283_v48 = vpop.f32.mrb[95].mxu0 }
 0x6eb   : > { %v9284_v26 = vadd.f32 %v16085_v10, %v9283_v48 }
 0x6ec   : > { %9804 = vst.msk [vmem:[%s16091_s21 + $0xf8] sm:$0xff] %vm9772_vm3, %v9289_v47 }
 0x6ed   : > { %9803 = vst.msk [vmem:[%s16091_s21 + $0xf0] sm:$0xff] %vm9772_vm3, %v9284_v26  ;;  %v13212_v3 = vpop.f32.mrb[96].mxu0 }
 0x6ee   : > { %v9299_v16 = vadd.f32 %v13212_v3, %v16085_v10  ;;  %v9293_v13 = vpop.f32.mrb[97].mxu0 }
 0x6ef   : > { %v9294_v45 = vadd.f32 %v16085_v10, %v9293_v13 }
 0x6f0   : > { %9806 = vst.msk [vmem:[%s16091_s21 + $0x108] sm:$0xff] %vm9772_vm3, %v9299_v16 }
 0x6f1   : > { %9805 = vst.msk [vmem:[%s16091_s21 + $0x100] sm:$0xff] %vm9772_vm3, %v9294_v45  ;;  %v13215_v0 = vpop.f32.mrb[98].mxu0 }
 0x6f2   : > { %v9309_v50 = vadd.f32 %v13215_v0, %v16085_v10  ;;  %v9303_v9 = vpop.f32.mrb[99].mxu0 }
 0x6f3   : > { %v9304_v54 = vadd.f32 %v16085_v10, %v9303_v9 }
 0x6f4   : > { %9808 = vst.msk [vmem:[%s16091_s21 + $0x118] sm:$0xff] %vm9772_vm3, %v9309_v50 }
 0x6f5   : > { %9807 = vst.msk [vmem:[%s16091_s21 + $0x110] sm:$0xff] %vm9772_vm3, %v9304_v54  ;;  %v13218_v7 = vpop.f32.mrb[100].mxu0 }
 0x6f6   : > { %v9319_v41 = vadd.f32 %v13218_v7, %v16085_v10  ;;  %v9313_v44 = vpop.f32.mrb[101].mxu0 }
 0x6f7   : > { %v9314_v52 = vadd.f32 %v16085_v10, %v9313_v44 }
 0x6f8   : > { %9810 = vst.msk [vmem:[%s16091_s21 + $0x128] sm:$0xff] %vm9772_vm3, %v9319_v41 }
 0x6f9   : > { %9809 = vst.msk [vmem:[%s16091_s21 + $0x120] sm:$0xff] %vm9772_vm3, %v9314_v52  ;;  %v13221_v60 = vpop.f32.mrb[102].mxu0 }
 0x6fa   : > { %v9329_v59 = vadd.f32 %v13221_v60, %v16085_v10  ;;  %v9323_v23 = vpop.f32.mrb[103].mxu0 }
 0x6fb   : > { %v9324_v34 = vadd.f32 %v16085_v10, %v9323_v23 }
 0x6fc   : > { %9812 = vst.msk [vmem:[%s16091_s21 + $0x138] sm:$0xff] %vm9772_vm3, %v9329_v59 }
 0x6fd   : > { %9811 = vst.msk [vmem:[%s16091_s21 + $0x130] sm:$0xff] %vm9772_vm3, %v9324_v34  ;;  %v13224_v4 = vpop.f32.mrb[104].mxu0 }
 0x6fe   : > { %v9339_v6 = vadd.f32 %v13224_v4, %v16085_v10  ;;  %v9333_v25 = vpop.f32.mrb[105].mxu0 }
 0x6ff   : > { %v9334_v53 = vadd.f32 %v16085_v10, %v9333_v25 }
 0x700   : > { %9814 = vst.msk [vmem:[%s16091_s21 + $0x148] sm:$0xff] %vm9772_vm3, %v9339_v6 }
 0x701   : > { %9813 = vst.msk [vmem:[%s16091_s21 + $0x140] sm:$0xff] %vm9772_vm3, %v9334_v53  ;;  %v13227_v57 = vpop.f32.mrb[106].mxu0 }
 0x702   : > { %v9349_v58 = vadd.f32 %v13227_v57, %v16085_v10  ;;  %v9343_v39 = vpop.f32.mrb[107].mxu0 }
 0x703   : > { %v9344_v14 = vadd.f32 %v16085_v10, %v9343_v39 }
 0x704   : > { %9816 = vst.msk [vmem:[%s16091_s21 + $0x158] sm:$0xff] %vm9772_vm3, %v9349_v58 }
 0x705   : > { %9815 = vst.msk [vmem:[%s16091_s21 + $0x150] sm:$0xff] %vm9772_vm3, %v9344_v14  ;;  %v13230_v42 = vpop.f32.mrb[108].mxu0 }
 0x706   : > { %v9359_v27 = vadd.f32 %v13230_v42, %v16085_v10  ;;  %v9353_v8 = vpop.f32.mrb[109].mxu0 }
 0x707   : > { %v9354_v31 = vadd.f32 %v16085_v10, %v9353_v8 }
 0x708   : > { %9818 = vst.msk [vmem:[%s16091_s21 + $0x168] sm:$0xff] %vm9772_vm3, %v9359_v27 }
 0x709   : > { %9817 = vst.msk [vmem:[%s16091_s21 + $0x160] sm:$0xff] %vm9772_vm3, %v9354_v31  ;;  %v13233_v51 = vpop.f32.mrb[110].mxu0 }
 0x70a   : > { %v9369_v40 = vadd.f32 %v13233_v51, %v16085_v10  ;;  %v9363_v21 = vpop.f32.mrb[111].mxu0 }
 0x70b   : > { %v9364_v11 = vadd.f32 %v16085_v10, %v9363_v21 }
 0x70c   : > { %9820 = vst.msk [vmem:[%s16091_s21 + $0x178] sm:$0xff] %vm9772_vm3, %v9369_v40 }
 0x70d   : > { %9819 = vst.msk [vmem:[%s16091_s21 + $0x170] sm:$0xff] %vm9772_vm3, %v9364_v11  ;;  %v13236_v61 = vpop.f32.mrb[112].mxu0 }
 0x70e   : > { %v9379_v22 = vadd.f32 %v13236_v61, %v16085_v10  ;;  %v9373_v2 = vpop.f32.mrb[113].mxu0 }
 0x70f   : > { %v9374_v5 = vadd.f32 %v16085_v10, %v9373_v2 }
 0x710   : > { %9822 = vst.msk [vmem:[%s16091_s21 + $0x188] sm:$0xff] %vm9772_vm3, %v9379_v22 }
 0x711   : > { %9821 = vst.msk [vmem:[%s16091_s21 + $0x180] sm:$0xff] %vm9772_vm3, %v9374_v5  ;;  %v13239_v24 = vpop.f32.mrb[114].mxu0 }
 0x712   : > { %v9389_v62 = vadd.f32 %v13239_v24, %v16085_v10  ;;  %v9383_v17 = vpop.f32.mrb[115].mxu0 }
 0x713   : > { %v9384_v38 = vadd.f32 %v16085_v10, %v9383_v17 }
 0x714   : > { %9824 = vst.msk [vmem:[%s16091_s21 + $0x198] sm:$0xff] %vm9772_vm3, %v9389_v62 }
 0x715   : > { %9823 = vst.msk [vmem:[%s16091_s21 + $0x190] sm:$0xff] %vm9772_vm3, %v9384_v38  ;;  %v13242_v55 = vpop.f32.mrb[116].mxu0 }
 0x716   : > { %v9399_v15 = vadd.f32 %v13242_v55, %v16085_v10  ;;  %v9393_v29 = vpop.f32.mrb[117].mxu0 }
 0x717   : > { %v9394_v35 = vadd.f32 %v16085_v10, %v9393_v29 }
 0x718   : > { %9826 = vst.msk [vmem:[%s16091_s21 + $0x1a8] sm:$0xff] %vm9772_vm3, %v9399_v15 }
 0x719   : > { %9825 = vst.msk [vmem:[%s16091_s21 + $0x1a0] sm:$0xff] %vm9772_vm3, %v9394_v35  ;;  %v13245_v63 = vpop.f32.mrb[118].mxu0 }
 0x71a   : > { %v9409_v1 = vadd.f32 %v13245_v63, %v16085_v10  ;;  %v9403_v19 = vpop.f32.mrb[119].mxu0 }
 0x71b   : > { %v9404_v36 = vadd.f32 %v16085_v10, %v9403_v19 }
 0x71c   : > { %9828 = vst.msk [vmem:[%s16091_s21 + $0x1b8] sm:$0xff] %vm9772_vm3, %v9409_v1 }
 0x71d   : > { %9827 = vst.msk [vmem:[%s16091_s21 + $0x1b0] sm:$0xff] %vm9772_vm3, %v9404_v36  ;;  %v13248_v37 = vpop.f32.mrb[120].mxu0 }
 0x71e   : > { %v9419_v18 = vadd.f32 %v13248_v37, %v16085_v10  ;;  %v9413_v43 = vpop.f32.mrb[121].mxu0 }
 0x71f   : > { %v9414_v20 = vadd.f32 %v16085_v10, %v9413_v43 }
 0x720   : > { %9830 = vst.msk [vmem:[%s16091_s21 + $0x1c8] sm:$0xff] %vm9772_vm3, %v9419_v18 }
 0x721   : > { %9829 = vst.msk [vmem:[%s16091_s21 + $0x1c0] sm:$0xff] %vm9772_vm3, %v9414_v20  ;;  %v13251_v46 = vpop.f32.mrb[122].mxu0 }
 0x722   : > { %v9429_v30 = vadd.f32 %v13251_v46, %v16085_v10  ;;  %v9423_v12 = vpop.f32.mrb[123].mxu0 }
 0x723   : > { %v9424_v32 = vadd.f32 %v16085_v10, %v9423_v12 }
 0x724   : > { %9832 = vst.msk [vmem:[%s16091_s21 + $0x1d8] sm:$0xff] %vm9772_vm3, %v9429_v30 }
 0x725   : > { %9831 = vst.msk [vmem:[%s16091_s21 + $0x1d0] sm:$0xff] %vm9772_vm3, %v9424_v32  ;;  %v13254_v56 = vpop.f32.mrb[124].mxu0 }
 0x726   : > { %v9439_v33 = vadd.f32 %v13254_v56, %v16085_v10  ;;  %v9433_v28 = vpop.f32.mrb[125].mxu0 }
 0x727   : > { %v9434_v49 = vadd.f32 %v16085_v10, %v9433_v28 }
 0x728   : > { %9834 = vst.msk [vmem:[%s16091_s21 + $0x1e8] sm:$0xff] %vm9772_vm3, %v9439_v33 }
 0x729   : > { %9833 = vst.msk [vmem:[%s16091_s21 + $0x1e0] sm:$0xff] %vm9772_vm3, %v9434_v49  ;;  %v13257_v47 = vpop.f32.mrb[126].mxu0 }
 0x72a   : > { %v9449_v48 = vadd.f32 %v13257_v47, %v16085_v10  ;;  %v9443_v26 = vpop.f32.mrb[127].mxu0 }
 0x72b   : > { %v9444_v3 = vadd.f32 %v16085_v10, %v9443_v26 }
 0x72c   : > { %9836 = vst.msk [vmem:[%s16091_s21 + $0x1f8] sm:$0xff] %vm9772_vm3, %v9449_v48 }
 0x72d   : > { %9835 = vst.msk [vmem:[%s16091_s21 + $0x1f0] sm:$0xff] %vm9772_vm3, %v9444_v3  ;;  %v13260_v16 = vpop.f32.mrb[128].mxu0 }
 0x72e   : > { %v9459_v13 = vadd.f32 %v13260_v16, %v16085_v10  ;;  %v9453_v45 = vpop.f32.mrb[129].mxu0 }
 0x72f   : > { %v9454_v0 = vadd.f32 %v16085_v10, %v9453_v45 }
 0x730   : > { %9838 = vst.msk [vmem:[%s16091_s21 + $0x208] sm:$0xff] %vm9772_vm3, %v9459_v13 }
 0x731   : > { %9837 = vst.msk [vmem:[%s16091_s21 + $0x200] sm:$0xff] %vm9772_vm3, %v9454_v0  ;;  %v13263_v50 = vpop.f32.mrb[130].mxu0 }
 0x732   : > { %v9469_v9 = vadd.f32 %v13263_v50, %v16085_v10  ;;  %v9463_v54 = vpop.f32.mrb[131].mxu0 }
 0x733   : > { %v9464_v7 = vadd.f32 %v16085_v10, %v9463_v54 }
 0x734   : > { %9840 = vst.msk [vmem:[%s16091_s21 + $0x218] sm:$0xff] %vm9772_vm3, %v9469_v9 }
 0x735   : > { %9839 = vst.msk [vmem:[%s16091_s21 + $0x210] sm:$0xff] %vm9772_vm3, %v9464_v7  ;;  %v13266_v41 = vpop.f32.mrb[132].mxu0 }
 0x736   : > { %v9479_v44 = vadd.f32 %v13266_v41, %v16085_v10  ;;  %v9473_v52 = vpop.f32.mrb[133].mxu0 }
 0x737   : > { %v9474_v60 = vadd.f32 %v16085_v10, %v9473_v52 }
 0x738   : > { %9842 = vst.msk [vmem:[%s16091_s21 + $0x228] sm:$0xff] %vm9772_vm3, %v9479_v44 }
 0x739   : > { %9841 = vst.msk [vmem:[%s16091_s21 + $0x220] sm:$0xff] %vm9772_vm3, %v9474_v60  ;;  %v13269_v59 = vpop.f32.mrb[134].mxu0 }
 0x73a   : > { %v9489_v23 = vadd.f32 %v13269_v59, %v16085_v10  ;;  %v9483_v34 = vpop.f32.mrb[135].mxu0 }
 0x73b   : > { %v9484_v4 = vadd.f32 %v16085_v10, %v9483_v34 }
 0x73c   : > { %9844 = vst.msk [vmem:[%s16091_s21 + $0x238] sm:$0xff] %vm9772_vm3, %v9489_v23 }
 0x73d   : > { %9843 = vst.msk [vmem:[%s16091_s21 + $0x230] sm:$0xff] %vm9772_vm3, %v9484_v4  ;;  %v13272_v6 = vpop.f32.mrb[136].mxu0 }
 0x73e   : > { %v9499_v25 = vadd.f32 %v13272_v6, %v16085_v10  ;;  %v9493_v53 = vpop.f32.mrb[137].mxu0 }
 0x73f   : > { %v9494_v57 = vadd.f32 %v16085_v10, %v9493_v53 }
 0x740   : > { %9846 = vst.msk [vmem:[%s16091_s21 + $0x248] sm:$0xff] %vm9772_vm3, %v9499_v25 }
 0x741   : > { %9845 = vst.msk [vmem:[%s16091_s21 + $0x240] sm:$0xff] %vm9772_vm3, %v9494_v57  ;;  %v13275_v58 = vpop.f32.mrb[138].mxu0 }
 0x742   : > { %v9509_v39 = vadd.f32 %v13275_v58, %v16085_v10  ;;  %v9503_v14 = vpop.f32.mrb[139].mxu0 }
 0x743   : > { %v9504_v42 = vadd.f32 %v16085_v10, %v9503_v14 }
 0x744   : > { %9848 = vst.msk [vmem:[%s16091_s21 + $0x258] sm:$0xff] %vm9772_vm3, %v9509_v39 }
 0x745   : > { %9847 = vst.msk [vmem:[%s16091_s21 + $0x250] sm:$0xff] %vm9772_vm3, %v9504_v42  ;;  %v13278_v27 = vpop.f32.mrb[140].mxu0 }
 0x746   : > { %v9519_v8 = vadd.f32 %v13278_v27, %v16085_v10  ;;  %v9513_v31 = vpop.f32.mrb[141].mxu0 }
 0x747   : > { %v9514_v51 = vadd.f32 %v16085_v10, %v9513_v31 }
 0x748   : > { %9850 = vst.msk [vmem:[%s16091_s21 + $0x268] sm:$0xff] %vm9772_vm3, %v9519_v8 }
 0x749   : > { %9849 = vst.msk [vmem:[%s16091_s21 + $0x260] sm:$0xff] %vm9772_vm3, %v9514_v51  ;;  %v13281_v40 = vpop.f32.mrb[142].mxu0 }
 0x74a   : > { %v9529_v21 = vadd.f32 %v13281_v40, %v16085_v10  ;;  %v9523_v11 = vpop.f32.mrb[143].mxu0 }
 0x74b   : > { %v9524_v61 = vadd.f32 %v16085_v10, %v9523_v11 }
 0x74c   : > { %9852 = vst.msk [vmem:[%s16091_s21 + $0x278] sm:$0xff] %vm9772_vm3, %v9529_v21 }
 0x74d   : > { %9851 = vst.msk [vmem:[%s16091_s21 + $0x270] sm:$0xff] %vm9772_vm3, %v9524_v61  ;;  %v13284_v22 = vpop.f32.mrb[144].mxu0 }
 0x74e   : > { %v9539_v2 = vadd.f32 %v13284_v22, %v16085_v10  ;;  %v9533_v5 = vpop.f32.mrb[145].mxu0 }
 0x74f   : > { %v9534_v24 = vadd.f32 %v16085_v10, %v9533_v5 }
 0x750   : > { %9854 = vst.msk [vmem:[%s16091_s21 + $0x288] sm:$0xff] %vm9772_vm3, %v9539_v2 }
 0x751   : > { %9853 = vst.msk [vmem:[%s16091_s21 + $0x280] sm:$0xff] %vm9772_vm3, %v9534_v24  ;;  %v13287_v62 = vpop.f32.mrb[146].mxu0 }
 0x752   : > { %v9549_v17 = vadd.f32 %v13287_v62, %v16085_v10  ;;  %v9543_v38 = vpop.f32.mrb[147].mxu0 }
 0x753   : > { %v9544_v55 = vadd.f32 %v16085_v10, %v9543_v38 }
 0x754   : > { %9856 = vst.msk [vmem:[%s16091_s21 + $0x298] sm:$0xff] %vm9772_vm3, %v9549_v17 }
 0x755   : > { %9855 = vst.msk [vmem:[%s16091_s21 + $0x290] sm:$0xff] %vm9772_vm3, %v9544_v55  ;;  %v13290_v15 = vpop.f32.mrb[148].mxu0 }
 0x756   : > { %v9559_v29 = vadd.f32 %v13290_v15, %v16085_v10  ;;  %v9553_v35 = vpop.f32.mrb[149].mxu0 }
 0x757   : > { %v9554_v63 = vadd.f32 %v16085_v10, %v9553_v35 }
 0x758   : > { %9858 = vst.msk [vmem:[%s16091_s21 + $0x2a8] sm:$0xff] %vm9772_vm3, %v9559_v29 }
 0x759   : > { %9857 = vst.msk [vmem:[%s16091_s21 + $0x2a0] sm:$0xff] %vm9772_vm3, %v9554_v63  ;;  %v13293_v1 = vpop.f32.mrb[150].mxu0 }
 0x75a   : > { %v9569_v19 = vadd.f32 %v13293_v1, %v16085_v10  ;;  %v9563_v36 = vpop.f32.mrb[151].mxu0 }
 0x75b   : > { %v9564_v37 = vadd.f32 %v16085_v10, %v9563_v36 }
 0x75c   : > { %9860 = vst.msk [vmem:[%s16091_s21 + $0x2b8] sm:$0xff] %vm9772_vm3, %v9569_v19 }
 0x75d   : > { %9859 = vst.msk [vmem:[%s16091_s21 + $0x2b0] sm:$0xff] %vm9772_vm3, %v9564_v37  ;;  %v13296_v18 = vpop.f32.mrb[152].mxu0 }
 0x75e   : > { %v9579_v43 = vadd.f32 %v13296_v18, %v16085_v10  ;;  %v9573_v20 = vpop.f32.mrb[153].mxu0 }
 0x75f   : > { %v9574_v46 = vadd.f32 %v16085_v10, %v9573_v20 }
 0x760   : > { %9862 = vst.msk [vmem:[%s16091_s21 + $0x2c8] sm:$0xff] %vm9772_vm3, %v9579_v43 }
 0x761   : > { %9861 = vst.msk [vmem:[%s16091_s21 + $0x2c0] sm:$0xff] %vm9772_vm3, %v9574_v46  ;;  %v13299_v30 = vpop.f32.mrb[154].mxu0 }
 0x762   : > { %v9589_v12 = vadd.f32 %v13299_v30, %v16085_v10  ;;  %v9583_v32 = vpop.f32.mrb[155].mxu0 }
 0x763   : > { %v9584_v56 = vadd.f32 %v16085_v10, %v9583_v32 }
 0x764   : > { %9864 = vst.msk [vmem:[%s16091_s21 + $0x2d8] sm:$0xff] %vm9772_vm3, %v9589_v12 }
 0x765   : > { %9863 = vst.msk [vmem:[%s16091_s21 + $0x2d0] sm:$0xff] %vm9772_vm3, %v9584_v56  ;;  %v13302_v33 = vpop.f32.mrb[156].mxu0 }
 0x766   : > { %v9599_v28 = vadd.f32 %v13302_v33, %v16085_v10  ;;  %v9593_v49 = vpop.f32.mrb[157].mxu0 }
 0x767   : > { %v9594_v47 = vadd.f32 %v16085_v10, %v9593_v49 }
 0x768   : > { %9866 = vst.msk [vmem:[%s16091_s21 + $0x2e8] sm:$0xff] %vm9772_vm3, %v9599_v28 }
 0x769   : > { %9865 = vst.msk [vmem:[%s16091_s21 + $0x2e0] sm:$0xff] %vm9772_vm3, %v9594_v47  ;;  %v13305_v48 = vpop.f32.mrb[158].mxu0 }
 0x76a   : > { %v9609_v26 = vadd.f32 %v13305_v48, %v16085_v10  ;;  %v9603_v3 = vpop.f32.mrb[159].mxu0 }
 0x76b   : > { %v9604_v16 = vadd.f32 %v16085_v10, %v9603_v3 }
 0x76c   : > { %9868 = vst.msk [vmem:[%s16091_s21 + $0x2f8] sm:$0xff] %vm9772_vm3, %v9609_v26 }
 0x76d   : > { %9867 = vst.msk [vmem:[%s16091_s21 + $0x2f0] sm:$0xff] %vm9772_vm3, %v9604_v16  ;;  %v13308_v13 = vpop.f32.mrb[160].mxu0 }
 0x76e   : > { %v9619_v45 = vadd.f32 %v13308_v13, %v16085_v10  ;;  %v9613_v0 = vpop.f32.mrb[161].mxu0 }
 0x76f   : > { %v9614_v50 = vadd.f32 %v16085_v10, %v9613_v0 }
 0x770   : > { %9870 = vst.msk [vmem:[%s16091_s21 + $0x308] sm:$0xff] %vm9772_vm3, %v9619_v45 }
 0x771   : > { %9869 = vst.msk [vmem:[%s16091_s21 + $0x300] sm:$0xff] %vm9772_vm3, %v9614_v50  ;;  %v13311_v9 = vpop.f32.mrb[162].mxu0 }
 0x772   : > { %v9629_v54 = vadd.f32 %v13311_v9, %v16085_v10  ;;  %v9623_v7 = vpop.f32.mrb[163].mxu0 }
 0x773   : > { %v9624_v41 = vadd.f32 %v16085_v10, %v9623_v7 }
 0x774   : > { %9872 = vst.msk [vmem:[%s16091_s21 + $0x318] sm:$0xff] %vm9772_vm3, %v9629_v54 }
 0x775   : > { %9871 = vst.msk [vmem:[%s16091_s21 + $0x310] sm:$0xff] %vm9772_vm3, %v9624_v41  ;;  %v13314_v44 = vpop.f32.mrb[164].mxu0 }
 0x776   : > { %v9639_v52 = vadd.f32 %v13314_v44, %v16085_v10  ;;  %v9633_v60 = vpop.f32.mrb[165].mxu0 }
 0x777   : > { %v9634_v59 = vadd.f32 %v16085_v10, %v9633_v60 }
 0x778   : > { %9874 = vst.msk [vmem:[%s16091_s21 + $0x328] sm:$0xff] %vm9772_vm3, %v9639_v52 }
 0x779   : > { %9873 = vst.msk [vmem:[%s16091_s21 + $0x320] sm:$0xff] %vm9772_vm3, %v9634_v59  ;;  %v13317_v23 = vpop.f32.mrb[166].mxu0 }
 0x77a   : > { %v9649_v34 = vadd.f32 %v13317_v23, %v16085_v10  ;;  %v9643_v4 = vpop.f32.mrb[167].mxu0 }
 0x77b   : > { %v9644_v6 = vadd.f32 %v16085_v10, %v9643_v4 }
 0x77c   : > { %9876 = vst.msk [vmem:[%s16091_s21 + $0x338] sm:$0xff] %vm9772_vm3, %v9649_v34 }
 0x77d   : > { %9875 = vst.msk [vmem:[%s16091_s21 + $0x330] sm:$0xff] %vm9772_vm3, %v9644_v6  ;;  %v13320_v25 = vpop.f32.mrb[168].mxu0 }
 0x77e   : > { %v9659_v53 = vadd.f32 %v13320_v25, %v16085_v10  ;;  %v9653_v57 = vpop.f32.mrb[169].mxu0 }
 0x77f   : > { %v9654_v58 = vadd.f32 %v16085_v10, %v9653_v57 }
 0x780   : > { %9878 = vst.msk [vmem:[%s16091_s21 + $0x348] sm:$0xff] %vm9772_vm3, %v9659_v53 }
 0x781   : > { %9877 = vst.msk [vmem:[%s16091_s21 + $0x340] sm:$0xff] %vm9772_vm3, %v9654_v58  ;;  %v13323_v39 = vpop.f32.mrb[170].mxu0 }
 0x782   : > { %v9669_v14 = vadd.f32 %v13323_v39, %v16085_v10  ;;  %v9663_v42 = vpop.f32.mrb[171].mxu0 }
 0x783   : > { %v9664_v27 = vadd.f32 %v16085_v10, %v9663_v42 }
 0x784   : > { %9880 = vst.msk [vmem:[%s16091_s21 + $0x358] sm:$0xff] %vm9772_vm3, %v9669_v14 }
 0x785   : > { %9879 = vst.msk [vmem:[%s16091_s21 + $0x350] sm:$0xff] %vm9772_vm3, %v9664_v27  ;;  %v13326_v8 = vpop.f32.mrb[172].mxu0 }
 0x786   : > { %v9679_v31 = vadd.f32 %v13326_v8, %v16085_v10  ;;  %v9673_v51 = vpop.f32.mrb[173].mxu0 }
 0x787   : > { %v9674_v40 = vadd.f32 %v16085_v10, %v9673_v51 }
 0x788   : > { %9882 = vst.msk [vmem:[%s16091_s21 + $0x368] sm:$0xff] %vm9772_vm3, %v9679_v31 }
 0x789   : > { %9881 = vst.msk [vmem:[%s16091_s21 + $0x360] sm:$0xff] %vm9772_vm3, %v9674_v40  ;;  %v13329_v21 = vpop.f32.mrb[174].mxu0 }
 0x78a   : > { %v9689_v11 = vadd.f32 %v13329_v21, %v16085_v10  ;;  %v9683_v61 = vpop.f32.mrb[175].mxu0 }
 0x78b   : > { %v9684_v22 = vadd.f32 %v16085_v10, %v9683_v61 }
 0x78c   : > { %9884 = vst.msk [vmem:[%s16091_s21 + $0x378] sm:$0xff] %vm9772_vm3, %v9689_v11 }
 0x78d   : > { %9883 = vst.msk [vmem:[%s16091_s21 + $0x370] sm:$0xff] %vm9772_vm3, %v9684_v22  ;;  %v13332_v2 = vpop.f32.mrb[176].mxu0 }
 0x78e   : > { %v9699_v5 = vadd.f32 %v13332_v2, %v16085_v10  ;;  %v9693_v24 = vpop.f32.mrb[177].mxu0 }
 0x78f   : > { %v9694_v62 = vadd.f32 %v16085_v10, %v9693_v24 }
 0x790   : > { %9886 = vst.msk [vmem:[%s16091_s21 + $0x388] sm:$0xff] %vm9772_vm3, %v9699_v5 }
 0x791   : > { %9885 = vst.msk [vmem:[%s16091_s21 + $0x380] sm:$0xff] %vm9772_vm3, %v9694_v62  ;;  %v13335_v17 = vpop.f32.mrb[178].mxu0 }
 0x792   : > { %v9709_v38 = vadd.f32 %v13335_v17, %v16085_v10  ;;  %v9703_v55 = vpop.f32.mrb[179].mxu0 }
 0x793   : > { %v9704_v15 = vadd.f32 %v16085_v10, %v9703_v55 }
 0x794   : > { %9888 = vst.msk [vmem:[%s16091_s21 + $0x398] sm:$0xff] %vm9772_vm3, %v9709_v38 }
 0x795   : > { %9887 = vst.msk [vmem:[%s16091_s21 + $0x390] sm:$0xff] %vm9772_vm3, %v9704_v15  ;;  %v13338_v29 = vpop.f32.mrb[180].mxu0 }
 0x796   : > { %v9719_v35 = vadd.f32 %v13338_v29, %v16085_v10  ;;  %v9713_v63 = vpop.f32.mrb[181].mxu0 }
 0x797   : > { %v9714_v1 = vadd.f32 %v16085_v10, %v9713_v63 }
 0x798   : > { %9890 = vst.msk [vmem:[%s16091_s21 + $0x3a8] sm:$0xff] %vm9772_vm3, %v9719_v35 }
 0x799   : > { %9889 = vst.msk [vmem:[%s16091_s21 + $0x3a0] sm:$0xff] %vm9772_vm3, %v9714_v1  ;;  %v13341_v19 = vpop.f32.mrb[182].mxu0 }
 0x79a   : > { %v9729_v36 = vadd.f32 %v13341_v19, %v16085_v10  ;;  %v9723_v37 = vpop.f32.mrb[183].mxu0 }
 0x79b   : > { %v9724_v18 = vadd.f32 %v16085_v10, %v9723_v37 }
 0x79c   : > { %9892 = vst.msk [vmem:[%s16091_s21 + $0x3b8] sm:$0xff] %vm9772_vm3, %v9729_v36 }
 0x79d   : > { %9891 = vst.msk [vmem:[%s16091_s21 + $0x3b0] sm:$0xff] %vm9772_vm3, %v9724_v18  ;;  %v13344_v43 = vpop.f32.mrb[184].mxu0 }
 0x79e   : > { %v9739_v20 = vadd.f32 %v13344_v43, %v16085_v10  ;;  %v9733_v46 = vpop.f32.mrb[185].mxu0 }
 0x79f   : > { %v9734_v30 = vadd.f32 %v16085_v10, %v9733_v46 }
 0x7a0   : > { %9894 = vst.msk [vmem:[%s16091_s21 + $0x3c8] sm:$0xff] %vm9772_vm3, %v9739_v20 }
 0x7a1   : > { %9893 = vst.msk [vmem:[%s16091_s21 + $0x3c0] sm:$0xff] %vm9772_vm3, %v9734_v30  ;;  %v13347_v12 = vpop.f32.mrb[186].mxu0 }
 0x7a2   : > { %v9749_v32 = vadd.f32 %v13347_v12, %v16085_v10  ;;  %v9743_v56 = vpop.f32.mrb[187].mxu0 }
 0x7a3   : > { %v9744_v33 = vadd.f32 %v16085_v10, %v9743_v56 }
 0x7a4   : > { %9896 = vst.msk [vmem:[%s16091_s21 + $0x3d8] sm:$0xff] %vm9772_vm3, %v9749_v32 }
 0x7a5   : > { %9895 = vst.msk [vmem:[%s16091_s21 + $0x3d0] sm:$0xff] %vm9772_vm3, %v9744_v33  ;;  %v13350_v28 = vpop.f32.mrb[188].mxu0 }
 0x7a6   : > { %v9759_v49 = vadd.f32 %v13350_v28, %v16085_v10  ;;  %v9753_v47 = vpop.f32.mrb[189].mxu0 }
 0x7a7   : > { %v9754_v48 = vadd.f32 %v16085_v10, %v9753_v47 }
 0x7a8   : > { %9898 = vst.msk [vmem:[%s16091_s21 + $0x3e8] sm:$0xff] %vm9772_vm3, %v9759_v49 }
 0x7a9   : > { %9897 = vst.msk [vmem:[%s16091_s21 + $0x3e0] sm:$0xff] %vm9772_vm3, %v9754_v48  ;;  %v13353_v26 = vpop.f32.mrb[190].mxu0 }
 0x7aa   : > { %v9769_v3 = vadd.f32 %v13353_v26, %v16085_v10  ;;  %v9763_v16 = vpop.f32.mrb[191].mxu0 }
 0x7ab   : > { %v9764_v13 = vadd.f32 %v16085_v10, %v9763_v16 }
 0x7ac   : > { %9900 = vst.msk [vmem:[%s16091_s21 + $0x3f8] sm:$0xff] %vm9772_vm3, %v9769_v3 }
 0x7ad   : > { %9899 = vst.msk [vmem:[%s16091_s21 + $0x3f0] sm:$0xff] %vm9772_vm3, %v9764_v13 }
 0x7ae PF: > { %s22_s8 = sadd.s32 1, %s13786_s8   ;;  %s16595_s24 = smov %s13762_s25 }
 0x7af   : > { %p19_p1 = scmp.ge.s32.totalorder %s22_s8, 6   ;;  %s16596_s25 = smov %s13766_s26 }
 0x7b0   : > { %s16597_s26 = smov %s14020_s13  ;;  %s16598_s27 = smov %s13778_s29 }
 0x7b1   : > { %s16599_s28 = smov %s13782_s30  ;;  %s16600_s29 = smov %s16603_s2 }
 0x7b2   : > { %s16601_s30 = smov %s16607_s4  ;;  %21 = sbr.rel (!%p19_p1) target bundleno = 11 (0xb), region = 111 }
 0x7b9   :  { %9931 = vsyncpa [#allocation3], 1 }
 0x7ba   :  { %9933 = vsyncpa [#allocation3 + $0x1], 1 }
 0x7bb   :  { %9934 = vsyncpa [#allocation5], 1 }
 0x7bc   :  { %9935 = vsyncpa [#allocation8], 1 }

</bundles_post_ra>
